<compile_context>
chip_gen: v7x
topology: tpu7x:2x2x1
jax: 0.10.0
libtpu: 0.0.40
codegen_flags: <defaults>
</compile_context>

<pallas_src>
import functools

import jax
import jax.numpy as jnp
import numpy as np
from jax.experimental import pallas as pl
from jax.experimental.pallas import tpu as pltpu

CP = 128  # carried channel padding = one vreg/MXU lane tile


def _pick_tm(m, cap=256):
    """Largest row tile <= cap dividing m, preferring >=2 tiles (v7x megacore)."""
    assert m % 8 == 0, m
    tm = min(cap, m)
    if m >= 16 and (m // 2) % 8 == 0:
        tm = min(tm, m // 2)          # >=2 'parallel' M tiles for v7x's two cores
    while m % tm:
        tm -= 8
    return tm


# ------------------------- fused tap-streamed conv kernel ---------------------------

def _conv_kernel(*refs, taps, has_prologue, prologue_relu, has_epilogue,
                 epilogue_relu, accumulate, pool_taps):
    it = iter(refs)
    a_ref, b_ref = next(it), next(it)
    ps_ref = pb_ref = es_ref = eb_ref = base_ref = None
    if has_prologue:
        ps_ref, pb_ref = next(it), next(it)
    if has_epilogue:
        es_ref, eb_ref = next(it), next(it)
    if accumulate:
        base_ref = next(it)
    o_ref = next(it)

    def bn_relu_f32(t):
        y = a_ref[t].astype(jnp.float32)
        if has_prologue:
            y = y * ps_ref[...] + pb_ref[...]
            if prologue_relu:
                y = jnp.maximum(y, 0.0)
        return y

    if pool_taps:
        # avgpool(BN+ReLU(x)) then a single 1x1 matmul (pool and 1x1 conv commute).
        s = bn_relu_f32(0)
        for t in range(1, taps):
            s = s + bn_relu_f32(t)
        lhs = (s * (1.0 / taps)).astype(jnp.bfloat16)
        acc = jnp.dot(lhs, b_ref[0], preferred_element_type=jnp.float32)
    else:
        # per-tap matmul, summed in f32 registers (no reduction grid axis, no scratch)
        acc = None
        for t in range(taps):
            lhs = a_ref[t] if not has_prologue else bn_relu_f32(t).astype(jnp.bfloat16)
            d = jnp.dot(lhs, b_ref[t], preferred_element_type=jnp.float32)
            acc = d if acc is None else acc + d

    if has_epilogue:
        acc = acc * es_ref[...] + eb_ref[...]
        if epilogue_relu:
            acc = jnp.maximum(acc, 0.0)
    if accumulate:
        # carried block buffer: not-yet-written channels are exactly 0, so a plain
        # add places this layer's GROWTH channels at their concat offset.
        acc = acc + base_ref[...].astype(jnp.float32)
    o_ref[...] = acc.astype(o_ref.dtype)


def fused_conv(a_taps, b, *, pscale=None, pshift=None, prologue_relu=False,
               escale=None, eshift=None, epilogue_relu=False,
               base=None, pool_taps=False, out_dtype=jnp.bfloat16):
    """Tap-streamed conv: relu?(BN(a_tap)) -> matmul(s) -> BN?(+relu?) -> +base?."""
    T, M, Kp = a_taps.shape
    Tb, Kpb, Np = b.shape
    assert Kp == Kpb and Kp % 128 == 0 and Np % 128 == 0 and M % 8 == 0
    has_pro = pscale is not None
    has_epi = escale is not None
    accumulate = base is not None
    tm, tn = _pick_tm(M), 128
    grid = (M // tm, Np // tn)

    in_specs = [pl.BlockSpec((T, tm, Kp), lambda i, j: (0, i, 0)),
                pl.BlockSpec((Tb, Kp, tn), lambda i, j: (0, 0, j))]
    args = [a_taps, b]
    if has_pro:
        in_specs += [pl.BlockSpec((1, Kp), lambda i, j: (0, 0)),
                     pl.BlockSpec((1, Kp), lambda i, j: (0, 0))]
        args += [pscale.reshape(1, Kp), pshift.reshape(1, Kp)]
    if has_epi:
        in_specs += [pl.BlockSpec((1, tn), lambda i, j: (0, j)),
                     pl.BlockSpec((1, tn), lambda i, j: (0, j))]
        args += [escale.reshape(1, Np), eshift.reshape(1, Np)]
    io_alias = {}
    if accumulate:
        assert base.shape == (M, Np) and base.dtype == out_dtype
        in_specs += [pl.BlockSpec((tm, tn), lambda i, j: (i, j))]
        args += [base]
        io_alias = {len(args) - 1: 0}     # base aliases the output buffer

    kern = functools.partial(
        _conv_kernel, taps=T, has_prologue=has_pro, prologue_relu=prologue_relu,
        has_epilogue=has_epi, epilogue_relu=epilogue_relu,
        accumulate=accumulate, pool_taps=pool_taps)
    return pl.pallas_call(
        kern,
        out_shape=jax.ShapeDtypeStruct((M, Np), out_dtype),
        grid=grid,
        in_specs=in_specs,
        out_specs=pl.BlockSpec((tm, tn), lambda i, j: (i, j)),
        input_output_aliases=io_alias,
        compiler_params=pltpu.CompilerParams(
            dimension_semantics=("parallel", "parallel")),
    )(*args)


# ----------------------------------- max pool ----------------------------------------

def _maxpool_kernel(a_ref, o_ref, *, taps):
    m = a_ref[0].astype(jnp.float32)
    for t in range(1, taps):
        m = jnp.maximum(m, a_ref[t].astype(jnp.float32))
    o_ref[...] = m.astype(o_ref.dtype)


def maxpool_3x3_s2_p1(x):
    N, H, W, Cp = x.shape
    neg = jnp.full((Cp,), -1e30, jnp.float32)   # ~ -inf pad (padded lanes stay 0)
    taps, (n, oh, ow) = extract_taps(x, 3, 3, 2, 1, neg)
    M = n * oh * ow
    tm = _pick_tm(M)
    out = pl.pallas_call(
        functools.partial(_maxpool_kernel, taps=9),
        out_shape=jax.ShapeDtypeStruct((M, Cp), x.dtype),
        grid=(M // tm,),
        in_specs=[pl.BlockSpec((9, tm, Cp), lambda i: (0, i, 0))],
        out_specs=pl.BlockSpec((tm, Cp), lambda i: (i, 0)),
        compiler_params=pltpu.CompilerParams(dimension_semantics=("parallel",)),
    )(taps)
    return out.reshape(n, oh, ow, Cp)


# ------------------- head: norm5 + relu + global average pool ------------------------

def _head_kernel(x_ref, s_ref, b_ref, o_ref, *, inv_hw):
    y = jnp.maximum(x_ref[...].astype(jnp.float32) * s_ref[...] + b_ref[...], 0.0)
    o_ref[...] = jnp.sum(y, axis=1) * inv_hw


def bn_relu_gap(x_nhwc, scale, shift, c_real):
    """norm5 + F.relu + F.adaptive_avg_pool2d((1,1)) + flatten, one lane-dense pass."""
    N, H, W, Cp = x_nhwc.shape
    hw = H * W
    x3 = x_nhwc.reshape(N, hw, Cp)
    out = pl.pallas_call(
        functools.partial(_head_kernel, inv_hw=1.0 / hw),
        out_shape=jax.ShapeDtypeStruct((N, Cp), jnp.float32),
        grid=(1,),
        in_specs=[pl.BlockSpec((N, hw, Cp), lambda i: (0, 0, 0)),
                  pl.BlockSpec((1, 1, Cp), lambda i: (0, 0, 0)),
                  pl.BlockSpec((1, 1, Cp), lambda i: (0, 0, 0))],
        out_specs=pl.BlockSpec((N, Cp), lambda i: (0, 0)),
        compiler_params=pltpu.CompilerParams(dimension_semantics=("arbitrary",)),
    )(x3, scale.reshape(1, 1, Cp), shift.reshape(1, 1, Cp))
    return out[:, :c_real]
    # TODO(synk): tile HW as a reduction grid axis (accumulating into the f32 o_ref)
    #             for real 7x7+ feature maps.


# ----------------------------------- JAX glue -----------------------------------------

def extract_taps(x, kh, kw, stride, pad, pad_val_row=None):
    """(N,H,W,Cp) -> (kh*kw, N*oh*ow, Cp) tap stack, NO transpose (tap axis leading)."""
    N, H, W, Cp = x.shape
    if pad:
        assert pad_val_row is not None
        Hp, Wp = H + 2 * pad, W + 2 * pad
        base = jnp.broadcast_to(pad_val_row.reshape(1, 1, 1, Cp).astype(x.dtype),
                                (N, Hp, Wp, Cp))
        x = jax.lax.dynamic_update_slice(base, x, (0, pad, pad, 0))
    else:
        Hp, Wp = H, W
    oh = (Hp - kh) // stride + 1
    ow = (Wp - kw) // stride + 1
    taps = [x[:, i:i + stride * (oh - 1) + 1:stride,
              j:j + stride * (ow - 1) + 1:stride, :]
            for i in range(kh) for j in range(kw)]
    wins = jnp.stack(taps, axis=0).reshape(kh * kw, N * oh * ow, Cp)
    return wins, (N, oh, ow)
    # TODO(synk): at large spatial sizes, index taps straight out of the padded NHWC
    #             tensor via the A index_map instead of materializing the tap stack.


# ----------------------------- tiny DenseNet config -----------------------------------

IN_CH = 3
INIT_FEATURES = 8
GROWTH = 4
BN_SIZE = 2
BLOCK_CONFIG = (2, 2)


def conv_init(key, kh, kw, cin, cout):
    fan_in = kh * kw * cin
    return (jax.random.normal(key, (kh, kw, cin, cout), jnp.float32)
            * np.sqrt(2.0 / fan_in)).astype(jnp.float32)


def bn_init(key, c):
    k1, k2, k3, k4 = jax.random.split(key, 4)
    return {
        "gamma": jax.random.uniform(k1, (c,), jnp.float32, 0.5, 1.5),
        "beta": jax.random.normal(k2, (c,), jnp.float32) * 0.1,
        "mean": jax.random.normal(k3, (c,), jnp.float32) * 0.1,
        "var": jax.random.uniform(k4, (c,), jnp.float32, 0.5, 1.5),
    }


def bn_fold(p, eps=1e-5):
    scale = p["gamma"] / jnp.sqrt(p["var"] + eps)
    shift = p["beta"] - p["mean"] * scale
    return scale, shift


def init_params(key):
    keys = iter(jax.random.split(key, 128))
    params = {"conv0": conv_init(next(keys), 7, 7, IN_CH, INIT_FEATURES),
              "norm0": bn_init(next(keys), INIT_FEATURES),
              "blocks": []}
    c = INIT_FEATURES
    for bi, nlayers in enumerate(BLOCK_CONFIG):
        layers = []
        for li in range(nlayers):
            cin = c + li * GROWTH
            layers.append({
                "norm1": bn_init(next(keys), cin),
                "conv1": conv_init(next(keys), 1, 1, cin, BN_SIZE * GROWTH),
                "norm2": bn_init(next(keys), BN_SIZE * GROWTH),
                "conv2": conv_init(next(keys), 3, 3, BN_SIZE * GROWTH, GROWTH),
            })
        c += nlayers * GROWTH
        block = {"layers": layers}
        if bi != len(BLOCK_CONFIG) - 1:
            block["trans_norm"] = bn_init(next(keys), c)
            block["trans_conv"] = conv_init(next(keys), 1, 1, c, c // 2)
            c //= 2
        params["blocks"].append(block)
    params["norm5"] = bn_init(next(keys), c)
    return params, c


# ------------------------ one-time weight / affine preparation ------------------------

def _pad_weight(w, col_offset=0):
    kh, kw, cin, cout = w.shape
    assert cin <= CP and col_offset + cout <= CP
    wp = jnp.zeros((kh * kw, CP, CP), jnp.float32)
    wp = wp.at[:, :cin, col_offset:col_offset + cout].set(w.reshape(kh * kw, cin, cout))
    return wp.astype(jnp.bfloat16)


def _pad_affine(scale, shift):
    s = jnp.ones((CP,), jnp.float32).at[:scale.shape[0]].set(scale)
    b = jnp.zeros((CP,), jnp.float32).at[:shift.shape[0]].set(shift)
    return s, b


def prepare_params(params):
    """Fold BN running stats and pad everything to the 128-lane layout ONCE."""
    prep = {"w0": _pad_weight(params["conv0"]), "blocks": []}
    prep["e0s"], prep["e0b"] = _pad_affine(*bn_fold(params["norm0"]))
    c = INIT_FEATURES
    for block in params["blocks"]:
        layers = []
        for li, lp in enumerate(block["layers"]):
            cin = c + li * GROWTH
            s1, b1 = _pad_affine(*bn_fold(lp["norm1"]))
            s2, b2 = _pad_affine(*bn_fold(lp["norm2"]))
            # spatial pad value so that ReLU(BN(pad)) == 0 (padded lanes -> 0).
            pad2 = (-b2 / jnp.where(s2 == 0, 1.0, s2)).astype(jnp.bfloat16)
            layers.append({
                "s1": s1, "b1": b1, "w1": _pad_weight(lp["conv1"]),
                "s2": s2, "b2": b2, "pad2": pad2,
                # conv2 output columns placed at the dense-concat channel offset.
                "w2": _pad_weight(lp["conv2"], col_offset=cin),
            })
        c += len(block["layers"]) * GROWTH
        pblock = {"layers": layers}
        if "trans_conv" in block:
            pblock["st"], pblock["bt"] = _pad_affine(*bn_fold(block["trans_norm"]))
            pblock["wt"] = _pad_weight(block["trans_conv"])
            c //= 2
        prep["blocks"].append(pblock)
    prep["s5"], prep["b5"] = _pad_affine(*bn_fold(params["norm5"]))
    return prep


# ------------------------------------- forward ----------------------------------------

def dense_layer(h_nhwc, lp):
    N, H, W, Cp = h_nhwc.shape
    buf = h_nhwc.reshape(N * H * W, Cp)
    # norm1 + relu fused into the 1x1 conv1 (no epilogue -> emits no epilogue code).
    h1 = fused_conv(buf[None], lp["w1"], pscale=lp["s1"], pshift=lp["b1"],
                    prologue_relu=True)
    # norm2 + relu fused into the 3x3 conv2; result added in place into the carried
    # block buffer (input_output_aliases) -> no concat, O(L) traffic per block.
    taps, _ = extract_taps(h1.reshape(N, H, W, Cp), 3, 3, 1, 1, lp["pad2"])
    buf = fused_conv(taps, lp["w2"], pscale=lp["s2"], pshift=lp["b2"],
                     prologue_relu=True, base=buf)
    return buf.reshape(N, H, W, Cp)


def transition(h_nhwc, pb):
    # BN+ReLU -> 1x1 conv -> avgpool(2,2)/2 fused into one kernel (pool-then-matmul).
    taps, (n, oh, ow) = extract_taps(h_nhwc, 2, 2, 2, 0)
    out = fused_conv(taps, pb["wt"], pscale=pb["st"], pshift=pb["bt"],
                     prologue_relu=True, pool_taps=True)
    return out.reshape(n, oh, ow, CP)


def densenet_base_forward(x_nchw, prep, out_features):
    x = jnp.transpose(x_nchw, (0, 2, 3, 1))                     # NCHW -> NHWC
    N, H, W, Cin = x.shape
    xp = jnp.zeros((N, H, W, CP), jnp.bfloat16).at[..., :Cin].set(x.astype(jnp.bfloat16))
    # conv0 (7x7/2 p3, zero pad) with norm0 + relu0 fused as its epilogue.
    taps, (n, oh, ow) = extract_taps(xp, 7, 7, 2, 3, jnp.zeros((CP,), jnp.bfloat16))
    h = fused_conv(taps, prep["w0"], escale=prep["e0s"], eshift=prep["e0b"],
                   epilogue_relu=True).reshape(n, oh, ow, CP)
    h = maxpool_3x3_s2_p1(h)                                    # pool0
    for pb in prep["blocks"]:
        for lp in pb["layers"]:
            h = dense_layer(h, lp)
        if "wt" in pb:
            h = transition(h, pb)
    # norm5 + F.relu + F.adaptive_avg_pool2d((1,1)) + torch.flatten(., 1)
    return bn_relu_gap(h, prep["s5"], prep["b5"], out_features)


# --------------------------------------- main -----------------------------------------

if __name__ == "__main__":
    key = jax.random.PRNGKey(0)
    k_param, k_input = jax.random.split(key)
    params, out_features = init_params(k_param)
    prep = prepare_params(params)        # fold BN + pad weights/affines once

    x = jax.random.normal(k_input, (2, IN_CH, 16, 16), jnp.float32)   # NCHW like PyTorch

    fwd = jax.jit(densenet_base_forward, static_argnames=("out_features",))
    out = jax.block_until_ready(fwd(x, prep, out_features=out_features))

    assert out.shape == (2, out_features), out.shape
    assert bool(jnp.all(jnp.isfinite(out)))
    assert bool(jnp.all(out >= 0.0))     # mean of ReLU'd features is non-negative
    print("KERNEL_OK")
</pallas_src>

<mosaic_0001>
module attributes {stable_mosaic.version = 11 : i64} {
  func.func @_conv_kernel(%arg0: i32, %arg1: i32, %arg2: memref<49x64x128xbf16, #tpu.memory_space<vmem>>, %arg3: memref<49x128x128xbf16, #tpu.memory_space<vmem>>, %arg4: memref<1x128xf32, #tpu.memory_space<vmem>>, %arg5: memref<1x128xf32, #tpu.memory_space<vmem>>, %arg6: memref<64x128xbf16, #tpu.memory_space<vmem>>) attributes {dimension_semantics = [#tpu.dimension_semantics<parallel>, #tpu.dimension_semantics<parallel>], iteration_bounds = array<i64: 2, 1>, scalar_prefetch = 0 : i64, scratch_operands = 0 : i64, tpu.core_type = #tpu.core_type<tc>, window_params = [{transform_indices = @transform_0, window_bounds = array<i64: 49, 64, 128>}, {transform_indices = @transform_1, window_bounds = array<i64: 49, 128, 128>}, {transform_indices = @transform_2, window_bounds = array<i64: 1, 128>}, {transform_indices = @transform_3, window_bounds = array<i64: 1, 128>}, {transform_indices = @transform_4, window_bounds = array<i64: 64, 128>}]} {
    %c0 = arith.constant 0 : index
    %c0_0 = arith.constant 0 : index
    %c0_1 = arith.constant 0 : index
    %0 = vector.load %arg2[%c0, %c0_0, %c0_1] : memref<49x64x128xbf16, #tpu.memory_space<vmem>>, vector<1x64x128xbf16>
    %1 = vector.shape_cast %0 : vector<1x64x128xbf16> to vector<64x128xbf16>
    %c0_2 = arith.constant 0 : index
    %c0_3 = arith.constant 0 : index
    %c0_4 = arith.constant 0 : index
    %2 = vector.load %arg3[%c0_2, %c0_3, %c0_4] : memref<49x128x128xbf16, #tpu.memory_space<vmem>>, vector<1x128x128xbf16>
    %3 = vector.shape_cast %2 : vector<1x128x128xbf16> to vector<128x128xbf16>
    %cst = arith.constant dense<0.000000e+00> : vector<64x128xf32>
    %4 = tpu.matmul %1, %3, %cst {dimension_numbers = #tpu.dot_dimension_numbers<[1], [0], [0], [1], [0, 0, 1, 1], [], []>} : vector<64x128xbf16>, vector<128x128xbf16>, vector<64x128xf32> -> vector<64x128xf32>
    %c1 = arith.constant 1 : index
    %c0_5 = arith.constant 0 : index
    %c0_6 = arith.constant 0 : index
    %5 = vector.load %arg2[%c1, %c0_5, %c0_6] : memref<49x64x128xbf16, #tpu.memory_space<vmem>>, vector<1x64x128xbf16>
    %6 = vector.shape_cast %5 : vector<1x64x128xbf16> to vector<64x128xbf16>
    %c1_7 = arith.constant 1 : index
    %c0_8 = arith.constant 0 : index
    %c0_9 = arith.constant 0 : index
    %7 = vector.load %arg3[%c1_7, %c0_8, %c0_9] : memref<49x128x128xbf16, #tpu.memory_space<vmem>>, vector<1x128x128xbf16>
    %8 = vector.shape_cast %7 : vector<1x128x128xbf16> to vector<128x128xbf16>
    %cst_10 = arith.constant dense<0.000000e+00> : vector<64x128xf32>
    %9 = tpu.matmul %6, %8, %cst_10 {dimension_numbers = #tpu.dot_dimension_numbers<[1], [0], [0], [1], [0, 0, 1, 1], [], []>} : vector<64x128xbf16>, vector<128x128xbf16>, vector<64x128xf32> -> vector<64x128xf32>
    %10 = arith.addf %4, %9 : vector<64x128xf32>
    %c2 = arith.constant 2 : index
    %c0_11 = arith.constant 0 : index
    %c0_12 = arith.constant 0 : index
    %11 = vector.load %arg2[%c2, %c0_11, %c0_12] : memref<49x64x128xbf16, #tpu.memory_space<vmem>>, vector<1x64x128xbf16>
    %12 = vector.shape_cast %11 : vector<1x64x128xbf16> to vector<64x128xbf16>
    %c2_13 = arith.constant 2 : index
    %c0_14 = arith.constant 0 : index
    %c0_15 = arith.constant 0 : index
    %13 = vector.load %arg3[%c2_13, %c0_14, %c0_15] : memref<49x128x128xbf16, #tpu.memory_space<vmem>>, vector<1x128x128xbf16>
    %14 = vector.shape_cast %13 : vector<1x128x128xbf16> to vector<128x128xbf16>
    %cst_16 = arith.constant dense<0.000000e+00> : vector<64x128xf32>
    %15 = tpu.matmul %12, %14, %cst_16 {dimension_numbers = #tpu.dot_dimension_numbers<[1], [0], [0], [1], [0, 0, 1, 1], [], []>} : vector<64x128xbf16>, vector<128x128xbf16>, vector<64x128xf32> -> vector<64x128xf32>
    %16 = arith.addf %10, %15 : vector<64x128xf32>
    %c3 = arith.constant 3 : index
    %c0_17 = arith.constant 0 : index
    %c0_18 = arith.constant 0 : index
    %17 = vector.load %arg2[%c3, %c0_17, %c0_18] : memref<49x64x128xbf16, #tpu.memory_space<vmem>>, vector<1x64x128xbf16>
    %18 = vector.shape_cast %17 : vector<1x64x128xbf16> to vector<64x128xbf16>
    %c3_19 = arith.constant 3 : index
    %c0_20 = arith.constant 0 : index
    %c0_21 = arith.constant 0 : index
    %19 = vector.load %arg3[%c3_19, %c0_20, %c0_21] : memref<49x128x128xbf16, #tpu.memory_space<vmem>>, vector<1x128x128xbf16>
    %20 = vector.shape_cast %19 : vector<1x128x128xbf16> to vector<128x128xbf16>
    %cst_22 = arith.constant dense<0.000000e+00> : vector<64x128xf32>
    %21 = tpu.matmul %18, %20, %cst_22 {dimension_numbers = #tpu.dot_dimension_numbers<[1], [0], [0], [1], [0, 0, 1, 1], [], []>} : vector<64x128xbf16>, vector<128x128xbf16>, vector<64x128xf32> -> vector<64x128xf32>
    %22 = arith.addf %16, %21 : vector<64x128xf32>
    %c4 = arith.constant 4 : index
    %c0_23 = arith.constant 0 : index
    %c0_24 = arith.constant 0 : index
    %23 = vector.load %arg2[%c4, %c0_23, %c0_24] : memref<49x64x128xbf16, #tpu.memory_space<vmem>>, vector<1x64x128xbf16>
    %24 = vector.shape_cast %23 : vector<1x64x128xbf16> to vector<64x128xbf16>
    %c4_25 = arith.constant 4 : index
    %c0_26 = arith.constant 0 : index
    %c0_27 = arith.constant 0 : index
    %25 = vector.load %arg3[%c4_25, %c0_26, %c0_27] : memref<49x128x128xbf16, #tpu.memory_space<vmem>>, vector<1x128x128xbf16>
    %26 = vector.shape_cast %25 : vector<1x128x128xbf16> to vector<128x128xbf16>
    %cst_28 = arith.constant dense<0.000000e+00> : vector<64x128xf32>
    %27 = tpu.matmul %24, %26, %cst_28 {dimension_numbers = #tpu.dot_dimension_numbers<[1], [0], [0], [1], [0, 0, 1, 1], [], []>} : vector<64x128xbf16>, vector<128x128xbf16>, vector<64x128xf32> -> vector<64x128xf32>
    %28 = arith.addf %22, %27 : vector<64x128xf32>
    %c5 = arith.constant 5 : index
    %c0_29 = arith.constant 0 : index
    %c0_30 = arith.constant 0 : index
    %29 = vector.load %arg2[%c5, %c0_29, %c0_30] : memref<49x64x128xbf16, #tpu.memory_space<vmem>>, vector<1x64x128xbf16>
    %30 = vector.shape_cast %29 : vector<1x64x128xbf16> to vector<64x128xbf16>
    %c5_31 = arith.constant 5 : index
    %c0_32 = arith.constant 0 : index
    %c0_33 = arith.constant 0 : index
    %31 = vector.load %arg3[%c5_31, %c0_32, %c0_33] : memref<49x128x128xbf16, #tpu.memory_space<vmem>>, vector<1x128x128xbf16>
    %32 = vector.shape_cast %31 : vector<1x128x128xbf16> to vector<128x128xbf16>
    %cst_34 = arith.constant dense<0.000000e+00> : vector<64x128xf32>
    %33 = tpu.matmul %30, %32, %cst_34 {dimension_numbers = #tpu.dot_dimension_numbers<[1], [0], [0], [1], [0, 0, 1, 1], [], []>} : vector<64x128xbf16>, vector<128x128xbf16>, vector<64x128xf32> -> vector<64x128xf32>
    %34 = arith.addf %28, %33 : vector<64x128xf32>
    %c6 = arith.constant 6 : index
    %c0_35 = arith.constant 0 : index
    %c0_36 = arith.constant 0 : index
    %35 = vector.load %arg2[%c6, %c0_35, %c0_36] : memref<49x64x128xbf16, #tpu.memory_space<vmem>>, vector<1x64x128xbf16>
    %36 = vector.shape_cast %35 : vector<1x64x128xbf16> to vector<64x128xbf16>
    %c6_37 = arith.constant 6 : index
    %c0_38 = arith.constant 0 : index
    %c0_39 = arith.constant 0 : index
    %37 = vector.load %arg3[%c6_37, %c0_38, %c0_39] : memref<49x128x128xbf16, #tpu.memory_space<vmem>>, vector<1x128x128xbf16>
    %38 = vector.shape_cast %37 : vector<1x128x128xbf16> to vector<128x128xbf16>
    %cst_40 = arith.constant dense<0.000000e+00> : vector<64x128xf32>
    %39 = tpu.matmul %36, %38, %cst_40 {dimension_numbers = #tpu.dot_dimension_numbers<[1], [0], [0], [1], [0, 0, 1, 1], [], []>} : vector<64x128xbf16>, vector<128x128xbf16>, vector<64x128xf32> -> vector<64x128xf32>
    %40 = arith.addf %34, %39 : vector<64x128xf32>
    %c7 = arith.constant 7 : index
    %c0_41 = arith.constant 0 : index
    %c0_42 = arith.constant 0 : index
    %41 = vector.load %arg2[%c7, %c0_41, %c0_42] : memref<49x64x128xbf16, #tpu.memory_space<vmem>>, vector<1x64x128xbf16>
    %42 = vector.shape_cast %41 : vector<1x64x128xbf16> to vector<64x128xbf16>
    %c7_43 = arith.constant 7 : index
    %c0_44 = arith.constant 0 : index
    %c0_45 = arith.constant 0 : index
    %43 = vector.load %arg3[%c7_43, %c0_44, %c0_45] : memref<49x128x128xbf16, #tpu.memory_space<vmem>>, vector<1x128x128xbf16>
    %44 = vector.shape_cast %43 : vector<1x128x128xbf16> to vector<128x128xbf16>
    %cst_46 = arith.constant dense<0.000000e+00> : vector<64x128xf32>
    %45 = tpu.matmul %42, %44, %cst_46 {dimension_numbers = #tpu.dot_dimension_numbers<[1], [0], [0], [1], [0, 0, 1, 1], [], []>} : vector<64x128xbf16>, vector<128x128xbf16>, vector<64x128xf32> -> vector<64x128xf32>
    %46 = arith.addf %40, %45 : vector<64x128xf32>
    %c8 = arith.constant 8 : index
    %c0_47 = arith.constant 0 : index
    %c0_48 = arith.constant 0 : index
    %47 = vector.load %arg2[%c8, %c0_47, %c0_48] : memref<49x64x128xbf16, #tpu.memory_space<vmem>>, vector<1x64x128xbf16>
    %48 = vector.shape_cast %47 : vector<1x64x128xbf16> to vector<64x128xbf16>
    %c8_49 = arith.constant 8 : index
    %c0_50 = arith.constant 0 : index
    %c0_51 = arith.constant 0 : index
    %49 = vector.load %arg3[%c8_49, %c0_50, %c0_51] : memref<49x128x128xbf16, #tpu.memory_space<vmem>>, vector<1x128x128xbf16>
    %50 = vector.shape_cast %49 : vector<1x128x128xbf16> to vector<128x128xbf16>
    %cst_52 = arith.constant dense<0.000000e+00> : vector<64x128xf32>
    %51 = tpu.matmul %48, %50, %cst_52 {dimension_numbers = #tpu.dot_dimension_numbers<[1], [0], [0], [1], [0, 0, 1, 1], [], []>} : vector<64x128xbf16>, vector<128x128xbf16>, vector<64x128xf32> -> vector<64x128xf32>
    %52 = arith.addf %46, %51 : vector<64x128xf32>
    %c9 = arith.constant 9 : index
    %c0_53 = arith.constant 0 : index
    %c0_54 = arith.constant 0 : index
    %53 = vector.load %arg2[%c9, %c0_53, %c0_54] : memref<49x64x128xbf16, #tpu.memory_space<vmem>>, vector<1x64x128xbf16>
    %54 = vector.shape_cast %53 : vector<1x64x128xbf16> to vector<64x128xbf16>
    %c9_55 = arith.constant 9 : index
    %c0_56 = arith.constant 0 : index
    %c0_57 = arith.constant 0 : index
    %55 = vector.load %arg3[%c9_55, %c0_56, %c0_57] : memref<49x128x128xbf16, #tpu.memory_space<vmem>>, vector<1x128x128xbf16>
    %56 = vector.shape_cast %55 : vector<1x128x128xbf16> to vector<128x128xbf16>
    %cst_58 = arith.constant dense<0.000000e+00> : vector<64x128xf32>
    %57 = tpu.matmul %54, %56, %cst_58 {dimension_numbers = #tpu.dot_dimension_numbers<[1], [0], [0], [1], [0, 0, 1, 1], [], []>} : vector<64x128xbf16>, vector<128x128xbf16>, vector<64x128xf32> -> vector<64x128xf32>
    %58 = arith.addf %52, %57 : vector<64x128xf32>
    %c10 = arith.constant 10 : index
    %c0_59 = arith.constant 0 : index
    %c0_60 = arith.constant 0 : index
    %59 = vector.load %arg2[%c10, %c0_59, %c0_60] : memref<49x64x128xbf16, #tpu.memory_space<vmem>>, vector<1x64x128xbf16>
    %60 = vector.shape_cast %59 : vector<1x64x128xbf16> to vector<64x128xbf16>
    %c10_61 = arith.constant 10 : index
    %c0_62 = arith.constant 0 : index
    %c0_63 = arith.constant 0 : index
    %61 = vector.load %arg3[%c10_61, %c0_62, %c0_63] : memref<49x128x128xbf16, #tpu.memory_space<vmem>>, vector<1x128x128xbf16>
    %62 = vector.shape_cast %61 : vector<1x128x128xbf16> to vector<128x128xbf16>
    %cst_64 = arith.constant dense<0.000000e+00> : vector<64x128xf32>
    %63 = tpu.matmul %60, %62, %cst_64 {dimension_numbers = #tpu.dot_dimension_numbers<[1], [0], [0], [1], [0, 0, 1, 1], [], []>} : vector<64x128xbf16>, vector<128x128xbf16>, vector<64x128xf32> -> vector<64x128xf32>
    %64 = arith.addf %58, %63 : vector<64x128xf32>
    %c11 = arith.constant 11 : index
    %c0_65 = arith.constant 0 : index
    %c0_66 = arith.constant 0 : index
    %65 = vector.load %arg2[%c11, %c0_65, %c0_66] : memref<49x64x128xbf16, #tpu.memory_space<vmem>>, vector<1x64x128xbf16>
    %66 = vector.shape_cast %65 : vector<1x64x128xbf16> to vector<64x128xbf16>
    %c11_67 = arith.constant 11 : index
    %c0_68 = arith.constant 0 : index
    %c0_69 = arith.constant 0 : index
    %67 = vector.load %arg3[%c11_67, %c0_68, %c0_69] : memref<49x128x128xbf16, #tpu.memory_space<vmem>>, vector<1x128x128xbf16>
    %68 = vector.shape_cast %67 : vector<1x128x128xbf16> to vector<128x128xbf16>
    %cst_70 = arith.constant dense<0.000000e+00> : vector<64x128xf32>
    %69 = tpu.matmul %66, %68, %cst_70 {dimension_numbers = #tpu.dot_dimension_numbers<[1], [0], [0], [1], [0, 0, 1, 1], [], []>} : vector<64x128xbf16>, vector<128x128xbf16>, vector<64x128xf32> -> vector<64x128xf32>
    %70 = arith.addf %64, %69 : vector<64x128xf32>
    %c12 = arith.constant 12 : index
    %c0_71 = arith.constant 0 : index
    %c0_72 = arith.constant 0 : index
    %71 = vector.load %arg2[%c12, %c0_71, %c0_72] : memref<49x64x128xbf16, #tpu.memory_space<vmem>>, vector<1x64x128xbf16>
    %72 = vector.shape_cast %71 : vector<1x64x128xbf16> to vector<64x128xbf16>
    %c12_73 = arith.constant 12 : index
    %c0_74 = arith.constant 0 : index
    %c0_75 = arith.constant 0 : index
    %73 = vector.load %arg3[%c12_73, %c0_74, %c0_75] : memref<49x128x128xbf16, #tpu.memory_space<vmem>>, vector<1x128x128xbf16>
    %74 = vector.shape_cast %73 : vector<1x128x128xbf16> to vector<128x128xbf16>
    %cst_76 = arith.constant dense<0.000000e+00> : vector<64x128xf32>
    %75 = tpu.matmul %72, %74, %cst_76 {dimension_numbers = #tpu.dot_dimension_numbers<[1], [0], [0], [1], [0, 0, 1, 1], [], []>} : vector<64x128xbf16>, vector<128x128xbf16>, vector<64x128xf32> -> vector<64x128xf32>
    %76 = arith.addf %70, %75 : vector<64x128xf32>
    %c13 = arith.constant 13 : index
    %c0_77 = arith.constant 0 : index
    %c0_78 = arith.constant 0 : index
    %77 = vector.load %arg2[%c13, %c0_77, %c0_78] : memref<49x64x128xbf16, #tpu.memory_space<vmem>>, vector<1x64x128xbf16>
    %78 = vector.shape_cast %77 : vector<1x64x128xbf16> to vector<64x128xbf16>
    %c13_79 = arith.constant 13 : index
    %c0_80 = arith.constant 0 : index
    %c0_81 = arith.constant 0 : index
    %79 = vector.load %arg3[%c13_79, %c0_80, %c0_81] : memref<49x128x128xbf16, #tpu.memory_space<vmem>>, vector<1x128x128xbf16>
    %80 = vector.shape_cast %79 : vector<1x128x128xbf16> to vector<128x128xbf16>
    %cst_82 = arith.constant dense<0.000000e+00> : vector<64x128xf32>
    %81 = tpu.matmul %78, %80, %cst_82 {dimension_numbers = #tpu.dot_dimension_numbers<[1], [0], [0], [1], [0, 0, 1, 1], [], []>} : vector<64x128xbf16>, vector<128x128xbf16>, vector<64x128xf32> -> vector<64x128xf32>
    %82 = arith.addf %76, %81 : vector<64x128xf32>
    %c14 = arith.constant 14 : index
    %c0_83 = arith.constant 0 : index
    %c0_84 = arith.constant 0 : index
    %83 = vector.load %arg2[%c14, %c0_83, %c0_84] : memref<49x64x128xbf16, #tpu.memory_space<vmem>>, vector<1x64x128xbf16>
    %84 = vector.shape_cast %83 : vector<1x64x128xbf16> to vector<64x128xbf16>
    %c14_85 = arith.constant 14 : index
    %c0_86 = arith.constant 0 : index
    %c0_87 = arith.constant 0 : index
    %85 = vector.load %arg3[%c14_85, %c0_86, %c0_87] : memref<49x128x128xbf16, #tpu.memory_space<vmem>>, vector<1x128x128xbf16>
    %86 = vector.shape_cast %85 : vector<1x128x128xbf16> to vector<128x128xbf16>
    %cst_88 = arith.constant dense<0.000000e+00> : vector<64x128xf32>
    %87 = tpu.matmul %84, %86, %cst_88 {dimension_numbers = #tpu.dot_dimension_numbers<[1], [0], [0], [1], [0, 0, 1, 1], [], []>} : vector<64x128xbf16>, vector<128x128xbf16>, vector<64x128xf32> -> vector<64x128xf32>
    %88 = arith.addf %82, %87 : vector<64x128xf32>
    %c15 = arith.constant 15 : index
    %c0_89 = arith.constant 0 : index
    %c0_90 = arith.constant 0 : index
    %89 = vector.load %arg2[%c15, %c0_89, %c0_90] : memref<49x64x128xbf16, #tpu.memory_space<vmem>>, vector<1x64x128xbf16>
    %90 = vector.shape_cast %89 : vector<1x64x128xbf16> to vector<64x128xbf16>
    %c15_91 = arith.constant 15 : index
    %c0_92 = arith.constant 0 : index
    %c0_93 = arith.constant 0 : index
    %91 = vector.load %arg3[%c15_91, %c0_92, %c0_93] : memref<49x128x128xbf16, #tpu.memory_space<vmem>>, vector<1x128x128xbf16>
    %92 = vector.shape_cast %91 : vector<1x128x128xbf16> to vector<128x128xbf16>
    %cst_94 = arith.constant dense<0.000000e+00> : vector<64x128xf32>
    %93 = tpu.matmul %90, %92, %cst_94 {dimension_numbers = #tpu.dot_dimension_numbers<[1], [0], [0], [1], [0, 0, 1, 1], [], []>} : vector<64x128xbf16>, vector<128x128xbf16>, vector<64x128xf32> -> vector<64x128xf32>
    %94 = arith.addf %88, %93 : vector<64x128xf32>
    %c16 = arith.constant 16 : index
    %c0_95 = arith.constant 0 : index
    %c0_96 = arith.constant 0 : index
    %95 = vector.load %arg2[%c16, %c0_95, %c0_96] : memref<49x64x128xbf16, #tpu.memory_space<vmem>>, vector<1x64x128xbf16>
    %96 = vector.shape_cast %95 : vector<1x64x128xbf16> to vector<64x128xbf16>
    %c16_97 = arith.constant 16 : index
    %c0_98 = arith.constant 0 : index
    %c0_99 = arith.constant 0 : index
    %97 = vector.load %arg3[%c16_97, %c0_98, %c0_99] : memref<49x128x128xbf16, #tpu.memory_space<vmem>>, vector<1x128x128xbf16>
    %98 = vector.shape_cast %97 : vector<1x128x128xbf16> to vector<128x128xbf16>
    %cst_100 = arith.constant dense<0.000000e+00> : vector<64x128xf32>
    %99 = tpu.matmul %96, %98, %cst_100 {dimension_numbers = #tpu.dot_dimension_numbers<[1], [0], [0], [1], [0, 0, 1, 1], [], []>} : vector<64x128xbf16>, vector<128x128xbf16>, vector<64x128xf32> -> vector<64x128xf32>
    %100 = arith.addf %94, %99 : vector<64x128xf32>
    %c17 = arith.constant 17 : index
    %c0_101 = arith.constant 0 : index
    %c0_102 = arith.constant 0 : index
    %101 = vector.load %arg2[%c17, %c0_101, %c0_102] : memref<49x64x128xbf16, #tpu.memory_space<vmem>>, vector<1x64x128xbf16>
    %102 = vector.shape_cast %101 : vector<1x64x128xbf16> to vector<64x128xbf16>
    %c17_103 = arith.constant 17 : index
    %c0_104 = arith.constant 0 : index
    %c0_105 = arith.constant 0 : index
    %103 = vector.load %arg3[%c17_103, %c0_104, %c0_105] : memref<49x128x128xbf16, #tpu.memory_space<vmem>>, vector<1x128x128xbf16>
    %104 = vector.shape_cast %103 : vector<1x128x128xbf16> to vector<128x128xbf16>
    %cst_106 = arith.constant dense<0.000000e+00> : vector<64x128xf32>
    %105 = tpu.matmul %102, %104, %cst_106 {dimension_numbers = #tpu.dot_dimension_numbers<[1], [0], [0], [1], [0, 0, 1, 1], [], []>} : vector<64x128xbf16>, vector<128x128xbf16>, vector<64x128xf32> -> vector<64x128xf32>
    %106 = arith.addf %100, %105 : vector<64x128xf32>
    %c18 = arith.constant 18 : index
    %c0_107 = arith.constant 0 : index
    %c0_108 = arith.constant 0 : index
    %107 = vector.load %arg2[%c18, %c0_107, %c0_108] : memref<49x64x128xbf16, #tpu.memory_space<vmem>>, vector<1x64x128xbf16>
    %108 = vector.shape_cast %107 : vector<1x64x128xbf16> to vector<64x128xbf16>
    %c18_109 = arith.constant 18 : index
    %c0_110 = arith.constant 0 : index
    %c0_111 = arith.constant 0 : index
    %109 = vector.load %arg3[%c18_109, %c0_110, %c0_111] : memref<49x128x128xbf16, #tpu.memory_space<vmem>>, vector<1x128x128xbf16>
    %110 = vector.shape_cast %109 : vector<1x128x128xbf16> to vector<128x128xbf16>
    %cst_112 = arith.constant dense<0.000000e+00> : vector<64x128xf32>
    %111 = tpu.matmul %108, %110, %cst_112 {dimension_numbers = #tpu.dot_dimension_numbers<[1], [0], [0], [1], [0, 0, 1, 1], [], []>} : vector<64x128xbf16>, vector<128x128xbf16>, vector<64x128xf32> -> vector<64x128xf32>
    %112 = arith.addf %106, %111 : vector<64x128xf32>
    %c19 = arith.constant 19 : index
    %c0_113 = arith.constant 0 : index
    %c0_114 = arith.constant 0 : index
    %113 = vector.load %arg2[%c19, %c0_113, %c0_114] : memref<49x64x128xbf16, #tpu.memory_space<vmem>>, vector<1x64x128xbf16>
    %114 = vector.shape_cast %113 : vector<1x64x128xbf16> to vector<64x128xbf16>
    %c19_115 = arith.constant 19 : index
    %c0_116 = arith.constant 0 : index
    %c0_117 = arith.constant 0 : index
    %115 = vector.load %arg3[%c19_115, %c0_116, %c0_117] : memref<49x128x128xbf16, #tpu.memory_space<vmem>>, vector<1x128x128xbf16>
    %116 = vector.shape_cast %115 : vector<1x128x128xbf16> to vector<128x128xbf16>
    %cst_118 = arith.constant dense<0.000000e+00> : vector<64x128xf32>
    %117 = tpu.matmul %114, %116, %cst_118 {dimension_numbers = #tpu.dot_dimension_numbers<[1], [0], [0], [1], [0, 0, 1, 1], [], []>} : vector<64x128xbf16>, vector<128x128xbf16>, vector<64x128xf32> -> vector<64x128xf32>
    %118 = arith.addf %112, %117 : vector<64x128xf32>
    %c20 = arith.constant 20 : index
    %c0_119 = arith.constant 0 : index
    %c0_120 = arith.constant 0 : index
    %119 = vector.load %arg2[%c20, %c0_119, %c0_120] : memref<49x64x128xbf16, #tpu.memory_space<vmem>>, vector<1x64x128xbf16>
    %120 = vector.shape_cast %119 : vector<1x64x128xbf16> to vector<64x128xbf16>
    %c20_121 = arith.constant 20 : index
    %c0_122 = arith.constant 0 : index
    %c0_123 = arith.constant 0 : index
    %121 = vector.load %arg3[%c20_121, %c0_122, %c0_123] : memref<49x128x128xbf16, #tpu.memory_space<vmem>>, vector<1x128x128xbf16>
    %122 = vector.shape_cast %121 : vector<1x128x128xbf16> to vector<128x128xbf16>
    %cst_124 = arith.constant dense<0.000000e+00> : vector<64x128xf32>
    %123 = tpu.matmul %120, %122, %cst_124 {dimension_numbers = #tpu.dot_dimension_numbers<[1], [0], [0], [1], [0, 0, 1, 1], [], []>} : vector<64x128xbf16>, vector<128x128xbf16>, vector<64x128xf32> -> vector<64x128xf32>
    %124 = arith.addf %118, %123 : vector<64x128xf32>
    %c21 = arith.constant 21 : index
    %c0_125 = arith.constant 0 : index
    %c0_126 = arith.constant 0 : index
    %125 = vector.load %arg2[%c21, %c0_125, %c0_126] : memref<49x64x128xbf16, #tpu.memory_space<vmem>>, vector<1x64x128xbf16>
    %126 = vector.shape_cast %125 : vector<1x64x128xbf16> to vector<64x128xbf16>
    %c21_127 = arith.constant 21 : index
    %c0_128 = arith.constant 0 : index
    %c0_129 = arith.constant 0 : index
    %127 = vector.load %arg3[%c21_127, %c0_128, %c0_129] : memref<49x128x128xbf16, #tpu.memory_space<vmem>>, vector<1x128x128xbf16>
    %128 = vector.shape_cast %127 : vector<1x128x128xbf16> to vector<128x128xbf16>
    %cst_130 = arith.constant dense<0.000000e+00> : vector<64x128xf32>
    %129 = tpu.matmul %126, %128, %cst_130 {dimension_numbers = #tpu.dot_dimension_numbers<[1], [0], [0], [1], [0, 0, 1, 1], [], []>} : vector<64x128xbf16>, vector<128x128xbf16>, vector<64x128xf32> -> vector<64x128xf32>
    %130 = arith.addf %124, %129 : vector<64x128xf32>
    %c22 = arith.constant 22 : index
    %c0_131 = arith.constant 0 : index
    %c0_132 = arith.constant 0 : index
    %131 = vector.load %arg2[%c22, %c0_131, %c0_132] : memref<49x64x128xbf16, #tpu.memory_space<vmem>>, vector<1x64x128xbf16>
    %132 = vector.shape_cast %131 : vector<1x64x128xbf16> to vector<64x128xbf16>
    %c22_133 = arith.constant 22 : index
    %c0_134 = arith.constant 0 : index
    %c0_135 = arith.constant 0 : index
    %133 = vector.load %arg3[%c22_133, %c0_134, %c0_135] : memref<49x128x128xbf16, #tpu.memory_space<vmem>>, vector<1x128x128xbf16>
    %134 = vector.shape_cast %133 : vector<1x128x128xbf16> to vector<128x128xbf16>
    %cst_136 = arith.constant dense<0.000000e+00> : vector<64x128xf32>
    %135 = tpu.matmul %132, %134, %cst_136 {dimension_numbers = #tpu.dot_dimension_numbers<[1], [0], [0], [1], [0, 0, 1, 1], [], []>} : vector<64x128xbf16>, vector<128x128xbf16>, vector<64x128xf32> -> vector<64x128xf32>
    %136 = arith.addf %130, %135 : vector<64x128xf32>
    %c23 = arith.constant 23 : index
    %c0_137 = arith.constant 0 : index
    %c0_138 = arith.constant 0 : index
    %137 = vector.load %arg2[%c23, %c0_137, %c0_138] : memref<49x64x128xbf16, #tpu.memory_space<vmem>>, vector<1x64x128xbf16>
    %138 = vector.shape_cast %137 : vector<1x64x128xbf16> to vector<64x128xbf16>
    %c23_139 = arith.constant 23 : index
    %c0_140 = arith.constant 0 : index
    %c0_141 = arith.constant 0 : index
    %139 = vector.load %arg3[%c23_139, %c0_140, %c0_141] : memref<49x128x128xbf16, #tpu.memory_space<vmem>>, vector<1x128x128xbf16>
    %140 = vector.shape_cast %139 : vector<1x128x128xbf16> to vector<128x128xbf16>
    %cst_142 = arith.constant dense<0.000000e+00> : vector<64x128xf32>
    %141 = tpu.matmul %138, %140, %cst_142 {dimension_numbers = #tpu.dot_dimension_numbers<[1], [0], [0], [1], [0, 0, 1, 1], [], []>} : vector<64x128xbf16>, vector<128x128xbf16>, vector<64x128xf32> -> vector<64x128xf32>
    %142 = arith.addf %136, %141 : vector<64x128xf32>
    %c24 = arith.constant 24 : index
    %c0_143 = arith.constant 0 : index
    %c0_144 = arith.constant 0 : index
    %143 = vector.load %arg2[%c24, %c0_143, %c0_144] : memref<49x64x128xbf16, #tpu.memory_space<vmem>>, vector<1x64x128xbf16>
    %144 = vector.shape_cast %143 : vector<1x64x128xbf16> to vector<64x128xbf16>
    %c24_145 = arith.constant 24 : index
    %c0_146 = arith.constant 0 : index
    %c0_147 = arith.constant 0 : index
    %145 = vector.load %arg3[%c24_145, %c0_146, %c0_147] : memref<49x128x128xbf16, #tpu.memory_space<vmem>>, vector<1x128x128xbf16>
    %146 = vector.shape_cast %145 : vector<1x128x128xbf16> to vector<128x128xbf16>
    %cst_148 = arith.constant dense<0.000000e+00> : vector<64x128xf32>
    %147 = tpu.matmul %144, %146, %cst_148 {dimension_numbers = #tpu.dot_dimension_numbers<[1], [0], [0], [1], [0, 0, 1, 1], [], []>} : vector<64x128xbf16>, vector<128x128xbf16>, vector<64x128xf32> -> vector<64x128xf32>
    %148 = arith.addf %142, %147 : vector<64x128xf32>
    %c25 = arith.constant 25 : index
    %c0_149 = arith.constant 0 : index
    %c0_150 = arith.constant 0 : index
    %149 = vector.load %arg2[%c25, %c0_149, %c0_150] : memref<49x64x128xbf16, #tpu.memory_space<vmem>>, vector<1x64x128xbf16>
    %150 = vector.shape_cast %149 : vector<1x64x128xbf16> to vector<64x128xbf16>
    %c25_151 = arith.constant 25 : index
    %c0_152 = arith.constant 0 : index
    %c0_153 = arith.constant 0 : index
    %151 = vector.load %arg3[%c25_151, %c0_152, %c0_153] : memref<49x128x128xbf16, #tpu.memory_space<vmem>>, vector<1x128x128xbf16>
    %152 = vector.shape_cast %151 : vector<1x128x128xbf16> to vector<128x128xbf16>
    %cst_154 = arith.constant dense<0.000000e+00> : vector<64x128xf32>
    %153 = tpu.matmul %150, %152, %cst_154 {dimension_numbers = #tpu.dot_dimension_numbers<[1], [0], [0], [1], [0, 0, 1, 1], [], []>} : vector<64x128xbf16>, vector<128x128xbf16>, vector<64x128xf32> -> vector<64x128xf32>
    %154 = arith.addf %148, %153 : vector<64x128xf32>
    %c26 = arith.constant 26 : index
    %c0_155 = arith.constant 0 : index
    %c0_156 = arith.constant 0 : index
    %155 = vector.load %arg2[%c26, %c0_155, %c0_156] : memref<49x64x128xbf16, #tpu.memory_space<vmem>>, vector<1x64x128xbf16>
    %156 = vector.shape_cast %155 : vector<1x64x128xbf16> to vector<64x128xbf16>
    %c26_157 = arith.constant 26 : index
    %c0_158 = arith.constant 0 : index
    %c0_159 = arith.constant 0 : index
    %157 = vector.load %arg3[%c26_157, %c0_158, %c0_159] : memref<49x128x128xbf16, #tpu.memory_space<vmem>>, vector<1x128x128xbf16>
    %158 = vector.shape_cast %157 : vector<1x128x128xbf16> to vector<128x128xbf16>
    %cst_160 = arith.constant dense<0.000000e+00> : vector<64x128xf32>
    %159 = tpu.matmul %156, %158, %cst_160 {dimension_numbers = #tpu.dot_dimension_numbers<[1], [0], [0], [1], [0, 0, 1, 1], [], []>} : vector<64x128xbf16>, vector<128x128xbf16>, vector<64x128xf32> -> vector<64x128xf32>
    %160 = arith.addf %154, %159 : vector<64x128xf32>
    %c27 = arith.constant 27 : index
    %c0_161 = arith.constant 0 : index
    %c0_162 = arith.constant 0 : index
    %161 = vector.load %arg2[%c27, %c0_161, %c0_162] : memref<49x64x128xbf16, #tpu.memory_space<vmem>>, vector<1x64x128xbf16>
    %162 = vector.shape_cast %161 : vector<1x64x128xbf16> to vector<64x128xbf16>
    %c27_163 = arith.constant 27 : index
    %c0_164 = arith.constant 0 : index
    %c0_165 = arith.constant 0 : index
    %163 = vector.load %arg3[%c27_163, %c0_164, %c0_165] : memref<49x128x128xbf16, #tpu.memory_space<vmem>>, vector<1x128x128xbf16>
    %164 = vector.shape_cast %163 : vector<1x128x128xbf16> to vector<128x128xbf16>
    %cst_166 = arith.constant dense<0.000000e+00> : vector<64x128xf32>
    %165 = tpu.matmul %162, %164, %cst_166 {dimension_numbers = #tpu.dot_dimension_numbers<[1], [0], [0], [1], [0, 0, 1, 1], [], []>} : vector<64x128xbf16>, vector<128x128xbf16>, vector<64x128xf32> -> vector<64x128xf32>
    %166 = arith.addf %160, %165 : vector<64x128xf32>
    %c28 = arith.constant 28 : index
    %c0_167 = arith.constant 0 : index
    %c0_168 = arith.constant 0 : index
    %167 = vector.load %arg2[%c28, %c0_167, %c0_168] : memref<49x64x128xbf16, #tpu.memory_space<vmem>>, vector<1x64x128xbf16>
    %168 = vector.shape_cast %167 : vector<1x64x128xbf16> to vector<64x128xbf16>
    %c28_169 = arith.constant 28 : index
    %c0_170 = arith.constant 0 : index
    %c0_171 = arith.constant 0 : index
    %169 = vector.load %arg3[%c28_169, %c0_170, %c0_171] : memref<49x128x128xbf16, #tpu.memory_space<vmem>>, vector<1x128x128xbf16>
    %170 = vector.shape_cast %169 : vector<1x128x128xbf16> to vector<128x128xbf16>
    %cst_172 = arith.constant dense<0.000000e+00> : vector<64x128xf32>
    %171 = tpu.matmul %168, %170, %cst_172 {dimension_numbers = #tpu.dot_dimension_numbers<[1], [0], [0], [1], [0, 0, 1, 1], [], []>} : vector<64x128xbf16>, vector<128x128xbf16>, vector<64x128xf32> -> vector<64x128xf32>
    %172 = arith.addf %166, %171 : vector<64x128xf32>
    %c29 = arith.constant 29 : index
    %c0_173 = arith.constant 0 : index
    %c0_174 = arith.constant 0 : index
    %173 = vector.load %arg2[%c29, %c0_173, %c0_174] : memref<49x64x128xbf16, #tpu.memory_space<vmem>>, vector<1x64x128xbf16>
    %174 = vector.shape_cast %173 : vector<1x64x128xbf16> to vector<64x128xbf16>
    %c29_175 = arith.constant 29 : index
    %c0_176 = arith.constant 0 : index
    %c0_177 = arith.constant 0 : index
    %175 = vector.load %arg3[%c29_175, %c0_176, %c0_177] : memref<49x128x128xbf16, #tpu.memory_space<vmem>>, vector<1x128x128xbf16>
    %176 = vector.shape_cast %175 : vector<1x128x128xbf16> to vector<128x128xbf16>
    %cst_178 = arith.constant dense<0.000000e+00> : vector<64x128xf32>
    %177 = tpu.matmul %174, %176, %cst_178 {dimension_numbers = #tpu.dot_dimension_numbers<[1], [0], [0], [1], [0, 0, 1, 1], [], []>} : vector<64x128xbf16>, vector<128x128xbf16>, vector<64x128xf32> -> vector<64x128xf32>
    %178 = arith.addf %172, %177 : vector<64x128xf32>
    %c30 = arith.constant 30 : index
    %c0_179 = arith.constant 0 : index
    %c0_180 = arith.constant 0 : index
    %179 = vector.load %arg2[%c30, %c0_179, %c0_180] : memref<49x64x128xbf16, #tpu.memory_space<vmem>>, vector<1x64x128xbf16>
    %180 = vector.shape_cast %179 : vector<1x64x128xbf16> to vector<64x128xbf16>
    %c30_181 = arith.constant 30 : index
    %c0_182 = arith.constant 0 : index
    %c0_183 = arith.constant 0 : index
    %181 = vector.load %arg3[%c30_181, %c0_182, %c0_183] : memref<49x128x128xbf16, #tpu.memory_space<vmem>>, vector<1x128x128xbf16>
    %182 = vector.shape_cast %181 : vector<1x128x128xbf16> to vector<128x128xbf16>
    %cst_184 = arith.constant dense<0.000000e+00> : vector<64x128xf32>
    %183 = tpu.matmul %180, %182, %cst_184 {dimension_numbers = #tpu.dot_dimension_numbers<[1], [0], [0], [1], [0, 0, 1, 1], [], []>} : vector<64x128xbf16>, vector<128x128xbf16>, vector<64x128xf32> -> vector<64x128xf32>
    %184 = arith.addf %178, %183 : vector<64x128xf32>
    %c31 = arith.constant 31 : index
    %c0_185 = arith.constant 0 : index
    %c0_186 = arith.constant 0 : index
    %185 = vector.load %arg2[%c31, %c0_185, %c0_186] : memref<49x64x128xbf16, #tpu.memory_space<vmem>>, vector<1x64x128xbf16>
    %186 = vector.shape_cast %185 : vector<1x64x128xbf16> to vector<64x128xbf16>
    %c31_187 = arith.constant 31 : index
    %c0_188 = arith.constant 0 : index
    %c0_189 = arith.constant 0 : index
    %187 = vector.load %arg3[%c31_187, %c0_188, %c0_189] : memref<49x128x128xbf16, #tpu.memory_space<vmem>>, vector<1x128x128xbf16>
    %188 = vector.shape_cast %187 : vector<1x128x128xbf16> to vector<128x128xbf16>
    %cst_190 = arith.constant dense<0.000000e+00> : vector<64x128xf32>
    %189 = tpu.matmul %186, %188, %cst_190 {dimension_numbers = #tpu.dot_dimension_numbers<[1], [0], [0], [1], [0, 0, 1, 1], [], []>} : vector<64x128xbf16>, vector<128x128xbf16>, vector<64x128xf32> -> vector<64x128xf32>
    %190 = arith.addf %184, %189 : vector<64x128xf32>
    %c32 = arith.constant 32 : index
    %c0_191 = arith.constant 0 : index
    %c0_192 = arith.constant 0 : index
    %191 = vector.load %arg2[%c32, %c0_191, %c0_192] : memref<49x64x128xbf16, #tpu.memory_space<vmem>>, vector<1x64x128xbf16>
    %192 = vector.shape_cast %191 : vector<1x64x128xbf16> to vector<64x128xbf16>
    %c32_193 = arith.constant 32 : index
    %c0_194 = arith.constant 0 : index
    %c0_195 = arith.constant 0 : index
    %193 = vector.load %arg3[%c32_193, %c0_194, %c0_195] : memref<49x128x128xbf16, #tpu.memory_space<vmem>>, vector<1x128x128xbf16>
    %194 = vector.shape_cast %193 : vector<1x128x128xbf16> to vector<128x128xbf16>
    %cst_196 = arith.constant dense<0.000000e+00> : vector<64x128xf32>
    %195 = tpu.matmul %192, %194, %cst_196 {dimension_numbers = #tpu.dot_dimension_numbers<[1], [0], [0], [1], [0, 0, 1, 1], [], []>} : vector<64x128xbf16>, vector<128x128xbf16>, vector<64x128xf32> -> vector<64x128xf32>
    %196 = arith.addf %190, %195 : vector<64x128xf32>
    %c33 = arith.constant 33 : index
    %c0_197 = arith.constant 0 : index
    %c0_198 = arith.constant 0 : index
    %197 = vector.load %arg2[%c33, %c0_197, %c0_198] : memref<49x64x128xbf16, #tpu.memory_space<vmem>>, vector<1x64x128xbf16>
    %198 = vector.shape_cast %197 : vector<1x64x128xbf16> to vector<64x128xbf16>
    %c33_199 = arith.constant 33 : index
    %c0_200 = arith.constant 0 : index
    %c0_201 = arith.constant 0 : index
    %199 = vector.load %arg3[%c33_199, %c0_200, %c0_201] : memref<49x128x128xbf16, #tpu.memory_space<vmem>>, vector<1x128x128xbf16>
    %200 = vector.shape_cast %199 : vector<1x128x128xbf16> to vector<128x128xbf16>
    %cst_202 = arith.constant dense<0.000000e+00> : vector<64x128xf32>
    %201 = tpu.matmul %198, %200, %cst_202 {dimension_numbers = #tpu.dot_dimension_numbers<[1], [0], [0], [1], [0, 0, 1, 1], [], []>} : vector<64x128xbf16>, vector<128x128xbf16>, vector<64x128xf32> -> vector<64x128xf32>
    %202 = arith.addf %196, %201 : vector<64x128xf32>
    %c34 = arith.constant 34 : index
    %c0_203 = arith.constant 0 : index
    %c0_204 = arith.constant 0 : index
    %203 = vector.load %arg2[%c34, %c0_203, %c0_204] : memref<49x64x128xbf16, #tpu.memory_space<vmem>>, vector<1x64x128xbf16>
    %204 = vector.shape_cast %203 : vector<1x64x128xbf16> to vector<64x128xbf16>
    %c34_205 = arith.constant 34 : index
    %c0_206 = arith.constant 0 : index
    %c0_207 = arith.constant 0 : index
    %205 = vector.load %arg3[%c34_205, %c0_206, %c0_207] : memref<49x128x128xbf16, #tpu.memory_space<vmem>>, vector<1x128x128xbf16>
    %206 = vector.shape_cast %205 : vector<1x128x128xbf16> to vector<128x128xbf16>
    %cst_208 = arith.constant dense<0.000000e+00> : vector<64x128xf32>
    %207 = tpu.matmul %204, %206, %cst_208 {dimension_numbers = #tpu.dot_dimension_numbers<[1], [0], [0], [1], [0, 0, 1, 1], [], []>} : vector<64x128xbf16>, vector<128x128xbf16>, vector<64x128xf32> -> vector<64x128xf32>
    %208 = arith.addf %202, %207 : vector<64x128xf32>
    %c35 = arith.constant 35 : index
    %c0_209 = arith.constant 0 : index
    %c0_210 = arith.constant 0 : index
    %209 = vector.load %arg2[%c35, %c0_209, %c0_210] : memref<49x64x128xbf16, #tpu.memory_space<vmem>>, vector<1x64x128xbf16>
    %210 = vector.shape_cast %209 : vector<1x64x128xbf16> to vector<64x128xbf16>
    %c35_211 = arith.constant 35 : index
    %c0_212 = arith.constant 0 : index
    %c0_213 = arith.constant 0 : index
    %211 = vector.load %arg3[%c35_211, %c0_212, %c0_213] : memref<49x128x128xbf16, #tpu.memory_space<vmem>>, vector<1x128x128xbf16>
    %212 = vector.shape_cast %211 : vector<1x128x128xbf16> to vector<128x128xbf16>
    %cst_214 = arith.constant dense<0.000000e+00> : vector<64x128xf32>
    %213 = tpu.matmul %210, %212, %cst_214 {dimension_numbers = #tpu.dot_dimension_numbers<[1], [0], [0], [1], [0, 0, 1, 1], [], []>} : vector<64x128xbf16>, vector<128x128xbf16>, vector<64x128xf32> -> vector<64x128xf32>
    %214 = arith.addf %208, %213 : vector<64x128xf32>
    %c36 = arith.constant 36 : index
    %c0_215 = arith.constant 0 : index
    %c0_216 = arith.constant 0 : index
    %215 = vector.load %arg2[%c36, %c0_215, %c0_216] : memref<49x64x128xbf16, #tpu.memory_space<vmem>>, vector<1x64x128xbf16>
    %216 = vector.shape_cast %215 : vector<1x64x128xbf16> to vector<64x128xbf16>
    %c36_217 = arith.constant 36 : index
    %c0_218 = arith.constant 0 : index
    %c0_219 = arith.constant 0 : index
    %217 = vector.load %arg3[%c36_217, %c0_218, %c0_219] : memref<49x128x128xbf16, #tpu.memory_space<vmem>>, vector<1x128x128xbf16>
    %218 = vector.shape_cast %217 : vector<1x128x128xbf16> to vector<128x128xbf16>
    %cst_220 = arith.constant dense<0.000000e+00> : vector<64x128xf32>
    %219 = tpu.matmul %216, %218, %cst_220 {dimension_numbers = #tpu.dot_dimension_numbers<[1], [0], [0], [1], [0, 0, 1, 1], [], []>} : vector<64x128xbf16>, vector<128x128xbf16>, vector<64x128xf32> -> vector<64x128xf32>
    %220 = arith.addf %214, %219 : vector<64x128xf32>
    %c37 = arith.constant 37 : index
    %c0_221 = arith.constant 0 : index
    %c0_222 = arith.constant 0 : index
    %221 = vector.load %arg2[%c37, %c0_221, %c0_222] : memref<49x64x128xbf16, #tpu.memory_space<vmem>>, vector<1x64x128xbf16>
    %222 = vector.shape_cast %221 : vector<1x64x128xbf16> to vector<64x128xbf16>
    %c37_223 = arith.constant 37 : index
    %c0_224 = arith.constant 0 : index
    %c0_225 = arith.constant 0 : index
    %223 = vector.load %arg3[%c37_223, %c0_224, %c0_225] : memref<49x128x128xbf16, #tpu.memory_space<vmem>>, vector<1x128x128xbf16>
    %224 = vector.shape_cast %223 : vector<1x128x128xbf16> to vector<128x128xbf16>
    %cst_226 = arith.constant dense<0.000000e+00> : vector<64x128xf32>
    %225 = tpu.matmul %222, %224, %cst_226 {dimension_numbers = #tpu.dot_dimension_numbers<[1], [0], [0], [1], [0, 0, 1, 1], [], []>} : vector<64x128xbf16>, vector<128x128xbf16>, vector<64x128xf32> -> vector<64x128xf32>
    %226 = arith.addf %220, %225 : vector<64x128xf32>
    %c38 = arith.constant 38 : index
    %c0_227 = arith.constant 0 : index
    %c0_228 = arith.constant 0 : index
    %227 = vector.load %arg2[%c38, %c0_227, %c0_228] : memref<49x64x128xbf16, #tpu.memory_space<vmem>>, vector<1x64x128xbf16>
    %228 = vector.shape_cast %227 : vector<1x64x128xbf16> to vector<64x128xbf16>
    %c38_229 = arith.constant 38 : index
    %c0_230 = arith.constant 0 : index
    %c0_231 = arith.constant 0 : index
    %229 = vector.load %arg3[%c38_229, %c0_230, %c0_231] : memref<49x128x128xbf16, #tpu.memory_space<vmem>>, vector<1x128x128xbf16>
    %230 = vector.shape_cast %229 : vector<1x128x128xbf16> to vector<128x128xbf16>
    %cst_232 = arith.constant dense<0.000000e+00> : vector<64x128xf32>
    %231 = tpu.matmul %228, %230, %cst_232 {dimension_numbers = #tpu.dot_dimension_numbers<[1], [0], [0], [1], [0, 0, 1, 1], [], []>} : vector<64x128xbf16>, vector<128x128xbf16>, vector<64x128xf32> -> vector<64x128xf32>
    %232 = arith.addf %226, %231 : vector<64x128xf32>
    %c39 = arith.constant 39 : index
    %c0_233 = arith.constant 0 : index
    %c0_234 = arith.constant 0 : index
    %233 = vector.load %arg2[%c39, %c0_233, %c0_234] : memref<49x64x128xbf16, #tpu.memory_space<vmem>>, vector<1x64x128xbf16>
    %234 = vector.shape_cast %233 : vector<1x64x128xbf16> to vector<64x128xbf16>
    %c39_235 = arith.constant 39 : index
    %c0_236 = arith.constant 0 : index
    %c0_237 = arith.constant 0 : index
    %235 = vector.load %arg3[%c39_235, %c0_236, %c0_237] : memref<49x128x128xbf16, #tpu.memory_space<vmem>>, vector<1x128x128xbf16>
    %236 = vector.shape_cast %235 : vector<1x128x128xbf16> to vector<128x128xbf16>
    %cst_238 = arith.constant dense<0.000000e+00> : vector<64x128xf32>
    %237 = tpu.matmul %234, %236, %cst_238 {dimension_numbers = #tpu.dot_dimension_numbers<[1], [0], [0], [1], [0, 0, 1, 1], [], []>} : vector<64x128xbf16>, vector<128x128xbf16>, vector<64x128xf32> -> vector<64x128xf32>
    %238 = arith.addf %232, %237 : vector<64x128xf32>
    %c40 = arith.constant 40 : index
    %c0_239 = arith.constant 0 : index
    %c0_240 = arith.constant 0 : index
    %239 = vector.load %arg2[%c40, %c0_239, %c0_240] : memref<49x64x128xbf16, #tpu.memory_space<vmem>>, vector<1x64x128xbf16>
    %240 = vector.shape_cast %239 : vector<1x64x128xbf16> to vector<64x128xbf16>
    %c40_241 = arith.constant 40 : index
    %c0_242 = arith.constant 0 : index
    %c0_243 = arith.constant 0 : index
    %241 = vector.load %arg3[%c40_241, %c0_242, %c0_243] : memref<49x128x128xbf16, #tpu.memory_space<vmem>>, vector<1x128x128xbf16>
    %242 = vector.shape_cast %241 : vector<1x128x128xbf16> to vector<128x128xbf16>
    %cst_244 = arith.constant dense<0.000000e+00> : vector<64x128xf32>
    %243 = tpu.matmul %240, %242, %cst_244 {dimension_numbers = #tpu.dot_dimension_numbers<[1], [0], [0], [1], [0, 0, 1, 1], [], []>} : vector<64x128xbf16>, vector<128x128xbf16>, vector<64x128xf32> -> vector<64x128xf32>
    %244 = arith.addf %238, %243 : vector<64x128xf32>
    %c41 = arith.constant 41 : index
    %c0_245 = arith.constant 0 : index
    %c0_246 = arith.constant 0 : index
    %245 = vector.load %arg2[%c41, %c0_245, %c0_246] : memref<49x64x128xbf16, #tpu.memory_space<vmem>>, vector<1x64x128xbf16>
    %246 = vector.shape_cast %245 : vector<1x64x128xbf16> to vector<64x128xbf16>
    %c41_247 = arith.constant 41 : index
    %c0_248 = arith.constant 0 : index
    %c0_249 = arith.constant 0 : index
    %247 = vector.load %arg3[%c41_247, %c0_248, %c0_249] : memref<49x128x128xbf16, #tpu.memory_space<vmem>>, vector<1x128x128xbf16>
    %248 = vector.shape_cast %247 : vector<1x128x128xbf16> to vector<128x128xbf16>
    %cst_250 = arith.constant dense<0.000000e+00> : vector<64x128xf32>
    %249 = tpu.matmul %246, %248, %cst_250 {dimension_numbers = #tpu.dot_dimension_numbers<[1], [0], [0], [1], [0, 0, 1, 1], [], []>} : vector<64x128xbf16>, vector<128x128xbf16>, vector<64x128xf32> -> vector<64x128xf32>
    %250 = arith.addf %244, %249 : vector<64x128xf32>
    %c42 = arith.constant 42 : index
    %c0_251 = arith.constant 0 : index
    %c0_252 = arith.constant 0 : index
    %251 = vector.load %arg2[%c42, %c0_251, %c0_252] : memref<49x64x128xbf16, #tpu.memory_space<vmem>>, vector<1x64x128xbf16>
    %252 = vector.shape_cast %251 : vector<1x64x128xbf16> to vector<64x128xbf16>
    %c42_253 = arith.constant 42 : index
    %c0_254 = arith.constant 0 : index
    %c0_255 = arith.constant 0 : index
    %253 = vector.load %arg3[%c42_253, %c0_254, %c0_255] : memref<49x128x128xbf16, #tpu.memory_space<vmem>>, vector<1x128x128xbf16>
    %254 = vector.shape_cast %253 : vector<1x128x128xbf16> to vector<128x128xbf16>
    %cst_256 = arith.constant dense<0.000000e+00> : vector<64x128xf32>
    %255 = tpu.matmul %252, %254, %cst_256 {dimension_numbers = #tpu.dot_dimension_numbers<[1], [0], [0], [1], [0, 0, 1, 1], [], []>} : vector<64x128xbf16>, vector<128x128xbf16>, vector<64x128xf32> -> vector<64x128xf32>
    %256 = arith.addf %250, %255 : vector<64x128xf32>
    %c43 = arith.constant 43 : index
    %c0_257 = arith.constant 0 : index
    %c0_258 = arith.constant 0 : index
    %257 = vector.load %arg2[%c43, %c0_257, %c0_258] : memref<49x64x128xbf16, #tpu.memory_space<vmem>>, vector<1x64x128xbf16>
    %258 = vector.shape_cast %257 : vector<1x64x128xbf16> to vector<64x128xbf16>
    %c43_259 = arith.constant 43 : index
    %c0_260 = arith.constant 0 : index
    %c0_261 = arith.constant 0 : index
    %259 = vector.load %arg3[%c43_259, %c0_260, %c0_261] : memref<49x128x128xbf16, #tpu.memory_space<vmem>>, vector<1x128x128xbf16>
    %260 = vector.shape_cast %259 : vector<1x128x128xbf16> to vector<128x128xbf16>
    %cst_262 = arith.constant dense<0.000000e+00> : vector<64x128xf32>
    %261 = tpu.matmul %258, %260, %cst_262 {dimension_numbers = #tpu.dot_dimension_numbers<[1], [0], [0], [1], [0, 0, 1, 1], [], []>} : vector<64x128xbf16>, vector<128x128xbf16>, vector<64x128xf32> -> vector<64x128xf32>
    %262 = arith.addf %256, %261 : vector<64x128xf32>
    %c44 = arith.constant 44 : index
    %c0_263 = arith.constant 0 : index
    %c0_264 = arith.constant 0 : index
    %263 = vector.load %arg2[%c44, %c0_263, %c0_264] : memref<49x64x128xbf16, #tpu.memory_space<vmem>>, vector<1x64x128xbf16>
    %264 = vector.shape_cast %263 : vector<1x64x128xbf16> to vector<64x128xbf16>
    %c44_265 = arith.constant 44 : index
    %c0_266 = arith.constant 0 : index
    %c0_267 = arith.constant 0 : index
    %265 = vector.load %arg3[%c44_265, %c0_266, %c0_267] : memref<49x128x128xbf16, #tpu.memory_space<vmem>>, vector<1x128x128xbf16>
    %266 = vector.shape_cast %265 : vector<1x128x128xbf16> to vector<128x128xbf16>
    %cst_268 = arith.constant dense<0.000000e+00> : vector<64x128xf32>
    %267 = tpu.matmul %264, %266, %cst_268 {dimension_numbers = #tpu.dot_dimension_numbers<[1], [0], [0], [1], [0, 0, 1, 1], [], []>} : vector<64x128xbf16>, vector<128x128xbf16>, vector<64x128xf32> -> vector<64x128xf32>
    %268 = arith.addf %262, %267 : vector<64x128xf32>
    %c45 = arith.constant 45 : index
    %c0_269 = arith.constant 0 : index
    %c0_270 = arith.constant 0 : index
    %269 = vector.load %arg2[%c45, %c0_269, %c0_270] : memref<49x64x128xbf16, #tpu.memory_space<vmem>>, vector<1x64x128xbf16>
    %270 = vector.shape_cast %269 : vector<1x64x128xbf16> to vector<64x128xbf16>
    %c45_271 = arith.constant 45 : index
    %c0_272 = arith.constant 0 : index
    %c0_273 = arith.constant 0 : index
    %271 = vector.load %arg3[%c45_271, %c0_272, %c0_273] : memref<49x128x128xbf16, #tpu.memory_space<vmem>>, vector<1x128x128xbf16>
    %272 = vector.shape_cast %271 : vector<1x128x128xbf16> to vector<128x128xbf16>
    %cst_274 = arith.constant dense<0.000000e+00> : vector<64x128xf32>
    %273 = tpu.matmul %270, %272, %cst_274 {dimension_numbers = #tpu.dot_dimension_numbers<[1], [0], [0], [1], [0, 0, 1, 1], [], []>} : vector<64x128xbf16>, vector<128x128xbf16>, vector<64x128xf32> -> vector<64x128xf32>
    %274 = arith.addf %268, %273 : vector<64x128xf32>
    %c46 = arith.constant 46 : index
    %c0_275 = arith.constant 0 : index
    %c0_276 = arith.constant 0 : index
    %275 = vector.load %arg2[%c46, %c0_275, %c0_276] : memref<49x64x128xbf16, #tpu.memory_space<vmem>>, vector<1x64x128xbf16>
    %276 = vector.shape_cast %275 : vector<1x64x128xbf16> to vector<64x128xbf16>
    %c46_277 = arith.constant 46 : index
    %c0_278 = arith.constant 0 : index
    %c0_279 = arith.constant 0 : index
    %277 = vector.load %arg3[%c46_277, %c0_278, %c0_279] : memref<49x128x128xbf16, #tpu.memory_space<vmem>>, vector<1x128x128xbf16>
    %278 = vector.shape_cast %277 : vector<1x128x128xbf16> to vector<128x128xbf16>
    %cst_280 = arith.constant dense<0.000000e+00> : vector<64x128xf32>
    %279 = tpu.matmul %276, %278, %cst_280 {dimension_numbers = #tpu.dot_dimension_numbers<[1], [0], [0], [1], [0, 0, 1, 1], [], []>} : vector<64x128xbf16>, vector<128x128xbf16>, vector<64x128xf32> -> vector<64x128xf32>
    %280 = arith.addf %274, %279 : vector<64x128xf32>
    %c47 = arith.constant 47 : index
    %c0_281 = arith.constant 0 : index
    %c0_282 = arith.constant 0 : index
    %281 = vector.load %arg2[%c47, %c0_281, %c0_282] : memref<49x64x128xbf16, #tpu.memory_space<vmem>>, vector<1x64x128xbf16>
    %282 = vector.shape_cast %281 : vector<1x64x128xbf16> to vector<64x128xbf16>
    %c47_283 = arith.constant 47 : index
    %c0_284 = arith.constant 0 : index
    %c0_285 = arith.constant 0 : index
    %283 = vector.load %arg3[%c47_283, %c0_284, %c0_285] : memref<49x128x128xbf16, #tpu.memory_space<vmem>>, vector<1x128x128xbf16>
    %284 = vector.shape_cast %283 : vector<1x128x128xbf16> to vector<128x128xbf16>
    %cst_286 = arith.constant dense<0.000000e+00> : vector<64x128xf32>
    %285 = tpu.matmul %282, %284, %cst_286 {dimension_numbers = #tpu.dot_dimension_numbers<[1], [0], [0], [1], [0, 0, 1, 1], [], []>} : vector<64x128xbf16>, vector<128x128xbf16>, vector<64x128xf32> -> vector<64x128xf32>
    %286 = arith.addf %280, %285 : vector<64x128xf32>
    %c48 = arith.constant 48 : index
    %c0_287 = arith.constant 0 : index
    %c0_288 = arith.constant 0 : index
    %287 = vector.load %arg2[%c48, %c0_287, %c0_288] : memref<49x64x128xbf16, #tpu.memory_space<vmem>>, vector<1x64x128xbf16>
    %288 = vector.shape_cast %287 : vector<1x64x128xbf16> to vector<64x128xbf16>
    %c48_289 = arith.constant 48 : index
    %c0_290 = arith.constant 0 : index
    %c0_291 = arith.constant 0 : index
    %289 = vector.load %arg3[%c48_289, %c0_290, %c0_291] : memref<49x128x128xbf16, #tpu.memory_space<vmem>>, vector<1x128x128xbf16>
    %290 = vector.shape_cast %289 : vector<1x128x128xbf16> to vector<128x128xbf16>
    %cst_292 = arith.constant dense<0.000000e+00> : vector<64x128xf32>
    %291 = tpu.matmul %288, %290, %cst_292 {dimension_numbers = #tpu.dot_dimension_numbers<[1], [0], [0], [1], [0, 0, 1, 1], [], []>} : vector<64x128xbf16>, vector<128x128xbf16>, vector<64x128xf32> -> vector<64x128xf32>
    %292 = arith.addf %286, %291 : vector<64x128xf32>
    %c0_293 = arith.constant 0 : index
    %c0_294 = arith.constant 0 : index
    %293 = vector.load %arg4[%c0_293, %c0_294] : memref<1x128xf32, #tpu.memory_space<vmem>>, vector<1x128xf32>
    %294 = vector.broadcast %293 : vector<1x128xf32> to vector<64x128xf32>
    %295 = arith.mulf %292, %294 : vector<64x128xf32>
    %c0_295 = arith.constant 0 : index
    %c0_296 = arith.constant 0 : index
    %296 = vector.load %arg5[%c0_295, %c0_296] : memref<1x128xf32, #tpu.memory_space<vmem>>, vector<1x128xf32>
    %297 = vector.broadcast %296 : vector<1x128xf32> to vector<64x128xf32>
    %298 = arith.addf %295, %297 : vector<64x128xf32>
    %cst_297 = arith.constant 0.000000e+00 : f32
    %299 = vector.broadcast %cst_297 : f32 to vector<64x128xf32>
    %300 = arith.maximumf %298, %299 : vector<64x128xf32>
    %301 = arith.truncf %300 : vector<64x128xf32> to vector<64x128xbf16>
    %c0_298 = arith.constant 0 : index
    %c0_299 = arith.constant 0 : index
    %302 = vector.load %arg6[%c0_298, %c0_299] : memref<64x128xbf16, #tpu.memory_space<vmem>>, vector<64x128xbf16>
    tpu.vector_store %arg6[%c0_298, %c0_299], %301 {strides = array<i32>} : memref<64x128xbf16, #tpu.memory_space<vmem>>, vector<64x128xbf16>,
    return
  }
  func.func @transform_0(%arg0: i32, %arg1: i32) -> (i32, i32, i32) {
    %c0_i32 = arith.constant 0 : i32
    %c0_i32_0 = arith.constant 0 : i32
    %c0_i32_1 = arith.constant 0 : i32
    return %c0_i32, %arg0, %c0_i32_0 : i32, i32, i32
  }
  func.func @transform_1(%arg0: i32, %arg1: i32) -> (i32, i32, i32) {
    %c0_i32 = arith.constant 0 : i32
    %c0_i32_0 = arith.constant 0 : i32
    %c0_i32_1 = arith.constant 0 : i32
    return %c0_i32, %c0_i32_0, %arg1 : i32, i32, i32
  }
  func.func @transform_2(%arg0: i32, %arg1: i32) -> (i32, i32) {
    %c0_i32 = arith.constant 0 : i32
    %c0_i32_0 = arith.constant 0 : i32
    return %c0_i32, %arg1 : i32, i32
  }
  func.func @transform_3(%arg0: i32, %arg1: i32) -> (i32, i32) {
    %c0_i32 = arith.constant 0 : i32
    %c0_i32_0 = arith.constant 0 : i32
    return %c0_i32, %arg1 : i32, i32
  }
  func.func @transform_4(%arg0: i32, %arg1: i32) -> (i32, i32) {
    %c0_i32 = arith.constant 0 : i32
    return %arg0, %arg1 : i32, i32
  }
}

module attributes {stable_mosaic.version = 11 : i64} {
  func.func @_conv_kernel(%arg0: i32, %arg1: i32, %arg2: memref<1x16x128xbf16, #tpu.memory_space<vmem>>, %arg3: memref<1x128x128xbf16, #tpu.memory_space<vmem>>, %arg4: memref<1x128xf32, #tpu.memory_space<vmem>>, %arg5: memref<1x128xf32, #tpu.memory_space<vmem>>, %arg6: memref<16x128xbf16, #tpu.memory_space<vmem>>) attributes {dimension_semantics = [#tpu.dimension_semantics<parallel>, #tpu.dimension_semantics<parallel>], iteration_bounds = array<i64: 2, 1>, scalar_prefetch = 0 : i64, scratch_operands = 0 : i64, tpu.core_type = #tpu.core_type<tc>, window_params = [{transform_indices = @transform_0, window_bounds = array<i64: 1, 16, 128>}, {transform_indices = @transform_1, window_bounds = array<i64: 1, 128, 128>}, {pipeline_mode = #tpu.pipeline_mode<synchronous>, transform_indices = @transform_2, window_bounds = array<i64: 1, 128>}, {pipeline_mode = #tpu.pipeline_mode<synchronous>, transform_indices = @transform_3, window_bounds = array<i64: 1, 128>}, {transform_indices = @transform_4, window_bounds = array<i64: 16, 128>}]} {
    %c0 = arith.constant 0 : index
    %c0_0 = arith.constant 0 : index
    %c0_1 = arith.constant 0 : index
    %0 = vector.load %arg2[%c0, %c0_0, %c0_1] : memref<1x16x128xbf16, #tpu.memory_space<vmem>>, vector<1x16x128xbf16>
    %1 = vector.shape_cast %0 : vector<1x16x128xbf16> to vector<16x128xbf16>
    %2 = arith.extf %1 : vector<16x128xbf16> to vector<16x128xf32>
    %c0_2 = arith.constant 0 : index
    %c0_3 = arith.constant 0 : index
    %3 = vector.load %arg4[%c0_2, %c0_3] : memref<1x128xf32, #tpu.memory_space<vmem>>, vector<1x128xf32>
    %4 = vector.broadcast %3 : vector<1x128xf32> to vector<16x128xf32>
    %5 = arith.mulf %2, %4 : vector<16x128xf32>
    %c0_4 = arith.constant 0 : index
    %c0_5 = arith.constant 0 : index
    %6 = vector.load %arg5[%c0_4, %c0_5] : memref<1x128xf32, #tpu.memory_space<vmem>>, vector<1x128xf32>
    %7 = vector.broadcast %6 : vector<1x128xf32> to vector<16x128xf32>
    %8 = arith.addf %5, %7 : vector<16x128xf32>
    %cst = arith.constant 0.000000e+00 : f32
    %9 = vector.broadcast %cst : f32 to vector<16x128xf32>
    %10 = arith.maximumf %8, %9 : vector<16x128xf32>
    %11 = arith.truncf %10 : vector<16x128xf32> to vector<16x128xbf16>
    %c0_6 = arith.constant 0 : index
    %c0_7 = arith.constant 0 : index
    %c0_8 = arith.constant 0 : index
    %12 = vector.load %arg3[%c0_6, %c0_7, %c0_8] : memref<1x128x128xbf16, #tpu.memory_space<vmem>>, vector<1x128x128xbf16>
    %13 = vector.shape_cast %12 : vector<1x128x128xbf16> to vector<128x128xbf16>
    %cst_9 = arith.constant dense<0.000000e+00> : vector<16x128xf32>
    %14 = tpu.matmul %11, %13, %cst_9 {dimension_numbers = #tpu.dot_dimension_numbers<[1], [0], [0], [1], [0, 0, 1, 1], [], []>} : vector<16x128xbf16>, vector<128x128xbf16>, vector<16x128xf32> -> vector<16x128xf32>
    %15 = arith.truncf %14 : vector<16x128xf32> to vector<16x128xbf16>
    %c0_10 = arith.constant 0 : index
    %c0_11 = arith.constant 0 : index
    %16 = vector.load %arg6[%c0_10, %c0_11] : memref<16x128xbf16, #tpu.memory_space<vmem>>, vector<16x128xbf16>
    tpu.vector_store %arg6[%c0_10, %c0_11], %15 {strides = array<i32>} : memref<16x128xbf16, #tpu.memory_space<vmem>>, vector<16x128xbf16>,
    return
  }
  func.func @transform_0(%arg0: i32, %arg1: i32) -> (i32, i32, i32) {
    %c0_i32 = arith.constant 0 : i32
    %c0_i32_0 = arith.constant 0 : i32
    %c0_i32_1 = arith.constant 0 : i32
    return %c0_i32, %arg0, %c0_i32_0 : i32, i32, i32
  }
  func.func @transform_1(%arg0: i32, %arg1: i32) -> (i32, i32, i32) {
    %c0_i32 = arith.constant 0 : i32
    %c0_i32_0 = arith.constant 0 : i32
    %c0_i32_1 = arith.constant 0 : i32
    return %c0_i32, %c0_i32_0, %arg1 : i32, i32, i32
  }
  func.func @transform_2(%arg0: i32, %arg1: i32) -> (i32, i32) {
    %c0_i32 = arith.constant 0 : i32
    %c0_i32_0 = arith.constant 0 : i32
    %c0_i32_1 = arith.constant 0 : i32
    return %c0_i32, %c0_i32_0 : i32, i32
  }
  func.func @transform_3(%arg0: i32, %arg1: i32) -> (i32, i32) {
    %c0_i32 = arith.constant 0 : i32
    %c0_i32_0 = arith.constant 0 : i32
    %c0_i32_1 = arith.constant 0 : i32
    return %c0_i32, %c0_i32_0 : i32, i32
  }
  func.func @transform_4(%arg0: i32, %arg1: i32) -> (i32, i32) {
    %c0_i32 = arith.constant 0 : i32
    return %arg0, %arg1 : i32, i32
  }
}

module attributes {stable_mosaic.version = 11 : i64} {
  func.func @_maxpool_kernel(%arg0: i32, %arg1: memref<9x16x128xbf16, #tpu.memory_space<vmem>>, %arg2: memref<16x128xbf16, #tpu.memory_space<vmem>>) attributes {dimension_semantics = [#tpu.dimension_semantics<parallel>], iteration_bounds = array<i64: 2>, scalar_prefetch = 0 : i64, scratch_operands = 0 : i64, tpu.core_type = #tpu.core_type<tc>, window_params = [{transform_indices = @transform_0, window_bounds = array<i64: 9, 16, 128>}, {transform_indices = @transform_1, window_bounds = array<i64: 16, 128>}]} {
    %c0 = arith.constant 0 : index
    %c0_0 = arith.constant 0 : index
    %c0_1 = arith.constant 0 : index
    %0 = vector.load %arg1[%c0, %c0_0, %c0_1] : memref<9x16x128xbf16, #tpu.memory_space<vmem>>, vector<1x16x128xbf16>
    %1 = vector.shape_cast %0 : vector<1x16x128xbf16> to vector<16x128xbf16>
    %2 = arith.extf %1 : vector<16x128xbf16> to vector<16x128xf32>
    %c1 = arith.constant 1 : index
    %c0_2 = arith.constant 0 : index
    %c0_3 = arith.constant 0 : index
    %3 = vector.load %arg1[%c1, %c0_2, %c0_3] : memref<9x16x128xbf16, #tpu.memory_space<vmem>>, vector<1x16x128xbf16>
    %4 = vector.shape_cast %3 : vector<1x16x128xbf16> to vector<16x128xbf16>
    %5 = arith.extf %4 : vector<16x128xbf16> to vector<16x128xf32>
    %6 = arith.maximumf %2, %5 : vector<16x128xf32>
    %c2 = arith.constant 2 : index
    %c0_4 = arith.constant 0 : index
    %c0_5 = arith.constant 0 : index
    %7 = vector.load %arg1[%c2, %c0_4, %c0_5] : memref<9x16x128xbf16, #tpu.memory_space<vmem>>, vector<1x16x128xbf16>
    %8 = vector.shape_cast %7 : vector<1x16x128xbf16> to vector<16x128xbf16>
    %9 = arith.extf %8 : vector<16x128xbf16> to vector<16x128xf32>
    %10 = arith.maximumf %6, %9 : vector<16x128xf32>
    %c3 = arith.constant 3 : index
    %c0_6 = arith.constant 0 : index
    %c0_7 = arith.constant 0 : index
    %11 = vector.load %arg1[%c3, %c0_6, %c0_7] : memref<9x16x128xbf16, #tpu.memory_space<vmem>>, vector<1x16x128xbf16>
    %12 = vector.shape_cast %11 : vector<1x16x128xbf16> to vector<16x128xbf16>
    %13 = arith.extf %12 : vector<16x128xbf16> to vector<16x128xf32>
    %14 = arith.maximumf %10, %13 : vector<16x128xf32>
    %c4 = arith.constant 4 : index
    %c0_8 = arith.constant 0 : index
    %c0_9 = arith.constant 0 : index
    %15 = vector.load %arg1[%c4, %c0_8, %c0_9] : memref<9x16x128xbf16, #tpu.memory_space<vmem>>, vector<1x16x128xbf16>
    %16 = vector.shape_cast %15 : vector<1x16x128xbf16> to vector<16x128xbf16>
    %17 = arith.extf %16 : vector<16x128xbf16> to vector<16x128xf32>
    %18 = arith.maximumf %14, %17 : vector<16x128xf32>
    %c5 = arith.constant 5 : index
    %c0_10 = arith.constant 0 : index
    %c0_11 = arith.constant 0 : index
    %19 = vector.load %arg1[%c5, %c0_10, %c0_11] : memref<9x16x128xbf16, #tpu.memory_space<vmem>>, vector<1x16x128xbf16>
    %20 = vector.shape_cast %19 : vector<1x16x128xbf16> to vector<16x128xbf16>
    %21 = arith.extf %20 : vector<16x128xbf16> to vector<16x128xf32>
    %22 = arith.maximumf %18, %21 : vector<16x128xf32>
    %c6 = arith.constant 6 : index
    %c0_12 = arith.constant 0 : index
    %c0_13 = arith.constant 0 : index
    %23 = vector.load %arg1[%c6, %c0_12, %c0_13] : memref<9x16x128xbf16, #tpu.memory_space<vmem>>, vector<1x16x128xbf16>
    %24 = vector.shape_cast %23 : vector<1x16x128xbf16> to vector<16x128xbf16>
    %25 = arith.extf %24 : vector<16x128xbf16> to vector<16x128xf32>
    %26 = arith.maximumf %22, %25 : vector<16x128xf32>
    %c7 = arith.constant 7 : index
    %c0_14 = arith.constant 0 : index
    %c0_15 = arith.constant 0 : index
    %27 = vector.load %arg1[%c7, %c0_14, %c0_15] : memref<9x16x128xbf16, #tpu.memory_space<vmem>>, vector<1x16x128xbf16>
    %28 = vector.shape_cast %27 : vector<1x16x128xbf16> to vector<16x128xbf16>
    %29 = arith.extf %28 : vector<16x128xbf16> to vector<16x128xf32>
    %30 = arith.maximumf %26, %29 : vector<16x128xf32>
    %c8 = arith.constant 8 : index
    %c0_16 = arith.constant 0 : index
    %c0_17 = arith.constant 0 : index
    %31 = vector.load %arg1[%c8, %c0_16, %c0_17] : memref<9x16x128xbf16, #tpu.memory_space<vmem>>, vector<1x16x128xbf16>
    %32 = vector.shape_cast %31 : vector<1x16x128xbf16> to vector<16x128xbf16>
    %33 = arith.extf %32 : vector<16x128xbf16> to vector<16x128xf32>
    %34 = arith.maximumf %30, %33 : vector<16x128xf32>
    %35 = arith.truncf %34 : vector<16x128xf32> to vector<16x128xbf16>
    %c0_18 = arith.constant 0 : index
    %c0_19 = arith.constant 0 : index
    %36 = vector.load %arg2[%c0_18, %c0_19] : memref<16x128xbf16, #tpu.memory_space<vmem>>, vector<16x128xbf16>
    tpu.vector_store %arg2[%c0_18, %c0_19], %35 {strides = array<i32>} : memref<16x128xbf16, #tpu.memory_space<vmem>>, vector<16x128xbf16>,
    return
  }
  func.func @transform_0(%arg0: i32) -> (i32, i32, i32) {
    %c0_i32 = arith.constant 0 : i32
    %c0_i32_0 = arith.constant 0 : i32
    %c0_i32_1 = arith.constant 0 : i32
    return %c0_i32, %arg0, %c0_i32_0 : i32, i32, i32
  }
  func.func @transform_1(%arg0: i32) -> (i32, i32) {
    %c0_i32 = arith.constant 0 : i32
    %c0_i32_0 = arith.constant 0 : i32
    return %arg0, %c0_i32 : i32, i32
  }
}

module attributes {stable_mosaic.version = 11 : i64} {
  func.func @_conv_kernel(%arg0: i32, %arg1: i32, %arg2: memref<9x16x128xbf16, #tpu.memory_space<vmem>>, %arg3: memref<9x128x128xbf16, #tpu.memory_space<vmem>>, %arg4: memref<1x128xf32, #tpu.memory_space<vmem>>, %arg5: memref<1x128xf32, #tpu.memory_space<vmem>>, %arg6: memref<16x128xbf16, #tpu.memory_space<vmem>>, %arg7: memref<16x128xbf16, #tpu.memory_space<vmem>>) attributes {dimension_semantics = [#tpu.dimension_semantics<parallel>, #tpu.dimension_semantics<parallel>], iteration_bounds = array<i64: 2, 1>, scalar_prefetch = 0 : i64, scratch_operands = 0 : i64, tpu.core_type = #tpu.core_type<tc>, window_params = [{transform_indices = @transform_0, window_bounds = array<i64: 9, 16, 128>}, {transform_indices = @transform_1, window_bounds = array<i64: 9, 128, 128>}, {pipeline_mode = #tpu.pipeline_mode<synchronous>, transform_indices = @transform_2, window_bounds = array<i64: 1, 128>}, {pipeline_mode = #tpu.pipeline_mode<synchronous>, transform_indices = @transform_3, window_bounds = array<i64: 1, 128>}, {transform_indices = @transform_4, window_bounds = array<i64: 16, 128>}, {transform_indices = @transform_5, window_bounds = array<i64: 16, 128>}]} {
    %c0 = arith.constant 0 : index
    %c0_0 = arith.constant 0 : index
    %c0_1 = arith.constant 0 : index
    %0 = vector.load %arg2[%c0, %c0_0, %c0_1] : memref<9x16x128xbf16, #tpu.memory_space<vmem>>, vector<1x16x128xbf16>
    %1 = vector.shape_cast %0 : vector<1x16x128xbf16> to vector<16x128xbf16>
    %2 = arith.extf %1 : vector<16x128xbf16> to vector<16x128xf32>
    %c0_2 = arith.constant 0 : index
    %c0_3 = arith.constant 0 : index
    %3 = vector.load %arg4[%c0_2, %c0_3] : memref<1x128xf32, #tpu.memory_space<vmem>>, vector<1x128xf32>
    %4 = vector.broadcast %3 : vector<1x128xf32> to vector<16x128xf32>
    %5 = arith.mulf %2, %4 : vector<16x128xf32>
    %c0_4 = arith.constant 0 : index
    %c0_5 = arith.constant 0 : index
    %6 = vector.load %arg5[%c0_4, %c0_5] : memref<1x128xf32, #tpu.memory_space<vmem>>, vector<1x128xf32>
    %7 = vector.broadcast %6 : vector<1x128xf32> to vector<16x128xf32>
    %8 = arith.addf %5, %7 : vector<16x128xf32>
    %cst = arith.constant 0.000000e+00 : f32
    %9 = vector.broadcast %cst : f32 to vector<16x128xf32>
    %10 = arith.maximumf %8, %9 : vector<16x128xf32>
    %11 = arith.truncf %10 : vector<16x128xf32> to vector<16x128xbf16>
    %c0_6 = arith.constant 0 : index
    %c0_7 = arith.constant 0 : index
    %c0_8 = arith.constant 0 : index
    %12 = vector.load %arg3[%c0_6, %c0_7, %c0_8] : memref<9x128x128xbf16, #tpu.memory_space<vmem>>, vector<1x128x128xbf16>
    %13 = vector.shape_cast %12 : vector<1x128x128xbf16> to vector<128x128xbf16>
    %cst_9 = arith.constant dense<0.000000e+00> : vector<16x128xf32>
    %14 = tpu.matmul %11, %13, %cst_9 {dimension_numbers = #tpu.dot_dimension_numbers<[1], [0], [0], [1], [0, 0, 1, 1], [], []>} : vector<16x128xbf16>, vector<128x128xbf16>, vector<16x128xf32> -> vector<16x128xf32>
    %c1 = arith.constant 1 : index
    %c0_10 = arith.constant 0 : index
    %c0_11 = arith.constant 0 : index
    %15 = vector.load %arg2[%c1, %c0_10, %c0_11] : memref<9x16x128xbf16, #tpu.memory_space<vmem>>, vector<1x16x128xbf16>
    %16 = vector.shape_cast %15 : vector<1x16x128xbf16> to vector<16x128xbf16>
    %17 = arith.extf %16 : vector<16x128xbf16> to vector<16x128xf32>
    %c0_12 = arith.constant 0 : index
    %c0_13 = arith.constant 0 : index
    %18 = vector.load %arg4[%c0_12, %c0_13] : memref<1x128xf32, #tpu.memory_space<vmem>>, vector<1x128xf32>
    %19 = vector.broadcast %18 : vector<1x128xf32> to vector<16x128xf32>
    %20 = arith.mulf %17, %19 : vector<16x128xf32>
    %c0_14 = arith.constant 0 : index
    %c0_15 = arith.constant 0 : index
    %21 = vector.load %arg5[%c0_14, %c0_15] : memref<1x128xf32, #tpu.memory_space<vmem>>, vector<1x128xf32>
    %22 = vector.broadcast %21 : vector<1x128xf32> to vector<16x128xf32>
    %23 = arith.addf %20, %22 : vector<16x128xf32>
    %cst_16 = arith.constant 0.000000e+00 : f32
    %24 = vector.broadcast %cst_16 : f32 to vector<16x128xf32>
    %25 = arith.maximumf %23, %24 : vector<16x128xf32>
    %26 = arith.truncf %25 : vector<16x128xf32> to vector<16x128xbf16>
    %c1_17 = arith.constant 1 : index
    %c0_18 = arith.constant 0 : index
    %c0_19 = arith.constant 0 : index
    %27 = vector.load %arg3[%c1_17, %c0_18, %c0_19] : memref<9x128x128xbf16, #tpu.memory_space<vmem>>, vector<1x128x128xbf16>
    %28 = vector.shape_cast %27 : vector<1x128x128xbf16> to vector<128x128xbf16>
    %cst_20 = arith.constant dense<0.000000e+00> : vector<16x128xf32>
    %29 = tpu.matmul %26, %28, %cst_20 {dimension_numbers = #tpu.dot_dimension_numbers<[1], [0], [0], [1], [0, 0, 1, 1], [], []>} : vector<16x128xbf16>, vector<128x128xbf16>, vector<16x128xf32> -> vector<16x128xf32>
    %30 = arith.addf %14, %29 : vector<16x128xf32>
    %c2 = arith.constant 2 : index
    %c0_21 = arith.constant 0 : index
    %c0_22 = arith.constant 0 : index
    %31 = vector.load %arg2[%c2, %c0_21, %c0_22] : memref<9x16x128xbf16, #tpu.memory_space<vmem>>, vector<1x16x128xbf16>
    %32 = vector.shape_cast %31 : vector<1x16x128xbf16> to vector<16x128xbf16>
    %33 = arith.extf %32 : vector<16x128xbf16> to vector<16x128xf32>
    %c0_23 = arith.constant 0 : index
    %c0_24 = arith.constant 0 : index
    %34 = vector.load %arg4[%c0_23, %c0_24] : memref<1x128xf32, #tpu.memory_space<vmem>>, vector<1x128xf32>
    %35 = vector.broadcast %34 : vector<1x128xf32> to vector<16x128xf32>
    %36 = arith.mulf %33, %35 : vector<16x128xf32>
    %c0_25 = arith.constant 0 : index
    %c0_26 = arith.constant 0 : index
    %37 = vector.load %arg5[%c0_25, %c0_26] : memref<1x128xf32, #tpu.memory_space<vmem>>, vector<1x128xf32>
    %38 = vector.broadcast %37 : vector<1x128xf32> to vector<16x128xf32>
    %39 = arith.addf %36, %38 : vector<16x128xf32>
    %cst_27 = arith.constant 0.000000e+00 : f32
    %40 = vector.broadcast %cst_27 : f32 to vector<16x128xf32>
    %41 = arith.maximumf %39, %40 : vector<16x128xf32>
    %42 = arith.truncf %41 : vector<16x128xf32> to vector<16x128xbf16>
    %c2_28 = arith.constant 2 : index
    %c0_29 = arith.constant 0 : index
    %c0_30 = arith.constant 0 : index
    %43 = vector.load %arg3[%c2_28, %c0_29, %c0_30] : memref<9x128x128xbf16, #tpu.memory_space<vmem>>, vector<1x128x128xbf16>
    %44 = vector.shape_cast %43 : vector<1x128x128xbf16> to vector<128x128xbf16>
    %cst_31 = arith.constant dense<0.000000e+00> : vector<16x128xf32>
    %45 = tpu.matmul %42, %44, %cst_31 {dimension_numbers = #tpu.dot_dimension_numbers<[1], [0], [0], [1], [0, 0, 1, 1], [], []>} : vector<16x128xbf16>, vector<128x128xbf16>, vector<16x128xf32> -> vector<16x128xf32>
    %46 = arith.addf %30, %45 : vector<16x128xf32>
    %c3 = arith.constant 3 : index
    %c0_32 = arith.constant 0 : index
    %c0_33 = arith.constant 0 : index
    %47 = vector.load %arg2[%c3, %c0_32, %c0_33] : memref<9x16x128xbf16, #tpu.memory_space<vmem>>, vector<1x16x128xbf16>
    %48 = vector.shape_cast %47 : vector<1x16x128xbf16> to vector<16x128xbf16>
    %49 = arith.extf %48 : vector<16x128xbf16> to vector<16x128xf32>
    %c0_34 = arith.constant 0 : index
    %c0_35 = arith.constant 0 : index
    %50 = vector.load %arg4[%c0_34, %c0_35] : memref<1x128xf32, #tpu.memory_space<vmem>>, vector<1x128xf32>
    %51 = vector.broadcast %50 : vector<1x128xf32> to vector<16x128xf32>
    %52 = arith.mulf %49, %51 : vector<16x128xf32>
    %c0_36 = arith.constant 0 : index
    %c0_37 = arith.constant 0 : index
    %53 = vector.load %arg5[%c0_36, %c0_37] : memref<1x128xf32, #tpu.memory_space<vmem>>, vector<1x128xf32>
    %54 = vector.broadcast %53 : vector<1x128xf32> to vector<16x128xf32>
    %55 = arith.addf %52, %54 : vector<16x128xf32>
    %cst_38 = arith.constant 0.000000e+00 : f32
    %56 = vector.broadcast %cst_38 : f32 to vector<16x128xf32>
    %57 = arith.maximumf %55, %56 : vector<16x128xf32>
    %58 = arith.truncf %57 : vector<16x128xf32> to vector<16x128xbf16>
    %c3_39 = arith.constant 3 : index
    %c0_40 = arith.constant 0 : index
    %c0_41 = arith.constant 0 : index
    %59 = vector.load %arg3[%c3_39, %c0_40, %c0_41] : memref<9x128x128xbf16, #tpu.memory_space<vmem>>, vector<1x128x128xbf16>
    %60 = vector.shape_cast %59 : vector<1x128x128xbf16> to vector<128x128xbf16>
    %cst_42 = arith.constant dense<0.000000e+00> : vector<16x128xf32>
    %61 = tpu.matmul %58, %60, %cst_42 {dimension_numbers = #tpu.dot_dimension_numbers<[1], [0], [0], [1], [0, 0, 1, 1], [], []>} : vector<16x128xbf16>, vector<128x128xbf16>, vector<16x128xf32> -> vector<16x128xf32>
    %62 = arith.addf %46, %61 : vector<16x128xf32>
    %c4 = arith.constant 4 : index
    %c0_43 = arith.constant 0 : index
    %c0_44 = arith.constant 0 : index
    %63 = vector.load %arg2[%c4, %c0_43, %c0_44] : memref<9x16x128xbf16, #tpu.memory_space<vmem>>, vector<1x16x128xbf16>
    %64 = vector.shape_cast %63 : vector<1x16x128xbf16> to vector<16x128xbf16>
    %65 = arith.extf %64 : vector<16x128xbf16> to vector<16x128xf32>
    %c0_45 = arith.constant 0 : index
    %c0_46 = arith.constant 0 : index
    %66 = vector.load %arg4[%c0_45, %c0_46] : memref<1x128xf32, #tpu.memory_space<vmem>>, vector<1x128xf32>
    %67 = vector.broadcast %66 : vector<1x128xf32> to vector<16x128xf32>
    %68 = arith.mulf %65, %67 : vector<16x128xf32>
    %c0_47 = arith.constant 0 : index
    %c0_48 = arith.constant 0 : index
    %69 = vector.load %arg5[%c0_47, %c0_48] : memref<1x128xf32, #tpu.memory_space<vmem>>, vector<1x128xf32>
    %70 = vector.broadcast %69 : vector<1x128xf32> to vector<16x128xf32>
    %71 = arith.addf %68, %70 : vector<16x128xf32>
    %cst_49 = arith.constant 0.000000e+00 : f32
    %72 = vector.broadcast %cst_49 : f32 to vector<16x128xf32>
    %73 = arith.maximumf %71, %72 : vector<16x128xf32>
    %74 = arith.truncf %73 : vector<16x128xf32> to vector<16x128xbf16>
    %c4_50 = arith.constant 4 : index
    %c0_51 = arith.constant 0 : index
    %c0_52 = arith.constant 0 : index
    %75 = vector.load %arg3[%c4_50, %c0_51, %c0_52] : memref<9x128x128xbf16, #tpu.memory_space<vmem>>, vector<1x128x128xbf16>
    %76 = vector.shape_cast %75 : vector<1x128x128xbf16> to vector<128x128xbf16>
    %cst_53 = arith.constant dense<0.000000e+00> : vector<16x128xf32>
    %77 = tpu.matmul %74, %76, %cst_53 {dimension_numbers = #tpu.dot_dimension_numbers<[1], [0], [0], [1], [0, 0, 1, 1], [], []>} : vector<16x128xbf16>, vector<128x128xbf16>, vector<16x128xf32> -> vector<16x128xf32>
    %78 = arith.addf %62, %77 : vector<16x128xf32>
    %c5 = arith.constant 5 : index
    %c0_54 = arith.constant 0 : index
    %c0_55 = arith.constant 0 : index
    %79 = vector.load %arg2[%c5, %c0_54, %c0_55] : memref<9x16x128xbf16, #tpu.memory_space<vmem>>, vector<1x16x128xbf16>
    %80 = vector.shape_cast %79 : vector<1x16x128xbf16> to vector<16x128xbf16>
    %81 = arith.extf %80 : vector<16x128xbf16> to vector<16x128xf32>
    %c0_56 = arith.constant 0 : index
    %c0_57 = arith.constant 0 : index
    %82 = vector.load %arg4[%c0_56, %c0_57] : memref<1x128xf32, #tpu.memory_space<vmem>>, vector<1x128xf32>
    %83 = vector.broadcast %82 : vector<1x128xf32> to vector<16x128xf32>
    %84 = arith.mulf %81, %83 : vector<16x128xf32>
    %c0_58 = arith.constant 0 : index
    %c0_59 = arith.constant 0 : index
    %85 = vector.load %arg5[%c0_58, %c0_59] : memref<1x128xf32, #tpu.memory_space<vmem>>, vector<1x128xf32>
    %86 = vector.broadcast %85 : vector<1x128xf32> to vector<16x128xf32>
    %87 = arith.addf %84, %86 : vector<16x128xf32>
    %cst_60 = arith.constant 0.000000e+00 : f32
    %88 = vector.broadcast %cst_60 : f32 to vector<16x128xf32>
    %89 = arith.maximumf %87, %88 : vector<16x128xf32>
    %90 = arith.truncf %89 : vector<16x128xf32> to vector<16x128xbf16>
    %c5_61 = arith.constant 5 : index
    %c0_62 = arith.constant 0 : index
    %c0_63 = arith.constant 0 : index
    %91 = vector.load %arg3[%c5_61, %c0_62, %c0_63] : memref<9x128x128xbf16, #tpu.memory_space<vmem>>, vector<1x128x128xbf16>
    %92 = vector.shape_cast %91 : vector<1x128x128xbf16> to vector<128x128xbf16>
    %cst_64 = arith.constant dense<0.000000e+00> : vector<16x128xf32>
    %93 = tpu.matmul %90, %92, %cst_64 {dimension_numbers = #tpu.dot_dimension_numbers<[1], [0], [0], [1], [0, 0, 1, 1], [], []>} : vector<16x128xbf16>, vector<128x128xbf16>, vector<16x128xf32> -> vector<16x128xf32>
    %94 = arith.addf %78, %93 : vector<16x128xf32>
    %c6 = arith.constant 6 : index
    %c0_65 = arith.constant 0 : index
    %c0_66 = arith.constant 0 : index
    %95 = vector.load %arg2[%c6, %c0_65, %c0_66] : memref<9x16x128xbf16, #tpu.memory_space<vmem>>, vector<1x16x128xbf16>
    %96 = vector.shape_cast %95 : vector<1x16x128xbf16> to vector<16x128xbf16>
    %97 = arith.extf %96 : vector<16x128xbf16> to vector<16x128xf32>
    %c0_67 = arith.constant 0 : index
    %c0_68 = arith.constant 0 : index
    %98 = vector.load %arg4[%c0_67, %c0_68] : memref<1x128xf32, #tpu.memory_space<vmem>>, vector<1x128xf32>
    %99 = vector.broadcast %98 : vector<1x128xf32> to vector<16x128xf32>
    %100 = arith.mulf %97, %99 : vector<16x128xf32>
    %c0_69 = arith.constant 0 : index
    %c0_70 = arith.constant 0 : index
    %101 = vector.load %arg5[%c0_69, %c0_70] : memref<1x128xf32, #tpu.memory_space<vmem>>, vector<1x128xf32>
    %102 = vector.broadcast %101 : vector<1x128xf32> to vector<16x128xf32>
    %103 = arith.addf %100, %102 : vector<16x128xf32>
    %cst_71 = arith.constant 0.000000e+00 : f32
    %104 = vector.broadcast %cst_71 : f32 to vector<16x128xf32>
    %105 = arith.maximumf %103, %104 : vector<16x128xf32>
    %106 = arith.truncf %105 : vector<16x128xf32> to vector<16x128xbf16>
    %c6_72 = arith.constant 6 : index
    %c0_73 = arith.constant 0 : index
    %c0_74 = arith.constant 0 : index
    %107 = vector.load %arg3[%c6_72, %c0_73, %c0_74] : memref<9x128x128xbf16, #tpu.memory_space<vmem>>, vector<1x128x128xbf16>
    %108 = vector.shape_cast %107 : vector<1x128x128xbf16> to vector<128x128xbf16>
    %cst_75 = arith.constant dense<0.000000e+00> : vector<16x128xf32>
    %109 = tpu.matmul %106, %108, %cst_75 {dimension_numbers = #tpu.dot_dimension_numbers<[1], [0], [0], [1], [0, 0, 1, 1], [], []>} : vector<16x128xbf16>, vector<128x128xbf16>, vector<16x128xf32> -> vector<16x128xf32>
    %110 = arith.addf %94, %109 : vector<16x128xf32>
    %c7 = arith.constant 7 : index
    %c0_76 = arith.constant 0 : index
    %c0_77 = arith.constant 0 : index
    %111 = vector.load %arg2[%c7, %c0_76, %c0_77] : memref<9x16x128xbf16, #tpu.memory_space<vmem>>, vector<1x16x128xbf16>
    %112 = vector.shape_cast %111 : vector<1x16x128xbf16> to vector<16x128xbf16>
    %113 = arith.extf %112 : vector<16x128xbf16> to vector<16x128xf32>
    %c0_78 = arith.constant 0 : index
    %c0_79 = arith.constant 0 : index
    %114 = vector.load %arg4[%c0_78, %c0_79] : memref<1x128xf32, #tpu.memory_space<vmem>>, vector<1x128xf32>
    %115 = vector.broadcast %114 : vector<1x128xf32> to vector<16x128xf32>
    %116 = arith.mulf %113, %115 : vector<16x128xf32>
    %c0_80 = arith.constant 0 : index
    %c0_81 = arith.constant 0 : index
    %117 = vector.load %arg5[%c0_80, %c0_81] : memref<1x128xf32, #tpu.memory_space<vmem>>, vector<1x128xf32>
    %118 = vector.broadcast %117 : vector<1x128xf32> to vector<16x128xf32>
    %119 = arith.addf %116, %118 : vector<16x128xf32>
    %cst_82 = arith.constant 0.000000e+00 : f32
    %120 = vector.broadcast %cst_82 : f32 to vector<16x128xf32>
    %121 = arith.maximumf %119, %120 : vector<16x128xf32>
    %122 = arith.truncf %121 : vector<16x128xf32> to vector<16x128xbf16>
    %c7_83 = arith.constant 7 : index
    %c0_84 = arith.constant 0 : index
    %c0_85 = arith.constant 0 : index
    %123 = vector.load %arg3[%c7_83, %c0_84, %c0_85] : memref<9x128x128xbf16, #tpu.memory_space<vmem>>, vector<1x128x128xbf16>
    %124 = vector.shape_cast %123 : vector<1x128x128xbf16> to vector<128x128xbf16>
    %cst_86 = arith.constant dense<0.000000e+00> : vector<16x128xf32>
    %125 = tpu.matmul %122, %124, %cst_86 {dimension_numbers = #tpu.dot_dimension_numbers<[1], [0], [0], [1], [0, 0, 1, 1], [], []>} : vector<16x128xbf16>, vector<128x128xbf16>, vector<16x128xf32> -> vector<16x128xf32>
    %126 = arith.addf %110, %125 : vector<16x128xf32>
    %c8 = arith.constant 8 : index
    %c0_87 = arith.constant 0 : index
    %c0_88 = arith.constant 0 : index
    %127 = vector.load %arg2[%c8, %c0_87, %c0_88] : memref<9x16x128xbf16, #tpu.memory_space<vmem>>, vector<1x16x128xbf16>
    %128 = vector.shape_cast %127 : vector<1x16x128xbf16> to vector<16x128xbf16>
    %129 = arith.extf %128 : vector<16x128xbf16> to vector<16x128xf32>
    %c0_89 = arith.constant 0 : index
    %c0_90 = arith.constant 0 : index
    %130 = vector.load %arg4[%c0_89, %c0_90] : memref<1x128xf32, #tpu.memory_space<vmem>>, vector<1x128xf32>
    %131 = vector.broadcast %130 : vector<1x128xf32> to vector<16x128xf32>
    %132 = arith.mulf %129, %131 : vector<16x128xf32>
    %c0_91 = arith.constant 0 : index
    %c0_92 = arith.constant 0 : index
    %133 = vector.load %arg5[%c0_91, %c0_92] : memref<1x128xf32, #tpu.memory_space<vmem>>, vector<1x128xf32>
    %134 = vector.broadcast %133 : vector<1x128xf32> to vector<16x128xf32>
    %135 = arith.addf %132, %134 : vector<16x128xf32>
    %cst_93 = arith.constant 0.000000e+00 : f32
    %136 = vector.broadcast %cst_93 : f32 to vector<16x128xf32>
    %137 = arith.maximumf %135, %136 : vector<16x128xf32>
    %138 = arith.truncf %137 : vector<16x128xf32> to vector<16x128xbf16>
    %c8_94 = arith.constant 8 : index
    %c0_95 = arith.constant 0 : index
    %c0_96 = arith.constant 0 : index
    %139 = vector.load %arg3[%c8_94, %c0_95, %c0_96] : memref<9x128x128xbf16, #tpu.memory_space<vmem>>, vector<1x128x128xbf16>
    %140 = vector.shape_cast %139 : vector<1x128x128xbf16> to vector<128x128xbf16>
    %cst_97 = arith.constant dense<0.000000e+00> : vector<16x128xf32>
    %141 = tpu.matmul %138, %140, %cst_97 {dimension_numbers = #tpu.dot_dimension_numbers<[1], [0], [0], [1], [0, 0, 1, 1], [], []>} : vector<16x128xbf16>, vector<128x128xbf16>, vector<16x128xf32> -> vector<16x128xf32>
    %142 = arith.addf %126, %141 : vector<16x128xf32>
    %c0_98 = arith.constant 0 : index
    %c0_99 = arith.constant 0 : index
    %143 = vector.load %arg6[%c0_98, %c0_99] : memref<16x128xbf16, #tpu.memory_space<vmem>>, vector<16x128xbf16>
    %144 = arith.extf %143 : vector<16x128xbf16> to vector<16x128xf32>
    %145 = arith.addf %142, %144 : vector<16x128xf32>
    %146 = arith.truncf %145 : vector<16x128xf32> to vector<16x128xbf16>
    %c0_100 = arith.constant 0 : index
    %c0_101 = arith.constant 0 : index
    %147 = vector.load %arg7[%c0_100, %c0_101] : memref<16x128xbf16, #tpu.memory_space<vmem>>, vector<16x128xbf16>
    tpu.vector_store %arg7[%c0_100, %c0_101], %146 {strides = array<i32>} : memref<16x128xbf16, #tpu.memory_space<vmem>>, vector<16x128xbf16>,
    return
  }
  func.func @transform_0(%arg0: i32, %arg1: i32) -> (i32, i32, i32) {
    %c0_i32 = arith.constant 0 : i32
    %c0_i32_0 = arith.constant 0 : i32
    %c0_i32_1 = arith.constant 0 : i32
    return %c0_i32, %arg0, %c0_i32_0 : i32, i32, i32
  }
  func.func @transform_1(%arg0: i32, %arg1: i32) -> (i32, i32, i32) {
    %c0_i32 = arith.constant 0 : i32
    %c0_i32_0 = arith.constant 0 : i32
    %c0_i32_1 = arith.constant 0 : i32
    return %c0_i32, %c0_i32_0, %arg1 : i32, i32, i32
  }
  func.func @transform_2(%arg0: i32, %arg1: i32) -> (i32, i32) {
    %c0_i32 = arith.constant 0 : i32
    %c0_i32_0 = arith.constant 0 : i32
    %c0_i32_1 = arith.constant 0 : i32
    return %c0_i32, %c0_i32_0 : i32, i32
  }
  func.func @transform_3(%arg0: i32, %arg1: i32) -> (i32, i32) {
    %c0_i32 = arith.constant 0 : i32
    %c0_i32_0 = arith.constant 0 : i32
    %c0_i32_1 = arith.constant 0 : i32
    return %c0_i32, %c0_i32_0 : i32, i32
  }
  func.func @transform_4(%arg0: i32, %arg1: i32) -> (i32, i32) {
    %c0_i32 = arith.constant 0 : i32
    return %arg0, %arg1 : i32, i32
  }
  func.func @transform_5(%arg0: i32, %arg1: i32) -> (i32, i32) {
    %c0_i32 = arith.constant 0 : i32
    return %arg0, %arg1 : i32, i32
  }
}

module attributes {stable_mosaic.version = 11 : i64} {
  func.func @_conv_kernel(%arg0: i32, %arg1: i32, %arg2: memref<1x8x128xbf16, #tpu.memory_space<vmem>>, %arg3: memref<1x128x128xbf16, #tpu.memory_space<vmem>>, %arg4: memref<1x128xf32, #tpu.memory_space<vmem>>, %arg5: memref<1x128xf32, #tpu.memory_space<vmem>>, %arg6: memref<8x128xbf16, #tpu.memory_space<vmem>>) attributes {dimension_semantics = [#tpu.dimension_semantics<parallel>, #tpu.dimension_semantics<parallel>], iteration_bounds = array<i64: 1, 1>, scalar_prefetch = 0 : i64, scratch_operands = 0 : i64, tpu.core_type = #tpu.core_type<tc>, window_params = [{transform_indices = @transform_0, window_bounds = array<i64: 1, 8, 128>}, {transform_indices = @transform_1, window_bounds = array<i64: 1, 128, 128>}, {pipeline_mode = #tpu.pipeline_mode<synchronous>, transform_indices = @transform_2, window_bounds = array<i64: 1, 128>}, {pipeline_mode = #tpu.pipeline_mode<synchronous>, transform_indices = @transform_3, window_bounds = array<i64: 1, 128>}, {transform_indices = @transform_4, window_bounds = array<i64: 8, 128>}]} {
    %c0 = arith.constant 0 : index
    %c0_0 = arith.constant 0 : index
    %c0_1 = arith.constant 0 : index
    %0 = vector.load %arg2[%c0, %c0_0, %c0_1] : memref<1x8x128xbf16, #tpu.memory_space<vmem>>, vector<1x8x128xbf16>
    %1 = vector.shape_cast %0 : vector<1x8x128xbf16> to vector<8x128xbf16>
    %2 = arith.extf %1 : vector<8x128xbf16> to vector<8x128xf32>
    %c0_2 = arith.constant 0 : index
    %c0_3 = arith.constant 0 : index
    %3 = vector.load %arg4[%c0_2, %c0_3] : memref<1x128xf32, #tpu.memory_space<vmem>>, vector<1x128xf32>
    %4 = vector.broadcast %3 : vector<1x128xf32> to vector<8x128xf32>
    %5 = arith.mulf %2, %4 : vector<8x128xf32>
    %c0_4 = arith.constant 0 : index
    %c0_5 = arith.constant 0 : index
    %6 = vector.load %arg5[%c0_4, %c0_5] : memref<1x128xf32, #tpu.memory_space<vmem>>, vector<1x128xf32>
    %7 = vector.broadcast %6 : vector<1x128xf32> to vector<8x128xf32>
    %8 = arith.addf %5, %7 : vector<8x128xf32>
    %cst = arith.constant 0.000000e+00 : f32
    %9 = vector.broadcast %cst : f32 to vector<8x128xf32>
    %10 = arith.maximumf %8, %9 : vector<8x128xf32>
    %11 = arith.truncf %10 : vector<8x128xf32> to vector<8x128xbf16>
    %c0_6 = arith.constant 0 : index
    %c0_7 = arith.constant 0 : index
    %c0_8 = arith.constant 0 : index
    %12 = vector.load %arg3[%c0_6, %c0_7, %c0_8] : memref<1x128x128xbf16, #tpu.memory_space<vmem>>, vector<1x128x128xbf16>
    %13 = vector.shape_cast %12 : vector<1x128x128xbf16> to vector<128x128xbf16>
    %cst_9 = arith.constant dense<0.000000e+00> : vector<8x128xf32>
    %14 = tpu.matmul %11, %13, %cst_9 {dimension_numbers = #tpu.dot_dimension_numbers<[1], [0], [0], [1], [0, 0, 1, 1], [], []>} : vector<8x128xbf16>, vector<128x128xbf16>, vector<8x128xf32> -> vector<8x128xf32>
    %15 = arith.truncf %14 : vector<8x128xf32> to vector<8x128xbf16>
    %c0_10 = arith.constant 0 : index
    %c0_11 = arith.constant 0 : index
    %16 = vector.load %arg6[%c0_10, %c0_11] : memref<8x128xbf16, #tpu.memory_space<vmem>>, vector<8x128xbf16>
    tpu.vector_store %arg6[%c0_10, %c0_11], %15 {strides = array<i32>} : memref<8x128xbf16, #tpu.memory_space<vmem>>, vector<8x128xbf16>,
    return
  }
  func.func @transform_0(%arg0: i32, %arg1: i32) -> (i32, i32, i32) {
    %c0_i32 = arith.constant 0 : i32
    %c0_i32_0 = arith.constant 0 : i32
    %c0_i32_1 = arith.constant 0 : i32
    return %c0_i32, %arg0, %c0_i32_0 : i32, i32, i32
  }
  func.func @transform_1(%arg0: i32, %arg1: i32) -> (i32, i32, i32) {
    %c0_i32 = arith.constant 0 : i32
    %c0_i32_0 = arith.constant 0 : i32
    %c0_i32_1 = arith.constant 0 : i32
    return %c0_i32, %c0_i32_0, %arg1 : i32, i32, i32
  }
  func.func @transform_2(%arg0: i32, %arg1: i32) -> (i32, i32) {
    %c0_i32 = arith.constant 0 : i32
    %c0_i32_0 = arith.constant 0 : i32
    %c0_i32_1 = arith.constant 0 : i32
    return %c0_i32, %c0_i32_0 : i32, i32
  }
  func.func @transform_3(%arg0: i32, %arg1: i32) -> (i32, i32) {
    %c0_i32 = arith.constant 0 : i32
    %c0_i32_0 = arith.constant 0 : i32
    %c0_i32_1 = arith.constant 0 : i32
    return %c0_i32, %c0_i32_0 : i32, i32
  }
  func.func @transform_4(%arg0: i32, %arg1: i32) -> (i32, i32) {
    %c0_i32 = arith.constant 0 : i32
    return %arg0, %arg1 : i32, i32
  }
}

module attributes {stable_mosaic.version = 11 : i64} {
  func.func @_conv_kernel(%arg0: i32, %arg1: i32, %arg2: memref<4x8x128xbf16, #tpu.memory_space<vmem>>, %arg3: memref<1x128x128xbf16, #tpu.memory_space<vmem>>, %arg4: memref<1x128xf32, #tpu.memory_space<vmem>>, %arg5: memref<1x128xf32, #tpu.memory_space<vmem>>, %arg6: memref<8x128xbf16, #tpu.memory_space<vmem>>) attributes {dimension_semantics = [#tpu.dimension_semantics<parallel>, #tpu.dimension_semantics<parallel>], iteration_bounds = array<i64: 1, 1>, scalar_prefetch = 0 : i64, scratch_operands = 0 : i64, tpu.core_type = #tpu.core_type<tc>, window_params = [{transform_indices = @transform_0, window_bounds = array<i64: 4, 8, 128>}, {transform_indices = @transform_1, window_bounds = array<i64: 1, 128, 128>}, {pipeline_mode = #tpu.pipeline_mode<synchronous>, transform_indices = @transform_2, window_bounds = array<i64: 1, 128>}, {pipeline_mode = #tpu.pipeline_mode<synchronous>, transform_indices = @transform_3, window_bounds = array<i64: 1, 128>}, {transform_indices = @transform_4, window_bounds = array<i64: 8, 128>}]} {
    %c0 = arith.constant 0 : index
    %c0_0 = arith.constant 0 : index
    %c0_1 = arith.constant 0 : index
    %0 = vector.load %arg2[%c0, %c0_0, %c0_1] : memref<4x8x128xbf16, #tpu.memory_space<vmem>>, vector<1x8x128xbf16>
    %1 = vector.shape_cast %0 : vector<1x8x128xbf16> to vector<8x128xbf16>
    %2 = arith.extf %1 : vector<8x128xbf16> to vector<8x128xf32>
    %c0_2 = arith.constant 0 : index
    %c0_3 = arith.constant 0 : index
    %3 = vector.load %arg4[%c0_2, %c0_3] : memref<1x128xf32, #tpu.memory_space<vmem>>, vector<1x128xf32>
    %4 = vector.broadcast %3 : vector<1x128xf32> to vector<8x128xf32>
    %5 = arith.mulf %2, %4 : vector<8x128xf32>
    %c0_4 = arith.constant 0 : index
    %c0_5 = arith.constant 0 : index
    %6 = vector.load %arg5[%c0_4, %c0_5] : memref<1x128xf32, #tpu.memory_space<vmem>>, vector<1x128xf32>
    %7 = vector.broadcast %6 : vector<1x128xf32> to vector<8x128xf32>
    %8 = arith.addf %5, %7 : vector<8x128xf32>
    %cst = arith.constant 0.000000e+00 : f32
    %9 = vector.broadcast %cst : f32 to vector<8x128xf32>
    %10 = arith.maximumf %8, %9 : vector<8x128xf32>
    %c1 = arith.constant 1 : index
    %c0_6 = arith.constant 0 : index
    %c0_7 = arith.constant 0 : index
    %11 = vector.load %arg2[%c1, %c0_6, %c0_7] : memref<4x8x128xbf16, #tpu.memory_space<vmem>>, vector<1x8x128xbf16>
    %12 = vector.shape_cast %11 : vector<1x8x128xbf16> to vector<8x128xbf16>
    %13 = arith.extf %12 : vector<8x128xbf16> to vector<8x128xf32>
    %c0_8 = arith.constant 0 : index
    %c0_9 = arith.constant 0 : index
    %14 = vector.load %arg4[%c0_8, %c0_9] : memref<1x128xf32, #tpu.memory_space<vmem>>, vector<1x128xf32>
    %15 = vector.broadcast %14 : vector<1x128xf32> to vector<8x128xf32>
    %16 = arith.mulf %13, %15 : vector<8x128xf32>
    %c0_10 = arith.constant 0 : index
    %c0_11 = arith.constant 0 : index
    %17 = vector.load %arg5[%c0_10, %c0_11] : memref<1x128xf32, #tpu.memory_space<vmem>>, vector<1x128xf32>
    %18 = vector.broadcast %17 : vector<1x128xf32> to vector<8x128xf32>
    %19 = arith.addf %16, %18 : vector<8x128xf32>
    %cst_12 = arith.constant 0.000000e+00 : f32
    %20 = vector.broadcast %cst_12 : f32 to vector<8x128xf32>
    %21 = arith.maximumf %19, %20 : vector<8x128xf32>
    %22 = arith.addf %10, %21 : vector<8x128xf32>
    %c2 = arith.constant 2 : index
    %c0_13 = arith.constant 0 : index
    %c0_14 = arith.constant 0 : index
    %23 = vector.load %arg2[%c2, %c0_13, %c0_14] : memref<4x8x128xbf16, #tpu.memory_space<vmem>>, vector<1x8x128xbf16>
    %24 = vector.shape_cast %23 : vector<1x8x128xbf16> to vector<8x128xbf16>
    %25 = arith.extf %24 : vector<8x128xbf16> to vector<8x128xf32>
    %c0_15 = arith.constant 0 : index
    %c0_16 = arith.constant 0 : index
    %26 = vector.load %arg4[%c0_15, %c0_16] : memref<1x128xf32, #tpu.memory_space<vmem>>, vector<1x128xf32>
    %27 = vector.broadcast %26 : vector<1x128xf32> to vector<8x128xf32>
    %28 = arith.mulf %25, %27 : vector<8x128xf32>
    %c0_17 = arith.constant 0 : index
    %c0_18 = arith.constant 0 : index
    %29 = vector.load %arg5[%c0_17, %c0_18] : memref<1x128xf32, #tpu.memory_space<vmem>>, vector<1x128xf32>
    %30 = vector.broadcast %29 : vector<1x128xf32> to vector<8x128xf32>
    %31 = arith.addf %28, %30 : vector<8x128xf32>
    %cst_19 = arith.constant 0.000000e+00 : f32
    %32 = vector.broadcast %cst_19 : f32 to vector<8x128xf32>
    %33 = arith.maximumf %31, %32 : vector<8x128xf32>
    %34 = arith.addf %22, %33 : vector<8x128xf32>
    %c3 = arith.constant 3 : index
    %c0_20 = arith.constant 0 : index
    %c0_21 = arith.constant 0 : index
    %35 = vector.load %arg2[%c3, %c0_20, %c0_21] : memref<4x8x128xbf16, #tpu.memory_space<vmem>>, vector<1x8x128xbf16>
    %36 = vector.shape_cast %35 : vector<1x8x128xbf16> to vector<8x128xbf16>
    %37 = arith.extf %36 : vector<8x128xbf16> to vector<8x128xf32>
    %c0_22 = arith.constant 0 : index
    %c0_23 = arith.constant 0 : index
    %38 = vector.load %arg4[%c0_22, %c0_23] : memref<1x128xf32, #tpu.memory_space<vmem>>, vector<1x128xf32>
    %39 = vector.broadcast %38 : vector<1x128xf32> to vector<8x128xf32>
    %40 = arith.mulf %37, %39 : vector<8x128xf32>
    %c0_24 = arith.constant 0 : index
    %c0_25 = arith.constant 0 : index
    %41 = vector.load %arg5[%c0_24, %c0_25] : memref<1x128xf32, #tpu.memory_space<vmem>>, vector<1x128xf32>
    %42 = vector.broadcast %41 : vector<1x128xf32> to vector<8x128xf32>
    %43 = arith.addf %40, %42 : vector<8x128xf32>
    %cst_26 = arith.constant 0.000000e+00 : f32
    %44 = vector.broadcast %cst_26 : f32 to vector<8x128xf32>
    %45 = arith.maximumf %43, %44 : vector<8x128xf32>
    %46 = arith.addf %34, %45 : vector<8x128xf32>
    %cst_27 = arith.constant 2.500000e-01 : f32
    %47 = vector.broadcast %cst_27 : f32 to vector<8x128xf32>
    %48 = arith.mulf %46, %47 : vector<8x128xf32>
    %49 = arith.truncf %48 : vector<8x128xf32> to vector<8x128xbf16>
    %c0_28 = arith.constant 0 : index
    %c0_29 = arith.constant 0 : index
    %c0_30 = arith.constant 0 : index
    %50 = vector.load %arg3[%c0_28, %c0_29, %c0_30] : memref<1x128x128xbf16, #tpu.memory_space<vmem>>, vector<1x128x128xbf16>
    %51 = vector.shape_cast %50 : vector<1x128x128xbf16> to vector<128x128xbf16>
    %cst_31 = arith.constant dense<0.000000e+00> : vector<8x128xf32>
    %52 = tpu.matmul %49, %51, %cst_31 {dimension_numbers = #tpu.dot_dimension_numbers<[1], [0], [0], [1], [0, 0, 1, 1], [], []>} : vector<8x128xbf16>, vector<128x128xbf16>, vector<8x128xf32> -> vector<8x128xf32>
    %53 = arith.truncf %52 : vector<8x128xf32> to vector<8x128xbf16>
    %c0_32 = arith.constant 0 : index
    %c0_33 = arith.constant 0 : index
    %54 = vector.load %arg6[%c0_32, %c0_33] : memref<8x128xbf16, #tpu.memory_space<vmem>>, vector<8x128xbf16>
    tpu.vector_store %arg6[%c0_32, %c0_33], %53 {strides = array<i32>} : memref<8x128xbf16, #tpu.memory_space<vmem>>, vector<8x128xbf16>,
    return
  }
  func.func @transform_0(%arg0: i32, %arg1: i32) -> (i32, i32, i32) {
    %c0_i32 = arith.constant 0 : i32
    %c0_i32_0 = arith.constant 0 : i32
    %c0_i32_1 = arith.constant 0 : i32
    return %c0_i32, %arg0, %c0_i32_0 : i32, i32, i32
  }
  func.func @transform_1(%arg0: i32, %arg1: i32) -> (i32, i32, i32) {
    %c0_i32 = arith.constant 0 : i32
    %c0_i32_0 = arith.constant 0 : i32
    %c0_i32_1 = arith.constant 0 : i32
    return %c0_i32, %c0_i32_0, %arg1 : i32, i32, i32
  }
  func.func @transform_2(%arg0: i32, %arg1: i32) -> (i32, i32) {
    %c0_i32 = arith.constant 0 : i32
    %c0_i32_0 = arith.constant 0 : i32
    %c0_i32_1 = arith.constant 0 : i32
    return %c0_i32, %c0_i32_0 : i32, i32
  }
  func.func @transform_3(%arg0: i32, %arg1: i32) -> (i32, i32) {
    %c0_i32 = arith.constant 0 : i32
    %c0_i32_0 = arith.constant 0 : i32
    %c0_i32_1 = arith.constant 0 : i32
    return %c0_i32, %c0_i32_0 : i32, i32
  }
  func.func @transform_4(%arg0: i32, %arg1: i32) -> (i32, i32) {
    %c0_i32 = arith.constant 0 : i32
    return %arg0, %arg1 : i32, i32
  }
}

module attributes {stable_mosaic.version = 11 : i64} {
  func.func @_conv_kernel(%arg0: i32, %arg1: i32, %arg2: memref<9x8x128xbf16, #tpu.memory_space<vmem>>, %arg3: memref<9x128x128xbf16, #tpu.memory_space<vmem>>, %arg4: memref<1x128xf32, #tpu.memory_space<vmem>>, %arg5: memref<1x128xf32, #tpu.memory_space<vmem>>, %arg6: memref<8x128xbf16, #tpu.memory_space<vmem>>, %arg7: memref<8x128xbf16, #tpu.memory_space<vmem>>) attributes {dimension_semantics = [#tpu.dimension_semantics<parallel>, #tpu.dimension_semantics<parallel>], iteration_bounds = array<i64: 1, 1>, scalar_prefetch = 0 : i64, scratch_operands = 0 : i64, tpu.core_type = #tpu.core_type<tc>, window_params = [{transform_indices = @transform_0, window_bounds = array<i64: 9, 8, 128>}, {transform_indices = @transform_1, window_bounds = array<i64: 9, 128, 128>}, {pipeline_mode = #tpu.pipeline_mode<synchronous>, transform_indices = @transform_2, window_bounds = array<i64: 1, 128>}, {pipeline_mode = #tpu.pipeline_mode<synchronous>, transform_indices = @transform_3, window_bounds = array<i64: 1, 128>}, {transform_indices = @transform_4, window_bounds = array<i64: 8, 128>}, {transform_indices = @transform_5, window_bounds = array<i64: 8, 128>}]} {
    %c0 = arith.constant 0 : index
    %c0_0 = arith.constant 0 : index
    %c0_1 = arith.constant 0 : index
    %0 = vector.load %arg2[%c0, %c0_0, %c0_1] : memref<9x8x128xbf16, #tpu.memory_space<vmem>>, vector<1x8x128xbf16>
    %1 = vector.shape_cast %0 : vector<1x8x128xbf16> to vector<8x128xbf16>
    %2 = arith.extf %1 : vector<8x128xbf16> to vector<8x128xf32>
    %c0_2 = arith.constant 0 : index
    %c0_3 = arith.constant 0 : index
    %3 = vector.load %arg4[%c0_2, %c0_3] : memref<1x128xf32, #tpu.memory_space<vmem>>, vector<1x128xf32>
    %4 = vector.broadcast %3 : vector<1x128xf32> to vector<8x128xf32>
    %5 = arith.mulf %2, %4 : vector<8x128xf32>
    %c0_4 = arith.constant 0 : index
    %c0_5 = arith.constant 0 : index
    %6 = vector.load %arg5[%c0_4, %c0_5] : memref<1x128xf32, #tpu.memory_space<vmem>>, vector<1x128xf32>
    %7 = vector.broadcast %6 : vector<1x128xf32> to vector<8x128xf32>
    %8 = arith.addf %5, %7 : vector<8x128xf32>
    %cst = arith.constant 0.000000e+00 : f32
    %9 = vector.broadcast %cst : f32 to vector<8x128xf32>
    %10 = arith.maximumf %8, %9 : vector<8x128xf32>
    %11 = arith.truncf %10 : vector<8x128xf32> to vector<8x128xbf16>
    %c0_6 = arith.constant 0 : index
    %c0_7 = arith.constant 0 : index
    %c0_8 = arith.constant 0 : index
    %12 = vector.load %arg3[%c0_6, %c0_7, %c0_8] : memref<9x128x128xbf16, #tpu.memory_space<vmem>>, vector<1x128x128xbf16>
    %13 = vector.shape_cast %12 : vector<1x128x128xbf16> to vector<128x128xbf16>
    %cst_9 = arith.constant dense<0.000000e+00> : vector<8x128xf32>
    %14 = tpu.matmul %11, %13, %cst_9 {dimension_numbers = #tpu.dot_dimension_numbers<[1], [0], [0], [1], [0, 0, 1, 1], [], []>} : vector<8x128xbf16>, vector<128x128xbf16>, vector<8x128xf32> -> vector<8x128xf32>
    %c1 = arith.constant 1 : index
    %c0_10 = arith.constant 0 : index
    %c0_11 = arith.constant 0 : index
    %15 = vector.load %arg2[%c1, %c0_10, %c0_11] : memref<9x8x128xbf16, #tpu.memory_space<vmem>>, vector<1x8x128xbf16>
    %16 = vector.shape_cast %15 : vector<1x8x128xbf16> to vector<8x128xbf16>
    %17 = arith.extf %16 : vector<8x128xbf16> to vector<8x128xf32>
    %c0_12 = arith.constant 0 : index
    %c0_13 = arith.constant 0 : index
    %18 = vector.load %arg4[%c0_12, %c0_13] : memref<1x128xf32, #tpu.memory_space<vmem>>, vector<1x128xf32>
    %19 = vector.broadcast %18 : vector<1x128xf32> to vector<8x128xf32>
    %20 = arith.mulf %17, %19 : vector<8x128xf32>
    %c0_14 = arith.constant 0 : index
    %c0_15 = arith.constant 0 : index
    %21 = vector.load %arg5[%c0_14, %c0_15] : memref<1x128xf32, #tpu.memory_space<vmem>>, vector<1x128xf32>
    %22 = vector.broadcast %21 : vector<1x128xf32> to vector<8x128xf32>
    %23 = arith.addf %20, %22 : vector<8x128xf32>
    %cst_16 = arith.constant 0.000000e+00 : f32
    %24 = vector.broadcast %cst_16 : f32 to vector<8x128xf32>
    %25 = arith.maximumf %23, %24 : vector<8x128xf32>
    %26 = arith.truncf %25 : vector<8x128xf32> to vector<8x128xbf16>
    %c1_17 = arith.constant 1 : index
    %c0_18 = arith.constant 0 : index
    %c0_19 = arith.constant 0 : index
    %27 = vector.load %arg3[%c1_17, %c0_18, %c0_19] : memref<9x128x128xbf16, #tpu.memory_space<vmem>>, vector<1x128x128xbf16>
    %28 = vector.shape_cast %27 : vector<1x128x128xbf16> to vector<128x128xbf16>
    %cst_20 = arith.constant dense<0.000000e+00> : vector<8x128xf32>
    %29 = tpu.matmul %26, %28, %cst_20 {dimension_numbers = #tpu.dot_dimension_numbers<[1], [0], [0], [1], [0, 0, 1, 1], [], []>} : vector<8x128xbf16>, vector<128x128xbf16>, vector<8x128xf32> -> vector<8x128xf32>
    %30 = arith.addf %14, %29 : vector<8x128xf32>
    %c2 = arith.constant 2 : index
    %c0_21 = arith.constant 0 : index
    %c0_22 = arith.constant 0 : index
    %31 = vector.load %arg2[%c2, %c0_21, %c0_22] : memref<9x8x128xbf16, #tpu.memory_space<vmem>>, vector<1x8x128xbf16>
    %32 = vector.shape_cast %31 : vector<1x8x128xbf16> to vector<8x128xbf16>
    %33 = arith.extf %32 : vector<8x128xbf16> to vector<8x128xf32>
    %c0_23 = arith.constant 0 : index
    %c0_24 = arith.constant 0 : index
    %34 = vector.load %arg4[%c0_23, %c0_24] : memref<1x128xf32, #tpu.memory_space<vmem>>, vector<1x128xf32>
    %35 = vector.broadcast %34 : vector<1x128xf32> to vector<8x128xf32>
    %36 = arith.mulf %33, %35 : vector<8x128xf32>
    %c0_25 = arith.constant 0 : index
    %c0_26 = arith.constant 0 : index
    %37 = vector.load %arg5[%c0_25, %c0_26] : memref<1x128xf32, #tpu.memory_space<vmem>>, vector<1x128xf32>
    %38 = vector.broadcast %37 : vector<1x128xf32> to vector<8x128xf32>
    %39 = arith.addf %36, %38 : vector<8x128xf32>
    %cst_27 = arith.constant 0.000000e+00 : f32
    %40 = vector.broadcast %cst_27 : f32 to vector<8x128xf32>
    %41 = arith.maximumf %39, %40 : vector<8x128xf32>
    %42 = arith.truncf %41 : vector<8x128xf32> to vector<8x128xbf16>
    %c2_28 = arith.constant 2 : index
    %c0_29 = arith.constant 0 : index
    %c0_30 = arith.constant 0 : index
    %43 = vector.load %arg3[%c2_28, %c0_29, %c0_30] : memref<9x128x128xbf16, #tpu.memory_space<vmem>>, vector<1x128x128xbf16>
    %44 = vector.shape_cast %43 : vector<1x128x128xbf16> to vector<128x128xbf16>
    %cst_31 = arith.constant dense<0.000000e+00> : vector<8x128xf32>
    %45 = tpu.matmul %42, %44, %cst_31 {dimension_numbers = #tpu.dot_dimension_numbers<[1], [0], [0], [1], [0, 0, 1, 1], [], []>} : vector<8x128xbf16>, vector<128x128xbf16>, vector<8x128xf32> -> vector<8x128xf32>
    %46 = arith.addf %30, %45 : vector<8x128xf32>
    %c3 = arith.constant 3 : index
    %c0_32 = arith.constant 0 : index
    %c0_33 = arith.constant 0 : index
    %47 = vector.load %arg2[%c3, %c0_32, %c0_33] : memref<9x8x128xbf16, #tpu.memory_space<vmem>>, vector<1x8x128xbf16>
    %48 = vector.shape_cast %47 : vector<1x8x128xbf16> to vector<8x128xbf16>
    %49 = arith.extf %48 : vector<8x128xbf16> to vector<8x128xf32>
    %c0_34 = arith.constant 0 : index
    %c0_35 = arith.constant 0 : index
    %50 = vector.load %arg4[%c0_34, %c0_35] : memref<1x128xf32, #tpu.memory_space<vmem>>, vector<1x128xf32>
    %51 = vector.broadcast %50 : vector<1x128xf32> to vector<8x128xf32>
    %52 = arith.mulf %49, %51 : vector<8x128xf32>
    %c0_36 = arith.constant 0 : index
    %c0_37 = arith.constant 0 : index
    %53 = vector.load %arg5[%c0_36, %c0_37] : memref<1x128xf32, #tpu.memory_space<vmem>>, vector<1x128xf32>
    %54 = vector.broadcast %53 : vector<1x128xf32> to vector<8x128xf32>
    %55 = arith.addf %52, %54 : vector<8x128xf32>
    %cst_38 = arith.constant 0.000000e+00 : f32
    %56 = vector.broadcast %cst_38 : f32 to vector<8x128xf32>
    %57 = arith.maximumf %55, %56 : vector<8x128xf32>
    %58 = arith.truncf %57 : vector<8x128xf32> to vector<8x128xbf16>
    %c3_39 = arith.constant 3 : index
    %c0_40 = arith.constant 0 : index
    %c0_41 = arith.constant 0 : index
    %59 = vector.load %arg3[%c3_39, %c0_40, %c0_41] : memref<9x128x128xbf16, #tpu.memory_space<vmem>>, vector<1x128x128xbf16>
    %60 = vector.shape_cast %59 : vector<1x128x128xbf16> to vector<128x128xbf16>
    %cst_42 = arith.constant dense<0.000000e+00> : vector<8x128xf32>
    %61 = tpu.matmul %58, %60, %cst_42 {dimension_numbers = #tpu.dot_dimension_numbers<[1], [0], [0], [1], [0, 0, 1, 1], [], []>} : vector<8x128xbf16>, vector<128x128xbf16>, vector<8x128xf32> -> vector<8x128xf32>
    %62 = arith.addf %46, %61 : vector<8x128xf32>
    %c4 = arith.constant 4 : index
    %c0_43 = arith.constant 0 : index
    %c0_44 = arith.constant 0 : index
    %63 = vector.load %arg2[%c4, %c0_43, %c0_44] : memref<9x8x128xbf16, #tpu.memory_space<vmem>>, vector<1x8x128xbf16>
    %64 = vector.shape_cast %63 : vector<1x8x128xbf16> to vector<8x128xbf16>
    %65 = arith.extf %64 : vector<8x128xbf16> to vector<8x128xf32>
    %c0_45 = arith.constant 0 : index
    %c0_46 = arith.constant 0 : index
    %66 = vector.load %arg4[%c0_45, %c0_46] : memref<1x128xf32, #tpu.memory_space<vmem>>, vector<1x128xf32>
    %67 = vector.broadcast %66 : vector<1x128xf32> to vector<8x128xf32>
    %68 = arith.mulf %65, %67 : vector<8x128xf32>
    %c0_47 = arith.constant 0 : index
    %c0_48 = arith.constant 0 : index
    %69 = vector.load %arg5[%c0_47, %c0_48] : memref<1x128xf32, #tpu.memory_space<vmem>>, vector<1x128xf32>
    %70 = vector.broadcast %69 : vector<1x128xf32> to vector<8x128xf32>
    %71 = arith.addf %68, %70 : vector<8x128xf32>
    %cst_49 = arith.constant 0.000000e+00 : f32
    %72 = vector.broadcast %cst_49 : f32 to vector<8x128xf32>
    %73 = arith.maximumf %71, %72 : vector<8x128xf32>
    %74 = arith.truncf %73 : vector<8x128xf32> to vector<8x128xbf16>
    %c4_50 = arith.constant 4 : index
    %c0_51 = arith.constant 0 : index
    %c0_52 = arith.constant 0 : index
    %75 = vector.load %arg3[%c4_50, %c0_51, %c0_52] : memref<9x128x128xbf16, #tpu.memory_space<vmem>>, vector<1x128x128xbf16>
    %76 = vector.shape_cast %75 : vector<1x128x128xbf16> to vector<128x128xbf16>
    %cst_53 = arith.constant dense<0.000000e+00> : vector<8x128xf32>
    %77 = tpu.matmul %74, %76, %cst_53 {dimension_numbers = #tpu.dot_dimension_numbers<[1], [0], [0], [1], [0, 0, 1, 1], [], []>} : vector<8x128xbf16>, vector<128x128xbf16>, vector<8x128xf32> -> vector<8x128xf32>
    %78 = arith.addf %62, %77 : vector<8x128xf32>
    %c5 = arith.constant 5 : index
    %c0_54 = arith.constant 0 : index
    %c0_55 = arith.constant 0 : index
    %79 = vector.load %arg2[%c5, %c0_54, %c0_55] : memref<9x8x128xbf16, #tpu.memory_space<vmem>>, vector<1x8x128xbf16>
    %80 = vector.shape_cast %79 : vector<1x8x128xbf16> to vector<8x128xbf16>
    %81 = arith.extf %80 : vector<8x128xbf16> to vector<8x128xf32>
    %c0_56 = arith.constant 0 : index
    %c0_57 = arith.constant 0 : index
    %82 = vector.load %arg4[%c0_56, %c0_57] : memref<1x128xf32, #tpu.memory_space<vmem>>, vector<1x128xf32>
    %83 = vector.broadcast %82 : vector<1x128xf32> to vector<8x128xf32>
    %84 = arith.mulf %81, %83 : vector<8x128xf32>
    %c0_58 = arith.constant 0 : index
    %c0_59 = arith.constant 0 : index
    %85 = vector.load %arg5[%c0_58, %c0_59] : memref<1x128xf32, #tpu.memory_space<vmem>>, vector<1x128xf32>
    %86 = vector.broadcast %85 : vector<1x128xf32> to vector<8x128xf32>
    %87 = arith.addf %84, %86 : vector<8x128xf32>
    %cst_60 = arith.constant 0.000000e+00 : f32
    %88 = vector.broadcast %cst_60 : f32 to vector<8x128xf32>
    %89 = arith.maximumf %87, %88 : vector<8x128xf32>
    %90 = arith.truncf %89 : vector<8x128xf32> to vector<8x128xbf16>
    %c5_61 = arith.constant 5 : index
    %c0_62 = arith.constant 0 : index
    %c0_63 = arith.constant 0 : index
    %91 = vector.load %arg3[%c5_61, %c0_62, %c0_63] : memref<9x128x128xbf16, #tpu.memory_space<vmem>>, vector<1x128x128xbf16>
    %92 = vector.shape_cast %91 : vector<1x128x128xbf16> to vector<128x128xbf16>
    %cst_64 = arith.constant dense<0.000000e+00> : vector<8x128xf32>
    %93 = tpu.matmul %90, %92, %cst_64 {dimension_numbers = #tpu.dot_dimension_numbers<[1], [0], [0], [1], [0, 0, 1, 1], [], []>} : vector<8x128xbf16>, vector<128x128xbf16>, vector<8x128xf32> -> vector<8x128xf32>
    %94 = arith.addf %78, %93 : vector<8x128xf32>
    %c6 = arith.constant 6 : index
    %c0_65 = arith.constant 0 : index
    %c0_66 = arith.constant 0 : index
    %95 = vector.load %arg2[%c6, %c0_65, %c0_66] : memref<9x8x128xbf16, #tpu.memory_space<vmem>>, vector<1x8x128xbf16>
    %96 = vector.shape_cast %95 : vector<1x8x128xbf16> to vector<8x128xbf16>
    %97 = arith.extf %96 : vector<8x128xbf16> to vector<8x128xf32>
    %c0_67 = arith.constant 0 : index
    %c0_68 = arith.constant 0 : index
    %98 = vector.load %arg4[%c0_67, %c0_68] : memref<1x128xf32, #tpu.memory_space<vmem>>, vector<1x128xf32>
    %99 = vector.broadcast %98 : vector<1x128xf32> to vector<8x128xf32>
    %100 = arith.mulf %97, %99 : vector<8x128xf32>
    %c0_69 = arith.constant 0 : index
    %c0_70 = arith.constant 0 : index
    %101 = vector.load %arg5[%c0_69, %c0_70] : memref<1x128xf32, #tpu.memory_space<vmem>>, vector<1x128xf32>
    %102 = vector.broadcast %101 : vector<1x128xf32> to vector<8x128xf32>
    %103 = arith.addf %100, %102 : vector<8x128xf32>
    %cst_71 = arith.constant 0.000000e+00 : f32
    %104 = vector.broadcast %cst_71 : f32 to vector<8x128xf32>
    %105 = arith.maximumf %103, %104 : vector<8x128xf32>
    %106 = arith.truncf %105 : vector<8x128xf32> to vector<8x128xbf16>
    %c6_72 = arith.constant 6 : index
    %c0_73 = arith.constant 0 : index
    %c0_74 = arith.constant 0 : index
    %107 = vector.load %arg3[%c6_72, %c0_73, %c0_74] : memref<9x128x128xbf16, #tpu.memory_space<vmem>>, vector<1x128x128xbf16>
    %108 = vector.shape_cast %107 : vector<1x128x128xbf16> to vector<128x128xbf16>
    %cst_75 = arith.constant dense<0.000000e+00> : vector<8x128xf32>
    %109 = tpu.matmul %106, %108, %cst_75 {dimension_numbers = #tpu.dot_dimension_numbers<[1], [0], [0], [1], [0, 0, 1, 1], [], []>} : vector<8x128xbf16>, vector<128x128xbf16>, vector<8x128xf32> -> vector<8x128xf32>
    %110 = arith.addf %94, %109 : vector<8x128xf32>
    %c7 = arith.constant 7 : index
    %c0_76 = arith.constant 0 : index
    %c0_77 = arith.constant 0 : index
    %111 = vector.load %arg2[%c7, %c0_76, %c0_77] : memref<9x8x128xbf16, #tpu.memory_space<vmem>>, vector<1x8x128xbf16>
    %112 = vector.shape_cast %111 : vector<1x8x128xbf16> to vector<8x128xbf16>
    %113 = arith.extf %112 : vector<8x128xbf16> to vector<8x128xf32>
    %c0_78 = arith.constant 0 : index
    %c0_79 = arith.constant 0 : index
    %114 = vector.load %arg4[%c0_78, %c0_79] : memref<1x128xf32, #tpu.memory_space<vmem>>, vector<1x128xf32>
    %115 = vector.broadcast %114 : vector<1x128xf32> to vector<8x128xf32>
    %116 = arith.mulf %113, %115 : vector<8x128xf32>
    %c0_80 = arith.constant 0 : index
    %c0_81 = arith.constant 0 : index
    %117 = vector.load %arg5[%c0_80, %c0_81] : memref<1x128xf32, #tpu.memory_space<vmem>>, vector<1x128xf32>
    %118 = vector.broadcast %117 : vector<1x128xf32> to vector<8x128xf32>
    %119 = arith.addf %116, %118 : vector<8x128xf32>
    %cst_82 = arith.constant 0.000000e+00 : f32
    %120 = vector.broadcast %cst_82 : f32 to vector<8x128xf32>
    %121 = arith.maximumf %119, %120 : vector<8x128xf32>
    %122 = arith.truncf %121 : vector<8x128xf32> to vector<8x128xbf16>
    %c7_83 = arith.constant 7 : index
    %c0_84 = arith.constant 0 : index
    %c0_85 = arith.constant 0 : index
    %123 = vector.load %arg3[%c7_83, %c0_84, %c0_85] : memref<9x128x128xbf16, #tpu.memory_space<vmem>>, vector<1x128x128xbf16>
    %124 = vector.shape_cast %123 : vector<1x128x128xbf16> to vector<128x128xbf16>
    %cst_86 = arith.constant dense<0.000000e+00> : vector<8x128xf32>
    %125 = tpu.matmul %122, %124, %cst_86 {dimension_numbers = #tpu.dot_dimension_numbers<[1], [0], [0], [1], [0, 0, 1, 1], [], []>} : vector<8x128xbf16>, vector<128x128xbf16>, vector<8x128xf32> -> vector<8x128xf32>
    %126 = arith.addf %110, %125 : vector<8x128xf32>
    %c8 = arith.constant 8 : index
    %c0_87 = arith.constant 0 : index
    %c0_88 = arith.constant 0 : index
    %127 = vector.load %arg2[%c8, %c0_87, %c0_88] : memref<9x8x128xbf16, #tpu.memory_space<vmem>>, vector<1x8x128xbf16>
    %128 = vector.shape_cast %127 : vector<1x8x128xbf16> to vector<8x128xbf16>
    %129 = arith.extf %128 : vector<8x128xbf16> to vector<8x128xf32>
    %c0_89 = arith.constant 0 : index
    %c0_90 = arith.constant 0 : index
    %130 = vector.load %arg4[%c0_89, %c0_90] : memref<1x128xf32, #tpu.memory_space<vmem>>, vector<1x128xf32>
    %131 = vector.broadcast %130 : vector<1x128xf32> to vector<8x128xf32>
    %132 = arith.mulf %129, %131 : vector<8x128xf32>
    %c0_91 = arith.constant 0 : index
    %c0_92 = arith.constant 0 : index
    %133 = vector.load %arg5[%c0_91, %c0_92] : memref<1x128xf32, #tpu.memory_space<vmem>>, vector<1x128xf32>
    %134 = vector.broadcast %133 : vector<1x128xf32> to vector<8x128xf32>
    %135 = arith.addf %132, %134 : vector<8x128xf32>
    %cst_93 = arith.constant 0.000000e+00 : f32
    %136 = vector.broadcast %cst_93 : f32 to vector<8x128xf32>
    %137 = arith.maximumf %135, %136 : vector<8x128xf32>
    %138 = arith.truncf %137 : vector<8x128xf32> to vector<8x128xbf16>
    %c8_94 = arith.constant 8 : index
    %c0_95 = arith.constant 0 : index
    %c0_96 = arith.constant 0 : index
    %139 = vector.load %arg3[%c8_94, %c0_95, %c0_96] : memref<9x128x128xbf16, #tpu.memory_space<vmem>>, vector<1x128x128xbf16>
    %140 = vector.shape_cast %139 : vector<1x128x128xbf16> to vector<128x128xbf16>
    %cst_97 = arith.constant dense<0.000000e+00> : vector<8x128xf32>
    %141 = tpu.matmul %138, %140, %cst_97 {dimension_numbers = #tpu.dot_dimension_numbers<[1], [0], [0], [1], [0, 0, 1, 1], [], []>} : vector<8x128xbf16>, vector<128x128xbf16>, vector<8x128xf32> -> vector<8x128xf32>
    %142 = arith.addf %126, %141 : vector<8x128xf32>
    %c0_98 = arith.constant 0 : index
    %c0_99 = arith.constant 0 : index
    %143 = vector.load %arg6[%c0_98, %c0_99] : memref<8x128xbf16, #tpu.memory_space<vmem>>, vector<8x128xbf16>
    %144 = arith.extf %143 : vector<8x128xbf16> to vector<8x128xf32>
    %145 = arith.addf %142, %144 : vector<8x128xf32>
    %146 = arith.truncf %145 : vector<8x128xf32> to vector<8x128xbf16>
    %c0_100 = arith.constant 0 : index
    %c0_101 = arith.constant 0 : index
    %147 = vector.load %arg7[%c0_100, %c0_101] : memref<8x128xbf16, #tpu.memory_space<vmem>>, vector<8x128xbf16>
    tpu.vector_store %arg7[%c0_100, %c0_101], %146 {strides = array<i32>} : memref<8x128xbf16, #tpu.memory_space<vmem>>, vector<8x128xbf16>,
    return
  }
  func.func @transform_0(%arg0: i32, %arg1: i32) -> (i32, i32, i32) {
    %c0_i32 = arith.constant 0 : i32
    %c0_i32_0 = arith.constant 0 : i32
    %c0_i32_1 = arith.constant 0 : i32
    return %c0_i32, %arg0, %c0_i32_0 : i32, i32, i32
  }
  func.func @transform_1(%arg0: i32, %arg1: i32) -> (i32, i32, i32) {
    %c0_i32 = arith.constant 0 : i32
    %c0_i32_0 = arith.constant 0 : i32
    %c0_i32_1 = arith.constant 0 : i32
    return %c0_i32, %c0_i32_0, %arg1 : i32, i32, i32
  }
  func.func @transform_2(%arg0: i32, %arg1: i32) -> (i32, i32) {
    %c0_i32 = arith.constant 0 : i32
    %c0_i32_0 = arith.constant 0 : i32
    %c0_i32_1 = arith.constant 0 : i32
    return %c0_i32, %c0_i32_0 : i32, i32
  }
  func.func @transform_3(%arg0: i32, %arg1: i32) -> (i32, i32) {
    %c0_i32 = arith.constant 0 : i32
    %c0_i32_0 = arith.constant 0 : i32
    %c0_i32_1 = arith.constant 0 : i32
    return %c0_i32, %c0_i32_0 : i32, i32
  }
  func.func @transform_4(%arg0: i32, %arg1: i32) -> (i32, i32) {
    %c0_i32 = arith.constant 0 : i32
    return %arg0, %arg1 : i32, i32
  }
  func.func @transform_5(%arg0: i32, %arg1: i32) -> (i32, i32) {
    %c0_i32 = arith.constant 0 : i32
    return %arg0, %arg1 : i32, i32
  }
}

module attributes {stable_mosaic.version = 11 : i64} {
  func.func @_head_kernel(%arg0: i32, %arg1: memref<2x4x128xbf16, #tpu.memory_space<vmem>>, %arg2: memref<1x1x128xf32, #tpu.memory_space<vmem>>, %arg3: memref<1x1x128xf32, #tpu.memory_space<vmem>>, %arg4: memref<2x128xf32, #tpu.memory_space<vmem>>) attributes {dimension_semantics = [#tpu.dimension_semantics<arbitrary>], iteration_bounds = array<i64: 1>, scalar_prefetch = 0 : i64, scratch_operands = 0 : i64, tpu.core_type = #tpu.core_type<tc>, window_params = [{pipeline_mode = #tpu.pipeline_mode<synchronous>, transform_indices = @transform_0, window_bounds = array<i64: 2, 4, 128>}, {pipeline_mode = #tpu.pipeline_mode<synchronous>, transform_indices = @transform_1, window_bounds = array<i64: 1, 1, 128>}, {pipeline_mode = #tpu.pipeline_mode<synchronous>, transform_indices = @transform_2, window_bounds = array<i64: 1, 1, 128>}, {pipeline_mode = #tpu.pipeline_mode<synchronous>, transform_indices = @transform_3, window_bounds = array<i64: 2, 128>}]} {
    %c0 = arith.constant 0 : index
    %c0_0 = arith.constant 0 : index
    %c0_1 = arith.constant 0 : index
    %0 = vector.load %arg1[%c0, %c0_0, %c0_1] : memref<2x4x128xbf16, #tpu.memory_space<vmem>>, vector<2x4x128xbf16>
    %1 = arith.extf %0 : vector<2x4x128xbf16> to vector<2x4x128xf32>
    %c0_2 = arith.constant 0 : index
    %c0_3 = arith.constant 0 : index
    %c0_4 = arith.constant 0 : index
    %2 = vector.load %arg2[%c0_2, %c0_3, %c0_4] : memref<1x1x128xf32, #tpu.memory_space<vmem>>, vector<1x1x128xf32>
    %3 = vector.broadcast %2 : vector<1x1x128xf32> to vector<2x4x128xf32>
    %4 = arith.mulf %1, %3 : vector<2x4x128xf32>
    %c0_5 = arith.constant 0 : index
    %c0_6 = arith.constant 0 : index
    %c0_7 = arith.constant 0 : index
    %5 = vector.load %arg3[%c0_5, %c0_6, %c0_7] : memref<1x1x128xf32, #tpu.memory_space<vmem>>, vector<1x1x128xf32>
    %6 = vector.broadcast %5 : vector<1x1x128xf32> to vector<2x4x128xf32>
    %7 = arith.addf %4, %6 : vector<2x4x128xf32>
    %cst = arith.constant 0.000000e+00 : f32
    %8 = vector.broadcast %cst : f32 to vector<2x4x128xf32>
    %9 = arith.maximumf %7, %8 : vector<2x4x128xf32>
    %cst_8 = arith.constant dense<0.000000e+00> : vector<2x128xf32>
    %10 = vector.multi_reduction <add>, %9, %cst_8 [1] : vector<2x4x128xf32> to vector<2x128xf32>
    %cst_9 = arith.constant 2.500000e-01 : f32
    %11 = vector.broadcast %cst_9 : f32 to vector<2x128xf32>
    %12 = arith.mulf %10, %11 : vector<2x128xf32>
    %c0_10 = arith.constant 0 : index
    %c0_11 = arith.constant 0 : index
    %13 = vector.load %arg4[%c0_10, %c0_11] : memref<2x128xf32, #tpu.memory_space<vmem>>, vector<2x128xf32>
    tpu.vector_store %arg4[%c0_10, %c0_11], %12 {strides = array<i32>} : memref<2x128xf32, #tpu.memory_space<vmem>>, vector<2x128xf32>,
    return
  }
  func.func @transform_0(%arg0: i32) -> (i32, i32, i32) {
    %c0_i32 = arith.constant 0 : i32
    %c0_i32_0 = arith.constant 0 : i32
    %c0_i32_1 = arith.constant 0 : i32
    %c0_i32_2 = arith.constant 0 : i32
    return %c0_i32, %c0_i32_0, %c0_i32_1 : i32, i32, i32
  }
  func.func @transform_1(%arg0: i32) -> (i32, i32, i32) {
    %c0_i32 = arith.constant 0 : i32
    %c0_i32_0 = arith.constant 0 : i32
    %c0_i32_1 = arith.constant 0 : i32
    %c0_i32_2 = arith.constant 0 : i32
    return %c0_i32, %c0_i32_0, %c0_i32_1 : i32, i32, i32
  }
  func.func @transform_2(%arg0: i32) -> (i32, i32, i32) {
    %c0_i32 = arith.constant 0 : i32
    %c0_i32_0 = arith.constant 0 : i32
    %c0_i32_1 = arith.constant 0 : i32
    %c0_i32_2 = arith.constant 0 : i32
    return %c0_i32, %c0_i32_0, %c0_i32_1 : i32, i32, i32
  }
  func.func @transform_3(%arg0: i32) -> (i32, i32) {
    %c0_i32 = arith.constant 0 : i32
    %c0_i32_0 = arith.constant 0 : i32
    %c0_i32_1 = arith.constant 0 : i32
    return %c0_i32, %c0_i32_0 : i32, i32
  }
}

</mosaic_0001>

<bundles_post_ra>
// kernel: densenet_base_forward.13
= control target key start
LH: loop header
LB: loop body
LE: loop exit
PB: predicated region body
PF: predicated region fallthrough
CT: control target
= control target key end

     0   :  { %s502_s6 = smov 0   ;;  %s504_s7 = smov 0   ;;  %s565_s0 = inlined_call_operand.vmem [shape: bf16[9,32,128], index: 0, kind: input, shape index: {}]   ;;  %s566_s1 = inlined_call_operand.vmem [shape: bf16[32,128], index: 1, kind: output, shape index: {}]  }
   0x1   :  { %s506_s8 = smov 0  }
   0x2 LB: > { %s361_s9 = sadd.s32 4294967295, %s490_s8   ;;  %s519_s10 = sadd.s32 1, %s490_s8   ;;  %s490_s8 = sphi %s506_s8, %s569_s8   ;;  %s486_s7 = sphi %s504_s7, %s568_s7   ;;  %s482_s6 = sphi %s502_s6, %s567_s6  }
   0x3   : > { %s15_s11 = ssub.s32 %s490_s8, %s519_s10  ;;  %s18_s12 = sadd.s32 1, %s486_s7 }
   0x4   : > { %p16_p0 = scmp.eq.s32.totalorder %s15_s11, 0  ;;  %p25_p1 = scmp.ne.s32.totalorder %s486_s7, %s482_s6 }
   0x5   : > { %p26_p2 = scmp.eq.s32.totalorder %s490_s8, 0  ;;  %p364_p4 = scmp.ge.s32.totalorder %s490_s8, 2 }
   0x6   : > { %s528_s13 = scalar_select %p16_p0, %s486_s7, %s18_s12  }
   0x7   : > { %p27_p3 = por %p26_p2, %p25_p1  ;;  %77 = sbr.rel (%p364_p4) target bundleno = 23 (0x17), region = 16 }
   0xe   : > { %80 = sbr.rel (!%p27_p3) target bundleno = 23 (0x17), region = 20  ;;  %s82_s14 = sand.u32 (%p27_p3), 1, %s486_s7  }
   0xf   : > { %s390_s15 = sshll.u32 (%p27_p3), %s490_s8, 3  ;;  %s442_s16 = smul.u32 (%p27_p3), 72, %s82_s14 }
  0x10   : > { %s87_s19 = scalar_lea.vmem (%p27_p3), %s565_s0, %s390_s15 }
  0x11   : > { %v103_v0 = vld [vmem:[%s87_s19] sm:$0xff] (%p27_p3)   ;;  %v107_v1 = vld [vmem:[%s87_s19 + $0x10] sm:$0xff] (%p27_p3)   ;;  %s84_s20 = scalar_lea.vmem (%p27_p3), [#allocation2], %s442_s16 }
  0x12   : > { %v111_v2 = vld [vmem:[%s87_s19 + $0x20] sm:$0xff] (%p27_p3)   ;;  %v115_v3 = vld [vmem:[%s87_s19 + $0x30] sm:$0xff] (%p27_p3)   ;;  %104 = vst [vmem:[%s84_s20] sm:$0xff] (%p27_p3), %v103_v0   ;;  %108 = vst [vmem:[%s84_s20 + $0x8] sm:$0xff] (%p27_p3), %v107_v1  }
  0x13   : > { %v119_v4 = vld [vmem:[%s87_s19 + $0x40] sm:$0xff] (%p27_p3)   ;;  %v123_v5 = vld [vmem:[%s87_s19 + $0x50] sm:$0xff] (%p27_p3)   ;;  %112 = vst [vmem:[%s84_s20 + $0x10] sm:$0xff] (%p27_p3), %v111_v2   ;;  %116 = vst [vmem:[%s84_s20 + $0x18] sm:$0xff] (%p27_p3), %v115_v3  }
  0x14   : > { %120 = vst [vmem:[%s84_s20 + $0x20] sm:$0xff] (%p27_p3), %v119_v4   ;;  %124 = vst [vmem:[%s84_s20 + $0x28] sm:$0xff] (%p27_p3), %v123_v5   ;;  %v127_v6 = vld [vmem:[%s87_s19 + $0x60] sm:$0xff] (%p27_p3)   ;;  %v131_v7 = vld [vmem:[%s87_s19 + $0x70] sm:$0xff] (%p27_p3)  }
  0x15   : > { %v135_v8 = vld [vmem:[%s87_s19 + $0x80] sm:$0xff]   ;;  %128 = vst [vmem:[%s84_s20 + $0x30] sm:$0xff] %v127_v6   ;;  %132 = vst [vmem:[%s84_s20 + $0x38] sm:$0xff] %v131_v7  }
  0x16   : > { %136 = vst [vmem:[%s84_s20 + $0x40] sm:$0xff] %v135_v8  }
  0x17 PF: > { %p367_p5 = scmp.ge.s32.totalorder %s490_s8, 1  ;;  %p196_p6 = scmp.lt.s32.totalorder %s490_s8, 3 }
  0x19   : > { %p197_p7 = pnand %p367_p5, %p196_p6 }
  0x1a   : > { %s203_s21 = sand.u32 (!%p197_p7), 1, %s482_s6   ;;  %s368_s24 = sshll.u32 (!%p197_p7), %s361_s9, 1 }
  0x1b   : > { %200 = sbr.rel (%p197_p7) target bundleno = 53 (0x35), region = 61  ;;  %p224_p8 = scmp.lt.s32.totalorder (!%p197_p7), %s368_s24, 3 }
  0x1c   : > { %s443_s22 = smul.u32 (!%p197_p7), 72, %s203_s21 }
  0x1e   : > { %s539_s23 = scalar_lea.vmem (!%p197_p7), [#allocation2], %s443_s22 }
  0x1f   : > { %v394_v9 = vld [vmem:[%s539_s23] sm:$0xff] (!%p197_p7)   ;;  %v434_v10 = vld [vmem:[%s539_s23 + $0x8] sm:$0xff] (!%p197_p7)   ;;  %v435_v11 = vld [vmem:[%s539_s23 + $0x10] sm:$0xff] (!%p197_p7)  }
  0x20   : > { %v395_v12 = vunpack.c.l.bf16 (!%p197_p7), %v394_v9  ;;  %v396_v13 = vunpack.c.h.bf16 (!%p197_p7), %v394_v9  ;;  %v399_v14 = vunpack.c.l.bf16 (!%p197_p7), %v434_v10  ;;  %v400_v15 = vunpack.c.h.bf16 (!%p197_p7), %v434_v10  ;;  %v436_v16 = vld [vmem:[%s539_s23 + $0x18] sm:$0xff] (!%p197_p7)   ;;  %v437_v19 = vld [vmem:[%s539_s23 + $0x20] sm:$0xff] (!%p197_p7)   ;;  %v438_v24 = vld [vmem:[%s539_s23 + $0x28] sm:$0xff] (!%p197_p7)  }
  0x21   : > { %v403_v17 = vunpack.c.l.bf16 (!%p197_p7), %v435_v11  ;;  %v404_v18 = vunpack.c.h.bf16 (!%p197_p7), %v435_v11  ;;  %v407_v22 = vunpack.c.l.bf16 (!%p197_p7), %v436_v16  ;;  %v408_v23 = vunpack.c.h.bf16 (!%p197_p7), %v436_v16  ;;  %v439_v29 = vld [vmem:[%s539_s23 + $0x30] sm:$0xff] (!%p197_p7)   ;;  %v440_v34 = vld [vmem:[%s539_s23 + $0x38] sm:$0xff] (!%p197_p7)   ;;  %v441_v39 = vld [vmem:[%s539_s23 + $0x40] sm:$0xff] (!%p197_p7)  }
  0x22   : > { %v238_v20 = vmax.f32 %v395_v12, %v399_v14  ;;  %v239_v21 = vmax.f32 %v396_v13, %v400_v15  ;;  %v411_v27 = vunpack.c.l.bf16 %v437_v19  ;;  %v412_v28 = vunpack.c.h.bf16 %v437_v19  ;;  %s571_s24 = smov (!%p224_p8, %s368_s24), 3 }
  0x23   : > { %v415_v32 = vunpack.c.l.bf16 %v438_v24  ;;  %v416_v33 = vunpack.c.h.bf16 %v438_v24  ;;  %v419_v37 = vunpack.c.l.bf16 %v439_v29  ;;  %v420_v38 = vunpack.c.h.bf16 %v439_v29  ;;  %s369_s25 = sshll.u32 %s571_s24, 2 }
  0x24   : > { %v245_v25 = vmax.f32 %v238_v20, %v403_v17  ;;  %v246_v26 = vmax.f32 %v239_v21, %v404_v18  ;;  %v423_v42 = vunpack.c.l.bf16 %v440_v34  ;;  %v424_v43 = vunpack.c.h.bf16 %v440_v34  ;;  %s227_s28 = scalar_lea.vmem %s566_s1, %s369_s25 }
  0x25   : > { %v427_v46 = vunpack.c.l.bf16 %v441_v39  ;;  %v428_v47 = vunpack.c.h.bf16 %v441_v39 }
  0x26   : > { %v252_v30 = vmax.f32 %v245_v25, %v407_v22  ;;  %v253_v31 = vmax.f32 %v246_v26, %v408_v23 }
  0x28   : > { %v259_v35 = vmax.f32 %v252_v30, %v411_v27  ;;  %v260_v36 = vmax.f32 %v253_v31, %v412_v28 }
  0x2a   : > { %v266_v40 = vmax.f32 %v259_v35, %v415_v32  ;;  %v267_v41 = vmax.f32 %v260_v36, %v416_v33 }
  0x2c   : > { %v273_v44 = vmax.f32 %v266_v40, %v419_v37  ;;  %v274_v45 = vmax.f32 %v267_v41, %v420_v38 }
  0x2e   : > { %v280_v48 = vmax.f32 %v273_v44, %v423_v42  ;;  %v281_v49 = vmax.f32 %v274_v45, %v424_v43 }
  0x30   : > { %v287_v50 = vmax.f32 %v280_v48, %v427_v46  ;;  %v288_v51 = vmax.f32 %v281_v49, %v428_v47 }
  0x32   : > { %v432_v52 = vpack.c.bf16 %v288_v51, %v287_v50 }
  0x34   : > { %433 = vst [vmem:[%s227_s28] sm:$0xff] %v432_v52  }
  0x35 PF: > { %p8_p9 = scmp.ge.s32.totalorder %s519_s10, 4   ;;  %s567_s6 = smov %s486_s7 }
  0x36   : > { %s568_s7 = smov %s528_s13  ;;  %s569_s8 = smov %s519_s10 }
  0x37   :  { %10 = sbr.rel (!%p8_p9) target bundleno = 2 (0x2), region = 108 }

// kernel: densenet_base_forward.14
= control target key start
LH: loop header
LB: loop body
LE: loop exit
PB: predicated region body
PF: predicated region fallthrough
CT: control target
= control target key end

     0   :  { %s618_s15 = smov 0   ;;  %s620_s16 = smov 0   ;;  %s688_s0 = inlined_call_operand.vmem [shape: bf16[1,32,128], index: 0, kind: input, shape index: {}]   ;;  %s689_s1 = inlined_call_operand.vmem [shape: bf16[1,128,128], index: 1, kind: input, shape index: {}]   ;;  %s690_s2 = inlined_call_operand.vmem [shape: f32[1,128], index: 2, kind: input, shape index: {}]   ;;  %s691_s3 = inlined_call_operand.vmem [shape: f32[1,128], index: 3, kind: input, shape index: {}]   ;;  %s692_s4 = inlined_call_operand.vmem [shape: bf16[32,128], index: 4, kind: output, shape index: {}]  }
   0x1   :  { %s622_s17 = smov 0  }
   0x2 LB: > { %s26_s18 = sadd.s32 1, %s585_s16  ;;  %p474_p0 = scmp.ge.s32.totalorder %s589_s17, 1  ;;  %s589_s17 = sphi %s622_s17, %s14_s17   ;;  %s585_s16 = sphi %s620_s16, %s694_s16   ;;  %s581_s15 = sphi %s618_s15, %s693_s15  }
   0x3   : > { %p28_p1 = scmp.ge.s32.totalorder %s26_s18, 2  ;;  %p186_p2 = scmp.lt.s32.totalorder %s589_s17, 3 }
   0x5   : > { %s696_s18 = smov (%p28_p1, %s26_s18), 0  ;;  %p187_p3 = pnand %p474_p0, %p186_p2 }
   0x6   : > { %v559_v0 = vld [vmem:[%s689_s1] sm:$0xff] (!%p187_p3)   ;;  %v591_v1 = vmov (!%p187_p3), 0.0   ;;  %v560_v2 = vld [vmem:[%s689_s1 + $0x8] sm:$0xff] (!%p187_p3)   ;;  %vm592_vm0 = vmmov (!%p187_p3), 0   ;;  %s475_s23 = sshll.u32 (!%p187_p3), %s581_s15, 1  ;;  %v561_v3 = vld [vmem:[%s689_s1 + $0x10] sm:$0xff] (!%p187_p3)  }
   0x7   : > { %190 = sbr.rel (%p187_p3) target bundleno = 256 (0x100), region = 36  ;;  %513 = vmatprep.subr.bf16.mxu0 (!%p187_p3), %v591_v1  ;;  %529 = vmatprep.mubr.msk.bf16.mxu0 (!%p187_p3), %vm592_vm0, %v591_v1  ;;  %p220_p4 = scmp.lt.s32.totalorder (!%p187_p3), %s475_s23, 3  ;;  %v562_v4 = vld [vmem:[%s689_s1 + $0x18] sm:$0xff] (!%p187_p3)   ;;  %v563_v8 = vld [vmem:[%s689_s1 + $0x20] sm:$0xff] (!%p187_p3)   ;;  %v564_v12 = vld [vmem:[%s689_s1 + $0x28] sm:$0xff] (!%p187_p3)  }
   0x8   : > { %514 = vmatpush3.bf16.msra.mxu0 (!%p187_p3), %v559_v0  ;;  %v479_v9 = vld [vmem:[%s690_s2] ss:$0 sm:$0xff] (!%p187_p3)  ;;  %v565_v16 = vld [vmem:[%s689_s1 + $0x30] sm:$0xff] (!%p187_p3)   ;;  %v566_v19 = vld [vmem:[%s689_s1 + $0x38] sm:$0xff] (!%p187_p3)  }
   0x9   : > { %515 = vmatprep.subr.bf16.mxu0 (!%p187_p3), %v591_v1  ;;  %v480_v13 = vld [vmem:[%s691_s3] ss:$0 sm:$0xff] (!%p187_p3) }
   0xc   : > { %516 = vmatpush3.bf16.msra.mxu0 (!%p187_p3), %v560_v2 }
   0xd   : > { %517 = vmatprep.subr.bf16.mxu0 (!%p187_p3), %v591_v1 }
   0xe   : > { %s698_s23 = smov (!%p220_p4, %s475_s23), 3 }
   0xf   : > { %s476_s26 = sshll.u32 %s698_s23, 2 }
  0x10   : > { %s223_s29 = scalar_lea.vmem %s688_s0, %s476_s26  ;;  %518 = vmatpush3.bf16.msra.mxu0 %v561_v3  ;;  %s236_s24 = scalar_lea.vmem %s692_s4, %s476_s26 }
  0x11   : > { %v496_v5 = vld [vmem:[%s223_s29] sm:$0xff]   ;;  %519 = vmatprep.subr.bf16.mxu0 %v591_v1 }
  0x12   : > { %v497_v6 = vunpack.c.l.bf16 %v496_v5  ;;  %v498_v7 = vunpack.c.h.bf16 %v496_v5 }
  0x14   : > { %520 = vmatpush3.bf16.msra.mxu0 %v562_v4  ;;  %v250_v10 = vmul.f32 %v497_v6, %v479_v9  ;;  %v251_v11 = vmul.f32 %v498_v7, %v479_v9 }
  0x15   : > { %521 = vmatprep.subr.bf16.mxu0 %v591_v1 }
  0x16   : > { %v259_v14 = vadd.f32 %v480_v13, %v250_v10  ;;  %v260_v15 = vadd.f32 %v480_v13, %v251_v11 }
  0x18   : > { %522 = vmatpush3.bf16.msra.mxu0 %v563_v8  ;;  %v261_v17 = vmax.f32 %v259_v14, 0.0  ;;  %v262_v18 = vmax.f32 %v260_v15, 0.0 }
  0x19   : > { %523 = vmatprep.subr.bf16.mxu0 %v591_v1 }
  0x1a   : > { %v263_v20 = vpack.c.bf16 %v262_v18, %v261_v17 }
  0x1c   : > { %524 = vmatpush3.bf16.msra.mxu0 %v564_v12 }
  0x1d   : > { %525 = vmatprep.subr.bf16.mxu0 %v591_v1 }
  0x20   : > { %526 = vmatpush3.bf16.msra.mxu0 %v565_v16 }
  0x21   : > { %527 = vmatprep.subr.bf16.mxu0 %v591_v1 }
  0x24   : > { %528 = vmatpush3.bf16.msra.mxu0 %v566_v19 }
  0x27   : > { %530 = vmatmul.mubr.bf16.vlgmr.msra.gmra.mrb[0].mxu0 %v263_v20 }
  0xfa   : > { %v362_v21 = vpop.f32.mrb[0].mxu0 }
  0xfb   : > { %v531_v22 = vpop.f32.mrb[1].mxu0 }
  0xfc   : > { %v365_v23 = vpop.f32.mrb[2].mxu0 }
  0xfd   : > { %v502_v24 = vpack.c.bf16 %v365_v23, %v362_v21  ;;  %v532_v25 = vpop.f32.mrb[3].mxu0 }
  0xff   : > { %503 = vst [vmem:[%s236_s24] sm:$0xff] %v502_v24  }
 0x100 PF: > { %s14_s17 = sadd.s32 1, %s589_s17   ;;  %s693_s15 = smov %s585_s16 }
 0x101   : > { %p11_p5 = scmp.ge.s32.totalorder %s14_s17, 4   ;;  %s694_s16 = smov %s696_s18 }
 0x103   :  { %13 = sbr.rel (!%p11_p5) target bundleno = 2 (0x2), region = 69 }

// kernel: densenet_base_forward.19
= control target key start
LH: loop header
LB: loop body
LE: loop exit
PB: predicated region body
PF: predicated region fallthrough
CT: control target
= control target key end

     0   :  { %v197_v0 = vmov 0.0   ;;  %vm198_vm0 = vmmov 0   ;;  %s260_s1 = inlined_call_operand.vmem [shape: bf16[1,128,128], index: 1, kind: input, shape index: {}]   ;;  %s261_s0 = inlined_call_operand.vmem [shape: bf16[1,8,128], index: 0, kind: input, shape index: {}]   ;;  %s262_s2 = inlined_call_operand.vmem [shape: f32[1,128], index: 2, kind: input, shape index: {}]   ;;  %s263_s3 = inlined_call_operand.vmem [shape: f32[1,128], index: 3, kind: input, shape index: {}]   ;;  %s264_s4 = inlined_call_operand.vmem [shape: bf16[8,128], index: 4, kind: output, shape index: {}]  }
   0x1   :  { %167 = vmatprep.subr.bf16.mxu0 %v197_v0  ;;  %v189_v1 = vld [vmem:[%s260_s1] sm:$0xff]   ;;  %183 = vmatprep.mubr.msk.bf16.mxu0 %vm198_vm0, %v197_v0  ;;  %v190_v2 = vld [vmem:[%s260_s1 + $0x8] sm:$0xff]   ;;  %v191_v3 = vld [vmem:[%s260_s1 + $0x10] sm:$0xff]  }
   0x2   :  { %168 = vmatpush3.bf16.msra.mxu0 %v189_v1  ;;  %v192_v4 = vld [vmem:[%s260_s1 + $0x18] sm:$0xff]   ;;  %v18_v5 = vld [vmem:[%s261_s0] sm:$0xf]  ;;  %v194_v10 = vld [vmem:[%s260_s1 + $0x28] sm:$0xff]  }
   0x3   :  { %169 = vmatprep.subr.bf16.mxu0 %v197_v0  ;;  %v19_v6 = vunpack.c.l.bf16 %v18_v5  ;;  %v193_v7 = vld [vmem:[%s260_s1 + $0x20] sm:$0xff]   ;;  %v195_v13 = vld [vmem:[%s260_s1 + $0x30] sm:$0xff]   ;;  %v196_v15 = vld [vmem:[%s260_s1 + $0x38] sm:$0xff]  }
   0x4   :  { %v148_v8 = vld [vmem:[%s262_s2] ss:$0 sm:$0xff] }
   0x5   :  { %v27_v9 = vmul.f32 %v148_v8, %v19_v6  ;;  %v149_v11 = vld [vmem:[%s263_s3] ss:$0 sm:$0xff] }
   0x6   :  { %170 = vmatpush3.bf16.msra.mxu0 %v190_v2 }
   0x7   :  { %171 = vmatprep.subr.bf16.mxu0 %v197_v0  ;;  %v35_v12 = vadd.f32 %v149_v11, %v27_v9 }
   0x9   :  { %v36_v14 = vmax.f32 %v35_v12, 0.0 }
   0xa   :  { %172 = vmatpush3.bf16.msra.mxu0 %v191_v3 }
   0xb   :  { %173 = vmatprep.subr.bf16.mxu0 %v197_v0  ;;  %v37_v16 = vpack.c.bf16 %v36_v14, %v36_v14 }
   0xe   :  { %174 = vmatpush3.bf16.msra.mxu0 %v192_v4 }
   0xf   :  { %175 = vmatprep.subr.bf16.mxu0 %v197_v0 }
  0x12   :  { %176 = vmatpush3.bf16.msra.mxu0 %v193_v7 }
  0x13   :  { %177 = vmatprep.subr.bf16.mxu0 %v197_v0 }
  0x16   :  { %178 = vmatpush3.bf16.msra.mxu0 %v194_v10 }
  0x17   :  { %179 = vmatprep.subr.bf16.mxu0 %v197_v0 }
  0x1a   :  { %180 = vmatpush3.bf16.msra.mxu0 %v195_v13 }
  0x1b   :  { %181 = vmatprep.subr.bf16.mxu0 %v197_v0 }
  0x1e   :  { %182 = vmatpush3.bf16.msra.mxu0 %v196_v15 }
  0x21   :  { %184 = vmatmul.mubr.bf16.vlgmr.msra.gmra.mrb[0].mxu0 %v37_v16 }
  0xf4   :  { %v136_v17 = vpop.f32.mrb[0].mxu0 }
  0xf5   :  { %v142_v18 = vpack.c.bf16 %v136_v17, %v136_v17  ;;  %v185_v19 = vpop.f32.mrb[1].mxu0 }
  0xf6   :  { %v139_v20 = vpop.f32.mrb[2].mxu0 }
  0xf7   :  { %143 = vst [vmem:[%s264_s4] sm:$0xf] %v142_v18  ;;  %v186_v21 = vpop.f32.mrb[3].mxu0 }

// kernel: densenet_base_forward.15
= control target key start
LH: loop header
LB: loop body
LE: loop exit
PB: predicated region body
PF: predicated region fallthrough
CT: control target
= control target key end

     0   :  { %s2362_s18 = smov 0   ;;  %s2364_s19 = smov 0   ;;  %s2808_s0 = inlined_call_operand.vmem [shape: bf16[9,32,128], index: 0, kind: input, shape index: {}]   ;;  %s2809_s1 = inlined_call_operand.vmem [shape: bf16[9,128,128], index: 1, kind: input, shape index: {}]   ;;  %s2810_s2 = inlined_call_operand.vmem [shape: f32[1,128], index: 2, kind: input, shape index: {}]   ;;  %s2811_s3 = inlined_call_operand.vmem [shape: f32[1,128], index: 3, kind: input, shape index: {}]   ;;  %s2812_s4 = inlined_call_operand.vmem [shape: bf16[32,128], index: 4, kind: input, shape index: {}, may-alias: {4,5}]   ;;  %s2813_s5 = inlined_call_operand.vmem [shape: bf16[32,128], index: 5, kind: output, shape index: {}, may-alias: {4,5}]  }
   0x1   :  { %s2366_s20 = smov 0   ;;  %s2368_s21 = smov 0  }
   0x2   :  { %s2370_s22 = smov 0  }
   0x3 LB: > { %s27_s23 = sadd.s32 1, %s2324_s21  ;;  %p41_p1 = scmp.ne.s32.totalorder %s2316_s19, %s2312_s18  ;;  %s2328_s22 = sphi %s2370_s22, %s15_s22   ;;  %s2324_s21 = sphi %s2368_s21, %s2817_s21   ;;  %s2320_s20 = sphi %s2366_s20, %s2816_s20   ;;  %s2316_s19 = sphi %s2364_s19, %s2815_s19   ;;  %s2312_s18 = sphi %s2362_s18, %s2814_s18  }
   0x4   : > { %p29_p0 = scmp.ge.s32.totalorder %s27_s23, 2  ;;  %p42_p2 = scmp.eq.s32.totalorder %s2328_s22, 0 }
   0x5   : > { %s34_s25 = sadd.s32 1, %s2316_s19  ;;  %p1627_p5 = scmp.ge.s32.totalorder %s2328_s22, 2 }
   0x6   : > { %s2819_s23 = smov (%p29_p0, %s27_s23), 0  ;;  %p43_p3 = por %p42_p2, %p41_p1 }
   0x7   : > { %s31_s24 = ssub.s32 %s2324_s21, %s2819_s23  ;;  %204 = sbr.rel (%p1627_p5) target bundleno = 23 (0x17), region = 28 }
   0x8   : > { %p32_p4 = scmp.eq.s32.totalorder %s31_s24, 0 }
   0xa   : > { %s2397_s26 = scalar_select %p32_p4, %s2316_s19, %s34_s25  }
   0xe   : > { %207 = sbr.rel (!%p43_p3) target bundleno = 23 (0x17), region = 32  ;;  %s209_s27 = sand.u32 (%p43_p3), 1, %s2316_s19  }
   0xf   : > { %s1857_s28 = sshll.u32 (%p43_p3), %s2324_s21, 3  ;;  %s2174_s29 = smul.u32 (%p43_p3), 72, %s209_s27 }
  0x10   : > { %s214_s7 = scalar_lea.vmem (%p43_p3), %s2808_s0, %s1857_s28 }
  0x11   : > { %v230_v0 = vld [vmem:[%s214_s7] sm:$0xff] (%p43_p3)   ;;  %v234_v1 = vld [vmem:[%s214_s7 + $0x10] sm:$0xff] (%p43_p3)   ;;  %s211_s8 = scalar_lea.vmem (%p43_p3), [#allocation2], %s2174_s29 }
  0x12   : > { %v238_v2 = vld [vmem:[%s214_s7 + $0x20] sm:$0xff] (%p43_p3)   ;;  %v242_v3 = vld [vmem:[%s214_s7 + $0x30] sm:$0xff] (%p43_p3)   ;;  %231 = vst [vmem:[%s211_s8] sm:$0xff] (%p43_p3), %v230_v0   ;;  %235 = vst [vmem:[%s211_s8 + $0x8] sm:$0xff] (%p43_p3), %v234_v1  }
  0x13   : > { %v246_v4 = vld [vmem:[%s214_s7 + $0x40] sm:$0xff] (%p43_p3)   ;;  %v250_v5 = vld [vmem:[%s214_s7 + $0x50] sm:$0xff] (%p43_p3)   ;;  %239 = vst [vmem:[%s211_s8 + $0x10] sm:$0xff] (%p43_p3), %v238_v2   ;;  %243 = vst [vmem:[%s211_s8 + $0x18] sm:$0xff] (%p43_p3), %v242_v3  }
  0x14   : > { %247 = vst [vmem:[%s211_s8 + $0x20] sm:$0xff] (%p43_p3), %v246_v4   ;;  %251 = vst [vmem:[%s211_s8 + $0x28] sm:$0xff] (%p43_p3), %v250_v5   ;;  %v254_v6 = vld [vmem:[%s214_s7 + $0x60] sm:$0xff] (%p43_p3)   ;;  %v258_v7 = vld [vmem:[%s214_s7 + $0x70] sm:$0xff] (%p43_p3)  }
  0x15   : > { %v262_v8 = vld [vmem:[%s214_s7 + $0x80] sm:$0xff]   ;;  %255 = vst [vmem:[%s211_s8 + $0x30] sm:$0xff] %v254_v6   ;;  %259 = vst [vmem:[%s211_s8 + $0x38] sm:$0xff] %v258_v7  }
  0x16   : > { %263 = vst [vmem:[%s211_s8 + $0x40] sm:$0xff] %v262_v8  }
  0x17 PF: > { %p1630_p6 = scmp.ge.s32.totalorder %s2328_s22, 1  ;;  %p335_p7 = scmp.lt.s32.totalorder %s2328_s22, 3 }
  0x19   : > { %p336_p8 = pnand %p1630_p6, %p335_p7 }
  0x1a   : > { %v2218_v9 = vld [vmem:[%s2809_s1 + $0x40] sm:$0xff] (!%p336_p8)   ;;  %v2330_v10 = vmov (!%p336_p8), 0.0   ;;  %v2220_v12 = vld [vmem:[%s2809_s1 + $0x48] sm:$0xff] (!%p336_p8)   ;;  %vm2331_vm0 = vmmov (!%p336_p8), 0   ;;  %v2222_v14 = vld [vmem:[%s2809_s1 + $0x50] sm:$0xff] (!%p336_p8)   ;;  %s342_s25 = sand.u32 (!%p336_p8), 1, %s2312_s18  }
  0x1b   : > { %339 = sbr.rel (%p336_p8) target bundleno = 408 (0x198), region = 77  ;;  %1994 = vmatprep.subr.bf16.mxu0 (!%p336_p8), %v2330_v10  ;;  %2014 = vmatprep.subr.bf16.mxu1 (!%p336_p8), %v2330_v10  ;;  %v2219_v11 = vld [vmem:[%s2809_s1] sm:$0xff] (!%p336_p8)   ;;  %v2221_v13 = vld [vmem:[%s2809_s1 + $0x8] sm:$0xff] (!%p336_p8)   ;;  %v2223_v15 = vld [vmem:[%s2809_s1 + $0x10] sm:$0xff] (!%p336_p8)   ;;  %s1631_s10 = sshll.u32 (!%p336_p8), %s2320_s20, 1 }
  0x1c   : > { %1995 = vmatpush3.bf16.msra.mxu0 (!%p336_p8), %v2218_v9  ;;  %2010 = vmatprep.mubr.msk.bf16.mxu0 (!%p336_p8), %vm2331_vm0, %v2330_v10  ;;  %s2175_s29 = smul.u32 (!%p336_p8), 72, %s342_s25  ;;  %v2224_v16 = vld [vmem:[%s2809_s1 + $0x58] sm:$0xff] (!%p336_p8)   ;;  %v2226_v18 = vld [vmem:[%s2809_s1 + $0x60] sm:$0xff] (!%p336_p8)   ;;  %v2228_v20 = vld [vmem:[%s2809_s1 + $0x68] sm:$0xff] (!%p336_p8)   ;;  %p390_p9 = scmp.lt.s32.totalorder (!%p336_p8), %s1631_s10, 3 }
  0x1d   : > { %2015 = vmatpush3.bf16.msra.mxu1 (!%p336_p8), %v2219_v11  ;;  %1996 = vmatprep.subr.bf16.mxu0 (!%p336_p8), %v2330_v10  ;;  %v2225_v17 = vld [vmem:[%s2809_s1 + $0x18] sm:$0xff] (!%p336_p8)   ;;  %v2227_v19 = vld [vmem:[%s2809_s1 + $0x20] sm:$0xff] (!%p336_p8)   ;;  %v2229_v29 = vld [vmem:[%s2809_s1 + $0x28] sm:$0xff] (!%p336_p8)  }
  0x1e   : > { %2016 = vmatprep.subr.bf16.mxu1 (!%p336_p8), %v2330_v10  ;;  %2030 = vmatprep.mubr.msk.bf16.mxu1 (!%p336_p8), %vm2331_vm0, %v2330_v10  ;;  %v2458_v21 = vld [vmem:[%s2810_s2] ss:$0 sm:$0xff] (!%p336_p8)  ;;  %s2460_s16 = scalar_lea.vmem (!%p336_p8), [#allocation2], %s2175_s29  ;;  %v2230_v36 = vld [vmem:[%s2809_s1 + $0x70] sm:$0xff] (!%p336_p8)   ;;  %v2232_v40 = vld [vmem:[%s2809_s1 + $0x78] sm:$0xff] (!%p336_p8)  }
  0x1f   : > { %v1905_v22 = vld [vmem:[%s2460_s16 + $0x8] sm:$0xff] (!%p336_p8)   ;;  %v1861_v25 = vld [vmem:[%s2460_s16] sm:$0xff] (!%p336_p8)   ;;  %v2233_v45 = vld [vmem:[%s2809_s1 + $0x38] sm:$0xff] (!%p336_p8)  }
  0x20   : > { %1997 = vmatpush3.bf16.msra.mxu0 (!%p336_p8), %v2220_v12  ;;  %v1866_v23 = vunpack.c.l.bf16 (!%p336_p8), %v1905_v22  ;;  %v1867_v24 = vunpack.c.h.bf16 (!%p336_p8), %v1905_v22  ;;  %v2467_v26 = vld [vmem:[%s2811_s3] ss:$0 sm:$0xff] (!%p336_p8)  ;;  %v1862_v27 = vunpack.c.l.bf16 (!%p336_p8), %v1861_v25  ;;  %v1863_v28 = vunpack.c.h.bf16 (!%p336_p8), %v1861_v25  ;;  %v2231_v39 = vld [vmem:[%s2809_s1 + $0x30] sm:$0xff] (!%p336_p8)   ;;  %v2236_v50 = vld [vmem:[%s2809_s1 + $0x88] sm:$0xff] (!%p336_p8)  }
  0x21   : > { %2017 = vmatpush3.bf16.msra.mxu1 (!%p336_p8), %v2221_v13  ;;  %1998 = vmatprep.subr.bf16.mxu0 (!%p336_p8), %v2330_v10  ;;  %v2234_v48 = vld [vmem:[%s2809_s1 + $0x80] sm:$0xff] (!%p336_p8)   ;;  %v2237_v51 = vld [vmem:[%s2809_s1 + $0xc8] sm:$0xff] (!%p336_p8)   ;;  %v2238_v52 = vld [vmem:[%s2809_s1 + $0x90] sm:$0xff] (!%p336_p8)  }
  0x22   : > { %2018 = vmatprep.subr.bf16.mxu1 %v2330_v10  ;;  %v454_v30 = vmul.f32 %v1866_v23, %v2458_v21  ;;  %v455_v31 = vmul.f32 %v1867_v24, %v2458_v21  ;;  %v419_v32 = vmul.f32 %v1862_v27, %v2458_v21  ;;  %v420_v33 = vmul.f32 %v1863_v28, %v2458_v21  ;;  %v2235_v49 = vld [vmem:[%s2809_s1 + $0xc0] sm:$0xff]   ;;  %v2239_v53 = vld [vmem:[%s2809_s1 + $0xd0] sm:$0xff]   ;;  %v2240_v54 = vld [vmem:[%s2809_s1 + $0x98] sm:$0xff]   ;;  %s2821_s10 = smov (!%p390_p9, %s1631_s10), 3 }
  0x23   : > { %v1906_v55 = vld [vmem:[%s2460_s16 + $0x10] sm:$0xff]   ;;  %v1907_v57 = vld [vmem:[%s2460_s16 + $0x18] sm:$0xff]   ;;  %v2244_v2 = vld [vmem:[%s2809_s1 + $0xa8] sm:$0xff]   ;;  %s1632_s11 = sshll.u32 %s2821_s10, 2 }
  0x24   : > { %1999 = vmatpush3.bf16.msra.mxu0 %v2222_v14  ;;  %v456_v34 = vadd.f32 %v2467_v26, %v454_v30  ;;  %v457_v35 = vadd.f32 %v2467_v26, %v455_v31  ;;  %v428_v37 = vadd.f32 %v2467_v26, %v419_v32  ;;  %v429_v38 = vadd.f32 %v2467_v26, %v420_v33  ;;  %v2241_v56 = vld [vmem:[%s2809_s1 + $0xd8] sm:$0xff]   ;;  %v2242_v60 = vld [vmem:[%s2809_s1 + $0xa0] sm:$0xff]   ;;  %v2245_v6 = vld [vmem:[%s2809_s1 + $0xe8] sm:$0xff]   ;;  %s396_s14 = scalar_lea.vmem %s2812_s4, %s1632_s11  ;;  %s405_s17 = scalar_lea.vmem %s2813_s5, %s1632_s11 }
  0x25   : > { %2019 = vmatpush3.bf16.msra.mxu1 %v2223_v15  ;;  %2000 = vmatprep.subr.bf16.mxu0 %v2330_v10  ;;  %v1870_v58 = vunpack.c.l.bf16 %v1906_v55  ;;  %v1871_v59 = vunpack.c.h.bf16 %v1906_v55  ;;  %v1874_v61 = vunpack.c.l.bf16 %v1907_v57  ;;  %v1875_v62 = vunpack.c.h.bf16 %v1907_v57  ;;  %v2243_v63 = vld [vmem:[%s2809_s1 + $0xe0] sm:$0xff]   ;;  %v1909_v9 = vld [vmem:[%s2460_s16 + $0x28] sm:$0xff]   ;;  %v2248_v27 = vld [vmem:[%s2809_s1 + $0xb8] sm:$0xff]  }
  0x26   : > { %2020 = vmatprep.subr.bf16.mxu1 %v2330_v10  ;;  %v458_v41 = vmax.f32 %v456_v34, 0.0  ;;  %v459_v42 = vmax.f32 %v457_v35, 0.0  ;;  %v430_v43 = vmax.f32 %v428_v37, 0.0  ;;  %v431_v44 = vmax.f32 %v429_v38, 0.0  ;;  %v1908_v5 = vld [vmem:[%s2460_s16 + $0x20] sm:$0xff]   ;;  %v2247_v23 = vld [vmem:[%s2809_s1 + $0xf0] sm:$0xff]  }
  0x27   : > { %v661_v0 = vmul.f32 %v1870_v58, %v2458_v21  ;;  %v662_v1 = vmul.f32 %v1871_v59, %v2458_v21  ;;  %v781_v3 = vmul.f32 %v1874_v61, %v2458_v21  ;;  %v782_v4 = vmul.f32 %v1875_v62, %v2458_v21  ;;  %v2249_v32 = vld [vmem:[%s2809_s1 + $0xf8] sm:$0xff]  }
  0x28   : > { %2001 = vmatpush3.bf16.msra.mxu0 %v2224_v16  ;;  %v460_v46 = vpack.c.bf16 %v459_v42, %v458_v41  ;;  %v432_v47 = vpack.c.bf16 %v431_v44, %v430_v43  ;;  %v1878_v7 = vunpack.c.l.bf16 %v1908_v5  ;;  %v1879_v8 = vunpack.c.h.bf16 %v1908_v5  ;;  %v2250_v42 = vld [vmem:[%s2809_s1 + $0x100] sm:$0xff]   ;;  %v2256_v61 = vld [vmem:[%s2809_s1 + $0x118] sm:$0xff]  }
  0x29   : > { %2021 = vmatpush3.bf16.msra.mxu1 %v2225_v17  ;;  %2002 = vmatprep.subr.bf16.mxu0 %v2330_v10  ;;  %v663_v11 = vadd.f32 %v2467_v26, %v661_v0  ;;  %v664_v12 = vadd.f32 %v2467_v26, %v662_v1  ;;  %v1882_v13 = vunpack.c.l.bf16 %v1909_v9  ;;  %v1883_v14 = vunpack.c.h.bf16 %v1909_v9  ;;  %v2246_v17 = vld [vmem:[%s2809_s1 + $0xb0] sm:$0xff]   ;;  %v2251_v44 = vld [vmem:[%s2809_s1 + $0x140] sm:$0xff]  }
  0x2a   : > { %2022 = vmatprep.subr.bf16.mxu1 %v2330_v10  ;;  %v901_v15 = vmul.f32 %v1878_v7, %v2458_v21  ;;  %v902_v16 = vmul.f32 %v1879_v8, %v2458_v21 }
  0x2b   : > { %v1022_v22 = vmul.f32 %v1883_v14, %v2458_v21  ;;  %v665_v28 = vmax.f32 %v663_v11, 0.0  ;;  %v2258_v11 = vld [vmem:[%s2809_s1 + $0x120] sm:$0xff]  }
  0x2c   : > { %2003 = vmatpush3.bf16.msra.mxu0 %v2226_v18  ;;  %v783_v18 = vadd.f32 %v2467_v26, %v781_v3  ;;  %v903_v24 = vadd.f32 %v2467_v26, %v901_v15  ;;  %v904_v25 = vadd.f32 %v2467_v26, %v902_v16 }
  0x2d   : > { %2023 = vmatpush3.bf16.msra.mxu1 %v2227_v19  ;;  %2004 = vmatprep.subr.bf16.mxu0 %v2330_v10  ;;  %v784_v19 = vadd.f32 %v2467_v26, %v782_v4  ;;  %v1024_v31 = vadd.f32 %v2467_v26, %v1022_v22  ;;  %v2263_v22 = vld [vmem:[%s2809_s1 + $0x170] sm:$0xff]  }
  0x2e   : > { %2024 = vmatprep.subr.bf16.mxu1 %v2330_v10  ;;  %v905_v33 = vmax.f32 %v903_v24, 0.0  ;;  %v906_v34 = vmax.f32 %v904_v25, 0.0  ;;  %v785_v35 = vmax.f32 %v783_v18, 0.0  ;;  %v2261_v18 = vld [vmem:[%s2809_s1 + $0x168] sm:$0xff]   ;;  %v2265_v24 = vld [vmem:[%s2809_s1 + $0x178] sm:$0xff]   ;;  %v2266_v25 = vld [vmem:[%s2809_s1 + $0x180] sm:$0xff]  }
  0x2f   : > { %v1026_v38 = vmax.f32 %v1024_v31, 0.0  ;;  %v2271_v31 = vld [vmem:[%s2809_s1 + $0x1d0] sm:$0xff]  }
  0x30   : > { %2005 = vmatpush3.bf16.msra.mxu0 %v2228_v20  ;;  %v1021_v20 = vmul.f32 %v1882_v13, %v2458_v21 }
  0x31   : > { %2025 = vmatpush3.bf16.msra.mxu1 %v2229_v29  ;;  %2006 = vmatprep.subr.bf16.mxu0 %v2330_v10  ;;  %v666_v29 = vmax.f32 %v664_v12, 0.0  ;;  %v2259_v12 = vld [vmem:[%s2809_s1 + $0x160] sm:$0xff]  }
  0x32   : > { %2026 = vmatprep.subr.bf16.mxu1 %v2330_v10  ;;  %v1023_v30 = vadd.f32 %v2467_v26, %v1021_v20 }
  0x33   : > { %v667_v41 = vpack.c.bf16 %v666_v29, %v665_v28  ;;  %v2268_v28 = vld [vmem:[%s2809_s1 + $0x188] sm:$0xff]  }
  0x34   : > { %2007 = vmatpush3.bf16.msra.mxu0 %v2230_v36  ;;  %v786_v36 = vmax.f32 %v784_v19, 0.0  ;;  %v1025_v37 = vmax.f32 %v1023_v30, 0.0  ;;  %v2269_v29 = vld [vmem:[%s2809_s1 + $0x1c8] sm:$0xff]   ;;  %v2270_v30 = vld [vmem:[%s2809_s1 + $0x190] sm:$0xff]  }
  0x35   : > { %2027 = vmatpush3.bf16.msra.mxu1 %v2231_v39  ;;  %2008 = vmatprep.subr.bf16.mxu0 %v2330_v10  ;;  %v2585_v39 = vpack.c.bf16 %v906_v34, %v905_v33  ;;  %v2273_v33 = vld [vmem:[%s2809_s1 + $0x1d8] sm:$0xff]   ;;  %v2274_v34 = vld [vmem:[%s2809_s1 + $0x1a0] sm:$0xff]  }
  0x36   : > { %2028 = vmatprep.subr.bf16.mxu1 %v2330_v10  ;;  %v787_v43 = vpack.c.bf16 %v786_v36, %v785_v35  ;;  %v2275_v35 = vld [vmem:[%s2809_s1 + $0x1e0] sm:$0xff]   ;;  %v2276_v36 = vld [vmem:[%s2809_s1 + $0x1a8] sm:$0xff]  }
  0x38   : > { %2009 = vmatpush3.bf16.msra.mxu0 %v2232_v40  ;;  %v2588_v40 = vpack.c.bf16 %v1026_v38, %v1025_v37  ;;  %v2277_v37 = vld [vmem:[%s2809_s1 + $0x1e8] sm:$0xff]   ;;  %v2278_v38 = vld [vmem:[%s2809_s1 + $0x1b0] sm:$0xff]  }
  0x39   : > { %2029 = vmatpush3.bf16.msra.mxu1 %v2233_v45  ;;  %2034 = vmatprep.subr.bf16.mxu0 %v2330_v10  ;;  %v2252_v45 = vld [vmem:[%s2809_s1 + $0x108] sm:$0xff]  }
  0x3a   : > { %2054 = vmatprep.subr.bf16.mxu1 %v2330_v10 }
  0x3b   : > { %2011 = vmatmul.mubr.bf16.vlgmr.msra.gmra.mrb[0].mxu0 %v460_v46  ;;  %v2253_v46 = vld [vmem:[%s2809_s1 + $0x148] sm:$0xff]  }
  0x3c   : > { %2031 = vmatmul.mubr.bf16.vlgmr.msra.gmra.mrb[0].mxu1 %v432_v47  ;;  %2035 = vmatpush3.bf16.msra.mxu0 %v2234_v48  ;;  %v1910_v47 = vld [vmem:[%s2460_s16 + $0x30] sm:$0xff]  }
  0x3d   : > { %2055 = vmatpush3.bf16.msra.mxu1 %v2235_v49  ;;  %2036 = vmatprep.subr.bf16.mxu0 %v2330_v10  ;;  %v1886_v48 = vunpack.c.l.bf16 %v1910_v47  ;;  %v1887_v49 = vunpack.c.h.bf16 %v1910_v47  ;;  %v2287_v47 = vld [vmem:[%s2809_s1 + $0x228] sm:$0xff]  }
  0x3e   : > { %2056 = vmatprep.subr.bf16.mxu1 %v2330_v10  ;;  %2050 = vmatprep.mubr.msk.bf16.mxu0 %vm2331_vm0, %v2330_v10 }
  0x3f   : > { %2070 = vmatprep.mubr.msk.bf16.mxu1 %vm2331_vm0, %v2330_v10  ;;  %v1142_v55 = vmul.f32 %v1887_v49, %v2458_v21  ;;  %v2289_v49 = vld [vmem:[%s2809_s1 + $0x238] sm:$0xff]  }
  0x40   : > { %2037 = vmatpush3.bf16.msra.mxu0 %v2236_v50  ;;  %v1911_v50 = vld [vmem:[%s2460_s16 + $0x38] sm:$0xff]  }
  0x41   : > { %2057 = vmatpush3.bf16.msra.mxu1 %v2237_v51  ;;  %2038 = vmatprep.subr.bf16.mxu0 %v2330_v10  ;;  %v1890_v51 = vunpack.c.l.bf16 %v1911_v50 }
  0x42   : > { %2058 = vmatprep.subr.bf16.mxu1 %v2330_v10 }
  0x43   : > { %v1261_v57 = vmul.f32 %v1890_v51, %v2458_v21 }
  0x44   : > { %2039 = vmatpush3.bf16.msra.mxu0 %v2238_v52  ;;  %v1891_v52 = vunpack.c.h.bf16 %v1911_v50 }
  0x45   : > { %2059 = vmatpush3.bf16.msra.mxu1 %v2239_v53  ;;  %2040 = vmatprep.subr.bf16.mxu0 %v2330_v10  ;;  %v2254_v53 = vld [vmem:[%s2809_s1 + $0x110] sm:$0xff]   ;;  %v1263_v62 = vadd.f32 %v2467_v26, %v1261_v57 }
  0x46   : > { %2060 = vmatprep.subr.bf16.mxu1 %v2330_v10  ;;  %v1262_v58 = vmul.f32 %v1891_v52, %v2458_v21 }
  0x47   : > { %v1265_v3 = vmax.f32 %v1263_v62, 0.0 }
  0x48   : > { %2041 = vmatpush3.bf16.msra.mxu0 %v2240_v54  ;;  %v1141_v54 = vmul.f32 %v1886_v48, %v2458_v21  ;;  %v2288_v48 = vld [vmem:[%s2809_s1 + $0x230] sm:$0xff]  }
  0x49   : > { %2061 = vmatpush3.bf16.msra.mxu1 %v2241_v56  ;;  %2042 = vmatprep.subr.bf16.mxu0 %v2330_v10  ;;  %v2255_v56 = vld [vmem:[%s2809_s1 + $0x150] sm:$0xff]  }
  0x4a   : > { %2062 = vmatprep.subr.bf16.mxu1 %v2330_v10  ;;  %v1143_v59 = vadd.f32 %v2467_v26, %v1141_v54 }
  0x4c   : > { %2043 = vmatpush3.bf16.msra.mxu0 %v2242_v60  ;;  %v1144_v60 = vadd.f32 %v2467_v26, %v1142_v55  ;;  %v1145_v0 = vmax.f32 %v1143_v59, 0.0 }
  0x4d   : > { %2063 = vmatpush3.bf16.msra.mxu1 %v2243_v63  ;;  %2044 = vmatprep.subr.bf16.mxu0 %v2330_v10  ;;  %v1264_v63 = vadd.f32 %v2467_v26, %v1262_v58 }
  0x4e   : > { %2064 = vmatprep.subr.bf16.mxu1 %v2330_v10  ;;  %v1146_v1 = vmax.f32 %v1144_v60, 0.0 }
  0x4f   : > { %v1266_v4 = vmax.f32 %v1264_v63, 0.0 }
  0x50   : > { %2045 = vmatpush3.bf16.msra.mxu0 %v2244_v2  ;;  %v2257_v2 = vld [vmem:[%s2809_s1 + $0x158] sm:$0xff]   ;;  %v2636_v5 = vpack.c.bf16 %v1146_v1, %v1145_v0 }
  0x51   : > { %2065 = vmatpush3.bf16.msra.mxu1 %v2245_v6  ;;  %2046 = vmatprep.subr.bf16.mxu0 %v2330_v10  ;;  %v1912_v6 = vld [vmem:[%s2460_s16 + $0x40] sm:$0xff]   ;;  %v2639_v7 = vpack.c.bf16 %v1266_v4, %v1265_v3 }
  0x52   : > { %2066 = vmatprep.subr.bf16.mxu1 %v2330_v10  ;;  %v1894_v8 = vunpack.c.l.bf16 %v1912_v6  ;;  %v1895_v9 = vunpack.c.h.bf16 %v1912_v6 }
  0x54   : > { %2047 = vmatpush3.bf16.msra.mxu0 %v2246_v17  ;;  %v1381_v13 = vmul.f32 %v1894_v8, %v2458_v21  ;;  %v1382_v14 = vmul.f32 %v1895_v9, %v2458_v21  ;;  %v2260_v17 = vld [vmem:[%s2809_s1 + $0x128] sm:$0xff]  }
  0x55   : > { %2067 = vmatpush3.bf16.msra.mxu1 %v2247_v23  ;;  %2048 = vmatprep.subr.bf16.mxu0 %v2330_v10  ;;  %v2264_v23 = vld [vmem:[%s2809_s1 + $0x138] sm:$0xff]  }
  0x56   : > { %2068 = vmatprep.subr.bf16.mxu1 %v2330_v10  ;;  %v1383_v15 = vadd.f32 %v2467_v26, %v1381_v13  ;;  %v1384_v16 = vadd.f32 %v2467_v26, %v1382_v14  ;;  %v2262_v26 = vld [vmem:[%s2809_s1 + $0x130] sm:$0xff]  }
  0x58   : > { %2049 = vmatpush3.bf16.msra.mxu0 %v2248_v27  ;;  %v1385_v19 = vmax.f32 %v1383_v15, 0.0  ;;  %v1386_v21 = vmax.f32 %v1384_v16, 0.0  ;;  %v2267_v27 = vld [vmem:[%s2809_s1 + $0x1c0] sm:$0xff]  }
  0x59   : > { %2069 = vmatpush3.bf16.msra.mxu1 %v2249_v32  ;;  %2074 = vmatprep.subr.bf16.mxu0 %v2330_v10  ;;  %v2272_v32 = vld [vmem:[%s2809_s1 + $0x198] sm:$0xff]  }
  0x5a   : > { %2094 = vmatprep.subr.bf16.mxu1 %v2330_v10  ;;  %v2661_v20 = vpack.c.bf16 %v1386_v21, %v1385_v19 }
  0x5b   : > { %2051 = vmatmul.mubr.bf16.vlgmr.msra.gmra.mrb[4].mxu0 %v667_v41  ;;  %v2281_v41 = vld [vmem:[%s2809_s1 + $0x1f8] sm:$0xff]  }
  0x5c   : > { %2075 = vmatpush3.bf16.msra.mxu0 %v2250_v42  ;;  %2071 = vmatmul.mubr.bf16.vlgmr.msra.gmra.mrb[4].mxu1 %v787_v43  ;;  %v2282_v42 = vld [vmem:[%s2809_s1 + $0x200] sm:$0xff]   ;;  %v2283_v43 = vld [vmem:[%s2809_s1 + $0x208] sm:$0xff]  }
  0x5d   : > { %2095 = vmatpush3.bf16.msra.mxu1 %v2251_v44  ;;  %2076 = vmatprep.subr.bf16.mxu0 %v2330_v10  ;;  %v2284_v44 = vld [vmem:[%s2809_s1 + $0x210] sm:$0xff]  }
  0x5e   : > { %2096 = vmatprep.subr.bf16.mxu1 %v2330_v10  ;;  %2090 = vmatprep.mubr.msk.bf16.mxu0 %vm2331_vm0, %v2330_v10 }
  0x5f   : > { %2110 = vmatprep.mubr.msk.bf16.mxu1 %vm2331_vm0, %v2330_v10 }
  0x60   : > { %2077 = vmatpush3.bf16.msra.mxu0 %v2252_v45  ;;  %v2285_v45 = vld [vmem:[%s2809_s1 + $0x218] sm:$0xff]  }
  0x61   : > { %2097 = vmatpush3.bf16.msra.mxu1 %v2253_v46  ;;  %2078 = vmatprep.subr.bf16.mxu0 %v2330_v10  ;;  %v2286_v46 = vld [vmem:[%s2809_s1 + $0x220] sm:$0xff]  }
  0x62   : > { %2098 = vmatprep.subr.bf16.mxu1 %v2330_v10 }
  0x64   : > { %2079 = vmatpush3.bf16.msra.mxu0 %v2254_v53 }
  0x65   : > { %2099 = vmatpush3.bf16.msra.mxu1 %v2255_v56  ;;  %2080 = vmatprep.subr.bf16.mxu0 %v2330_v10 }
  0x66   : > { %2100 = vmatprep.subr.bf16.mxu1 %v2330_v10 }
  0x68   : > { %2081 = vmatpush3.bf16.msra.mxu0 %v2256_v61 }
  0x69   : > { %2101 = vmatpush3.bf16.msra.mxu1 %v2257_v2  ;;  %2082 = vmatprep.subr.bf16.mxu0 %v2330_v10 }
  0x6a   : > { %2102 = vmatprep.subr.bf16.mxu1 %v2330_v10 }
  0x6c   : > { %2083 = vmatpush3.bf16.msra.mxu0 %v2258_v11 }
  0x6d   : > { %2103 = vmatpush3.bf16.msra.mxu1 %v2259_v12  ;;  %2084 = vmatprep.subr.bf16.mxu0 %v2330_v10 }
  0x6e   : > { %2104 = vmatprep.subr.bf16.mxu1 %v2330_v10 }
  0x70   : > { %2085 = vmatpush3.bf16.msra.mxu0 %v2260_v17 }
  0x71   : > { %2105 = vmatpush3.bf16.msra.mxu1 %v2261_v18  ;;  %2086 = vmatprep.subr.bf16.mxu0 %v2330_v10 }
  0x72   : > { %2106 = vmatprep.subr.bf16.mxu1 %v2330_v10 }
  0x74   : > { %2087 = vmatpush3.bf16.msra.mxu0 %v2262_v26 }
  0x75   : > { %2107 = vmatpush3.bf16.msra.mxu1 %v2263_v22  ;;  %2088 = vmatprep.subr.bf16.mxu0 %v2330_v10 }
  0x76   : > { %2108 = vmatprep.subr.bf16.mxu1 %v2330_v10 }
  0x78   : > { %2089 = vmatpush3.bf16.msra.mxu0 %v2264_v23 }
  0x79   : > { %2109 = vmatpush3.bf16.msra.mxu1 %v2265_v24  ;;  %2114 = vmatprep.subr.bf16.mxu0 %v2330_v10 }
  0x7a   : > { %2134 = vmatprep.subr.bf16.mxu1 %v2330_v10 }
  0x7b   : > { %2091 = vmatmul.mubr.bf16.vlgmr.msra.gmra.mrb[8].mxu0 %v2585_v39  ;;  %v2279_v39 = vld [vmem:[%s2809_s1 + $0x1f0] sm:$0xff]  }
  0x7c   : > { %2115 = vmatpush3.bf16.msra.mxu0 %v2266_v25  ;;  %2111 = vmatmul.mubr.bf16.vlgmr.msra.gmra.mrb[8].mxu1 %v2588_v40  ;;  %v2280_v40 = vld [vmem:[%s2809_s1 + $0x1b8] sm:$0xff]  }
  0x7d   : > { %2135 = vmatpush3.bf16.msra.mxu1 %v2267_v27  ;;  %2116 = vmatprep.subr.bf16.mxu0 %v2330_v10 }
  0x7e   : > { %2136 = vmatprep.subr.bf16.mxu1 %v2330_v10  ;;  %2130 = vmatprep.mubr.msk.bf16.mxu0 %vm2331_vm0, %v2330_v10 }
  0x7f   : > { %2150 = vmatprep.mubr.msk.bf16.mxu1 %vm2331_vm0, %v2330_v10 }
  0x80   : > { %2117 = vmatpush3.bf16.msra.mxu0 %v2268_v28 }
  0x81   : > { %2137 = vmatpush3.bf16.msra.mxu1 %v2269_v29  ;;  %2118 = vmatprep.subr.bf16.mxu0 %v2330_v10 }
  0x82   : > { %2138 = vmatprep.subr.bf16.mxu1 %v2330_v10 }
  0x84   : > { %2119 = vmatpush3.bf16.msra.mxu0 %v2270_v30 }
  0x85   : > { %2139 = vmatpush3.bf16.msra.mxu1 %v2271_v31  ;;  %2120 = vmatprep.subr.bf16.mxu0 %v2330_v10 }
  0x86   : > { %2140 = vmatprep.subr.bf16.mxu1 %v2330_v10 }
  0x88   : > { %2121 = vmatpush3.bf16.msra.mxu0 %v2272_v32  ;;  %v1897_v32 = vld [vmem:[%s396_s14] sm:$0xff]  }
  0x89   : > { %2141 = vmatpush3.bf16.msra.mxu1 %v2273_v33  ;;  %2122 = vmatprep.subr.bf16.mxu0 %v2330_v10 }
  0x8a   : > { %2142 = vmatprep.subr.bf16.mxu1 %v2330_v10 }
  0x8c   : > { %2123 = vmatpush3.bf16.msra.mxu0 %v2274_v34 }
  0x8d   : > { %2143 = vmatpush3.bf16.msra.mxu1 %v2275_v35  ;;  %2124 = vmatprep.subr.bf16.mxu0 %v2330_v10  ;;  %v1898_v35 = vunpack.c.l.bf16 %v1897_v32 }
  0x8e   : > { %2144 = vmatprep.subr.bf16.mxu1 %v2330_v10 }
  0x90   : > { %2125 = vmatpush3.bf16.msra.mxu0 %v2276_v36 }
  0x91   : > { %2145 = vmatpush3.bf16.msra.mxu1 %v2277_v37  ;;  %2126 = vmatprep.subr.bf16.mxu0 %v2330_v10  ;;  %v1899_v37 = vunpack.c.h.bf16 %v1897_v32 }
  0x92   : > { %2146 = vmatprep.subr.bf16.mxu1 %v2330_v10 }
  0x94   : > { %2127 = vmatpush3.bf16.msra.mxu0 %v2278_v38 }
  0x95   : > { %2147 = vmatpush3.bf16.msra.mxu1 %v2279_v39  ;;  %2128 = vmatprep.subr.bf16.mxu0 %v2330_v10 }
  0x96   : > { %2148 = vmatprep.subr.bf16.mxu1 %v2330_v10 }
  0x98   : > { %2129 = vmatpush3.bf16.msra.mxu0 %v2280_v40 }
  0x99   : > { %2149 = vmatpush3.bf16.msra.mxu1 %v2281_v41  ;;  %2154 = vmatprep.subr.bf16.mxu0 %v2330_v10 }
  0x9b   : > { %2131 = vmatmul.mubr.bf16.vlgmr.msra.gmra.mrb[12].mxu0 %v2636_v5 }
  0x9c   : > { %2155 = vmatpush3.bf16.msra.mxu0 %v2282_v42  ;;  %2151 = vmatmul.mubr.bf16.vlgmr.msra.gmra.mrb[12].mxu1 %v2639_v7 }
  0x9d   : > { %2156 = vmatprep.subr.bf16.mxu0 %v2330_v10  ;;  %2170 = vmatprep.mubr.msk.bf16.mxu0 %vm2331_vm0, %v2330_v10 }
  0xa0   : > { %2157 = vmatpush3.bf16.msra.mxu0 %v2283_v43 }
  0xa1   : > { %2158 = vmatprep.subr.bf16.mxu0 %v2330_v10 }
  0xa4   : > { %2159 = vmatpush3.bf16.msra.mxu0 %v2284_v44 }
  0xa5   : > { %2160 = vmatprep.subr.bf16.mxu0 %v2330_v10 }
  0xa8   : > { %2161 = vmatpush3.bf16.msra.mxu0 %v2285_v45 }
  0xa9   : > { %2162 = vmatprep.subr.bf16.mxu0 %v2330_v10 }
  0xac   : > { %2163 = vmatpush3.bf16.msra.mxu0 %v2286_v46 }
  0xad   : > { %2164 = vmatprep.subr.bf16.mxu0 %v2330_v10 }
  0xb0   : > { %2165 = vmatpush3.bf16.msra.mxu0 %v2287_v47 }
  0xb1   : > { %2166 = vmatprep.subr.bf16.mxu0 %v2330_v10 }
  0xb4   : > { %2167 = vmatpush3.bf16.msra.mxu0 %v2288_v48 }
  0xb5   : > { %2168 = vmatprep.subr.bf16.mxu0 %v2330_v10 }
  0xb8   : > { %2169 = vmatpush3.bf16.msra.mxu0 %v2289_v49 }
  0xbb   : > { %2171 = vmatmul.mubr.bf16.vlgmr.msra.gmra.mrb[16].mxu0 %v2661_v20 }
 0x10e   : > { %v560_v50 = vpop.f32.mrb[0].mxu0 }
 0x10f   : > { %v649_v51 = vpop.f32.mrb[0].mxu1  ;;  %v2012_v52 = vpop.f32.mrb[1].mxu0 }
 0x110   : > { %v650_v53 = vadd.f32 %v649_v51, %v560_v50  ;;  %v2032_v54 = vpop.f32.mrb[1].mxu1  ;;  %v563_v55 = vpop.f32.mrb[2].mxu0 }
 0x111   : > { %v652_v56 = vpop.f32.mrb[2].mxu1  ;;  %v2013_v57 = vpop.f32.mrb[3].mxu0 }
 0x112   : > { %v653_v58 = vadd.f32 %v652_v56, %v563_v55  ;;  %v2033_v59 = vpop.f32.mrb[3].mxu1 }
 0x12e   : > { %v767_v60 = vpop.f32.mrb[4].mxu0 }
 0x12f   : > { %v774_v61 = vadd.f32 %v767_v60, %v650_v53  ;;  %v2052_v62 = vpop.f32.mrb[5].mxu0  ;;  %v887_v63 = vpop.f32.mrb[4].mxu1 }
 0x130   : > { %v770_v0 = vpop.f32.mrb[6].mxu0  ;;  %v2072_v1 = vpop.f32.mrb[5].mxu1 }
 0x131   : > { %v775_v10 = vadd.f32 %v770_v0, %v653_v58  ;;  %v894_v2 = vadd.f32 %v887_v63, %v774_v61  ;;  %v2053_v3 = vpop.f32.mrb[7].mxu0  ;;  %v890_v4 = vpop.f32.mrb[6].mxu1 }
 0x132   : > { %v2073_v5 = vpop.f32.mrb[7].mxu1 }
 0x133   : > { %v895_v6 = vadd.f32 %v890_v4, %v775_v10 }
 0x14e   : > { %v1007_v7 = vpop.f32.mrb[8].mxu0 }
 0x14f   : > { %v1014_v8 = vadd.f32 %v1007_v7, %v894_v2  ;;  %v2092_v9 = vpop.f32.mrb[9].mxu0  ;;  %v1127_v11 = vpop.f32.mrb[8].mxu1 }
 0x150   : > { %v1010_v12 = vpop.f32.mrb[10].mxu0  ;;  %v2112_v13 = vpop.f32.mrb[9].mxu1 }
 0x151   : > { %v1015_v14 = vadd.f32 %v1010_v12, %v895_v6  ;;  %v1134_v15 = vadd.f32 %v1127_v11, %v1014_v8  ;;  %v2093_v16 = vpop.f32.mrb[11].mxu0  ;;  %v1130_v17 = vpop.f32.mrb[10].mxu1 }
 0x152   : > { %v2113_v18 = vpop.f32.mrb[11].mxu1 }
 0x153   : > { %v1135_v19 = vadd.f32 %v1130_v17, %v1015_v14 }
 0x16e   : > { %v1247_v21 = vpop.f32.mrb[12].mxu0 }
 0x16f   : > { %v1254_v20 = vadd.f32 %v1247_v21, %v1134_v15  ;;  %v2132_v26 = vpop.f32.mrb[13].mxu0  ;;  %v1367_v22 = vpop.f32.mrb[12].mxu1 }
 0x170   : > { %v1250_v23 = vpop.f32.mrb[14].mxu0  ;;  %v2152_v24 = vpop.f32.mrb[13].mxu1 }
 0x171   : > { %v1255_v25 = vadd.f32 %v1250_v23, %v1135_v19  ;;  %v1374_v27 = vadd.f32 %v1367_v22, %v1254_v20  ;;  %v2133_v28 = vpop.f32.mrb[15].mxu0  ;;  %v1370_v29 = vpop.f32.mrb[14].mxu1 }
 0x172   : > { %v2153_v30 = vpop.f32.mrb[15].mxu1 }
 0x173   : > { %v1375_v31 = vadd.f32 %v1370_v29, %v1255_v25 }
 0x18e   : > { %v1487_v33 = vpop.f32.mrb[16].mxu0 }
 0x18f   : > { %v1494_v34 = vadd.f32 %v1487_v33, %v1374_v27  ;;  %v2172_v36 = vpop.f32.mrb[17].mxu0 }
 0x190   : > { %v1490_v38 = vpop.f32.mrb[18].mxu0 }
 0x191   : > { %v1495_v39 = vadd.f32 %v1490_v38, %v1375_v31  ;;  %v2173_v40 = vpop.f32.mrb[19].mxu0  ;;  %v1500_v41 = vadd.f32 %v1898_v35, %v1494_v34 }
 0x193   : > { %v1501_v42 = vadd.f32 %v1899_v37, %v1495_v39 }
 0x195   : > { %v1903_v43 = vpack.c.bf16 %v1501_v42, %v1500_v41 }
 0x197   : > { %1904 = vst [vmem:[%s405_s17] sm:$0xff] %v1903_v43  }
 0x198 PF: > { %s15_s22 = sadd.s32 1, %s2328_s22   ;;  %s2814_s18 = smov %s2316_s19 }
 0x199   : > { %p12_p10 = scmp.ge.s32.totalorder %s15_s22, 4   ;;  %s2815_s19 = smov %s2397_s26 }
 0x19a   : > { %s2816_s20 = smov %s2324_s21  ;;  %s2817_s21 = smov %s2819_s23 }
 0x19b   :  { %14 = sbr.rel (!%p12_p10) target bundleno = 3 (0x3), region = 138 }

// kernel: densenet_base_forward.18
= control target key start
LH: loop header
LB: loop body
LE: loop exit
PB: predicated region body
PF: predicated region fallthrough
CT: control target
= control target key end

     0   :  { %v222_v0 = vmov 0.0   ;;  %vm223_vm0 = vmmov 0   ;;  %s288_s1 = inlined_call_operand.vmem [shape: bf16[1,128,128], index: 1, kind: input, shape index: {}]   ;;  %s289_s0 = inlined_call_operand.vmem [shape: bf16[4,8,128], index: 0, kind: input, shape index: {}]   ;;  %s290_s2 = inlined_call_operand.vmem [shape: f32[1,128], index: 2, kind: input, shape index: {}]   ;;  %s291_s3 = inlined_call_operand.vmem [shape: f32[1,128], index: 3, kind: input, shape index: {}]   ;;  %s292_s4 = inlined_call_operand.vmem [shape: bf16[8,128], index: 4, kind: output, shape index: {}]  }
   0x1   :  { %192 = vmatprep.subr.bf16.mxu0 %v222_v0  ;;  %v214_v1 = vld [vmem:[%s288_s1] sm:$0xff]   ;;  %208 = vmatprep.mubr.msk.bf16.mxu0 %vm223_vm0, %v222_v0  ;;  %v215_v2 = vld [vmem:[%s288_s1 + $0x8] sm:$0xff]   ;;  %v216_v3 = vld [vmem:[%s288_s1 + $0x10] sm:$0xff]  }
   0x2   :  { %193 = vmatpush3.bf16.msra.mxu0 %v214_v1  ;;  %v18_v4 = vld [vmem:[%s289_s0] sm:$0xff]   ;;  %v173_v8 = vld [vmem:[%s289_s0 + $0x8] sm:$0xff]   ;;  %v217_v9 = vld [vmem:[%s288_s1 + $0x18] sm:$0xff]  }
   0x3   :  { %194 = vmatprep.subr.bf16.mxu0 %v222_v0  ;;  %v170_v5 = vld [vmem:[%s290_s2] ss:$0 sm:$0xff]  ;;  %v19_v6 = vunpack.c.l.bf16 %v18_v4  ;;  %v39_v7 = vunpack.c.h.bf16 %v18_v4  ;;  %v46_v11 = vunpack.c.l.bf16 %v173_v8  ;;  %v53_v12 = vunpack.c.h.bf16 %v173_v8  ;;  %v219_v27 = vld [vmem:[%s288_s1 + $0x28] sm:$0xff]   ;;  %v220_v30 = vld [vmem:[%s288_s1 + $0x30] sm:$0xff]  }
   0x4   :  { %v171_v10 = vld [vmem:[%s291_s3] ss:$0 sm:$0xff]  ;;  %v221_v32 = vld [vmem:[%s288_s1 + $0x38] sm:$0xff]  }
   0x5   :  { %v27_v13 = vmul.f32 %v170_v5, %v19_v6  ;;  %v40_v14 = vmul.f32 %v170_v5, %v39_v7  ;;  %v47_v15 = vmul.f32 %v170_v5, %v46_v11  ;;  %v54_v16 = vmul.f32 %v170_v5, %v53_v12  ;;  %v218_v19 = vld [vmem:[%s288_s1 + $0x20] sm:$0xff]  }
   0x6   :  { %195 = vmatpush3.bf16.msra.mxu0 %v215_v2 }
   0x7   :  { %196 = vmatprep.subr.bf16.mxu0 %v222_v0  ;;  %v35_v17 = vadd.f32 %v171_v10, %v27_v13  ;;  %v41_v18 = vadd.f32 %v171_v10, %v40_v14  ;;  %v48_v20 = vadd.f32 %v171_v10, %v47_v15  ;;  %v55_v21 = vadd.f32 %v171_v10, %v54_v16 }
   0x9   :  { %v36_v22 = vmax.f32 %v35_v17, 0.0  ;;  %v42_v23 = vmax.f32 %v41_v18, 0.0  ;;  %v49_v24 = vmax.f32 %v48_v20, 0.0  ;;  %v56_v26 = vmax.f32 %v55_v21, 0.0 }
   0xa   :  { %197 = vmatpush3.bf16.msra.mxu0 %v216_v3 }
   0xb   :  { %198 = vmatprep.subr.bf16.mxu0 %v222_v0  ;;  %v43_v25 = vadd.f32 %v42_v23, %v36_v22 }
   0xd   :  { %v50_v28 = vadd.f32 %v49_v24, %v43_v25 }
   0xe   :  { %199 = vmatpush3.bf16.msra.mxu0 %v217_v9 }
   0xf   :  { %200 = vmatprep.subr.bf16.mxu0 %v222_v0  ;;  %v57_v29 = vadd.f32 %v56_v26, %v50_v28 }
  0x11   :  { %v58_v31 = vmul.f32 0.25, %v57_v29 }
  0x12   :  { %201 = vmatpush3.bf16.msra.mxu0 %v218_v19 }
  0x13   :  { %202 = vmatprep.subr.bf16.mxu0 %v222_v0  ;;  %v59_v33 = vpack.c.bf16 %v58_v31, %v58_v31 }
  0x16   :  { %203 = vmatpush3.bf16.msra.mxu0 %v219_v27 }
  0x17   :  { %204 = vmatprep.subr.bf16.mxu0 %v222_v0 }
  0x1a   :  { %205 = vmatpush3.bf16.msra.mxu0 %v220_v30 }
  0x1b   :  { %206 = vmatprep.subr.bf16.mxu0 %v222_v0 }
  0x1e   :  { %207 = vmatpush3.bf16.msra.mxu0 %v221_v32 }
  0x21   :  { %209 = vmatmul.mubr.bf16.vlgmr.msra.gmra.mrb[0].mxu0 %v59_v33 }
  0xf4   :  { %v158_v34 = vpop.f32.mrb[0].mxu0 }
  0xf5   :  { %v164_v35 = vpack.c.bf16 %v158_v34, %v158_v34  ;;  %v210_v36 = vpop.f32.mrb[1].mxu0 }
  0xf6   :  { %v161_v37 = vpop.f32.mrb[2].mxu0 }
  0xf7   :  { %165 = vst [vmem:[%s292_s4] sm:$0xf] %v164_v35  ;;  %v211_v38 = vpop.f32.mrb[3].mxu0 }

// kernel: densenet_base_forward.23
= control target key start
LH: loop header
LB: loop body
LE: loop exit
PB: predicated region body
PF: predicated region fallthrough
CT: control target
= control target key end

     0   :  { %s148_s0 = inlined_call_operand.vmem [shape: bf16[2,4,128], index: 0, kind: input, shape index: {}]   ;;  %s149_s1 = inlined_call_operand.vmem [shape: f32[1,1,128], index: 1, kind: input, shape index: {}]   ;;  %s150_s2 = inlined_call_operand.vmem [shape: f32[1,1,128], index: 2, kind: input, shape index: {}]   ;;  %s151_s3 = inlined_call_operand.hbm [shape: f32[2,128], index: 3, kind: output, shape index: {}]  }
   0x1   :  { %v15_v0 = vld [vmem:[%s148_s0] sm:$0x3]  ;;  %v16_v1 = vld [vmem:[%s148_s0 + $0x2] sm:$0x3] }
   0x2   :  { %v76_v2 = vld [vmem:[%s149_s1] ss:$0 sm:$0xff]  ;;  %v17_v3 = vunpack.c.l.bf16 %v15_v0  ;;  %v18_v4 = vunpack.c.l.bf16 %v16_v1 }
   0x3   :  { %8 = vsyncpa [#allocation3], 0  ;;  %v77_v5 = vld [vmem:[%s150_s2] ss:$0 sm:$0xff]  ;;  %vm39_vm0 = vcmask 1043456   ;;  %s103_s0 = smov [#allocation2]  }
   0x4   :  { %v26_v6 = vmul.f32 %v76_v2, %v17_v3  ;;  %v27_v7 = vmul.f32 %v76_v2, %v18_v4  ;;  %s68_s1 = sshll.u32 %s103_s0, 4  ;;  %vm58_vm1 = vcmask 1041409   ;;  %s69_s1 = int_to_ptr.vmem [resolvable:$true] %s68_s1 }
   0x5   :  { %s79_s2 = scalar_lea.vmem %s69_s1, 32  ;;  %p84_p1 = scmp.lt.s32.totalorder %s69_s1, %s69_s1 }
   0x6   :  { %v35_v8 = vadd.f32 %v77_v5, %v26_v6  ;;  %v36_v9 = vadd.f32 %v77_v5, %v27_v7  ;;  %p80_p0 = scmp.ne.s32.totalorder %s69_s1, %s79_s2  ;;  %p85_p2 = scmp.lt.s32.totalorder %s79_s2, %s79_s2 }
   0x8   :  { %v37_v10 = vmax.f32 %v35_v8, 0.0  ;;  %v38_v11 = vmax.f32 %v36_v9, 0.0  ;;  %p86_p3 = por %p85_p2, %p84_p1 }
   0xa   :  { %v40_v12 = vsel %vm39_vm0, %v37_v10, 0.0  ;;  %v47_v13 = vsel %vm39_vm0, %v38_v11, 0.0  ;;  %p87_p4 = pnand %p86_p3, %p80_p0 }
   0xb   :  { %v41_v14 = vrot.slane %v40_v12, 4  ;;  %v48_v15 = vrot.slane %v47_v13, 4 }
   0xd   :  { %v42_v16 = vadd.f32 %v41_v14, %v40_v12  ;;  %v49_v17 = vadd.f32 %v48_v15, %v47_v13 }
   0xf   :  { %v43_v18 = vrot.slane %v42_v16, 2  ;;  %v50_v19 = vrot.slane %v49_v17, 2 }
  0x11   :  { %v44_v20 = vadd.f32 %v43_v18, %v42_v16  ;;  %v51_v21 = vadd.f32 %v50_v19, %v49_v17 }
  0x13   :  { %v45_v22 = vrot.slane %v44_v20, 1  ;;  %v52_v23 = vrot.slane %v51_v21, 1 }
  0x15   :  { %v46_v24 = vadd.f32 %v45_v22, %v44_v20  ;;  %v53_v25 = vadd.f32 %v52_v23, %v51_v21 }
  0x17   :  { %v54_v26 = vmul.f32 0.25, %v46_v24  ;;  %v55_v27 = vmul.f32 0.25, %v53_v25 }
  0x19   :  { %v59_v28 = vsel %vm58_vm1, %v55_v27, %v54_v26 }
  0x1a   :  { %61 = vst [vmem:[#allocation2] sm:$0x3] %v59_v28 }
  0x1b   :  { %90 = shalt.err (!%p87_p4)
}
  0x1c   :  { %s91_s22 = scalar_lea.hbm %s151_s3, 32 }
  0x1d   :  { %p92_p5 = scmp.ne.s32.totalorder %s151_s3, %s91_s22  ;;  %p95_p6 = scmp.lt.u32.totalorder %s91_s22, %s151_s3 }
  0x1f   :  { %p97_p7 = pnand %p95_p6, %p92_p5 }
  0x21   :  { %100 = shalt.err (!%p97_p7)
}
  0x22   :  { %71 = dma.vmem_to_hbm [thread:$0]  %s69_s1, 32, %s151_s3, [#allocation3]  }
  0x23   :  { %101 = dma.done.wait [#allocation3], 32  }
  0x24   :  { %102 = vsyncadd [#allocation3], 4294967264 }
  0x25   :  { %75 = vsyncpa [#allocation3], 1 }

// kernel: densenet_base_forward.20
= control target key start
LH: loop header
LB: loop body
LE: loop exit
PB: predicated region body
PF: predicated region fallthrough
CT: control target
= control target key end

     0   :  { %v1602_v0 = vmov 0.0   ;;  %vm1603_vm0 = vmmov 0   ;;  %s2008_s1 = inlined_call_operand.vmem [shape: bf16[9,128,128], index: 1, kind: input, shape index: {}]   ;;  %s2009_s0 = inlined_call_operand.vmem [shape: bf16[9,8,128], index: 0, kind: input, shape index: {}]   ;;  %s2010_s2 = inlined_call_operand.vmem [shape: f32[1,128], index: 2, kind: input, shape index: {}]   ;;  %s2011_s3 = inlined_call_operand.vmem [shape: f32[1,128], index: 3, kind: input, shape index: {}]   ;;  %s2012_s4 = inlined_call_operand.vmem [shape: bf16[8,128], index: 4, kind: input, shape index: {}, may-alias: {4,5}]   ;;  %s2013_s5 = inlined_call_operand.vmem [shape: bf16[8,128], index: 5, kind: output, shape index: {}, may-alias: {4,5}]  }
   0x1   :  { %1348 = vmatprep.subr.bf16.mxu0 %v1602_v0  ;;  %v1530_v1 = vld [vmem:[%s2008_s1 + $0x40] sm:$0xff]   ;;  %1368 = vmatprep.subr.bf16.mxu1 %v1602_v0  ;;  %v1532_v3 = vld [vmem:[%s2008_s1 + $0x48] sm:$0xff]   ;;  %v1534_v5 = vld [vmem:[%s2008_s1 + $0x50] sm:$0xff]  }
   0x2   :  { %v1531_v2 = vld [vmem:[%s2008_s1] sm:$0xff]   ;;  %1364 = vmatprep.mubr.msk.bf16.mxu0 %vm1603_vm0, %v1602_v0  ;;  %1384 = vmatprep.mubr.msk.bf16.mxu1 %vm1603_vm0, %v1602_v0  ;;  %v1533_v4 = vld [vmem:[%s2008_s1 + $0x8] sm:$0xff]   ;;  %v1535_v6 = vld [vmem:[%s2008_s1 + $0x10] sm:$0xff]  }
   0x3   :  { %1349 = vmatpush3.bf16.msra.mxu0 %v1530_v1  ;;  %1369 = vmatpush3.bf16.msra.mxu1 %v1531_v2  ;;  %v1536_v7 = vld [vmem:[%s2008_s1 + $0x58] sm:$0xff]   ;;  %v1538_v9 = vld [vmem:[%s2008_s1 + $0x60] sm:$0xff]   ;;  %v1540_v11 = vld [vmem:[%s2008_s1 + $0x68] sm:$0xff]  }
   0x4   :  { %1350 = vmatprep.subr.bf16.mxu0 %v1602_v0  ;;  %1370 = vmatprep.subr.bf16.mxu1 %v1602_v0  ;;  %v1537_v8 = vld [vmem:[%s2008_s1 + $0x18] sm:$0xff]   ;;  %v1539_v10 = vld [vmem:[%s2008_s1 + $0x20] sm:$0xff]   ;;  %v1541_v18 = vld [vmem:[%s2008_s1 + $0x28] sm:$0xff]  }
   0x5   :  { %v1684_v12 = vld [vmem:[%s2010_s2] ss:$0 sm:$0xff]  ;;  %v1689_v13 = vld [vmem:[%s2009_s0 + $0x4] sm:$0xff]   ;;  %v1542_v22 = vld [vmem:[%s2008_s1 + $0x70] sm:$0xff]  }
   0x6   :  { %v59_v14 = vunpack.c.l.bf16 %v1689_v13  ;;  %v21_v15 = vld [vmem:[%s2009_s0] sm:$0xf]  ;;  %v1543_v24 = vld [vmem:[%s2008_s1 + $0x30] sm:$0xff]   ;;  %v1544_v26 = vld [vmem:[%s2008_s1 + $0x78] sm:$0xff]   ;;  %v259_v43 = vunpack.c.h.bf16 %v1689_v13 }
   0x7   :  { %1351 = vmatpush3.bf16.msra.mxu0 %v1532_v3  ;;  %1371 = vmatpush3.bf16.msra.mxu1 %v1533_v4  ;;  %v1698_v16 = vld [vmem:[%s2011_s3] ss:$0 sm:$0xff]  ;;  %v22_v17 = vunpack.c.l.bf16 %v21_v15  ;;  %v1545_v28 = vld [vmem:[%s2008_s1 + $0x38] sm:$0xff]   ;;  %v1548_v33 = vld [vmem:[%s2008_s1 + $0x88] sm:$0xff]  }
   0x8   :  { %1352 = vmatprep.subr.bf16.mxu0 %v1602_v0  ;;  %1372 = vmatprep.subr.bf16.mxu1 %v1602_v0  ;;  %v60_v19 = vmul.f32 %v1684_v12, %v59_v14  ;;  %v1546_v31 = vld [vmem:[%s2008_s1 + $0x80] sm:$0xff]   ;;  %v1117_v34 = vld [vmem:[%s2009_s0 + $0xc] sm:$0xff]   ;;  %v1552_v41 = vld [vmem:[%s2008_s1 + $0x98] sm:$0xff]   ;;  %v260_v47 = vmul.f32 %v1684_v12, %v259_v43 }
   0x9   :  { %v30_v20 = vmul.f32 %v1684_v12, %v22_v17  ;;  %v1547_v32 = vld [vmem:[%s2008_s1 + $0xc0] sm:$0xff]   ;;  %v1549_v35 = vld [vmem:[%s2008_s1 + $0xc8] sm:$0xff]   ;;  %v485_v36 = vunpack.c.h.bf16 %v1117_v34  ;;  %v1550_v38 = vld [vmem:[%s2008_s1 + $0x90] sm:$0xff]   ;;  %v372_v45 = vunpack.c.l.bf16 %v1117_v34 }
   0xa   :  { %v61_v21 = vadd.f32 %v1698_v16, %v60_v19  ;;  %v1551_v39 = vld [vmem:[%s2008_s1 + $0xd0] sm:$0xff]   ;;  %v1553_v42 = vld [vmem:[%s2008_s1 + $0xd8] sm:$0xff]   ;;  %v1554_v44 = vld [vmem:[%s2008_s1 + $0xa0] sm:$0xff]   ;;  %v261_v54 = vadd.f32 %v1698_v16, %v260_v47 }
   0xb   :  { %1353 = vmatpush3.bf16.msra.mxu0 %v1534_v5  ;;  %1373 = vmatpush3.bf16.msra.mxu1 %v1535_v6  ;;  %v38_v23 = vadd.f32 %v1698_v16, %v30_v20  ;;  %v486_v37 = vmul.f32 %v1684_v12, %v485_v36  ;;  %v1555_v46 = vld [vmem:[%s2008_s1 + $0xe0] sm:$0xff]   ;;  %v1556_v48 = vld [vmem:[%s2008_s1 + $0xa8] sm:$0xff]   ;;  %v373_v49 = vmul.f32 %v1684_v12, %v372_v45  ;;  %v1167_v50 = vld [vmem:[%s2009_s0 + $0x14] sm:$0xff]  }
   0xc   :  { %1354 = vmatprep.subr.bf16.mxu0 %v1602_v0  ;;  %1374 = vmatprep.subr.bf16.mxu1 %v1602_v0  ;;  %v62_v25 = vmax.f32 %v61_v21, 0.0  ;;  %v1557_v51 = vld [vmem:[%s2008_s1 + $0xe8] sm:$0xff]   ;;  %v598_v52 = vunpack.c.l.bf16 %v1167_v50  ;;  %v711_v53 = vunpack.c.h.bf16 %v1167_v50  ;;  %v1558_v57 = vld [vmem:[%s2008_s1 + $0xb0] sm:$0xff]   ;;  %v262_v62 = vmax.f32 %v261_v54, 0.0  ;;  %v1560_v63 = vld [vmem:[%s2008_s1 + $0xb8] sm:$0xff]  }
   0xd   :  { %v39_v27 = vmax.f32 %v38_v23, 0.0  ;;  %v1757_v40 = vadd.f32 %v1698_v16, %v486_v37  ;;  %v374_v58 = vadd.f32 %v1698_v16, %v373_v49  ;;  %v1559_v59 = vld [vmem:[%s2008_s1 + $0xf0] sm:$0xff]   ;;  %v1561_v2 = vld [vmem:[%s2008_s1 + $0xf8] sm:$0xff]   ;;  %v1562_v4 = vld [vmem:[%s2008_s1 + $0x100] sm:$0xff]  }
   0xe   :  { %v63_v29 = vpack.c.bf16 %v62_v25, %v62_v25  ;;  %v599_v55 = vmul.f32 %v1684_v12, %v598_v52  ;;  %v712_v56 = vmul.f32 %v1684_v12, %v711_v53  ;;  %v263_v3 = vpack.c.bf16 %v262_v62, %v262_v62  ;;  %v1563_v6 = vld [vmem:[%s2008_s1 + $0x140] sm:$0xff]   ;;  %v1566_v13 = vld [vmem:[%s2008_s1 + $0x110] sm:$0xff]   ;;  %v1569_v20 = vld [vmem:[%s2008_s1 + $0x158] sm:$0xff]  }
   0xf   :  { %1355 = vmatpush3.bf16.msra.mxu0 %v1536_v7  ;;  %1375 = vmatpush3.bf16.msra.mxu1 %v1537_v8  ;;  %v40_v30 = vpack.c.bf16 %v39_v27, %v39_v27  ;;  %v375_v1 = vmax.f32 %v374_v58, 0.0  ;;  %v1564_v7 = vld [vmem:[%s2008_s1 + $0x108] sm:$0xff]   ;;  %v1567_v17 = vld [vmem:[%s2008_s1 + $0x150] sm:$0xff]   ;;  %v1571_v21 = vld [vmem:[%s2008_s1 + $0x160] sm:$0xff]  }
  0x10   :  { %1356 = vmatprep.subr.bf16.mxu0 %v1602_v0  ;;  %1376 = vmatprep.subr.bf16.mxu1 %v1602_v0  ;;  %v1802_v60 = vadd.f32 %v1698_v16, %v599_v55  ;;  %v1805_v61 = vadd.f32 %v1698_v16, %v712_v56  ;;  %v1565_v8 = vld [vmem:[%s2008_s1 + $0x148] sm:$0xff]   ;;  %v1575_v25 = vld [vmem:[%s2008_s1 + $0x170] sm:$0xff]   ;;  %v1576_v27 = vld [vmem:[%s2008_s1 + $0x138] sm:$0xff]  }
  0x11   :  { %v376_v5 = vpack.c.bf16 %v375_v1, %v375_v1  ;;  %v1573_v23 = vld [vmem:[%s2008_s1 + $0x168] sm:$0xff]   ;;  %v1582_v36 = vld [vmem:[%s2008_s1 + $0x190] sm:$0xff]   ;;  %v1592_v47 = vld [vmem:[%s2008_s1 + $0x1b8] sm:$0xff]  }
  0x12   :  { %v1580_v34 = vld [vmem:[%s2008_s1 + $0x188] sm:$0xff]   ;;  %v1583_v37 = vld [vmem:[%s2008_s1 + $0x1d0] sm:$0xff]   ;;  %v1593_v49 = vld [vmem:[%s2008_s1 + $0x1f8] sm:$0xff]  }
  0x13   :  { %1357 = vmatpush3.bf16.msra.mxu0 %v1538_v9  ;;  %1377 = vmatpush3.bf16.msra.mxu1 %v1539_v10  ;;  %v1217_v9 = vld [vmem:[%s2009_s0 + $0x1c] sm:$0xff]   ;;  %v1589_v43 = vld [vmem:[%s2008_s1 + $0x1e8] sm:$0xff]   ;;  %v1591_v45 = vld [vmem:[%s2008_s1 + $0x1f0] sm:$0xff]  }
  0x14   :  { %1358 = vmatprep.subr.bf16.mxu0 %v1602_v0  ;;  %1378 = vmatprep.subr.bf16.mxu1 %v1602_v0  ;;  %v824_v10 = vunpack.c.l.bf16 %v1217_v9  ;;  %v1595_v53 = vld [vmem:[%s2008_s1 + $0x208] sm:$0xff]   ;;  %v1596_v54 = vld [vmem:[%s2008_s1 + $0x210] sm:$0xff]   ;;  %v1597_v55 = vld [vmem:[%s2008_s1 + $0x218] sm:$0xff]  }
  0x15   :  { %v1598_v56 = vld [vmem:[%s2008_s1 + $0x220] sm:$0xff]   ;;  %v1600_v58 = vld [vmem:[%s2008_s1 + $0x230] sm:$0xff]  }
  0x16   :  { %v825_v14 = vmul.f32 %v1684_v12, %v824_v10 }
  0x17   :  { %1359 = vmatpush3.bf16.msra.mxu0 %v1540_v11  ;;  %1379 = vmatpush3.bf16.msra.mxu1 %v1541_v18  ;;  %v937_v11 = vunpack.c.h.bf16 %v1217_v9 }
  0x18   :  { %1360 = vmatprep.subr.bf16.mxu0 %v1602_v0  ;;  %1380 = vmatprep.subr.bf16.mxu1 %v1602_v0  ;;  %v1850_v18 = vadd.f32 %v1698_v16, %v825_v14 }
  0x19   :  { %v938_v15 = vmul.f32 %v1684_v12, %v937_v11  ;;  %v1568_v12 = vld [vmem:[%s2008_s1 + $0x118] sm:$0xff]  }
  0x1b   :  { %1361 = vmatpush3.bf16.msra.mxu0 %v1542_v22  ;;  %1381 = vmatpush3.bf16.msra.mxu1 %v1543_v24  ;;  %v1853_v19 = vadd.f32 %v1698_v16, %v938_v15  ;;  %v1570_v16 = vld [vmem:[%s2008_s1 + $0x120] sm:$0xff]   ;;  %v1572_v22 = vld [vmem:[%s2008_s1 + $0x128] sm:$0xff]   ;;  %v1574_v24 = vld [vmem:[%s2008_s1 + $0x130] sm:$0xff]  }
  0x1c   :  { %1362 = vmatprep.subr.bf16.mxu0 %v1602_v0  ;;  %1382 = vmatprep.subr.bf16.mxu1 %v1602_v0 }
  0x1f   :  { %1363 = vmatpush3.bf16.msra.mxu0 %v1544_v26  ;;  %1383 = vmatpush3.bf16.msra.mxu1 %v1545_v28  ;;  %v488_v26 = vmax.f32 %v1757_v40, 0.0  ;;  %v601_v28 = vmax.f32 %v1802_v60, 0.0  ;;  %v1586_v40 = vld [vmem:[%s2008_s1 + $0x1a0] sm:$0xff]   ;;  %v1601_v60 = vld [vmem:[%s2008_s1 + $0x238] sm:$0xff]  }
  0x20   :  { %1388 = vmatprep.subr.bf16.mxu0 %v1602_v0  ;;  %1408 = vmatprep.subr.bf16.mxu1 %v1602_v0 }
  0x22   :  { %1365 = vmatmul.mubr.bf16.vlgmr.msra.gmra.mrb[0].mxu0 %v63_v29  ;;  %1385 = vmatmul.mubr.bf16.vlgmr.msra.gmra.mrb[0].mxu1 %v40_v30  ;;  %v1577_v29 = vld [vmem:[%s2008_s1 + $0x178] sm:$0xff]   ;;  %v489_v30 = vpack.c.bf16 %v488_v26, %v488_v26 }
  0x23   :  { %1389 = vmatpush3.bf16.msra.mxu0 %v1546_v31  ;;  %1409 = vmatpush3.bf16.msra.mxu1 %v1547_v32  ;;  %v1578_v31 = vld [vmem:[%s2008_s1 + $0x180] sm:$0xff]   ;;  %v602_v32 = vpack.c.bf16 %v601_v28, %v601_v28 }
  0x24   :  { %1390 = vmatprep.subr.bf16.mxu0 %v1602_v0  ;;  %1410 = vmatprep.subr.bf16.mxu1 %v1602_v0 }
  0x25   :  { %1404 = vmatprep.mubr.msk.bf16.mxu0 %vm1603_vm0, %v1602_v0  ;;  %1424 = vmatprep.mubr.msk.bf16.mxu1 %vm1603_vm0, %v1602_v0 }
  0x27   :  { %1391 = vmatpush3.bf16.msra.mxu0 %v1548_v33  ;;  %1411 = vmatpush3.bf16.msra.mxu1 %v1549_v35  ;;  %v1579_v33 = vld [vmem:[%s2008_s1 + $0x1c0] sm:$0xff]   ;;  %v1581_v35 = vld [vmem:[%s2008_s1 + $0x1c8] sm:$0xff]  }
  0x28   :  { %1392 = vmatprep.subr.bf16.mxu0 %v1602_v0  ;;  %1412 = vmatprep.subr.bf16.mxu1 %v1602_v0 }
  0x2b   :  { %1393 = vmatpush3.bf16.msra.mxu0 %v1550_v38  ;;  %1413 = vmatpush3.bf16.msra.mxu1 %v1551_v39  ;;  %v1584_v38 = vld [vmem:[%s2008_s1 + $0x198] sm:$0xff]  }
  0x2c   :  { %1394 = vmatprep.subr.bf16.mxu0 %v1602_v0  ;;  %1414 = vmatprep.subr.bf16.mxu1 %v1602_v0  ;;  %v1585_v39 = vld [vmem:[%s2008_s1 + $0x1d8] sm:$0xff]  }
  0x2f   :  { %1395 = vmatpush3.bf16.msra.mxu0 %v1552_v41  ;;  %1415 = vmatpush3.bf16.msra.mxu1 %v1553_v42  ;;  %v1587_v41 = vld [vmem:[%s2008_s1 + $0x1e0] sm:$0xff]   ;;  %v1588_v42 = vld [vmem:[%s2008_s1 + $0x1a8] sm:$0xff]  }
  0x30   :  { %1396 = vmatprep.subr.bf16.mxu0 %v1602_v0  ;;  %1416 = vmatprep.subr.bf16.mxu1 %v1602_v0 }
  0x33   :  { %1397 = vmatpush3.bf16.msra.mxu0 %v1554_v44  ;;  %1417 = vmatpush3.bf16.msra.mxu1 %v1555_v46  ;;  %v1590_v44 = vld [vmem:[%s2008_s1 + $0x1b0] sm:$0xff]   ;;  %v714_v46 = vmax.f32 %v1805_v61, 0.0 }
  0x34   :  { %1398 = vmatprep.subr.bf16.mxu0 %v1602_v0  ;;  %1418 = vmatprep.subr.bf16.mxu1 %v1602_v0 }
  0x35   :  { %v715_v50 = vpack.c.bf16 %v714_v46, %v714_v46 }
  0x37   :  { %1399 = vmatpush3.bf16.msra.mxu0 %v1556_v48  ;;  %1419 = vmatpush3.bf16.msra.mxu1 %v1557_v51  ;;  %v827_v48 = vmax.f32 %v1850_v18, 0.0  ;;  %v1594_v51 = vld [vmem:[%s2008_s1 + $0x200] sm:$0xff]  }
  0x38   :  { %1400 = vmatprep.subr.bf16.mxu0 %v1602_v0  ;;  %1420 = vmatprep.subr.bf16.mxu1 %v1602_v0 }
  0x39   :  { %v828_v52 = vpack.c.bf16 %v827_v48, %v827_v48 }
  0x3b   :  { %1401 = vmatpush3.bf16.msra.mxu0 %v1558_v57  ;;  %1421 = vmatpush3.bf16.msra.mxu1 %v1559_v59  ;;  %v1599_v57 = vld [vmem:[%s2008_s1 + $0x228] sm:$0xff]   ;;  %v940_v59 = vmax.f32 %v1853_v19, 0.0 }
  0x3c   :  { %1402 = vmatprep.subr.bf16.mxu0 %v1602_v0  ;;  %1422 = vmatprep.subr.bf16.mxu1 %v1602_v0 }
  0x3d   :  { %v941_v61 = vpack.c.bf16 %v940_v59, %v940_v59 }
  0x3f   :  { %1403 = vmatpush3.bf16.msra.mxu0 %v1560_v63  ;;  %1423 = vmatpush3.bf16.msra.mxu1 %v1561_v2 }
  0x40   :  { %1428 = vmatprep.subr.bf16.mxu0 %v1602_v0  ;;  %1448 = vmatprep.subr.bf16.mxu1 %v1602_v0 }
  0x42   :  { %1405 = vmatmul.mubr.bf16.vlgmr.msra.gmra.mrb[4].mxu0 %v263_v3  ;;  %1425 = vmatmul.mubr.bf16.vlgmr.msra.gmra.mrb[4].mxu1 %v376_v5 }
  0x43   :  { %1429 = vmatpush3.bf16.msra.mxu0 %v1562_v4  ;;  %1449 = vmatpush3.bf16.msra.mxu1 %v1563_v6 }
  0x44   :  { %1430 = vmatprep.subr.bf16.mxu0 %v1602_v0  ;;  %1450 = vmatprep.subr.bf16.mxu1 %v1602_v0 }
  0x45   :  { %1444 = vmatprep.mubr.msk.bf16.mxu0 %vm1603_vm0, %v1602_v0  ;;  %1464 = vmatprep.mubr.msk.bf16.mxu1 %vm1603_vm0, %v1602_v0 }
  0x47   :  { %1431 = vmatpush3.bf16.msra.mxu0 %v1564_v7  ;;  %1451 = vmatpush3.bf16.msra.mxu1 %v1565_v8 }
  0x48   :  { %1432 = vmatprep.subr.bf16.mxu0 %v1602_v0  ;;  %1452 = vmatprep.subr.bf16.mxu1 %v1602_v0 }
  0x4b   :  { %1433 = vmatpush3.bf16.msra.mxu0 %v1566_v13  ;;  %1453 = vmatpush3.bf16.msra.mxu1 %v1567_v17 }
  0x4c   :  { %1434 = vmatprep.subr.bf16.mxu0 %v1602_v0  ;;  %1454 = vmatprep.subr.bf16.mxu1 %v1602_v0 }
  0x4f   :  { %1435 = vmatpush3.bf16.msra.mxu0 %v1568_v12  ;;  %1455 = vmatpush3.bf16.msra.mxu1 %v1569_v20 }
  0x50   :  { %1436 = vmatprep.subr.bf16.mxu0 %v1602_v0  ;;  %1456 = vmatprep.subr.bf16.mxu1 %v1602_v0 }
  0x53   :  { %1437 = vmatpush3.bf16.msra.mxu0 %v1570_v16  ;;  %1457 = vmatpush3.bf16.msra.mxu1 %v1571_v21 }
  0x54   :  { %1438 = vmatprep.subr.bf16.mxu0 %v1602_v0  ;;  %1458 = vmatprep.subr.bf16.mxu1 %v1602_v0 }
  0x57   :  { %1439 = vmatpush3.bf16.msra.mxu0 %v1572_v22  ;;  %1459 = vmatpush3.bf16.msra.mxu1 %v1573_v23 }
  0x58   :  { %1440 = vmatprep.subr.bf16.mxu0 %v1602_v0  ;;  %1460 = vmatprep.subr.bf16.mxu1 %v1602_v0 }
  0x5b   :  { %1441 = vmatpush3.bf16.msra.mxu0 %v1574_v24  ;;  %1461 = vmatpush3.bf16.msra.mxu1 %v1575_v25 }
  0x5c   :  { %1442 = vmatprep.subr.bf16.mxu0 %v1602_v0  ;;  %1462 = vmatprep.subr.bf16.mxu1 %v1602_v0 }
  0x5f   :  { %1443 = vmatpush3.bf16.msra.mxu0 %v1576_v27  ;;  %1463 = vmatpush3.bf16.msra.mxu1 %v1577_v29 }
  0x60   :  { %1468 = vmatprep.subr.bf16.mxu0 %v1602_v0  ;;  %1488 = vmatprep.subr.bf16.mxu1 %v1602_v0 }
  0x62   :  { %1445 = vmatmul.mubr.bf16.vlgmr.msra.gmra.mrb[8].mxu0 %v489_v30  ;;  %1465 = vmatmul.mubr.bf16.vlgmr.msra.gmra.mrb[8].mxu1 %v602_v32 }
  0x63   :  { %1469 = vmatpush3.bf16.msra.mxu0 %v1578_v31  ;;  %1489 = vmatpush3.bf16.msra.mxu1 %v1579_v33 }
  0x64   :  { %1470 = vmatprep.subr.bf16.mxu0 %v1602_v0  ;;  %1490 = vmatprep.subr.bf16.mxu1 %v1602_v0 }
  0x65   :  { %1484 = vmatprep.mubr.msk.bf16.mxu0 %vm1603_vm0, %v1602_v0  ;;  %1504 = vmatprep.mubr.msk.bf16.mxu1 %vm1603_vm0, %v1602_v0 }
  0x67   :  { %1471 = vmatpush3.bf16.msra.mxu0 %v1580_v34  ;;  %1491 = vmatpush3.bf16.msra.mxu1 %v1581_v35 }
  0x68   :  { %1472 = vmatprep.subr.bf16.mxu0 %v1602_v0  ;;  %1492 = vmatprep.subr.bf16.mxu1 %v1602_v0 }
  0x6b   :  { %1473 = vmatpush3.bf16.msra.mxu0 %v1582_v36  ;;  %1493 = vmatpush3.bf16.msra.mxu1 %v1583_v37  ;;  %v1048_v37 = vld [vmem:[%s2012_s4] sm:$0xf] }
  0x6c   :  { %1474 = vmatprep.subr.bf16.mxu0 %v1602_v0  ;;  %1494 = vmatprep.subr.bf16.mxu1 %v1602_v0 }
  0x6f   :  { %1475 = vmatpush3.bf16.msra.mxu0 %v1584_v38  ;;  %1495 = vmatpush3.bf16.msra.mxu1 %v1585_v39  ;;  %v1049_v38 = vunpack.c.l.bf16 %v1048_v37 }
  0x70   :  { %1476 = vmatprep.subr.bf16.mxu0 %v1602_v0  ;;  %1496 = vmatprep.subr.bf16.mxu1 %v1602_v0 }
  0x73   :  { %1477 = vmatpush3.bf16.msra.mxu0 %v1586_v40  ;;  %1497 = vmatpush3.bf16.msra.mxu1 %v1587_v41 }
  0x74   :  { %1478 = vmatprep.subr.bf16.mxu0 %v1602_v0  ;;  %1498 = vmatprep.subr.bf16.mxu1 %v1602_v0 }
  0x77   :  { %1479 = vmatpush3.bf16.msra.mxu0 %v1588_v42  ;;  %1499 = vmatpush3.bf16.msra.mxu1 %v1589_v43 }
  0x78   :  { %1480 = vmatprep.subr.bf16.mxu0 %v1602_v0  ;;  %1500 = vmatprep.subr.bf16.mxu1 %v1602_v0 }
  0x7b   :  { %1481 = vmatpush3.bf16.msra.mxu0 %v1590_v44  ;;  %1501 = vmatpush3.bf16.msra.mxu1 %v1591_v45 }
  0x7c   :  { %1482 = vmatprep.subr.bf16.mxu0 %v1602_v0  ;;  %1502 = vmatprep.subr.bf16.mxu1 %v1602_v0 }
  0x7f   :  { %1483 = vmatpush3.bf16.msra.mxu0 %v1592_v47  ;;  %1503 = vmatpush3.bf16.msra.mxu1 %v1593_v49 }
  0x80   :  { %1508 = vmatprep.subr.bf16.mxu0 %v1602_v0 }
  0x82   :  { %1485 = vmatmul.mubr.bf16.vlgmr.msra.gmra.mrb[12].mxu0 %v715_v50  ;;  %1505 = vmatmul.mubr.bf16.vlgmr.msra.gmra.mrb[12].mxu1 %v828_v52 }
  0x83   :  { %1509 = vmatpush3.bf16.msra.mxu0 %v1594_v51  ;;  %1524 = vmatprep.mubr.msk.bf16.mxu0 %vm1603_vm0, %v1602_v0 }
  0x84   :  { %1510 = vmatprep.subr.bf16.mxu0 %v1602_v0 }
  0x87   :  { %1511 = vmatpush3.bf16.msra.mxu0 %v1595_v53 }
  0x88   :  { %1512 = vmatprep.subr.bf16.mxu0 %v1602_v0 }
  0x8b   :  { %1513 = vmatpush3.bf16.msra.mxu0 %v1596_v54 }
  0x8c   :  { %1514 = vmatprep.subr.bf16.mxu0 %v1602_v0 }
  0x8f   :  { %1515 = vmatpush3.bf16.msra.mxu0 %v1597_v55 }
  0x90   :  { %1516 = vmatprep.subr.bf16.mxu0 %v1602_v0 }
  0x93   :  { %1517 = vmatpush3.bf16.msra.mxu0 %v1598_v56 }
  0x94   :  { %1518 = vmatprep.subr.bf16.mxu0 %v1602_v0 }
  0x97   :  { %1519 = vmatpush3.bf16.msra.mxu0 %v1599_v57 }
  0x98   :  { %1520 = vmatprep.subr.bf16.mxu0 %v1602_v0 }
  0x9b   :  { %1521 = vmatpush3.bf16.msra.mxu0 %v1600_v58 }
  0x9c   :  { %1522 = vmatprep.subr.bf16.mxu0 %v1602_v0 }
  0x9f   :  { %1523 = vmatpush3.bf16.msra.mxu0 %v1601_v60 }
  0xa2   :  { %1525 = vmatmul.mubr.bf16.vlgmr.msra.gmra.mrb[16].mxu0 %v941_v61 }
  0xf5   :  { %v163_v62 = vpop.f32.mrb[0].mxu0  ;;  %v251_v1 = vpop.f32.mrb[0].mxu1 }
  0xf6   :  { %v1366_v63 = vpop.f32.mrb[1].mxu0  ;;  %v252_v2 = vadd.f32 %v251_v1, %v163_v62  ;;  %v1386_v4 = vpop.f32.mrb[1].mxu1 }
  0xf7   :  { %v166_v3 = vpop.f32.mrb[2].mxu0  ;;  %v254_v6 = vpop.f32.mrb[2].mxu1 }
  0xf8   :  { %v1367_v5 = vpop.f32.mrb[3].mxu0  ;;  %v1387_v7 = vpop.f32.mrb[3].mxu1 }
 0x115   :  { %v363_v8 = vpop.f32.mrb[4].mxu0  ;;  %v476_v11 = vpop.f32.mrb[4].mxu1 }
 0x116   :  { %v369_v9 = vadd.f32 %v363_v8, %v252_v2  ;;  %v1406_v10 = vpop.f32.mrb[5].mxu0  ;;  %v1426_v14 = vpop.f32.mrb[5].mxu1 }
 0x117   :  { %v366_v13 = vpop.f32.mrb[6].mxu0  ;;  %v479_v17 = vpop.f32.mrb[6].mxu1 }
 0x118   :  { %v482_v15 = vadd.f32 %v476_v11, %v369_v9  ;;  %v1407_v0 = vpop.f32.mrb[7].mxu0  ;;  %v1427_v18 = vpop.f32.mrb[7].mxu1 }
 0x135   :  { %v589_v19 = vpop.f32.mrb[8].mxu0  ;;  %v702_v16 = vpop.f32.mrb[8].mxu1 }
 0x136   :  { %v595_v12 = vadd.f32 %v589_v19, %v482_v15  ;;  %v1446_v20 = vpop.f32.mrb[9].mxu0  ;;  %v1466_v22 = vpop.f32.mrb[9].mxu1 }
 0x137   :  { %v592_v21 = vpop.f32.mrb[10].mxu0  ;;  %v705_v25 = vpop.f32.mrb[10].mxu1 }
 0x138   :  { %v708_v23 = vadd.f32 %v702_v16, %v595_v12  ;;  %v1447_v24 = vpop.f32.mrb[11].mxu0  ;;  %v1467_v26 = vpop.f32.mrb[11].mxu1 }
 0x155   :  { %v815_v27 = vpop.f32.mrb[12].mxu0  ;;  %v928_v30 = vpop.f32.mrb[12].mxu1 }
 0x156   :  { %v821_v28 = vadd.f32 %v815_v27, %v708_v23  ;;  %v1486_v29 = vpop.f32.mrb[13].mxu0  ;;  %v1506_v32 = vpop.f32.mrb[13].mxu1 }
 0x157   :  { %v818_v31 = vpop.f32.mrb[14].mxu0  ;;  %v931_v35 = vpop.f32.mrb[14].mxu1 }
 0x158   :  { %v934_v33 = vadd.f32 %v928_v30, %v821_v28  ;;  %v1487_v34 = vpop.f32.mrb[15].mxu0  ;;  %v1507_v36 = vpop.f32.mrb[15].mxu1 }
 0x175   :  { %v1041_v39 = vpop.f32.mrb[16].mxu0 }
 0x176   :  { %v1047_v40 = vadd.f32 %v1041_v39, %v934_v33  ;;  %v1526_v41 = vpop.f32.mrb[17].mxu0 }
 0x177   :  { %v1044_v42 = vpop.f32.mrb[18].mxu0 }
 0x178   :  { %v1050_v43 = vadd.f32 %v1049_v38, %v1047_v40  ;;  %v1527_v44 = vpop.f32.mrb[19].mxu0 }
 0x17a   :  { %v1051_v45 = vpack.c.bf16 %v1050_v43, %v1050_v43 }
 0x17c   :  { %1052 = vst [vmem:[%s2013_s5] sm:$0xf] %v1051_v45 }

// kernel: densenet_base_forward.12
= control target key start
LH: loop header
LB: loop body
LE: loop exit
PB: predicated region body
PF: predicated region fallthrough
CT: control target
= control target key end

     0   :  { %s15086_s15 = smov 0   ;;  %s15088_s16 = smov 0   ;;  %s16930_s0 = inlined_call_operand.vmem [shape: bf16[49,128,128], index: 0, kind: input, shape index: {}]   ;;  %s16931_s1 = inlined_call_operand.vmem [shape: bf16[49,128,128], index: 1, kind: input, shape index: {}]   ;;  %s16932_s2 = inlined_call_operand.vmem [shape: f32[1,128], index: 2, kind: input, shape index: {}]   ;;  %s16933_s3 = inlined_call_operand.vmem [shape: f32[1,128], index: 3, kind: input, shape index: {}]   ;;  %s16934_s4 = inlined_call_operand.vmem [shape: bf16[128,128], index: 4, kind: output, shape index: {}]  }
   0x1   :  { %s15090_s17 = smov 0   ;;  %s15092_s18 = smov 0  }
   0x2   :  { %s15094_s19 = smov 0  }
   0x3 LB: > { %s26_s20 = sadd.s32 1, %s15055_s18  ;;  %p40_p1 = scmp.ne.s32.totalorder %s15047_s16, %s15043_s15  ;;  %s15059_s19 = sphi %s15094_s19, %s14_s19   ;;  %s15055_s18 = sphi %s15092_s18, %s16938_s18   ;;  %s15051_s17 = sphi %s15090_s17, %s16937_s17   ;;  %s15047_s16 = sphi %s15088_s16, %s16936_s16   ;;  %s15043_s15 = sphi %s15086_s15, %s16935_s15  }
   0x4   : > { %p28_p0 = scmp.ge.s32.totalorder %s26_s20, 2  ;;  %p41_p2 = scmp.eq.s32.totalorder %s15059_s19, 0 }
   0x5   : > { %s33_s22 = sadd.s32 1, %s15047_s16  ;;  %p10437_p5 = scmp.ge.s32.totalorder %s15059_s19, 2 }
   0x6   : > { %s16940_s20 = smov (%p28_p0, %s26_s20), 0  ;;  %p42_p3 = por %p41_p2, %p40_p1 }
   0x7   : > { %s30_s21 = ssub.s32 %s15055_s18, %s16940_s20  ;;  %191 = sbr.rel (%p10437_p5) target bundleno = 117 (0x75), region = 28 }
   0x8   : > { %p31_p4 = scmp.eq.s32.totalorder %s30_s21, 0 }
   0xa   : > { %s15121_s23 = scalar_select %p31_p4, %s15047_s16, %s33_s22  }
   0xe   : > { %194 = sbr.rel (!%p42_p3) target bundleno = 117 (0x75), region = 32  ;;  %s196_s24 = sand.u32 (%p42_p3), 1, %s15047_s16  }
   0xf   : > { %s12195_s25 = sshll.u32 (%p42_p3), %s15055_s18, 5  ;;  %s14391_s26 = smul.u32 (%p42_p3), 1568, %s196_s24 }
  0x10   : > { %s15129_s29 = scalar_lea.vmem (%p42_p3), %s16930_s0, %s12195_s25 }
  0x11   : > { %v217_v0 = vld [vmem:[%s15129_s29] sm:$0xff] (%p42_p3)   ;;  %v221_v1 = vld [vmem:[%s15129_s29 + $0x8] sm:$0xff] (%p42_p3)   ;;  %v225_v2 = vld [vmem:[%s15129_s29 + $0x10] sm:$0xff] (%p42_p3)   ;;  %s15137_s30 = scalar_lea.vmem (%p42_p3), [#allocation2], %s14391_s26 }
  0x12   : > { %v229_v3 = vld [vmem:[%s15129_s29 + $0x18] sm:$0xff] (%p42_p3)   ;;  %v233_v4 = vld [vmem:[%s15129_s29 + $0x40] sm:$0xff] (%p42_p3)   ;;  %v237_v5 = vld [vmem:[%s15129_s29 + $0x48] sm:$0xff] (%p42_p3)   ;;  %218 = vst [vmem:[%s15137_s30] sm:$0xff] (%p42_p3), %v217_v0  }
  0x13   : > { %222 = vst [vmem:[%s15137_s30 + $0x8] sm:$0xff] (%p42_p3), %v221_v1   ;;  %226 = vst [vmem:[%s15137_s30 + $0x10] sm:$0xff] (%p42_p3), %v225_v2   ;;  %v241_v6 = vld [vmem:[%s15129_s29 + $0x50] sm:$0xff] (%p42_p3)   ;;  %v245_v7 = vld [vmem:[%s15129_s29 + $0x58] sm:$0xff] (%p42_p3)  }
  0x14   : > { %230 = vst [vmem:[%s15137_s30 + $0x18] sm:$0xff] (%p42_p3), %v229_v3   ;;  %234 = vst [vmem:[%s15137_s30 + $0x20] sm:$0xff] (%p42_p3), %v233_v4   ;;  %v249_v8 = vld [vmem:[%s15129_s29 + $0x80] sm:$0xff] (%p42_p3)   ;;  %v253_v9 = vld [vmem:[%s15129_s29 + $0x88] sm:$0xff] (%p42_p3)  }
  0x15   : > { %238 = vst [vmem:[%s15137_s30 + $0x28] sm:$0xff] %v237_v5   ;;  %242 = vst [vmem:[%s15137_s30 + $0x30] sm:$0xff] %v241_v6   ;;  %v257_v10 = vld [vmem:[%s15129_s29 + $0x90] sm:$0xff]   ;;  %v261_v11 = vld [vmem:[%s15129_s29 + $0x98] sm:$0xff]  }
  0x16   : > { %246 = vst [vmem:[%s15137_s30 + $0x38] sm:$0xff] %v245_v7   ;;  %250 = vst [vmem:[%s15137_s30 + $0x40] sm:$0xff] %v249_v8   ;;  %v265_v12 = vld [vmem:[%s15129_s29 + $0xc0] sm:$0xff]   ;;  %v269_v13 = vld [vmem:[%s15129_s29 + $0xc8] sm:$0xff]  }
  0x17   : > { %254 = vst [vmem:[%s15137_s30 + $0x48] sm:$0xff] %v253_v9   ;;  %258 = vst [vmem:[%s15137_s30 + $0x50] sm:$0xff] %v257_v10   ;;  %v273_v14 = vld [vmem:[%s15129_s29 + $0xd0] sm:$0xff]   ;;  %v277_v15 = vld [vmem:[%s15129_s29 + $0xd8] sm:$0xff]  }
  0x18   : > { %262 = vst [vmem:[%s15137_s30 + $0x58] sm:$0xff] %v261_v11   ;;  %266 = vst [vmem:[%s15137_s30 + $0x60] sm:$0xff] %v265_v12   ;;  %v281_v16 = vld [vmem:[%s15129_s29 + $0x100] sm:$0xff]   ;;  %v285_v17 = vld [vmem:[%s15129_s29 + $0x108] sm:$0xff]  }
  0x19   : > { %270 = vst [vmem:[%s15137_s30 + $0x68] sm:$0xff] %v269_v13   ;;  %274 = vst [vmem:[%s15137_s30 + $0x70] sm:$0xff] %v273_v14   ;;  %v289_v18 = vld [vmem:[%s15129_s29 + $0x110] sm:$0xff]   ;;  %v293_v19 = vld [vmem:[%s15129_s29 + $0x118] sm:$0xff]  }
  0x1a   : > { %278 = vst [vmem:[%s15137_s30 + $0x78] sm:$0xff] %v277_v15   ;;  %282 = vst [vmem:[%s15137_s30 + $0x80] sm:$0xff] %v281_v16   ;;  %v297_v20 = vld [vmem:[%s15129_s29 + $0x140] sm:$0xff]   ;;  %v301_v21 = vld [vmem:[%s15129_s29 + $0x148] sm:$0xff]  }
  0x1b   : > { %286 = vst [vmem:[%s15137_s30 + $0x88] sm:$0xff] %v285_v17   ;;  %290 = vst [vmem:[%s15137_s30 + $0x90] sm:$0xff] %v289_v18   ;;  %v305_v22 = vld [vmem:[%s15129_s29 + $0x150] sm:$0xff]   ;;  %v309_v23 = vld [vmem:[%s15129_s29 + $0x158] sm:$0xff]  }
  0x1c   : > { %294 = vst [vmem:[%s15137_s30 + $0x98] sm:$0xff] %v293_v19   ;;  %298 = vst [vmem:[%s15137_s30 + $0xa0] sm:$0xff] %v297_v20   ;;  %v313_v24 = vld [vmem:[%s15129_s29 + $0x180] sm:$0xff]   ;;  %v317_v25 = vld [vmem:[%s15129_s29 + $0x188] sm:$0xff]  }
  0x1d   : > { %302 = vst [vmem:[%s15137_s30 + $0xa8] sm:$0xff] %v301_v21   ;;  %306 = vst [vmem:[%s15137_s30 + $0xb0] sm:$0xff] %v305_v22   ;;  %v321_v26 = vld [vmem:[%s15129_s29 + $0x190] sm:$0xff]   ;;  %v325_v27 = vld [vmem:[%s15129_s29 + $0x198] sm:$0xff]  }
  0x1e   : > { %310 = vst [vmem:[%s15137_s30 + $0xb8] sm:$0xff] %v309_v23   ;;  %314 = vst [vmem:[%s15137_s30 + $0xc0] sm:$0xff] %v313_v24   ;;  %v329_v28 = vld [vmem:[%s15129_s29 + $0x1c0] sm:$0xff]   ;;  %v333_v29 = vld [vmem:[%s15129_s29 + $0x1c8] sm:$0xff]  }
  0x1f   : > { %318 = vst [vmem:[%s15137_s30 + $0xc8] sm:$0xff] %v317_v25   ;;  %322 = vst [vmem:[%s15137_s30 + $0xd0] sm:$0xff] %v321_v26   ;;  %v337_v30 = vld [vmem:[%s15129_s29 + $0x1d0] sm:$0xff]   ;;  %v341_v31 = vld [vmem:[%s15129_s29 + $0x1d8] sm:$0xff]  }
  0x20   : > { %326 = vst [vmem:[%s15137_s30 + $0xd8] sm:$0xff] %v325_v27   ;;  %330 = vst [vmem:[%s15137_s30 + $0xe0] sm:$0xff] %v329_v28   ;;  %v345_v32 = vld [vmem:[%s15129_s29 + $0x200] sm:$0xff]   ;;  %v349_v33 = vld [vmem:[%s15129_s29 + $0x208] sm:$0xff]  }
  0x21   : > { %334 = vst [vmem:[%s15137_s30 + $0xe8] sm:$0xff] %v333_v29   ;;  %338 = vst [vmem:[%s15137_s30 + $0xf0] sm:$0xff] %v337_v30   ;;  %v353_v34 = vld [vmem:[%s15129_s29 + $0x210] sm:$0xff]   ;;  %v357_v35 = vld [vmem:[%s15129_s29 + $0x218] sm:$0xff]  }
  0x22   : > { %342 = vst [vmem:[%s15137_s30 + $0xf8] sm:$0xff] %v341_v31   ;;  %346 = vst [vmem:[%s15137_s30 + $0x100] sm:$0xff] %v345_v32   ;;  %v361_v36 = vld [vmem:[%s15129_s29 + $0x240] sm:$0xff]   ;;  %v365_v37 = vld [vmem:[%s15129_s29 + $0x248] sm:$0xff]  }
  0x23   : > { %350 = vst [vmem:[%s15137_s30 + $0x108] sm:$0xff] %v349_v33   ;;  %354 = vst [vmem:[%s15137_s30 + $0x110] sm:$0xff] %v353_v34   ;;  %v369_v38 = vld [vmem:[%s15129_s29 + $0x250] sm:$0xff]   ;;  %v373_v39 = vld [vmem:[%s15129_s29 + $0x258] sm:$0xff]  }
  0x24   : > { %358 = vst [vmem:[%s15137_s30 + $0x118] sm:$0xff] %v357_v35   ;;  %362 = vst [vmem:[%s15137_s30 + $0x120] sm:$0xff] %v361_v36   ;;  %v377_v40 = vld [vmem:[%s15129_s29 + $0x280] sm:$0xff]   ;;  %v381_v41 = vld [vmem:[%s15129_s29 + $0x288] sm:$0xff]  }
  0x25   : > { %366 = vst [vmem:[%s15137_s30 + $0x128] sm:$0xff] %v365_v37   ;;  %370 = vst [vmem:[%s15137_s30 + $0x130] sm:$0xff] %v369_v38   ;;  %v385_v42 = vld [vmem:[%s15129_s29 + $0x290] sm:$0xff]   ;;  %v389_v43 = vld [vmem:[%s15129_s29 + $0x298] sm:$0xff]  }
  0x26   : > { %374 = vst [vmem:[%s15137_s30 + $0x138] sm:$0xff] %v373_v39   ;;  %378 = vst [vmem:[%s15137_s30 + $0x140] sm:$0xff] %v377_v40   ;;  %v393_v44 = vld [vmem:[%s15129_s29 + $0x2c0] sm:$0xff]   ;;  %v397_v45 = vld [vmem:[%s15129_s29 + $0x2c8] sm:$0xff]  }
  0x27   : > { %382 = vst [vmem:[%s15137_s30 + $0x148] sm:$0xff] %v381_v41   ;;  %386 = vst [vmem:[%s15137_s30 + $0x150] sm:$0xff] %v385_v42   ;;  %v401_v46 = vld [vmem:[%s15129_s29 + $0x2d0] sm:$0xff]   ;;  %v405_v47 = vld [vmem:[%s15129_s29 + $0x2d8] sm:$0xff]  }
  0x28   : > { %390 = vst [vmem:[%s15137_s30 + $0x158] sm:$0xff] %v389_v43   ;;  %394 = vst [vmem:[%s15137_s30 + $0x160] sm:$0xff] %v393_v44   ;;  %v409_v48 = vld [vmem:[%s15129_s29 + $0x300] sm:$0xff]   ;;  %v413_v49 = vld [vmem:[%s15129_s29 + $0x308] sm:$0xff]  }
  0x29   : > { %398 = vst [vmem:[%s15137_s30 + $0x168] sm:$0xff] %v397_v45   ;;  %402 = vst [vmem:[%s15137_s30 + $0x170] sm:$0xff] %v401_v46   ;;  %v417_v50 = vld [vmem:[%s15129_s29 + $0x310] sm:$0xff]   ;;  %v421_v51 = vld [vmem:[%s15129_s29 + $0x318] sm:$0xff]  }
  0x2a   : > { %406 = vst [vmem:[%s15137_s30 + $0x178] sm:$0xff] %v405_v47   ;;  %410 = vst [vmem:[%s15137_s30 + $0x180] sm:$0xff] %v409_v48   ;;  %v425_v52 = vld [vmem:[%s15129_s29 + $0x340] sm:$0xff]   ;;  %v429_v53 = vld [vmem:[%s15129_s29 + $0x348] sm:$0xff]  }
  0x2b   : > { %414 = vst [vmem:[%s15137_s30 + $0x188] sm:$0xff] %v413_v49   ;;  %418 = vst [vmem:[%s15137_s30 + $0x190] sm:$0xff] %v417_v50   ;;  %v433_v54 = vld [vmem:[%s15129_s29 + $0x350] sm:$0xff]   ;;  %v437_v55 = vld [vmem:[%s15129_s29 + $0x358] sm:$0xff]  }
  0x2c   : > { %422 = vst [vmem:[%s15137_s30 + $0x198] sm:$0xff] %v421_v51   ;;  %426 = vst [vmem:[%s15137_s30 + $0x1a0] sm:$0xff] %v425_v52   ;;  %v441_v56 = vld [vmem:[%s15129_s29 + $0x380] sm:$0xff]   ;;  %v445_v57 = vld [vmem:[%s15129_s29 + $0x388] sm:$0xff]  }
  0x2d   : > { %430 = vst [vmem:[%s15137_s30 + $0x1a8] sm:$0xff] %v429_v53   ;;  %434 = vst [vmem:[%s15137_s30 + $0x1b0] sm:$0xff] %v433_v54   ;;  %v449_v58 = vld [vmem:[%s15129_s29 + $0x390] sm:$0xff]   ;;  %v453_v59 = vld [vmem:[%s15129_s29 + $0x398] sm:$0xff]  }
  0x2e   : > { %438 = vst [vmem:[%s15137_s30 + $0x1b8] sm:$0xff] %v437_v55   ;;  %442 = vst [vmem:[%s15137_s30 + $0x1c0] sm:$0xff] %v441_v56   ;;  %v457_v60 = vld [vmem:[%s15129_s29 + $0x3c0] sm:$0xff]   ;;  %v461_v61 = vld [vmem:[%s15129_s29 + $0x3c8] sm:$0xff]  }
  0x2f   : > { %446 = vst [vmem:[%s15137_s30 + $0x1c8] sm:$0xff] %v445_v57   ;;  %450 = vst [vmem:[%s15137_s30 + $0x1d0] sm:$0xff] %v449_v58   ;;  %v465_v62 = vld [vmem:[%s15129_s29 + $0x3d0] sm:$0xff]   ;;  %v469_v63 = vld [vmem:[%s15129_s29 + $0x3d8] sm:$0xff]  }
  0x30   : > { %454 = vst [vmem:[%s15137_s30 + $0x1d8] sm:$0xff] %v453_v59   ;;  %458 = vst [vmem:[%s15137_s30 + $0x1e0] sm:$0xff] %v457_v60   ;;  %v473_v0 = vld [vmem:[%s15129_s29 + $0x400] sm:$0xff]   ;;  %v477_v1 = vld [vmem:[%s15129_s29 + $0x408] sm:$0xff]  }
  0x31   : > { %462 = vst [vmem:[%s15137_s30 + $0x1e8] sm:$0xff] %v461_v61   ;;  %466 = vst [vmem:[%s15137_s30 + $0x1f0] sm:$0xff] %v465_v62   ;;  %v481_v2 = vld [vmem:[%s15129_s29 + $0x410] sm:$0xff]   ;;  %v485_v3 = vld [vmem:[%s15129_s29 + $0x418] sm:$0xff]  }
  0x32   : > { %470 = vst [vmem:[%s15137_s30 + $0x1f8] sm:$0xff] %v469_v63   ;;  %474 = vst [vmem:[%s15137_s30 + $0x200] sm:$0xff] %v473_v0   ;;  %v489_v4 = vld [vmem:[%s15129_s29 + $0x440] sm:$0xff]   ;;  %v493_v5 = vld [vmem:[%s15129_s29 + $0x448] sm:$0xff]  }
  0x33   : > { %478 = vst [vmem:[%s15137_s30 + $0x208] sm:$0xff] %v477_v1   ;;  %482 = vst [vmem:[%s15137_s30 + $0x210] sm:$0xff] %v481_v2   ;;  %v497_v6 = vld [vmem:[%s15129_s29 + $0x450] sm:$0xff]   ;;  %v501_v7 = vld [vmem:[%s15129_s29 + $0x458] sm:$0xff]  }
  0x34   : > { %486 = vst [vmem:[%s15137_s30 + $0x218] sm:$0xff] %v485_v3   ;;  %490 = vst [vmem:[%s15137_s30 + $0x220] sm:$0xff] %v489_v4   ;;  %v505_v8 = vld [vmem:[%s15129_s29 + $0x480] sm:$0xff]   ;;  %v509_v9 = vld [vmem:[%s15129_s29 + $0x488] sm:$0xff]  }
  0x35   : > { %494 = vst [vmem:[%s15137_s30 + $0x228] sm:$0xff] %v493_v5   ;;  %498 = vst [vmem:[%s15137_s30 + $0x230] sm:$0xff] %v497_v6   ;;  %v513_v10 = vld [vmem:[%s15129_s29 + $0x490] sm:$0xff]   ;;  %v517_v11 = vld [vmem:[%s15129_s29 + $0x498] sm:$0xff]  }
  0x36   : > { %502 = vst [vmem:[%s15137_s30 + $0x238] sm:$0xff] %v501_v7   ;;  %506 = vst [vmem:[%s15137_s30 + $0x240] sm:$0xff] %v505_v8   ;;  %v521_v12 = vld [vmem:[%s15129_s29 + $0x4c0] sm:$0xff]   ;;  %v525_v13 = vld [vmem:[%s15129_s29 + $0x4c8] sm:$0xff]  }
  0x37   : > { %510 = vst [vmem:[%s15137_s30 + $0x248] sm:$0xff] %v509_v9   ;;  %514 = vst [vmem:[%s15137_s30 + $0x250] sm:$0xff] %v513_v10   ;;  %v529_v14 = vld [vmem:[%s15129_s29 + $0x4d0] sm:$0xff]   ;;  %v533_v15 = vld [vmem:[%s15129_s29 + $0x4d8] sm:$0xff]  }
  0x38   : > { %518 = vst [vmem:[%s15137_s30 + $0x258] sm:$0xff] %v517_v11   ;;  %522 = vst [vmem:[%s15137_s30 + $0x260] sm:$0xff] %v521_v12   ;;  %v537_v16 = vld [vmem:[%s15129_s29 + $0x500] sm:$0xff]   ;;  %v541_v17 = vld [vmem:[%s15129_s29 + $0x508] sm:$0xff]  }
  0x39   : > { %526 = vst [vmem:[%s15137_s30 + $0x268] sm:$0xff] %v525_v13   ;;  %530 = vst [vmem:[%s15137_s30 + $0x270] sm:$0xff] %v529_v14   ;;  %v545_v18 = vld [vmem:[%s15129_s29 + $0x510] sm:$0xff]   ;;  %v549_v19 = vld [vmem:[%s15129_s29 + $0x518] sm:$0xff]  }
  0x3a   : > { %534 = vst [vmem:[%s15137_s30 + $0x278] sm:$0xff] %v533_v15   ;;  %538 = vst [vmem:[%s15137_s30 + $0x280] sm:$0xff] %v537_v16   ;;  %v553_v20 = vld [vmem:[%s15129_s29 + $0x540] sm:$0xff]   ;;  %v557_v21 = vld [vmem:[%s15129_s29 + $0x548] sm:$0xff]  }
  0x3b   : > { %542 = vst [vmem:[%s15137_s30 + $0x288] sm:$0xff] %v541_v17   ;;  %546 = vst [vmem:[%s15137_s30 + $0x290] sm:$0xff] %v545_v18   ;;  %v561_v22 = vld [vmem:[%s15129_s29 + $0x550] sm:$0xff]   ;;  %v565_v23 = vld [vmem:[%s15129_s29 + $0x558] sm:$0xff]  }
  0x3c   : > { %550 = vst [vmem:[%s15137_s30 + $0x298] sm:$0xff] %v549_v19   ;;  %554 = vst [vmem:[%s15137_s30 + $0x2a0] sm:$0xff] %v553_v20   ;;  %v569_v24 = vld [vmem:[%s15129_s29 + $0x580] sm:$0xff]   ;;  %v573_v25 = vld [vmem:[%s15129_s29 + $0x588] sm:$0xff]  }
  0x3d   : > { %558 = vst [vmem:[%s15137_s30 + $0x2a8] sm:$0xff] %v557_v21   ;;  %562 = vst [vmem:[%s15137_s30 + $0x2b0] sm:$0xff] %v561_v22   ;;  %v577_v26 = vld [vmem:[%s15129_s29 + $0x590] sm:$0xff]   ;;  %v581_v27 = vld [vmem:[%s15129_s29 + $0x598] sm:$0xff]  }
  0x3e   : > { %566 = vst [vmem:[%s15137_s30 + $0x2b8] sm:$0xff] %v565_v23   ;;  %570 = vst [vmem:[%s15137_s30 + $0x2c0] sm:$0xff] %v569_v24   ;;  %v585_v28 = vld [vmem:[%s15129_s29 + $0x5c0] sm:$0xff]   ;;  %v589_v29 = vld [vmem:[%s15129_s29 + $0x5c8] sm:$0xff]  }
  0x3f   : > { %574 = vst [vmem:[%s15137_s30 + $0x2c8] sm:$0xff] %v573_v25   ;;  %578 = vst [vmem:[%s15137_s30 + $0x2d0] sm:$0xff] %v577_v26   ;;  %v593_v30 = vld [vmem:[%s15129_s29 + $0x5d0] sm:$0xff]   ;;  %v597_v31 = vld [vmem:[%s15129_s29 + $0x5d8] sm:$0xff]  }
  0x40   : > { %582 = vst [vmem:[%s15137_s30 + $0x2d8] sm:$0xff] %v581_v27   ;;  %586 = vst [vmem:[%s15137_s30 + $0x2e0] sm:$0xff] %v585_v28   ;;  %v601_v32 = vld [vmem:[%s15129_s29 + $0x600] sm:$0xff]   ;;  %v605_v33 = vld [vmem:[%s15129_s29 + $0x608] sm:$0xff]  }
  0x41   : > { %590 = vst [vmem:[%s15137_s30 + $0x2e8] sm:$0xff] %v589_v29   ;;  %594 = vst [vmem:[%s15137_s30 + $0x2f0] sm:$0xff] %v593_v30   ;;  %v609_v34 = vld [vmem:[%s15129_s29 + $0x610] sm:$0xff]   ;;  %v613_v35 = vld [vmem:[%s15129_s29 + $0x618] sm:$0xff]  }
  0x42   : > { %598 = vst [vmem:[%s15137_s30 + $0x2f8] sm:$0xff] %v597_v31   ;;  %602 = vst [vmem:[%s15137_s30 + $0x300] sm:$0xff] %v601_v32   ;;  %v617_v36 = vld [vmem:[%s15129_s29 + $0x640] sm:$0xff]   ;;  %v621_v37 = vld [vmem:[%s15129_s29 + $0x648] sm:$0xff]  }
  0x43   : > { %606 = vst [vmem:[%s15137_s30 + $0x308] sm:$0xff] %v605_v33   ;;  %610 = vst [vmem:[%s15137_s30 + $0x310] sm:$0xff] %v609_v34   ;;  %v625_v38 = vld [vmem:[%s15129_s29 + $0x650] sm:$0xff]   ;;  %v629_v39 = vld [vmem:[%s15129_s29 + $0x658] sm:$0xff]  }
  0x44   : > { %614 = vst [vmem:[%s15137_s30 + $0x318] sm:$0xff] %v613_v35   ;;  %618 = vst [vmem:[%s15137_s30 + $0x320] sm:$0xff] %v617_v36   ;;  %v633_v40 = vld [vmem:[%s15129_s29 + $0x680] sm:$0xff]   ;;  %v637_v41 = vld [vmem:[%s15129_s29 + $0x688] sm:$0xff]  }
  0x45   : > { %622 = vst [vmem:[%s15137_s30 + $0x328] sm:$0xff] %v621_v37   ;;  %626 = vst [vmem:[%s15137_s30 + $0x330] sm:$0xff] %v625_v38   ;;  %v641_v42 = vld [vmem:[%s15129_s29 + $0x690] sm:$0xff]   ;;  %v645_v43 = vld [vmem:[%s15129_s29 + $0x698] sm:$0xff]  }
  0x46   : > { %630 = vst [vmem:[%s15137_s30 + $0x338] sm:$0xff] %v629_v39   ;;  %634 = vst [vmem:[%s15137_s30 + $0x340] sm:$0xff] %v633_v40   ;;  %v649_v44 = vld [vmem:[%s15129_s29 + $0x6c0] sm:$0xff]   ;;  %v653_v45 = vld [vmem:[%s15129_s29 + $0x6c8] sm:$0xff]  }
  0x47   : > { %638 = vst [vmem:[%s15137_s30 + $0x348] sm:$0xff] %v637_v41   ;;  %642 = vst [vmem:[%s15137_s30 + $0x350] sm:$0xff] %v641_v42   ;;  %v657_v46 = vld [vmem:[%s15129_s29 + $0x6d0] sm:$0xff]   ;;  %v661_v47 = vld [vmem:[%s15129_s29 + $0x6d8] sm:$0xff]  }
  0x48   : > { %646 = vst [vmem:[%s15137_s30 + $0x358] sm:$0xff] %v645_v43   ;;  %650 = vst [vmem:[%s15137_s30 + $0x360] sm:$0xff] %v649_v44   ;;  %v665_v48 = vld [vmem:[%s15129_s29 + $0x700] sm:$0xff]   ;;  %v669_v49 = vld [vmem:[%s15129_s29 + $0x708] sm:$0xff]  }
  0x49   : > { %654 = vst [vmem:[%s15137_s30 + $0x368] sm:$0xff] %v653_v45   ;;  %658 = vst [vmem:[%s15137_s30 + $0x370] sm:$0xff] %v657_v46   ;;  %v673_v50 = vld [vmem:[%s15129_s29 + $0x710] sm:$0xff]   ;;  %v677_v51 = vld [vmem:[%s15129_s29 + $0x718] sm:$0xff]  }
  0x4a   : > { %662 = vst [vmem:[%s15137_s30 + $0x378] sm:$0xff] %v661_v47   ;;  %666 = vst [vmem:[%s15137_s30 + $0x380] sm:$0xff] %v665_v48   ;;  %v681_v52 = vld [vmem:[%s15129_s29 + $0x740] sm:$0xff]   ;;  %v685_v53 = vld [vmem:[%s15129_s29 + $0x748] sm:$0xff]  }
  0x4b   : > { %670 = vst [vmem:[%s15137_s30 + $0x388] sm:$0xff] %v669_v49   ;;  %674 = vst [vmem:[%s15137_s30 + $0x390] sm:$0xff] %v673_v50   ;;  %v689_v54 = vld [vmem:[%s15129_s29 + $0x750] sm:$0xff]   ;;  %v693_v55 = vld [vmem:[%s15129_s29 + $0x758] sm:$0xff]  }
  0x4c   : > { %678 = vst [vmem:[%s15137_s30 + $0x398] sm:$0xff] %v677_v51   ;;  %682 = vst [vmem:[%s15137_s30 + $0x3a0] sm:$0xff] %v681_v52   ;;  %v697_v56 = vld [vmem:[%s15129_s29 + $0x780] sm:$0xff]   ;;  %v701_v57 = vld [vmem:[%s15129_s29 + $0x788] sm:$0xff]  }
  0x4d   : > { %686 = vst [vmem:[%s15137_s30 + $0x3a8] sm:$0xff] %v685_v53   ;;  %690 = vst [vmem:[%s15137_s30 + $0x3b0] sm:$0xff] %v689_v54   ;;  %v705_v58 = vld [vmem:[%s15129_s29 + $0x790] sm:$0xff]   ;;  %v709_v59 = vld [vmem:[%s15129_s29 + $0x798] sm:$0xff]  }
  0x4e   : > { %694 = vst [vmem:[%s15137_s30 + $0x3b8] sm:$0xff] %v693_v55   ;;  %698 = vst [vmem:[%s15137_s30 + $0x3c0] sm:$0xff] %v697_v56   ;;  %v713_v60 = vld [vmem:[%s15129_s29 + $0x7c0] sm:$0xff]   ;;  %v717_v61 = vld [vmem:[%s15129_s29 + $0x7c8] sm:$0xff]  }
  0x4f   : > { %702 = vst [vmem:[%s15137_s30 + $0x3c8] sm:$0xff] %v701_v57   ;;  %706 = vst [vmem:[%s15137_s30 + $0x3d0] sm:$0xff] %v705_v58   ;;  %v721_v62 = vld [vmem:[%s15129_s29 + $0x7d0] sm:$0xff]   ;;  %v725_v63 = vld [vmem:[%s15129_s29 + $0x7d8] sm:$0xff]  }
  0x50   : > { %710 = vst [vmem:[%s15137_s30 + $0x3d8] sm:$0xff] %v709_v59   ;;  %714 = vst [vmem:[%s15137_s30 + $0x3e0] sm:$0xff] %v713_v60   ;;  %v729_v0 = vld [vmem:[%s15129_s29 + $0x800] sm:$0xff]   ;;  %v733_v1 = vld [vmem:[%s15129_s29 + $0x808] sm:$0xff]  }
  0x51   : > { %718 = vst [vmem:[%s15137_s30 + $0x3e8] sm:$0xff] %v717_v61   ;;  %722 = vst [vmem:[%s15137_s30 + $0x3f0] sm:$0xff] %v721_v62   ;;  %v737_v2 = vld [vmem:[%s15129_s29 + $0x810] sm:$0xff]   ;;  %v741_v3 = vld [vmem:[%s15129_s29 + $0x818] sm:$0xff]  }
  0x52   : > { %726 = vst [vmem:[%s15137_s30 + $0x3f8] sm:$0xff] %v725_v63   ;;  %730 = vst [vmem:[%s15137_s30 + $0x400] sm:$0xff] %v729_v0   ;;  %v745_v4 = vld [vmem:[%s15129_s29 + $0x840] sm:$0xff]   ;;  %v749_v5 = vld [vmem:[%s15129_s29 + $0x848] sm:$0xff]  }
  0x53   : > { %734 = vst [vmem:[%s15137_s30 + $0x408] sm:$0xff] %v733_v1   ;;  %738 = vst [vmem:[%s15137_s30 + $0x410] sm:$0xff] %v737_v2   ;;  %v753_v6 = vld [vmem:[%s15129_s29 + $0x850] sm:$0xff]   ;;  %v757_v7 = vld [vmem:[%s15129_s29 + $0x858] sm:$0xff]  }
  0x54   : > { %742 = vst [vmem:[%s15137_s30 + $0x418] sm:$0xff] %v741_v3   ;;  %746 = vst [vmem:[%s15137_s30 + $0x420] sm:$0xff] %v745_v4   ;;  %v761_v8 = vld [vmem:[%s15129_s29 + $0x880] sm:$0xff]   ;;  %v765_v9 = vld [vmem:[%s15129_s29 + $0x888] sm:$0xff]  }
  0x55   : > { %750 = vst [vmem:[%s15137_s30 + $0x428] sm:$0xff] %v749_v5   ;;  %754 = vst [vmem:[%s15137_s30 + $0x430] sm:$0xff] %v753_v6   ;;  %v769_v10 = vld [vmem:[%s15129_s29 + $0x890] sm:$0xff]   ;;  %v773_v11 = vld [vmem:[%s15129_s29 + $0x898] sm:$0xff]  }
  0x56   : > { %758 = vst [vmem:[%s15137_s30 + $0x438] sm:$0xff] %v757_v7   ;;  %762 = vst [vmem:[%s15137_s30 + $0x440] sm:$0xff] %v761_v8   ;;  %v777_v12 = vld [vmem:[%s15129_s29 + $0x8c0] sm:$0xff]   ;;  %v781_v13 = vld [vmem:[%s15129_s29 + $0x8c8] sm:$0xff]  }
  0x57   : > { %766 = vst [vmem:[%s15137_s30 + $0x448] sm:$0xff] %v765_v9   ;;  %770 = vst [vmem:[%s15137_s30 + $0x450] sm:$0xff] %v769_v10   ;;  %v785_v14 = vld [vmem:[%s15129_s29 + $0x8d0] sm:$0xff]   ;;  %v789_v15 = vld [vmem:[%s15129_s29 + $0x8d8] sm:$0xff]  }
  0x58   : > { %774 = vst [vmem:[%s15137_s30 + $0x458] sm:$0xff] %v773_v11   ;;  %778 = vst [vmem:[%s15137_s30 + $0x460] sm:$0xff] %v777_v12   ;;  %v793_v16 = vld [vmem:[%s15129_s29 + $0x900] sm:$0xff]   ;;  %v797_v17 = vld [vmem:[%s15129_s29 + $0x908] sm:$0xff]  }
  0x59   : > { %782 = vst [vmem:[%s15137_s30 + $0x468] sm:$0xff] %v781_v13   ;;  %786 = vst [vmem:[%s15137_s30 + $0x470] sm:$0xff] %v785_v14   ;;  %v801_v18 = vld [vmem:[%s15129_s29 + $0x910] sm:$0xff]   ;;  %v805_v19 = vld [vmem:[%s15129_s29 + $0x918] sm:$0xff]  }
  0x5a   : > { %790 = vst [vmem:[%s15137_s30 + $0x478] sm:$0xff] %v789_v15   ;;  %794 = vst [vmem:[%s15137_s30 + $0x480] sm:$0xff] %v793_v16   ;;  %v809_v20 = vld [vmem:[%s15129_s29 + $0x940] sm:$0xff]   ;;  %v813_v21 = vld [vmem:[%s15129_s29 + $0x948] sm:$0xff]  }
  0x5b   : > { %798 = vst [vmem:[%s15137_s30 + $0x488] sm:$0xff] %v797_v17   ;;  %802 = vst [vmem:[%s15137_s30 + $0x490] sm:$0xff] %v801_v18   ;;  %v817_v22 = vld [vmem:[%s15129_s29 + $0x950] sm:$0xff]   ;;  %v821_v23 = vld [vmem:[%s15129_s29 + $0x958] sm:$0xff]  }
  0x5c   : > { %806 = vst [vmem:[%s15137_s30 + $0x498] sm:$0xff] %v805_v19   ;;  %810 = vst [vmem:[%s15137_s30 + $0x4a0] sm:$0xff] %v809_v20   ;;  %v825_v24 = vld [vmem:[%s15129_s29 + $0x980] sm:$0xff]   ;;  %v829_v25 = vld [vmem:[%s15129_s29 + $0x988] sm:$0xff]  }
  0x5d   : > { %814 = vst [vmem:[%s15137_s30 + $0x4a8] sm:$0xff] %v813_v21   ;;  %818 = vst [vmem:[%s15137_s30 + $0x4b0] sm:$0xff] %v817_v22   ;;  %v833_v26 = vld [vmem:[%s15129_s29 + $0x990] sm:$0xff]   ;;  %v837_v27 = vld [vmem:[%s15129_s29 + $0x998] sm:$0xff]  }
  0x5e   : > { %822 = vst [vmem:[%s15137_s30 + $0x4b8] sm:$0xff] %v821_v23   ;;  %826 = vst [vmem:[%s15137_s30 + $0x4c0] sm:$0xff] %v825_v24   ;;  %v841_v28 = vld [vmem:[%s15129_s29 + $0x9c0] sm:$0xff]   ;;  %v845_v29 = vld [vmem:[%s15129_s29 + $0x9c8] sm:$0xff]  }
  0x5f   : > { %830 = vst [vmem:[%s15137_s30 + $0x4c8] sm:$0xff] %v829_v25   ;;  %834 = vst [vmem:[%s15137_s30 + $0x4d0] sm:$0xff] %v833_v26   ;;  %v849_v30 = vld [vmem:[%s15129_s29 + $0x9d0] sm:$0xff]   ;;  %v853_v31 = vld [vmem:[%s15129_s29 + $0x9d8] sm:$0xff]  }
  0x60   : > { %838 = vst [vmem:[%s15137_s30 + $0x4d8] sm:$0xff] %v837_v27   ;;  %842 = vst [vmem:[%s15137_s30 + $0x4e0] sm:$0xff] %v841_v28   ;;  %v857_v32 = vld [vmem:[%s15129_s29 + $0xa00] sm:$0xff]   ;;  %v861_v33 = vld [vmem:[%s15129_s29 + $0xa08] sm:$0xff]  }
  0x61   : > { %846 = vst [vmem:[%s15137_s30 + $0x4e8] sm:$0xff] %v845_v29   ;;  %850 = vst [vmem:[%s15137_s30 + $0x4f0] sm:$0xff] %v849_v30   ;;  %v865_v34 = vld [vmem:[%s15129_s29 + $0xa10] sm:$0xff]   ;;  %v869_v35 = vld [vmem:[%s15129_s29 + $0xa18] sm:$0xff]  }
  0x62   : > { %854 = vst [vmem:[%s15137_s30 + $0x4f8] sm:$0xff] %v853_v31   ;;  %858 = vst [vmem:[%s15137_s30 + $0x500] sm:$0xff] %v857_v32   ;;  %v873_v36 = vld [vmem:[%s15129_s29 + $0xa40] sm:$0xff]   ;;  %v877_v37 = vld [vmem:[%s15129_s29 + $0xa48] sm:$0xff]  }
  0x63   : > { %862 = vst [vmem:[%s15137_s30 + $0x508] sm:$0xff] %v861_v33   ;;  %866 = vst [vmem:[%s15137_s30 + $0x510] sm:$0xff] %v865_v34   ;;  %v881_v38 = vld [vmem:[%s15129_s29 + $0xa50] sm:$0xff]   ;;  %v885_v39 = vld [vmem:[%s15129_s29 + $0xa58] sm:$0xff]  }
  0x64   : > { %870 = vst [vmem:[%s15137_s30 + $0x518] sm:$0xff] %v869_v35   ;;  %874 = vst [vmem:[%s15137_s30 + $0x520] sm:$0xff] %v873_v36   ;;  %v889_v40 = vld [vmem:[%s15129_s29 + $0xa80] sm:$0xff]   ;;  %v893_v41 = vld [vmem:[%s15129_s29 + $0xa88] sm:$0xff]  }
  0x65   : > { %878 = vst [vmem:[%s15137_s30 + $0x528] sm:$0xff] %v877_v37   ;;  %882 = vst [vmem:[%s15137_s30 + $0x530] sm:$0xff] %v881_v38   ;;  %v897_v42 = vld [vmem:[%s15129_s29 + $0xa90] sm:$0xff]   ;;  %v901_v43 = vld [vmem:[%s15129_s29 + $0xa98] sm:$0xff]  }
  0x66   : > { %886 = vst [vmem:[%s15137_s30 + $0x538] sm:$0xff] %v885_v39   ;;  %890 = vst [vmem:[%s15137_s30 + $0x540] sm:$0xff] %v889_v40   ;;  %v905_v44 = vld [vmem:[%s15129_s29 + $0xac0] sm:$0xff]   ;;  %v909_v45 = vld [vmem:[%s15129_s29 + $0xac8] sm:$0xff]  }
  0x67   : > { %894 = vst [vmem:[%s15137_s30 + $0x548] sm:$0xff] %v893_v41   ;;  %898 = vst [vmem:[%s15137_s30 + $0x550] sm:$0xff] %v897_v42   ;;  %v913_v46 = vld [vmem:[%s15129_s29 + $0xad0] sm:$0xff]   ;;  %v917_v47 = vld [vmem:[%s15129_s29 + $0xad8] sm:$0xff]  }
  0x68   : > { %902 = vst [vmem:[%s15137_s30 + $0x558] sm:$0xff] %v901_v43   ;;  %906 = vst [vmem:[%s15137_s30 + $0x560] sm:$0xff] %v905_v44   ;;  %v921_v48 = vld [vmem:[%s15129_s29 + $0xb00] sm:$0xff]   ;;  %v925_v49 = vld [vmem:[%s15129_s29 + $0xb08] sm:$0xff]  }
  0x69   : > { %910 = vst [vmem:[%s15137_s30 + $0x568] sm:$0xff] %v909_v45   ;;  %914 = vst [vmem:[%s15137_s30 + $0x570] sm:$0xff] %v913_v46   ;;  %v929_v50 = vld [vmem:[%s15129_s29 + $0xb10] sm:$0xff]   ;;  %v933_v51 = vld [vmem:[%s15129_s29 + $0xb18] sm:$0xff]  }
  0x6a   : > { %918 = vst [vmem:[%s15137_s30 + $0x578] sm:$0xff] %v917_v47   ;;  %922 = vst [vmem:[%s15137_s30 + $0x580] sm:$0xff] %v921_v48   ;;  %v937_v52 = vld [vmem:[%s15129_s29 + $0xb40] sm:$0xff]   ;;  %v941_v53 = vld [vmem:[%s15129_s29 + $0xb48] sm:$0xff]  }
  0x6b   : > { %926 = vst [vmem:[%s15137_s30 + $0x588] sm:$0xff] %v925_v49   ;;  %930 = vst [vmem:[%s15137_s30 + $0x590] sm:$0xff] %v929_v50   ;;  %v945_v54 = vld [vmem:[%s15129_s29 + $0xb50] sm:$0xff]   ;;  %v949_v55 = vld [vmem:[%s15129_s29 + $0xb58] sm:$0xff]  }
  0x6c   : > { %934 = vst [vmem:[%s15137_s30 + $0x598] sm:$0xff] %v933_v51   ;;  %938 = vst [vmem:[%s15137_s30 + $0x5a0] sm:$0xff] %v937_v52   ;;  %v953_v56 = vld [vmem:[%s15129_s29 + $0xb80] sm:$0xff]   ;;  %v957_v57 = vld [vmem:[%s15129_s29 + $0xb88] sm:$0xff]  }
  0x6d   : > { %942 = vst [vmem:[%s15137_s30 + $0x5a8] sm:$0xff] %v941_v53   ;;  %946 = vst [vmem:[%s15137_s30 + $0x5b0] sm:$0xff] %v945_v54   ;;  %v961_v58 = vld [vmem:[%s15129_s29 + $0xb90] sm:$0xff]   ;;  %v965_v59 = vld [vmem:[%s15129_s29 + $0xb98] sm:$0xff]  }
  0x6e   : > { %950 = vst [vmem:[%s15137_s30 + $0x5b8] sm:$0xff] %v949_v55   ;;  %954 = vst [vmem:[%s15137_s30 + $0x5c0] sm:$0xff] %v953_v56   ;;  %v969_v60 = vld [vmem:[%s15129_s29 + $0xbc0] sm:$0xff]   ;;  %v973_v61 = vld [vmem:[%s15129_s29 + $0xbc8] sm:$0xff]  }
  0x6f   : > { %958 = vst [vmem:[%s15137_s30 + $0x5c8] sm:$0xff] %v957_v57   ;;  %962 = vst [vmem:[%s15137_s30 + $0x5d0] sm:$0xff] %v961_v58   ;;  %v977_v62 = vld [vmem:[%s15129_s29 + $0xbd0] sm:$0xff]   ;;  %v981_v63 = vld [vmem:[%s15129_s29 + $0xbd8] sm:$0xff]  }
  0x70   : > { %966 = vst [vmem:[%s15137_s30 + $0x5d8] sm:$0xff] %v965_v59   ;;  %970 = vst [vmem:[%s15137_s30 + $0x5e0] sm:$0xff] %v969_v60   ;;  %v985_v0 = vld [vmem:[%s15129_s29 + $0xc00] sm:$0xff]   ;;  %v989_v1 = vld [vmem:[%s15129_s29 + $0xc08] sm:$0xff]  }
  0x71   : > { %974 = vst [vmem:[%s15137_s30 + $0x5e8] sm:$0xff] %v973_v61   ;;  %978 = vst [vmem:[%s15137_s30 + $0x5f0] sm:$0xff] %v977_v62   ;;  %v993_v2 = vld [vmem:[%s15129_s29 + $0xc10] sm:$0xff]   ;;  %v997_v3 = vld [vmem:[%s15129_s29 + $0xc18] sm:$0xff]  }
  0x72   : > { %982 = vst [vmem:[%s15137_s30 + $0x5f8] sm:$0xff] %v981_v63   ;;  %986 = vst [vmem:[%s15137_s30 + $0x600] sm:$0xff] %v985_v0  }
  0x73   : > { %990 = vst [vmem:[%s15137_s30 + $0x608] sm:$0xff] %v989_v1   ;;  %994 = vst [vmem:[%s15137_s30 + $0x610] sm:$0xff] %v993_v2  }
  0x74   : > { %998 = vst [vmem:[%s15137_s30 + $0x618] sm:$0xff] %v997_v3  }
  0x75 PF: > { %p10440_p6 = scmp.ge.s32.totalorder %s15059_s19, 1  ;;  %p1806_p7 = scmp.lt.s32.totalorder %s15059_s19, 3 }
  0x77   : > { %p1807_p8 = pnand %p10440_p6, %p1806_p7 }
  0x78   : > { %v14433_v4 = vld [vmem:[%s16931_s1 + $0x40] sm:$0xff] (!%p1807_p8)   ;;  %v14435_v6 = vld [vmem:[%s16931_s1 + $0x48] sm:$0xff] (!%p1807_p8)   ;;  %v14437_v8 = vld [vmem:[%s16931_s1 + $0x50] sm:$0xff] (!%p1807_p8)   ;;  %s1813_s24 = sand.u32 (!%p1807_p8), 1, %s15043_s15  }
  0x79   : > { %1810 = sbr.rel (%p1807_p8) target bundleno = 1148 (0x47c), region = 73  ;;  %v14434_v5 = vld [vmem:[%s16931_s1 + $0x600] sm:$0xff] (!%p1807_p8)   ;;  %12815 = vmatprep.subr.bf16.mxu1 (!%p1807_p8), %v14433_v4  ;;  %v14436_v7 = vld [vmem:[%s16931_s1 + $0x608] sm:$0xff] (!%p1807_p8)   ;;  %v14438_v9 = vld [vmem:[%s16931_s1 + $0x610] sm:$0xff] (!%p1807_p8)  }
  0x7a   : > { %13391 = vmatprep.subr.bf16.mxu0 (!%p1807_p8), %v14434_v5  ;;  %12816 = vmatpush3.bf16.msra.mxu1 (!%p1807_p8), %v14433_v4  ;;  %v14439_v10 = vld [vmem:[%s16931_s1 + $0x58] sm:$0xff] (!%p1807_p8)   ;;  %s14392_s29 = smul.u32 (!%p1807_p8), 1568, %s1813_s24  ;;  %v14441_v12 = vld [vmem:[%s16931_s1 + $0x60] sm:$0xff] (!%p1807_p8)   ;;  %v14443_v14 = vld [vmem:[%s16931_s1 + $0x68] sm:$0xff] (!%p1807_p8)  }
  0x7b   : > { %13392 = vmatpush3.bf16.msra.mxu0 (!%p1807_p8), %v14434_v5  ;;  %12817 = vmatprep.subr.bf16.mxu1 (!%p1807_p8), %v14435_v6  ;;  %v14440_v11 = vld [vmem:[%s16931_s1 + $0x618] sm:$0xff] (!%p1807_p8)   ;;  %v14442_v13 = vld [vmem:[%s16931_s1 + $0x620] sm:$0xff] (!%p1807_p8)   ;;  %v14444_v16 = vld [vmem:[%s16931_s1 + $0x628] sm:$0xff] (!%p1807_p8)  }
  0x7c   : > { %13393 = vmatprep.subr.bf16.mxu0 (!%p1807_p8), %v14436_v7  ;;  %s15561_s9 = scalar_lea.vmem (!%p1807_p8), [#allocation2], %s14392_s29  ;;  %v14445_v18 = vld [vmem:[%s16931_s1 + $0x70] sm:$0xff] (!%p1807_p8)   ;;  %v14447_v20 = vld [vmem:[%s16931_s1 + $0x78] sm:$0xff] (!%p1807_p8)   ;;  %v14450_v22 = vld [vmem:[%s16931_s1] sm:$0xff] (!%p1807_p8)  }
  0x7d   : > { %v14449_v15 = vld [vmem:[%s15561_s9 + $0x20] sm:$0xff] (!%p1807_p8)   ;;  %v14446_v19 = vld [vmem:[%s16931_s1 + $0x630] sm:$0xff] (!%p1807_p8)   ;;  %v14448_v21 = vld [vmem:[%s16931_s1 + $0x638] sm:$0xff] (!%p1807_p8)  }
  0x7e   : > { %12818 = vmatpush3.bf16.msra.mxu1 (!%p1807_p8), %v14435_v6  ;;  %12831 = vmatprep.mubr.bf16.mxu1 (!%p1807_p8), %v14449_v15  ;;  %v14451_v17 = vld [vmem:[%s15561_s9 + $0x300] sm:$0xff] (!%p1807_p8)   ;;  %v14453_v24 = vld [vmem:[%s15561_s9 + $0x28] sm:$0xff] (!%p1807_p8)   ;;  %v14465_v28 = vld [vmem:[%s15561_s9 + $0x30] sm:$0xff] (!%p1807_p8)  }
  0x7f   : > { %13394 = vmatpush3.bf16.msra.mxu0 (!%p1807_p8), %v14436_v7  ;;  %12819 = vmatprep.subr.bf16.mxu1 (!%p1807_p8), %v14437_v8  ;;  %v14452_v23 = vld [vmem:[%s16931_s1 + $0x640] sm:$0xff] (!%p1807_p8)   ;;  %v14454_v25 = vld [vmem:[%s15561_s9 + $0x308] sm:$0xff] (!%p1807_p8)   ;;  %v14467_v29 = vld [vmem:[%s15561_s9 + $0x310] sm:$0xff] (!%p1807_p8)  }
  0x80   : > { %13395 = vmatprep.subr.bf16.mxu0 %v14438_v9  ;;  %13407 = vmatprep.mubr.bf16.mxu0 %v14451_v17  ;;  %v14455_v26 = vld [vmem:[%s16931_s1 + $0x8] sm:$0xff]   ;;  %v14457_v30 = vld [vmem:[%s16931_s1 + $0x10] sm:$0xff]   ;;  %v14459_v32 = vld [vmem:[%s16931_s1 + $0x18] sm:$0xff]  }
  0x81   : > { %v14456_v27 = vld [vmem:[%s16931_s1 + $0x648] sm:$0xff]   ;;  %v14458_v31 = vld [vmem:[%s16931_s1 + $0x650] sm:$0xff]   ;;  %v14469_v33 = vld [vmem:[%s15561_s9 + $0x38] sm:$0xff]  }
  0x82   : > { %12820 = vmatpush3.bf16.msra.mxu1 %v14437_v8  ;;  %v14470_v34 = vld [vmem:[%s15561_s9 + $0x318] sm:$0xff]   ;;  %v14473_v36 = vld [vmem:[%s15561_s9] sm:$0xff]   ;;  %v14463_v40 = vld [vmem:[%s16931_s1 + $0x28] sm:$0xff]  }
  0x83   : > { %13396 = vmatpush3.bf16.msra.mxu0 %v14438_v9  ;;  %12821 = vmatprep.subr.bf16.mxu1 %v14439_v10  ;;  %v14460_v35 = vld [vmem:[%s16931_s1 + $0x658] sm:$0xff]   ;;  %v14475_v37 = vld [vmem:[%s15561_s9 + $0x320] sm:$0xff]   ;;  %v14464_v41 = vld [vmem:[%s16931_s1 + $0x668] sm:$0xff]  }
  0x84   : > { %13397 = vmatprep.subr.bf16.mxu0 %v14440_v11  ;;  %v14461_v38 = vld [vmem:[%s16931_s1 + $0x20] sm:$0xff]   ;;  %v14466_v42 = vld [vmem:[%s16931_s1 + $0x30] sm:$0xff]   ;;  %v14471_v44 = vld [vmem:[%s16931_s1 + $0x38] sm:$0xff]  }
  0x85   : > { %v14462_v39 = vld [vmem:[%s16931_s1 + $0x660] sm:$0xff]   ;;  %v14468_v43 = vld [vmem:[%s16931_s1 + $0x670] sm:$0xff]   ;;  %v14472_v45 = vld [vmem:[%s16931_s1 + $0x678] sm:$0xff]  }
  0x86   : > { %12822 = vmatpush3.bf16.msra.mxu1 %v14439_v10  ;;  %v14474_v46 = vld [vmem:[%s16931_s1 + $0x80] sm:$0xff]   ;;  %v14477_v48 = vld [vmem:[%s15561_s9 + $0x8] sm:$0xff]   ;;  %v14489_v52 = vld [vmem:[%s15561_s9 + $0x10] sm:$0xff]  }
  0x87   : > { %13398 = vmatpush3.bf16.msra.mxu0 %v14440_v11  ;;  %12823 = vmatprep.subr.bf16.mxu1 %v14441_v12  ;;  %v14476_v47 = vld [vmem:[%s16931_s1 + $0x680] sm:$0xff]   ;;  %v14478_v49 = vld [vmem:[%s15561_s9 + $0x328] sm:$0xff]   ;;  %v14491_v53 = vld [vmem:[%s15561_s9 + $0x330] sm:$0xff]  }
  0x88   : > { %13399 = vmatprep.subr.bf16.mxu0 %v14442_v13  ;;  %v14479_v50 = vld [vmem:[%s16931_s1 + $0x88] sm:$0xff]   ;;  %v14481_v54 = vld [vmem:[%s16931_s1 + $0x90] sm:$0xff]   ;;  %v14483_v56 = vld [vmem:[%s16931_s1 + $0x98] sm:$0xff]  }
  0x89   : > { %v14480_v51 = vld [vmem:[%s16931_s1 + $0x688] sm:$0xff]   ;;  %v14482_v55 = vld [vmem:[%s16931_s1 + $0x690] sm:$0xff]   ;;  %v14493_v57 = vld [vmem:[%s15561_s9 + $0x18] sm:$0xff]  }
  0x8a   : > { %12824 = vmatpush3.bf16.msra.mxu1 %v14441_v12  ;;  %v14494_v58 = vld [vmem:[%s15561_s9 + $0x338] sm:$0xff]   ;;  %v14497_v60 = vld [vmem:[%s15561_s9 + $0x40] sm:$0xff]   ;;  %v14487_v0 = vld [vmem:[%s16931_s1 + $0xa8] sm:$0xff]  }
  0x8b   : > { %13400 = vmatpush3.bf16.msra.mxu0 %v14442_v13  ;;  %12825 = vmatprep.subr.bf16.mxu1 %v14443_v14  ;;  %v14484_v59 = vld [vmem:[%s16931_s1 + $0x698] sm:$0xff]   ;;  %v14499_v61 = vld [vmem:[%s15561_s9 + $0x340] sm:$0xff]   ;;  %v14488_v1 = vld [vmem:[%s16931_s1 + $0x6a8] sm:$0xff]  }
  0x8c   : > { %13401 = vmatprep.subr.bf16.mxu0 %v14444_v16  ;;  %v14485_v62 = vld [vmem:[%s16931_s1 + $0xa0] sm:$0xff]   ;;  %v14490_v2 = vld [vmem:[%s16931_s1 + $0xb0] sm:$0xff]   ;;  %v14495_v4 = vld [vmem:[%s16931_s1 + $0xb8] sm:$0xff]  }
  0x8d   : > { %v14486_v63 = vld [vmem:[%s16931_s1 + $0x6a0] sm:$0xff]   ;;  %v14492_v3 = vld [vmem:[%s16931_s1 + $0x6b0] sm:$0xff]   ;;  %v14496_v5 = vld [vmem:[%s16931_s1 + $0x6b8] sm:$0xff]  }
  0x8e   : > { %12826 = vmatpush3.bf16.msra.mxu1 %v14443_v14  ;;  %v14498_v6 = vld [vmem:[%s16931_s1 + $0xc0] sm:$0xff]   ;;  %v14501_v8 = vld [vmem:[%s15561_s9 + $0x48] sm:$0xff]   ;;  %v14513_v12 = vld [vmem:[%s15561_s9 + $0x50] sm:$0xff]  }
  0x8f   : > { %13402 = vmatpush3.bf16.msra.mxu0 %v14444_v16  ;;  %12827 = vmatprep.subr.bf16.mxu1 %v14445_v18  ;;  %v14500_v7 = vld [vmem:[%s16931_s1 + $0x6c0] sm:$0xff]   ;;  %v14502_v9 = vld [vmem:[%s15561_s9 + $0x348] sm:$0xff]   ;;  %v14515_v13 = vld [vmem:[%s15561_s9 + $0x350] sm:$0xff]  }
  0x90   : > { %13403 = vmatprep.subr.bf16.mxu0 %v14446_v19  ;;  %v14503_v10 = vld [vmem:[%s16931_s1 + $0xc8] sm:$0xff]   ;;  %v14505_v14 = vld [vmem:[%s16931_s1 + $0xd0] sm:$0xff]   ;;  %v14507_v16 = vld [vmem:[%s16931_s1 + $0xd8] sm:$0xff]  }
  0x91   : > { %v14504_v11 = vld [vmem:[%s16931_s1 + $0x6c8] sm:$0xff]   ;;  %v14506_v15 = vld [vmem:[%s16931_s1 + $0x6d0] sm:$0xff]   ;;  %v14517_v17 = vld [vmem:[%s15561_s9 + $0x58] sm:$0xff]  }
  0x92   : > { %12828 = vmatpush3.bf16.msra.mxu1 %v14445_v18  ;;  %v14518_v18 = vld [vmem:[%s15561_s9 + $0x358] sm:$0xff]  }
  0x93   : > { %13404 = vmatpush3.bf16.msra.mxu0 %v14446_v19  ;;  %12829 = vmatprep.subr.bf16.mxu1 %v14447_v20  ;;  %v14508_v19 = vld [vmem:[%s16931_s1 + $0x6d8] sm:$0xff]  }
  0x94   : > { %13405 = vmatprep.subr.bf16.mxu0 %v14448_v21 }
  0x96   : > { %12830 = vmatpush3.bf16.msra.mxu1 %v14447_v20  ;;  %v14521_v20 = vld [vmem:[%s15561_s9 + $0x60] sm:$0xff]  }
  0x97   : > { %13406 = vmatpush3.bf16.msra.mxu0 %v14448_v21  ;;  %12839 = vmatprep.subr.bf16.mxu1 %v14450_v22  ;;  %v14523_v21 = vld [vmem:[%s15561_s9 + $0x360] sm:$0xff]  }
  0x98   : > { %13415 = vmatprep.subr.bf16.mxu0 %v14452_v23 }
  0x99   : > { %12832 = vmatmul.mubr.bf16.vlgmr.msra.gmra.mrb[0].mxu1 %v14453_v24  ;;  %v14511_v24 = vld [vmem:[%s16931_s1 + $0xe8] sm:$0xff]  }
  0x9a   : > { %12840 = vmatpush3.bf16.msra.mxu1 %v14450_v22  ;;  %13408 = vmatmul.mubr.bf16.vlgmr.msra.gmra.mrb[0].mxu0 %v14454_v25  ;;  %v14509_v22 = vld [vmem:[%s16931_s1 + $0xe0] sm:$0xff]   ;;  %v14512_v25 = vld [vmem:[%s16931_s1 + $0x6e8] sm:$0xff]  }
  0x9b   : > { %13416 = vmatpush3.bf16.msra.mxu0 %v14452_v23  ;;  %12841 = vmatprep.subr.bf16.mxu1 %v14455_v26  ;;  %v14510_v23 = vld [vmem:[%s16931_s1 + $0x6e0] sm:$0xff]  }
  0x9c   : > { %13417 = vmatprep.subr.bf16.mxu0 %v14456_v27  ;;  %12835 = vmatprep.mubr.bf16.mxu1 %v14465_v28  ;;  %v14519_v28 = vld [vmem:[%s16931_s1 + $0xf8] sm:$0xff]  }
  0x9d   : > { %13411 = vmatprep.mubr.bf16.mxu0 %v14467_v29  ;;  %v14520_v29 = vld [vmem:[%s16931_s1 + $0x6f8] sm:$0xff]  }
  0x9e   : > { %12842 = vmatpush3.bf16.msra.mxu1 %v14455_v26  ;;  %v14514_v26 = vld [vmem:[%s16931_s1 + $0xf0] sm:$0xff]  }
  0x9f   : > { %13418 = vmatpush3.bf16.msra.mxu0 %v14456_v27  ;;  %12843 = vmatprep.subr.bf16.mxu1 %v14457_v30  ;;  %v14516_v27 = vld [vmem:[%s16931_s1 + $0x6f0] sm:$0xff]  }
  0xa0   : > { %13419 = vmatprep.subr.bf16.mxu0 %v14458_v31 }
  0xa1   : > { %12836 = vmatmul.mubr.bf16.gmra.mrb[4].mxu1 %v14469_v33  ;;  %v14526_v33 = vld [vmem:[%s15561_s9 + $0x368] sm:$0xff]  }
  0xa2   : > { %12844 = vmatpush3.bf16.msra.mxu1 %v14457_v30  ;;  %13412 = vmatmul.mubr.bf16.gmra.mrb[4].mxu0 %v14470_v34  ;;  %v14522_v30 = vld [vmem:[%s16931_s1 + $0x100] sm:$0xff]   ;;  %v14527_v34 = vld [vmem:[%s16931_s1 + $0x108] sm:$0xff]  }
  0xa3   : > { %13420 = vmatpush3.bf16.msra.mxu0 %v14458_v31  ;;  %12845 = vmatprep.subr.bf16.mxu1 %v14459_v32  ;;  %v14524_v31 = vld [vmem:[%s16931_s1 + $0x700] sm:$0xff]  }
  0xa4   : > { %13421 = vmatprep.subr.bf16.mxu0 %v14460_v35  ;;  %12855 = vmatprep.mubr.bf16.mxu1 %v14473_v36  ;;  %v14537_v36 = vld [vmem:[%s15561_s9 + $0x70] sm:$0xff]  }
  0xa5   : > { %13431 = vmatprep.mubr.bf16.mxu0 %v14475_v37  ;;  %v14539_v37 = vld [vmem:[%s15561_s9 + $0x370] sm:$0xff]  }
  0xa6   : > { %12846 = vmatpush3.bf16.msra.mxu1 %v14459_v32  ;;  %v14525_v32 = vld [vmem:[%s15561_s9 + $0x68] sm:$0xff]  }
  0xa7   : > { %13422 = vmatpush3.bf16.msra.mxu0 %v14460_v35  ;;  %12847 = vmatprep.subr.bf16.mxu1 %v14461_v38  ;;  %v14528_v35 = vld [vmem:[%s16931_s1 + $0x708] sm:$0xff]  }
  0xa8   : > { %13423 = vmatprep.subr.bf16.mxu0 %v14462_v39 }
  0xaa   : > { %12848 = vmatpush3.bf16.msra.mxu1 %v14461_v38  ;;  %v14529_v38 = vld [vmem:[%s16931_s1 + $0x110] sm:$0xff]  }
  0xab   : > { %13424 = vmatpush3.bf16.msra.mxu0 %v14462_v39  ;;  %12849 = vmatprep.subr.bf16.mxu1 %v14463_v40  ;;  %v14530_v39 = vld [vmem:[%s16931_s1 + $0x710] sm:$0xff]  }
  0xac   : > { %13425 = vmatprep.subr.bf16.mxu0 %v14464_v41 }
  0xae   : > { %12850 = vmatpush3.bf16.msra.mxu1 %v14463_v40  ;;  %v14531_v40 = vld [vmem:[%s16931_s1 + $0x118] sm:$0xff]  }
  0xaf   : > { %13426 = vmatpush3.bf16.msra.mxu0 %v14464_v41  ;;  %12851 = vmatprep.subr.bf16.mxu1 %v14466_v42  ;;  %v14541_v41 = vld [vmem:[%s15561_s9 + $0x78] sm:$0xff]  }
  0xb0   : > { %13427 = vmatprep.subr.bf16.mxu0 %v14468_v43 }
  0xb2   : > { %12852 = vmatpush3.bf16.msra.mxu1 %v14466_v42  ;;  %v14542_v42 = vld [vmem:[%s15561_s9 + $0x378] sm:$0xff]  }
  0xb3   : > { %13428 = vmatpush3.bf16.msra.mxu0 %v14468_v43  ;;  %12853 = vmatprep.subr.bf16.mxu1 %v14471_v44  ;;  %v14532_v43 = vld [vmem:[%s16931_s1 + $0x718] sm:$0xff]  }
  0xb4   : > { %13429 = vmatprep.subr.bf16.mxu0 %v14472_v45 }
  0xb6   : > { %12854 = vmatpush3.bf16.msra.mxu1 %v14471_v44  ;;  %v14545_v44 = vld [vmem:[%s15561_s9 + $0x80] sm:$0xff]  }
  0xb7   : > { %13430 = vmatpush3.bf16.msra.mxu0 %v14472_v45  ;;  %12863 = vmatprep.subr.bf16.mxu1 %v14474_v46  ;;  %v14547_v45 = vld [vmem:[%s15561_s9 + $0x380] sm:$0xff]  }
  0xb8   : > { %13439 = vmatprep.subr.bf16.mxu0 %v14476_v47 }
  0xb9   : > { %12856 = vmatmul.mubr.bf16.vlgmr.msra.gmra.mrb[0].mxu1 %v14477_v48  ;;  %v14535_v48 = vld [vmem:[%s16931_s1 + $0x128] sm:$0xff]  }
  0xba   : > { %12864 = vmatpush3.bf16.msra.mxu1 %v14474_v46  ;;  %13432 = vmatmul.mubr.bf16.vlgmr.msra.gmra.mrb[0].mxu0 %v14478_v49  ;;  %v14533_v46 = vld [vmem:[%s16931_s1 + $0x120] sm:$0xff]   ;;  %v14536_v49 = vld [vmem:[%s16931_s1 + $0x728] sm:$0xff]  }
  0xbb   : > { %13440 = vmatpush3.bf16.msra.mxu0 %v14476_v47  ;;  %12865 = vmatprep.subr.bf16.mxu1 %v14479_v50  ;;  %v14534_v47 = vld [vmem:[%s16931_s1 + $0x720] sm:$0xff]  }
  0xbc   : > { %13441 = vmatprep.subr.bf16.mxu0 %v14480_v51  ;;  %12859 = vmatprep.mubr.bf16.mxu1 %v14489_v52  ;;  %v14543_v52 = vld [vmem:[%s16931_s1 + $0x138] sm:$0xff]  }
  0xbd   : > { %13435 = vmatprep.mubr.bf16.mxu0 %v14491_v53  ;;  %v14544_v53 = vld [vmem:[%s16931_s1 + $0x738] sm:$0xff]  }
  0xbe   : > { %12866 = vmatpush3.bf16.msra.mxu1 %v14479_v50  ;;  %v14538_v50 = vld [vmem:[%s16931_s1 + $0x130] sm:$0xff]  }
  0xbf   : > { %13442 = vmatpush3.bf16.msra.mxu0 %v14480_v51  ;;  %12867 = vmatprep.subr.bf16.mxu1 %v14481_v54  ;;  %v14540_v51 = vld [vmem:[%s16931_s1 + $0x730] sm:$0xff]  }
  0xc0   : > { %13443 = vmatprep.subr.bf16.mxu0 %v14482_v55 }
  0xc1   : > { %12860 = vmatmul.mubr.bf16.gmra.mrb[4].mxu1 %v14493_v57  ;;  %v14550_v57 = vld [vmem:[%s15561_s9 + $0x388] sm:$0xff]  }
  0xc2   : > { %12868 = vmatpush3.bf16.msra.mxu1 %v14481_v54  ;;  %13436 = vmatmul.mubr.bf16.gmra.mrb[4].mxu0 %v14494_v58  ;;  %v14546_v54 = vld [vmem:[%s16931_s1 + $0x140] sm:$0xff]   ;;  %v14551_v58 = vld [vmem:[%s16931_s1 + $0x148] sm:$0xff]  }
  0xc3   : > { %13444 = vmatpush3.bf16.msra.mxu0 %v14482_v55  ;;  %12869 = vmatprep.subr.bf16.mxu1 %v14483_v56  ;;  %v14548_v55 = vld [vmem:[%s16931_s1 + $0x740] sm:$0xff]  }
  0xc4   : > { %13445 = vmatprep.subr.bf16.mxu0 %v14484_v59  ;;  %12879 = vmatprep.mubr.bf16.mxu1 %v14497_v60  ;;  %v14561_v60 = vld [vmem:[%s15561_s9 + $0x90] sm:$0xff]  }
  0xc5   : > { %13455 = vmatprep.mubr.bf16.mxu0 %v14499_v61  ;;  %v14563_v61 = vld [vmem:[%s15561_s9 + $0x390] sm:$0xff]  }
  0xc6   : > { %12870 = vmatpush3.bf16.msra.mxu1 %v14483_v56  ;;  %v14549_v56 = vld [vmem:[%s15561_s9 + $0x88] sm:$0xff]  }
  0xc7   : > { %13446 = vmatpush3.bf16.msra.mxu0 %v14484_v59  ;;  %12871 = vmatprep.subr.bf16.mxu1 %v14485_v62  ;;  %v14552_v59 = vld [vmem:[%s16931_s1 + $0x748] sm:$0xff]  }
  0xc8   : > { %13447 = vmatprep.subr.bf16.mxu0 %v14486_v63 }
  0xca   : > { %12872 = vmatpush3.bf16.msra.mxu1 %v14485_v62  ;;  %v14553_v62 = vld [vmem:[%s16931_s1 + $0x150] sm:$0xff]  }
  0xcb   : > { %13448 = vmatpush3.bf16.msra.mxu0 %v14486_v63  ;;  %12873 = vmatprep.subr.bf16.mxu1 %v14487_v0  ;;  %v14554_v63 = vld [vmem:[%s16931_s1 + $0x750] sm:$0xff]  }
  0xcc   : > { %13449 = vmatprep.subr.bf16.mxu0 %v14488_v1 }
  0xce   : > { %12874 = vmatpush3.bf16.msra.mxu1 %v14487_v0  ;;  %v14555_v0 = vld [vmem:[%s16931_s1 + $0x158] sm:$0xff]  }
  0xcf   : > { %13450 = vmatpush3.bf16.msra.mxu0 %v14488_v1  ;;  %12875 = vmatprep.subr.bf16.mxu1 %v14490_v2  ;;  %v14565_v1 = vld [vmem:[%s15561_s9 + $0x98] sm:$0xff]  }
  0xd0   : > { %13451 = vmatprep.subr.bf16.mxu0 %v14492_v3 }
  0xd2   : > { %12876 = vmatpush3.bf16.msra.mxu1 %v14490_v2  ;;  %v14566_v2 = vld [vmem:[%s15561_s9 + $0x398] sm:$0xff]  }
  0xd3   : > { %13452 = vmatpush3.bf16.msra.mxu0 %v14492_v3  ;;  %12877 = vmatprep.subr.bf16.mxu1 %v14495_v4  ;;  %v14556_v3 = vld [vmem:[%s16931_s1 + $0x758] sm:$0xff]  }
  0xd4   : > { %13453 = vmatprep.subr.bf16.mxu0 %v14496_v5 }
  0xd6   : > { %12878 = vmatpush3.bf16.msra.mxu1 %v14495_v4  ;;  %v14569_v4 = vld [vmem:[%s15561_s9 + $0xa0] sm:$0xff]  }
  0xd7   : > { %13454 = vmatpush3.bf16.msra.mxu0 %v14496_v5  ;;  %12887 = vmatprep.subr.bf16.mxu1 %v14498_v6  ;;  %v14571_v5 = vld [vmem:[%s15561_s9 + $0x3a0] sm:$0xff]  }
  0xd8   : > { %13463 = vmatprep.subr.bf16.mxu0 %v14500_v7 }
  0xd9   : > { %12880 = vmatmul.mubr.bf16.vlgmr.msra.gmra.mrb[0].mxu1 %v14501_v8  ;;  %v14559_v8 = vld [vmem:[%s16931_s1 + $0x168] sm:$0xff]  }
  0xda   : > { %12888 = vmatpush3.bf16.msra.mxu1 %v14498_v6  ;;  %13456 = vmatmul.mubr.bf16.vlgmr.msra.gmra.mrb[0].mxu0 %v14502_v9  ;;  %v14557_v6 = vld [vmem:[%s16931_s1 + $0x160] sm:$0xff]   ;;  %v14560_v9 = vld [vmem:[%s16931_s1 + $0x768] sm:$0xff]  }
  0xdb   : > { %13464 = vmatpush3.bf16.msra.mxu0 %v14500_v7  ;;  %12889 = vmatprep.subr.bf16.mxu1 %v14503_v10  ;;  %v14558_v7 = vld [vmem:[%s16931_s1 + $0x760] sm:$0xff]  }
  0xdc   : > { %13465 = vmatprep.subr.bf16.mxu0 %v14504_v11  ;;  %12883 = vmatprep.mubr.bf16.mxu1 %v14513_v12  ;;  %v14567_v12 = vld [vmem:[%s16931_s1 + $0x178] sm:$0xff]  }
  0xdd   : > { %13459 = vmatprep.mubr.bf16.mxu0 %v14515_v13  ;;  %v14568_v13 = vld [vmem:[%s16931_s1 + $0x778] sm:$0xff]  }
  0xde   : > { %12890 = vmatpush3.bf16.msra.mxu1 %v14503_v10  ;;  %v14562_v10 = vld [vmem:[%s16931_s1 + $0x170] sm:$0xff]  }
  0xdf   : > { %13466 = vmatpush3.bf16.msra.mxu0 %v14504_v11  ;;  %12891 = vmatprep.subr.bf16.mxu1 %v14505_v14  ;;  %v14564_v11 = vld [vmem:[%s16931_s1 + $0x770] sm:$0xff]  }
  0xe0   : > { %13467 = vmatprep.subr.bf16.mxu0 %v14506_v15 }
  0xe1   : > { %12884 = vmatmul.mubr.bf16.gmra.mrb[4].mxu1 %v14517_v17  ;;  %v14574_v17 = vld [vmem:[%s15561_s9 + $0x3a8] sm:$0xff]  }
  0xe2   : > { %12892 = vmatpush3.bf16.msra.mxu1 %v14505_v14  ;;  %13460 = vmatmul.mubr.bf16.gmra.mrb[4].mxu0 %v14518_v18  ;;  %v14570_v14 = vld [vmem:[%s16931_s1 + $0x180] sm:$0xff]   ;;  %v14575_v18 = vld [vmem:[%s16931_s1 + $0x188] sm:$0xff]  }
  0xe3   : > { %13468 = vmatpush3.bf16.msra.mxu0 %v14506_v15  ;;  %12893 = vmatprep.subr.bf16.mxu1 %v14507_v16  ;;  %v14572_v15 = vld [vmem:[%s16931_s1 + $0x780] sm:$0xff]  }
  0xe4   : > { %13469 = vmatprep.subr.bf16.mxu0 %v14508_v19  ;;  %12903 = vmatprep.mubr.bf16.mxu1 %v14521_v20  ;;  %v14585_v20 = vld [vmem:[%s15561_s9 + $0xb0] sm:$0xff]  }
  0xe5   : > { %13479 = vmatprep.mubr.bf16.mxu0 %v14523_v21  ;;  %v14587_v21 = vld [vmem:[%s15561_s9 + $0x3b0] sm:$0xff]  }
  0xe6   : > { %12894 = vmatpush3.bf16.msra.mxu1 %v14507_v16  ;;  %v14573_v16 = vld [vmem:[%s15561_s9 + $0xa8] sm:$0xff]  }
  0xe7   : > { %13470 = vmatpush3.bf16.msra.mxu0 %v14508_v19  ;;  %12895 = vmatprep.subr.bf16.mxu1 %v14509_v22  ;;  %v14576_v19 = vld [vmem:[%s16931_s1 + $0x788] sm:$0xff]  }
  0xe8   : > { %13471 = vmatprep.subr.bf16.mxu0 %v14510_v23 }
  0xea   : > { %12896 = vmatpush3.bf16.msra.mxu1 %v14509_v22  ;;  %v14577_v22 = vld [vmem:[%s16931_s1 + $0x190] sm:$0xff]  }
  0xeb   : > { %13472 = vmatpush3.bf16.msra.mxu0 %v14510_v23  ;;  %12897 = vmatprep.subr.bf16.mxu1 %v14511_v24  ;;  %v14578_v23 = vld [vmem:[%s16931_s1 + $0x790] sm:$0xff]  }
  0xec   : > { %13473 = vmatprep.subr.bf16.mxu0 %v14512_v25 }
  0xee   : > { %12898 = vmatpush3.bf16.msra.mxu1 %v14511_v24  ;;  %v14579_v24 = vld [vmem:[%s16931_s1 + $0x198] sm:$0xff]  }
  0xef   : > { %13474 = vmatpush3.bf16.msra.mxu0 %v14512_v25  ;;  %12899 = vmatprep.subr.bf16.mxu1 %v14514_v26  ;;  %v14589_v25 = vld [vmem:[%s15561_s9 + $0xb8] sm:$0xff]  }
  0xf0   : > { %13475 = vmatprep.subr.bf16.mxu0 %v14516_v27 }
  0xf2   : > { %12900 = vmatpush3.bf16.msra.mxu1 %v14514_v26  ;;  %v14590_v26 = vld [vmem:[%s15561_s9 + $0x3b8] sm:$0xff]  }
  0xf3   : > { %13476 = vmatpush3.bf16.msra.mxu0 %v14516_v27  ;;  %12901 = vmatprep.subr.bf16.mxu1 %v14519_v28  ;;  %v14580_v27 = vld [vmem:[%s16931_s1 + $0x798] sm:$0xff]  }
  0xf4   : > { %13477 = vmatprep.subr.bf16.mxu0 %v14520_v29 }
  0xf6   : > { %12902 = vmatpush3.bf16.msra.mxu1 %v14519_v28  ;;  %v14593_v28 = vld [vmem:[%s15561_s9 + $0xc0] sm:$0xff]  }
  0xf7   : > { %13478 = vmatpush3.bf16.msra.mxu0 %v14520_v29  ;;  %12911 = vmatprep.subr.bf16.mxu1 %v14522_v30  ;;  %v14595_v29 = vld [vmem:[%s15561_s9 + $0x3c0] sm:$0xff]  }
  0xf8   : > { %13487 = vmatprep.subr.bf16.mxu0 %v14524_v31 }
  0xf9   : > { %12904 = vmatmul.mubr.bf16.vlgmr.msra.gmra.mrb[0].mxu1 %v14525_v32  ;;  %v14583_v32 = vld [vmem:[%s16931_s1 + $0x1a8] sm:$0xff]  }
  0xfa   : > { %12912 = vmatpush3.bf16.msra.mxu1 %v14522_v30  ;;  %13480 = vmatmul.mubr.bf16.vlgmr.msra.gmra.mrb[0].mxu0 %v14526_v33  ;;  %v14581_v30 = vld [vmem:[%s16931_s1 + $0x1a0] sm:$0xff]   ;;  %v14584_v33 = vld [vmem:[%s16931_s1 + $0x7a8] sm:$0xff]  }
  0xfb   : > { %13488 = vmatpush3.bf16.msra.mxu0 %v14524_v31  ;;  %12913 = vmatprep.subr.bf16.mxu1 %v14527_v34  ;;  %v14582_v31 = vld [vmem:[%s16931_s1 + $0x7a0] sm:$0xff]  }
  0xfc   : > { %13489 = vmatprep.subr.bf16.mxu0 %v14528_v35  ;;  %12907 = vmatprep.mubr.bf16.mxu1 %v14537_v36  ;;  %v14591_v36 = vld [vmem:[%s16931_s1 + $0x1b8] sm:$0xff]  }
  0xfd   : > { %13483 = vmatprep.mubr.bf16.mxu0 %v14539_v37  ;;  %v14592_v37 = vld [vmem:[%s16931_s1 + $0x7b8] sm:$0xff]  }
  0xfe   : > { %12914 = vmatpush3.bf16.msra.mxu1 %v14527_v34  ;;  %v14586_v34 = vld [vmem:[%s16931_s1 + $0x1b0] sm:$0xff]  }
  0xff   : > { %13490 = vmatpush3.bf16.msra.mxu0 %v14528_v35  ;;  %12915 = vmatprep.subr.bf16.mxu1 %v14529_v38  ;;  %v14588_v35 = vld [vmem:[%s16931_s1 + $0x7b0] sm:$0xff]  }
 0x100   : > { %13491 = vmatprep.subr.bf16.mxu0 %v14530_v39 }
 0x101   : > { %12908 = vmatmul.mubr.bf16.gmra.mrb[4].mxu1 %v14541_v41  ;;  %v14598_v41 = vld [vmem:[%s15561_s9 + $0x3c8] sm:$0xff]  }
 0x102   : > { %12916 = vmatpush3.bf16.msra.mxu1 %v14529_v38  ;;  %13484 = vmatmul.mubr.bf16.gmra.mrb[4].mxu0 %v14542_v42  ;;  %v14594_v38 = vld [vmem:[%s16931_s1 + $0x1c0] sm:$0xff]   ;;  %v14599_v42 = vld [vmem:[%s16931_s1 + $0x1c8] sm:$0xff]  }
 0x103   : > { %13492 = vmatpush3.bf16.msra.mxu0 %v14530_v39  ;;  %12917 = vmatprep.subr.bf16.mxu1 %v14531_v40  ;;  %v14596_v39 = vld [vmem:[%s16931_s1 + $0x7c0] sm:$0xff]  }
 0x104   : > { %13493 = vmatprep.subr.bf16.mxu0 %v14532_v43  ;;  %12927 = vmatprep.mubr.bf16.mxu1 %v14545_v44  ;;  %v14609_v44 = vld [vmem:[%s15561_s9 + $0xd0] sm:$0xff]  }
 0x105   : > { %13503 = vmatprep.mubr.bf16.mxu0 %v14547_v45  ;;  %v14611_v45 = vld [vmem:[%s15561_s9 + $0x3d0] sm:$0xff]  }
 0x106   : > { %12918 = vmatpush3.bf16.msra.mxu1 %v14531_v40  ;;  %v14597_v40 = vld [vmem:[%s15561_s9 + $0xc8] sm:$0xff]  }
 0x107   : > { %13494 = vmatpush3.bf16.msra.mxu0 %v14532_v43  ;;  %12919 = vmatprep.subr.bf16.mxu1 %v14533_v46  ;;  %v14600_v43 = vld [vmem:[%s16931_s1 + $0x7c8] sm:$0xff]  }
 0x108   : > { %13495 = vmatprep.subr.bf16.mxu0 %v14534_v47 }
 0x10a   : > { %12920 = vmatpush3.bf16.msra.mxu1 %v14533_v46  ;;  %v14601_v46 = vld [vmem:[%s16931_s1 + $0x1d0] sm:$0xff]  }
 0x10b   : > { %13496 = vmatpush3.bf16.msra.mxu0 %v14534_v47  ;;  %12921 = vmatprep.subr.bf16.mxu1 %v14535_v48  ;;  %v14602_v47 = vld [vmem:[%s16931_s1 + $0x7d0] sm:$0xff]  }
 0x10c   : > { %13497 = vmatprep.subr.bf16.mxu0 %v14536_v49 }
 0x10e   : > { %12922 = vmatpush3.bf16.msra.mxu1 %v14535_v48  ;;  %v14603_v48 = vld [vmem:[%s16931_s1 + $0x1d8] sm:$0xff]  }
 0x10f   : > { %13498 = vmatpush3.bf16.msra.mxu0 %v14536_v49  ;;  %12923 = vmatprep.subr.bf16.mxu1 %v14538_v50  ;;  %v14613_v49 = vld [vmem:[%s15561_s9 + $0xd8] sm:$0xff]  }
 0x110   : > { %13499 = vmatprep.subr.bf16.mxu0 %v14540_v51 }
 0x112   : > { %12924 = vmatpush3.bf16.msra.mxu1 %v14538_v50  ;;  %v14614_v50 = vld [vmem:[%s15561_s9 + $0x3d8] sm:$0xff]  }
 0x113   : > { %13500 = vmatpush3.bf16.msra.mxu0 %v14540_v51  ;;  %12925 = vmatprep.subr.bf16.mxu1 %v14543_v52  ;;  %v14604_v51 = vld [vmem:[%s16931_s1 + $0x7d8] sm:$0xff]  }
 0x114   : > { %13501 = vmatprep.subr.bf16.mxu0 %v14544_v53 }
 0x116   : > { %12926 = vmatpush3.bf16.msra.mxu1 %v14543_v52  ;;  %v14617_v52 = vld [vmem:[%s15561_s9 + $0xe0] sm:$0xff]  }
 0x117   : > { %13502 = vmatpush3.bf16.msra.mxu0 %v14544_v53  ;;  %12935 = vmatprep.subr.bf16.mxu1 %v14546_v54  ;;  %v14619_v53 = vld [vmem:[%s15561_s9 + $0x3e0] sm:$0xff]  }
 0x118   : > { %13511 = vmatprep.subr.bf16.mxu0 %v14548_v55 }
 0x119   : > { %12928 = vmatmul.mubr.bf16.vlgmr.msra.gmra.mrb[0].mxu1 %v14549_v56  ;;  %v14607_v56 = vld [vmem:[%s16931_s1 + $0x1e8] sm:$0xff]  }
 0x11a   : > { %12936 = vmatpush3.bf16.msra.mxu1 %v14546_v54  ;;  %13504 = vmatmul.mubr.bf16.vlgmr.msra.gmra.mrb[0].mxu0 %v14550_v57  ;;  %v14605_v54 = vld [vmem:[%s16931_s1 + $0x1e0] sm:$0xff]   ;;  %v14608_v57 = vld [vmem:[%s16931_s1 + $0x7e8] sm:$0xff]  }
 0x11b   : > { %13512 = vmatpush3.bf16.msra.mxu0 %v14548_v55  ;;  %12937 = vmatprep.subr.bf16.mxu1 %v14551_v58  ;;  %v14606_v55 = vld [vmem:[%s16931_s1 + $0x7e0] sm:$0xff]  }
 0x11c   : > { %13513 = vmatprep.subr.bf16.mxu0 %v14552_v59  ;;  %12931 = vmatprep.mubr.bf16.mxu1 %v14561_v60  ;;  %v14615_v60 = vld [vmem:[%s16931_s1 + $0x1f8] sm:$0xff]  }
 0x11d   : > { %13507 = vmatprep.mubr.bf16.mxu0 %v14563_v61  ;;  %v14616_v61 = vld [vmem:[%s16931_s1 + $0x7f8] sm:$0xff]  }
 0x11e   : > { %12938 = vmatpush3.bf16.msra.mxu1 %v14551_v58  ;;  %v14610_v58 = vld [vmem:[%s16931_s1 + $0x1f0] sm:$0xff]  }
 0x11f   : > { %13514 = vmatpush3.bf16.msra.mxu0 %v14552_v59  ;;  %12939 = vmatprep.subr.bf16.mxu1 %v14553_v62  ;;  %v14612_v59 = vld [vmem:[%s16931_s1 + $0x7f0] sm:$0xff]  }
 0x120   : > { %13515 = vmatprep.subr.bf16.mxu0 %v14554_v63 }
 0x121   : > { %12932 = vmatmul.mubr.bf16.gmra.mrb[4].mxu1 %v14565_v1  ;;  %v14622_v1 = vld [vmem:[%s15561_s9 + $0x3e8] sm:$0xff]  }
 0x122   : > { %12940 = vmatpush3.bf16.msra.mxu1 %v14553_v62  ;;  %13508 = vmatmul.mubr.bf16.gmra.mrb[4].mxu0 %v14566_v2  ;;  %v14618_v62 = vld [vmem:[%s16931_s1 + $0x200] sm:$0xff]   ;;  %v14623_v2 = vld [vmem:[%s16931_s1 + $0x208] sm:$0xff]  }
 0x123   : > { %13516 = vmatpush3.bf16.msra.mxu0 %v14554_v63  ;;  %12941 = vmatprep.subr.bf16.mxu1 %v14555_v0  ;;  %v14620_v63 = vld [vmem:[%s16931_s1 + $0x800] sm:$0xff]  }
 0x124   : > { %13517 = vmatprep.subr.bf16.mxu0 %v14556_v3  ;;  %12951 = vmatprep.mubr.bf16.mxu1 %v14569_v4  ;;  %v14633_v4 = vld [vmem:[%s15561_s9 + $0xf0] sm:$0xff]  }
 0x125   : > { %13527 = vmatprep.mubr.bf16.mxu0 %v14571_v5  ;;  %v14635_v5 = vld [vmem:[%s15561_s9 + $0x3f0] sm:$0xff]  }
 0x126   : > { %12942 = vmatpush3.bf16.msra.mxu1 %v14555_v0  ;;  %v14621_v0 = vld [vmem:[%s15561_s9 + $0xe8] sm:$0xff]  }
 0x127   : > { %13518 = vmatpush3.bf16.msra.mxu0 %v14556_v3  ;;  %12943 = vmatprep.subr.bf16.mxu1 %v14557_v6  ;;  %v14624_v3 = vld [vmem:[%s16931_s1 + $0x808] sm:$0xff]  }
 0x128   : > { %13519 = vmatprep.subr.bf16.mxu0 %v14558_v7 }
 0x12a   : > { %12944 = vmatpush3.bf16.msra.mxu1 %v14557_v6  ;;  %v14625_v6 = vld [vmem:[%s16931_s1 + $0x210] sm:$0xff]  }
 0x12b   : > { %13520 = vmatpush3.bf16.msra.mxu0 %v14558_v7  ;;  %12945 = vmatprep.subr.bf16.mxu1 %v14559_v8  ;;  %v14626_v7 = vld [vmem:[%s16931_s1 + $0x810] sm:$0xff]  }
 0x12c   : > { %13521 = vmatprep.subr.bf16.mxu0 %v14560_v9 }
 0x12e   : > { %12946 = vmatpush3.bf16.msra.mxu1 %v14559_v8  ;;  %v14627_v8 = vld [vmem:[%s16931_s1 + $0x218] sm:$0xff]  }
 0x12f   : > { %13522 = vmatpush3.bf16.msra.mxu0 %v14560_v9  ;;  %12947 = vmatprep.subr.bf16.mxu1 %v14562_v10  ;;  %v14637_v9 = vld [vmem:[%s15561_s9 + $0xf8] sm:$0xff]  }
 0x130   : > { %13523 = vmatprep.subr.bf16.mxu0 %v14564_v11 }
 0x132   : > { %12948 = vmatpush3.bf16.msra.mxu1 %v14562_v10  ;;  %v14638_v10 = vld [vmem:[%s15561_s9 + $0x3f8] sm:$0xff]  }
 0x133   : > { %13524 = vmatpush3.bf16.msra.mxu0 %v14564_v11  ;;  %12949 = vmatprep.subr.bf16.mxu1 %v14567_v12  ;;  %v14628_v11 = vld [vmem:[%s16931_s1 + $0x818] sm:$0xff]  }
 0x134   : > { %13525 = vmatprep.subr.bf16.mxu0 %v14568_v13 }
 0x136   : > { %12950 = vmatpush3.bf16.msra.mxu1 %v14567_v12  ;;  %v14641_v12 = vld [vmem:[%s15561_s9 + $0x100] sm:$0xff]  }
 0x137   : > { %13526 = vmatpush3.bf16.msra.mxu0 %v14568_v13  ;;  %12959 = vmatprep.subr.bf16.mxu1 %v14570_v14  ;;  %v14643_v13 = vld [vmem:[%s15561_s9 + $0x400] sm:$0xff]  }
 0x138   : > { %13535 = vmatprep.subr.bf16.mxu0 %v14572_v15 }
 0x139   : > { %12952 = vmatmul.mubr.bf16.vlgmr.msra.gmra.mrb[0].mxu1 %v14573_v16  ;;  %v14631_v16 = vld [vmem:[%s16931_s1 + $0x228] sm:$0xff]  }
 0x13a   : > { %12960 = vmatpush3.bf16.msra.mxu1 %v14570_v14  ;;  %13528 = vmatmul.mubr.bf16.vlgmr.msra.gmra.mrb[0].mxu0 %v14574_v17  ;;  %v14629_v14 = vld [vmem:[%s16931_s1 + $0x220] sm:$0xff]   ;;  %v14632_v17 = vld [vmem:[%s16931_s1 + $0x828] sm:$0xff]  }
 0x13b   : > { %13536 = vmatpush3.bf16.msra.mxu0 %v14572_v15  ;;  %12961 = vmatprep.subr.bf16.mxu1 %v14575_v18  ;;  %v14630_v15 = vld [vmem:[%s16931_s1 + $0x820] sm:$0xff]  }
 0x13c   : > { %13537 = vmatprep.subr.bf16.mxu0 %v14576_v19  ;;  %12955 = vmatprep.mubr.bf16.mxu1 %v14585_v20  ;;  %v14639_v20 = vld [vmem:[%s16931_s1 + $0x238] sm:$0xff]  }
 0x13d   : > { %13531 = vmatprep.mubr.bf16.mxu0 %v14587_v21  ;;  %v14640_v21 = vld [vmem:[%s16931_s1 + $0x838] sm:$0xff]  }
 0x13e   : > { %12962 = vmatpush3.bf16.msra.mxu1 %v14575_v18  ;;  %v14634_v18 = vld [vmem:[%s16931_s1 + $0x230] sm:$0xff]  }
 0x13f   : > { %13538 = vmatpush3.bf16.msra.mxu0 %v14576_v19  ;;  %12963 = vmatprep.subr.bf16.mxu1 %v14577_v22  ;;  %v14636_v19 = vld [vmem:[%s16931_s1 + $0x830] sm:$0xff]  }
 0x140   : > { %13539 = vmatprep.subr.bf16.mxu0 %v14578_v23 }
 0x141   : > { %12956 = vmatmul.mubr.bf16.gmra.mrb[4].mxu1 %v14589_v25  ;;  %v14646_v25 = vld [vmem:[%s15561_s9 + $0x408] sm:$0xff]  }
 0x142   : > { %12964 = vmatpush3.bf16.msra.mxu1 %v14577_v22  ;;  %13532 = vmatmul.mubr.bf16.gmra.mrb[4].mxu0 %v14590_v26  ;;  %v14642_v22 = vld [vmem:[%s16931_s1 + $0x240] sm:$0xff]   ;;  %v14647_v26 = vld [vmem:[%s16931_s1 + $0x248] sm:$0xff]  }
 0x143   : > { %13540 = vmatpush3.bf16.msra.mxu0 %v14578_v23  ;;  %12965 = vmatprep.subr.bf16.mxu1 %v14579_v24  ;;  %v14644_v23 = vld [vmem:[%s16931_s1 + $0x840] sm:$0xff]  }
 0x144   : > { %13541 = vmatprep.subr.bf16.mxu0 %v14580_v27  ;;  %12975 = vmatprep.mubr.bf16.mxu1 %v14593_v28  ;;  %v14657_v28 = vld [vmem:[%s15561_s9 + $0x110] sm:$0xff]  }
 0x145   : > { %13551 = vmatprep.mubr.bf16.mxu0 %v14595_v29  ;;  %v14659_v29 = vld [vmem:[%s15561_s9 + $0x410] sm:$0xff]  }
 0x146   : > { %12966 = vmatpush3.bf16.msra.mxu1 %v14579_v24  ;;  %v14645_v24 = vld [vmem:[%s15561_s9 + $0x108] sm:$0xff]  }
 0x147   : > { %13542 = vmatpush3.bf16.msra.mxu0 %v14580_v27  ;;  %12967 = vmatprep.subr.bf16.mxu1 %v14581_v30  ;;  %v14648_v27 = vld [vmem:[%s16931_s1 + $0x848] sm:$0xff]  }
 0x148   : > { %13543 = vmatprep.subr.bf16.mxu0 %v14582_v31 }
 0x14a   : > { %12968 = vmatpush3.bf16.msra.mxu1 %v14581_v30  ;;  %v14649_v30 = vld [vmem:[%s16931_s1 + $0x250] sm:$0xff]  }
 0x14b   : > { %13544 = vmatpush3.bf16.msra.mxu0 %v14582_v31  ;;  %12969 = vmatprep.subr.bf16.mxu1 %v14583_v32  ;;  %v14650_v31 = vld [vmem:[%s16931_s1 + $0x850] sm:$0xff]  }
 0x14c   : > { %13545 = vmatprep.subr.bf16.mxu0 %v14584_v33 }
 0x14e   : > { %12970 = vmatpush3.bf16.msra.mxu1 %v14583_v32  ;;  %v14651_v32 = vld [vmem:[%s16931_s1 + $0x258] sm:$0xff]  }
 0x14f   : > { %13546 = vmatpush3.bf16.msra.mxu0 %v14584_v33  ;;  %12971 = vmatprep.subr.bf16.mxu1 %v14586_v34  ;;  %v14661_v33 = vld [vmem:[%s15561_s9 + $0x118] sm:$0xff]  }
 0x150   : > { %13547 = vmatprep.subr.bf16.mxu0 %v14588_v35 }
 0x152   : > { %12972 = vmatpush3.bf16.msra.mxu1 %v14586_v34  ;;  %v14662_v34 = vld [vmem:[%s15561_s9 + $0x418] sm:$0xff]  }
 0x153   : > { %13548 = vmatpush3.bf16.msra.mxu0 %v14588_v35  ;;  %12973 = vmatprep.subr.bf16.mxu1 %v14591_v36  ;;  %v14652_v35 = vld [vmem:[%s16931_s1 + $0x858] sm:$0xff]  }
 0x154   : > { %13549 = vmatprep.subr.bf16.mxu0 %v14592_v37 }
 0x156   : > { %12974 = vmatpush3.bf16.msra.mxu1 %v14591_v36  ;;  %v14665_v36 = vld [vmem:[%s15561_s9 + $0x120] sm:$0xff]  }
 0x157   : > { %13550 = vmatpush3.bf16.msra.mxu0 %v14592_v37  ;;  %12983 = vmatprep.subr.bf16.mxu1 %v14594_v38  ;;  %v14667_v37 = vld [vmem:[%s15561_s9 + $0x420] sm:$0xff]  }
 0x158   : > { %13559 = vmatprep.subr.bf16.mxu0 %v14596_v39 }
 0x159   : > { %12976 = vmatmul.mubr.bf16.vlgmr.msra.gmra.mrb[0].mxu1 %v14597_v40  ;;  %v14655_v40 = vld [vmem:[%s16931_s1 + $0x268] sm:$0xff]  }
 0x15a   : > { %12984 = vmatpush3.bf16.msra.mxu1 %v14594_v38  ;;  %13552 = vmatmul.mubr.bf16.vlgmr.msra.gmra.mrb[0].mxu0 %v14598_v41  ;;  %v14653_v38 = vld [vmem:[%s16931_s1 + $0x260] sm:$0xff]   ;;  %v14656_v41 = vld [vmem:[%s16931_s1 + $0x868] sm:$0xff]  }
 0x15b   : > { %13560 = vmatpush3.bf16.msra.mxu0 %v14596_v39  ;;  %12985 = vmatprep.subr.bf16.mxu1 %v14599_v42  ;;  %v14654_v39 = vld [vmem:[%s16931_s1 + $0x860] sm:$0xff]  }
 0x15c   : > { %13561 = vmatprep.subr.bf16.mxu0 %v14600_v43  ;;  %12979 = vmatprep.mubr.bf16.mxu1 %v14609_v44  ;;  %v14663_v44 = vld [vmem:[%s16931_s1 + $0x278] sm:$0xff]  }
 0x15d   : > { %13555 = vmatprep.mubr.bf16.mxu0 %v14611_v45  ;;  %v14664_v45 = vld [vmem:[%s16931_s1 + $0x878] sm:$0xff]  }
 0x15e   : > { %12986 = vmatpush3.bf16.msra.mxu1 %v14599_v42  ;;  %v14658_v42 = vld [vmem:[%s16931_s1 + $0x270] sm:$0xff]  }
 0x15f   : > { %13562 = vmatpush3.bf16.msra.mxu0 %v14600_v43  ;;  %12987 = vmatprep.subr.bf16.mxu1 %v14601_v46  ;;  %v14660_v43 = vld [vmem:[%s16931_s1 + $0x870] sm:$0xff]  }
 0x160   : > { %13563 = vmatprep.subr.bf16.mxu0 %v14602_v47 }
 0x161   : > { %12980 = vmatmul.mubr.bf16.gmra.mrb[4].mxu1 %v14613_v49  ;;  %v14670_v49 = vld [vmem:[%s15561_s9 + $0x428] sm:$0xff]  }
 0x162   : > { %12988 = vmatpush3.bf16.msra.mxu1 %v14601_v46  ;;  %13556 = vmatmul.mubr.bf16.gmra.mrb[4].mxu0 %v14614_v50  ;;  %v14666_v46 = vld [vmem:[%s16931_s1 + $0x280] sm:$0xff]   ;;  %v14671_v50 = vld [vmem:[%s16931_s1 + $0x288] sm:$0xff]  }
 0x163   : > { %13564 = vmatpush3.bf16.msra.mxu0 %v14602_v47  ;;  %12989 = vmatprep.subr.bf16.mxu1 %v14603_v48  ;;  %v14668_v47 = vld [vmem:[%s16931_s1 + $0x880] sm:$0xff]  }
 0x164   : > { %13565 = vmatprep.subr.bf16.mxu0 %v14604_v51  ;;  %12999 = vmatprep.mubr.bf16.mxu1 %v14617_v52  ;;  %v14681_v52 = vld [vmem:[%s15561_s9 + $0x130] sm:$0xff]  }
 0x165   : > { %13575 = vmatprep.mubr.bf16.mxu0 %v14619_v53  ;;  %v14683_v53 = vld [vmem:[%s15561_s9 + $0x430] sm:$0xff]  }
 0x166   : > { %12990 = vmatpush3.bf16.msra.mxu1 %v14603_v48  ;;  %v14669_v48 = vld [vmem:[%s15561_s9 + $0x128] sm:$0xff]  }
 0x167   : > { %13566 = vmatpush3.bf16.msra.mxu0 %v14604_v51  ;;  %12991 = vmatprep.subr.bf16.mxu1 %v14605_v54  ;;  %v14672_v51 = vld [vmem:[%s16931_s1 + $0x888] sm:$0xff]  }
 0x168   : > { %13567 = vmatprep.subr.bf16.mxu0 %v14606_v55 }
 0x16a   : > { %12992 = vmatpush3.bf16.msra.mxu1 %v14605_v54  ;;  %v14673_v54 = vld [vmem:[%s16931_s1 + $0x290] sm:$0xff]  }
 0x16b   : > { %13568 = vmatpush3.bf16.msra.mxu0 %v14606_v55  ;;  %12993 = vmatprep.subr.bf16.mxu1 %v14607_v56  ;;  %v14674_v55 = vld [vmem:[%s16931_s1 + $0x890] sm:$0xff]  }
 0x16c   : > { %13569 = vmatprep.subr.bf16.mxu0 %v14608_v57 }
 0x16e   : > { %12994 = vmatpush3.bf16.msra.mxu1 %v14607_v56  ;;  %v14675_v56 = vld [vmem:[%s16931_s1 + $0x298] sm:$0xff]  }
 0x16f   : > { %13570 = vmatpush3.bf16.msra.mxu0 %v14608_v57  ;;  %12995 = vmatprep.subr.bf16.mxu1 %v14610_v58  ;;  %v14685_v57 = vld [vmem:[%s15561_s9 + $0x138] sm:$0xff]  }
 0x170   : > { %13571 = vmatprep.subr.bf16.mxu0 %v14612_v59 }
 0x172   : > { %12996 = vmatpush3.bf16.msra.mxu1 %v14610_v58  ;;  %v14686_v58 = vld [vmem:[%s15561_s9 + $0x438] sm:$0xff]  }
 0x173   : > { %13572 = vmatpush3.bf16.msra.mxu0 %v14612_v59  ;;  %12997 = vmatprep.subr.bf16.mxu1 %v14615_v60  ;;  %v14676_v59 = vld [vmem:[%s16931_s1 + $0x898] sm:$0xff]  }
 0x174   : > { %13573 = vmatprep.subr.bf16.mxu0 %v14616_v61 }
 0x176   : > { %12998 = vmatpush3.bf16.msra.mxu1 %v14615_v60  ;;  %v14689_v60 = vld [vmem:[%s15561_s9 + $0x140] sm:$0xff]  }
 0x177   : > { %13574 = vmatpush3.bf16.msra.mxu0 %v14616_v61  ;;  %13007 = vmatprep.subr.bf16.mxu1 %v14618_v62  ;;  %v14691_v61 = vld [vmem:[%s15561_s9 + $0x440] sm:$0xff]  }
 0x178   : > { %13583 = vmatprep.subr.bf16.mxu0 %v14620_v63 }
 0x179   : > { %13000 = vmatmul.mubr.bf16.vlgmr.msra.gmra.mrb[0].mxu1 %v14621_v0  ;;  %v14679_v0 = vld [vmem:[%s16931_s1 + $0x2a8] sm:$0xff]  }
 0x17a   : > { %13008 = vmatpush3.bf16.msra.mxu1 %v14618_v62  ;;  %13576 = vmatmul.mubr.bf16.vlgmr.msra.gmra.mrb[0].mxu0 %v14622_v1  ;;  %v14677_v62 = vld [vmem:[%s16931_s1 + $0x2a0] sm:$0xff]   ;;  %v14680_v1 = vld [vmem:[%s16931_s1 + $0x8a8] sm:$0xff]  }
 0x17b   : > { %13584 = vmatpush3.bf16.msra.mxu0 %v14620_v63  ;;  %13009 = vmatprep.subr.bf16.mxu1 %v14623_v2  ;;  %v14678_v63 = vld [vmem:[%s16931_s1 + $0x8a0] sm:$0xff]  }
 0x17c   : > { %13585 = vmatprep.subr.bf16.mxu0 %v14624_v3  ;;  %13003 = vmatprep.mubr.bf16.mxu1 %v14633_v4  ;;  %v14687_v4 = vld [vmem:[%s16931_s1 + $0x2b8] sm:$0xff]  }
 0x17d   : > { %13579 = vmatprep.mubr.bf16.mxu0 %v14635_v5  ;;  %v14688_v5 = vld [vmem:[%s16931_s1 + $0x8b8] sm:$0xff]  }
 0x17e   : > { %13010 = vmatpush3.bf16.msra.mxu1 %v14623_v2  ;;  %v14682_v2 = vld [vmem:[%s16931_s1 + $0x2b0] sm:$0xff]  }
 0x17f   : > { %13586 = vmatpush3.bf16.msra.mxu0 %v14624_v3  ;;  %13011 = vmatprep.subr.bf16.mxu1 %v14625_v6  ;;  %v14684_v3 = vld [vmem:[%s16931_s1 + $0x8b0] sm:$0xff]  }
 0x180   : > { %13587 = vmatprep.subr.bf16.mxu0 %v14626_v7 }
 0x181   : > { %13004 = vmatmul.mubr.bf16.gmra.mrb[4].mxu1 %v14637_v9  ;;  %v14694_v9 = vld [vmem:[%s15561_s9 + $0x448] sm:$0xff]  }
 0x182   : > { %13012 = vmatpush3.bf16.msra.mxu1 %v14625_v6  ;;  %13580 = vmatmul.mubr.bf16.gmra.mrb[4].mxu0 %v14638_v10  ;;  %v14690_v6 = vld [vmem:[%s16931_s1 + $0x2c0] sm:$0xff]   ;;  %v14695_v10 = vld [vmem:[%s16931_s1 + $0x2c8] sm:$0xff]  }
 0x183   : > { %13588 = vmatpush3.bf16.msra.mxu0 %v14626_v7  ;;  %13013 = vmatprep.subr.bf16.mxu1 %v14627_v8  ;;  %v14692_v7 = vld [vmem:[%s16931_s1 + $0x8c0] sm:$0xff]  }
 0x184   : > { %13589 = vmatprep.subr.bf16.mxu0 %v14628_v11  ;;  %13023 = vmatprep.mubr.bf16.mxu1 %v14641_v12  ;;  %v14705_v12 = vld [vmem:[%s15561_s9 + $0x150] sm:$0xff]  }
 0x185   : > { %13599 = vmatprep.mubr.bf16.mxu0 %v14643_v13  ;;  %v14707_v13 = vld [vmem:[%s15561_s9 + $0x450] sm:$0xff]  }
 0x186   : > { %13014 = vmatpush3.bf16.msra.mxu1 %v14627_v8  ;;  %v14693_v8 = vld [vmem:[%s15561_s9 + $0x148] sm:$0xff]  }
 0x187   : > { %13590 = vmatpush3.bf16.msra.mxu0 %v14628_v11  ;;  %13015 = vmatprep.subr.bf16.mxu1 %v14629_v14  ;;  %v14696_v11 = vld [vmem:[%s16931_s1 + $0x8c8] sm:$0xff]  }
 0x188   : > { %13591 = vmatprep.subr.bf16.mxu0 %v14630_v15 }
 0x18a   : > { %13016 = vmatpush3.bf16.msra.mxu1 %v14629_v14  ;;  %v14697_v14 = vld [vmem:[%s16931_s1 + $0x2d0] sm:$0xff]  }
 0x18b   : > { %13592 = vmatpush3.bf16.msra.mxu0 %v14630_v15  ;;  %13017 = vmatprep.subr.bf16.mxu1 %v14631_v16  ;;  %v14698_v15 = vld [vmem:[%s16931_s1 + $0x8d0] sm:$0xff]  }
 0x18c   : > { %13593 = vmatprep.subr.bf16.mxu0 %v14632_v17 }
 0x18e   : > { %13018 = vmatpush3.bf16.msra.mxu1 %v14631_v16  ;;  %v14699_v16 = vld [vmem:[%s16931_s1 + $0x2d8] sm:$0xff]  }
 0x18f   : > { %13594 = vmatpush3.bf16.msra.mxu0 %v14632_v17  ;;  %13019 = vmatprep.subr.bf16.mxu1 %v14634_v18  ;;  %v14709_v17 = vld [vmem:[%s15561_s9 + $0x158] sm:$0xff]  }
 0x190   : > { %13595 = vmatprep.subr.bf16.mxu0 %v14636_v19 }
 0x192   : > { %13020 = vmatpush3.bf16.msra.mxu1 %v14634_v18  ;;  %v14700_v18 = vld [vmem:[%s16931_s1 + $0x8d8] sm:$0xff]  }
 0x193   : > { %13596 = vmatpush3.bf16.msra.mxu0 %v14636_v19  ;;  %13021 = vmatprep.subr.bf16.mxu1 %v14639_v20  ;;  %v14710_v19 = vld [vmem:[%s15561_s9 + $0x458] sm:$0xff]  }
 0x194   : > { %13597 = vmatprep.subr.bf16.mxu0 %v14640_v21 }
 0x196   : > { %13022 = vmatpush3.bf16.msra.mxu1 %v14639_v20  ;;  %v14713_v20 = vld [vmem:[%s15561_s9 + $0x160] sm:$0xff]  }
 0x197   : > { %13598 = vmatpush3.bf16.msra.mxu0 %v14640_v21  ;;  %13031 = vmatprep.subr.bf16.mxu1 %v14642_v22  ;;  %v14715_v21 = vld [vmem:[%s15561_s9 + $0x460] sm:$0xff]  }
 0x198   : > { %13607 = vmatprep.subr.bf16.mxu0 %v14644_v23 }
 0x199   : > { %13024 = vmatmul.mubr.bf16.vlgmr.msra.gmra.mrb[0].mxu1 %v14645_v24  ;;  %v14703_v24 = vld [vmem:[%s16931_s1 + $0x2e8] sm:$0xff]  }
 0x19a   : > { %13032 = vmatpush3.bf16.msra.mxu1 %v14642_v22  ;;  %13600 = vmatmul.mubr.bf16.vlgmr.msra.gmra.mrb[0].mxu0 %v14646_v25  ;;  %v14701_v22 = vld [vmem:[%s16931_s1 + $0x2e0] sm:$0xff]   ;;  %v14704_v25 = vld [vmem:[%s16931_s1 + $0x8e8] sm:$0xff]  }
 0x19b   : > { %13608 = vmatpush3.bf16.msra.mxu0 %v14644_v23  ;;  %13033 = vmatprep.subr.bf16.mxu1 %v14647_v26  ;;  %v14702_v23 = vld [vmem:[%s16931_s1 + $0x8e0] sm:$0xff]  }
 0x19c   : > { %13609 = vmatprep.subr.bf16.mxu0 %v14648_v27  ;;  %13027 = vmatprep.mubr.bf16.mxu1 %v14657_v28  ;;  %v14711_v28 = vld [vmem:[%s16931_s1 + $0x2f8] sm:$0xff]  }
 0x19d   : > { %13603 = vmatprep.mubr.bf16.mxu0 %v14659_v29  ;;  %v14712_v29 = vld [vmem:[%s16931_s1 + $0x8f8] sm:$0xff]  }
 0x19e   : > { %13034 = vmatpush3.bf16.msra.mxu1 %v14647_v26  ;;  %v14706_v26 = vld [vmem:[%s16931_s1 + $0x2f0] sm:$0xff]  }
 0x19f   : > { %13610 = vmatpush3.bf16.msra.mxu0 %v14648_v27  ;;  %13035 = vmatprep.subr.bf16.mxu1 %v14649_v30  ;;  %v14708_v27 = vld [vmem:[%s16931_s1 + $0x8f0] sm:$0xff]  }
 0x1a0   : > { %13611 = vmatprep.subr.bf16.mxu0 %v14650_v31 }
 0x1a1   : > { %13028 = vmatmul.mubr.bf16.gmra.mrb[4].mxu1 %v14661_v33  ;;  %v14718_v33 = vld [vmem:[%s15561_s9 + $0x468] sm:$0xff]  }
 0x1a2   : > { %13036 = vmatpush3.bf16.msra.mxu1 %v14649_v30  ;;  %13604 = vmatmul.mubr.bf16.gmra.mrb[4].mxu0 %v14662_v34  ;;  %v14714_v30 = vld [vmem:[%s16931_s1 + $0x300] sm:$0xff]   ;;  %v14719_v34 = vld [vmem:[%s16931_s1 + $0x308] sm:$0xff]  }
 0x1a3   : > { %13612 = vmatpush3.bf16.msra.mxu0 %v14650_v31  ;;  %13037 = vmatprep.subr.bf16.mxu1 %v14651_v32  ;;  %v14716_v31 = vld [vmem:[%s16931_s1 + $0x900] sm:$0xff]  }
 0x1a4   : > { %13613 = vmatprep.subr.bf16.mxu0 %v14652_v35  ;;  %13047 = vmatprep.mubr.bf16.mxu1 %v14665_v36  ;;  %v14729_v36 = vld [vmem:[%s15561_s9 + $0x170] sm:$0xff]  }
 0x1a5   : > { %13623 = vmatprep.mubr.bf16.mxu0 %v14667_v37  ;;  %v14721_v37 = vld [vmem:[%s16931_s1 + $0x310] sm:$0xff]  }
 0x1a6   : > { %13038 = vmatpush3.bf16.msra.mxu1 %v14651_v32  ;;  %v14717_v32 = vld [vmem:[%s15561_s9 + $0x168] sm:$0xff]  }
 0x1a7   : > { %13614 = vmatpush3.bf16.msra.mxu0 %v14652_v35  ;;  %13039 = vmatprep.subr.bf16.mxu1 %v14653_v38  ;;  %v14720_v35 = vld [vmem:[%s16931_s1 + $0x908] sm:$0xff]  }
 0x1a8   : > { %13615 = vmatprep.subr.bf16.mxu0 %v14654_v39 }
 0x1aa   : > { %13040 = vmatpush3.bf16.msra.mxu1 %v14653_v38  ;;  %v14731_v38 = vld [vmem:[%s15561_s9 + $0x470] sm:$0xff]  }
 0x1ab   : > { %13616 = vmatpush3.bf16.msra.mxu0 %v14654_v39  ;;  %13041 = vmatprep.subr.bf16.mxu1 %v14655_v40  ;;  %v14722_v39 = vld [vmem:[%s16931_s1 + $0x910] sm:$0xff]  }
 0x1ac   : > { %13617 = vmatprep.subr.bf16.mxu0 %v14656_v41 }
 0x1ae   : > { %13042 = vmatpush3.bf16.msra.mxu1 %v14655_v40  ;;  %v14733_v40 = vld [vmem:[%s15561_s9 + $0x178] sm:$0xff]  }
 0x1af   : > { %13618 = vmatpush3.bf16.msra.mxu0 %v14656_v41  ;;  %13043 = vmatprep.subr.bf16.mxu1 %v14658_v42  ;;  %v14734_v41 = vld [vmem:[%s15561_s9 + $0x478] sm:$0xff]  }
 0x1b0   : > { %13619 = vmatprep.subr.bf16.mxu0 %v14660_v43 }
 0x1b2   : > { %13044 = vmatpush3.bf16.msra.mxu1 %v14658_v42  ;;  %v14723_v42 = vld [vmem:[%s16931_s1 + $0x318] sm:$0xff]  }
 0x1b3   : > { %13620 = vmatpush3.bf16.msra.mxu0 %v14660_v43  ;;  %13045 = vmatprep.subr.bf16.mxu1 %v14663_v44  ;;  %v14724_v43 = vld [vmem:[%s16931_s1 + $0x918] sm:$0xff]  }
 0x1b4   : > { %13621 = vmatprep.subr.bf16.mxu0 %v14664_v45 }
 0x1b6   : > { %13046 = vmatpush3.bf16.msra.mxu1 %v14663_v44  ;;  %v14737_v44 = vld [vmem:[%s15561_s9 + $0x180] sm:$0xff]  }
 0x1b7   : > { %13622 = vmatpush3.bf16.msra.mxu0 %v14664_v45  ;;  %13055 = vmatprep.subr.bf16.mxu1 %v14666_v46  ;;  %v14739_v45 = vld [vmem:[%s15561_s9 + $0x480] sm:$0xff]  }
 0x1b8   : > { %13631 = vmatprep.subr.bf16.mxu0 %v14668_v47 }
 0x1b9   : > { %13048 = vmatmul.mubr.bf16.vlgmr.msra.gmra.mrb[0].mxu1 %v14669_v48  ;;  %v14727_v48 = vld [vmem:[%s16931_s1 + $0x328] sm:$0xff]  }
 0x1ba   : > { %13056 = vmatpush3.bf16.msra.mxu1 %v14666_v46  ;;  %13624 = vmatmul.mubr.bf16.vlgmr.msra.gmra.mrb[0].mxu0 %v14670_v49  ;;  %v14725_v46 = vld [vmem:[%s16931_s1 + $0x320] sm:$0xff]   ;;  %v14728_v49 = vld [vmem:[%s16931_s1 + $0x928] sm:$0xff]  }
 0x1bb   : > { %13632 = vmatpush3.bf16.msra.mxu0 %v14668_v47  ;;  %13057 = vmatprep.subr.bf16.mxu1 %v14671_v50  ;;  %v14726_v47 = vld [vmem:[%s16931_s1 + $0x920] sm:$0xff]  }
 0x1bc   : > { %13633 = vmatprep.subr.bf16.mxu0 %v14672_v51  ;;  %13051 = vmatprep.mubr.bf16.mxu1 %v14681_v52  ;;  %v14735_v52 = vld [vmem:[%s16931_s1 + $0x338] sm:$0xff]  }
 0x1bd   : > { %13627 = vmatprep.mubr.bf16.mxu0 %v14683_v53  ;;  %v14736_v53 = vld [vmem:[%s16931_s1 + $0x938] sm:$0xff]  }
 0x1be   : > { %13058 = vmatpush3.bf16.msra.mxu1 %v14671_v50  ;;  %v14730_v50 = vld [vmem:[%s16931_s1 + $0x330] sm:$0xff]  }
 0x1bf   : > { %13634 = vmatpush3.bf16.msra.mxu0 %v14672_v51  ;;  %13059 = vmatprep.subr.bf16.mxu1 %v14673_v54  ;;  %v14732_v51 = vld [vmem:[%s16931_s1 + $0x930] sm:$0xff]  }
 0x1c0   : > { %13635 = vmatprep.subr.bf16.mxu0 %v14674_v55 }
 0x1c1   : > { %13052 = vmatmul.mubr.bf16.gmra.mrb[4].mxu1 %v14685_v57  ;;  %v14742_v57 = vld [vmem:[%s15561_s9 + $0x488] sm:$0xff]  }
 0x1c2   : > { %13060 = vmatpush3.bf16.msra.mxu1 %v14673_v54  ;;  %13628 = vmatmul.mubr.bf16.gmra.mrb[4].mxu0 %v14686_v58  ;;  %v14738_v54 = vld [vmem:[%s16931_s1 + $0x340] sm:$0xff]   ;;  %v14743_v58 = vld [vmem:[%s16931_s1 + $0x348] sm:$0xff]  }
 0x1c3   : > { %13636 = vmatpush3.bf16.msra.mxu0 %v14674_v55  ;;  %13061 = vmatprep.subr.bf16.mxu1 %v14675_v56  ;;  %v14740_v55 = vld [vmem:[%s16931_s1 + $0x940] sm:$0xff]  }
 0x1c4   : > { %13637 = vmatprep.subr.bf16.mxu0 %v14676_v59  ;;  %13071 = vmatprep.mubr.bf16.mxu1 %v14689_v60  ;;  %v14753_v60 = vld [vmem:[%s15561_s9 + $0x190] sm:$0xff]  }
 0x1c5   : > { %13647 = vmatprep.mubr.bf16.mxu0 %v14691_v61  ;;  %v14745_v61 = vld [vmem:[%s16931_s1 + $0x350] sm:$0xff]  }
 0x1c6   : > { %13062 = vmatpush3.bf16.msra.mxu1 %v14675_v56  ;;  %v14741_v56 = vld [vmem:[%s15561_s9 + $0x188] sm:$0xff]  }
 0x1c7   : > { %13638 = vmatpush3.bf16.msra.mxu0 %v14676_v59  ;;  %13063 = vmatprep.subr.bf16.mxu1 %v14677_v62  ;;  %v14744_v59 = vld [vmem:[%s16931_s1 + $0x948] sm:$0xff]  }
 0x1c8   : > { %13639 = vmatprep.subr.bf16.mxu0 %v14678_v63 }
 0x1ca   : > { %13064 = vmatpush3.bf16.msra.mxu1 %v14677_v62  ;;  %v14755_v62 = vld [vmem:[%s15561_s9 + $0x490] sm:$0xff]  }
 0x1cb   : > { %13640 = vmatpush3.bf16.msra.mxu0 %v14678_v63  ;;  %13065 = vmatprep.subr.bf16.mxu1 %v14679_v0  ;;  %v14746_v63 = vld [vmem:[%s16931_s1 + $0x950] sm:$0xff]  }
 0x1cc   : > { %13641 = vmatprep.subr.bf16.mxu0 %v14680_v1 }
 0x1ce   : > { %13066 = vmatpush3.bf16.msra.mxu1 %v14679_v0  ;;  %v14757_v0 = vld [vmem:[%s15561_s9 + $0x198] sm:$0xff]  }
 0x1cf   : > { %13642 = vmatpush3.bf16.msra.mxu0 %v14680_v1  ;;  %13067 = vmatprep.subr.bf16.mxu1 %v14682_v2  ;;  %v14758_v1 = vld [vmem:[%s15561_s9 + $0x498] sm:$0xff]  }
 0x1d0   : > { %13643 = vmatprep.subr.bf16.mxu0 %v14684_v3 }
 0x1d2   : > { %13068 = vmatpush3.bf16.msra.mxu1 %v14682_v2  ;;  %v14747_v2 = vld [vmem:[%s16931_s1 + $0x358] sm:$0xff]  }
 0x1d3   : > { %13644 = vmatpush3.bf16.msra.mxu0 %v14684_v3  ;;  %13069 = vmatprep.subr.bf16.mxu1 %v14687_v4  ;;  %v14748_v3 = vld [vmem:[%s16931_s1 + $0x958] sm:$0xff]  }
 0x1d4   : > { %13645 = vmatprep.subr.bf16.mxu0 %v14688_v5 }
 0x1d6   : > { %13070 = vmatpush3.bf16.msra.mxu1 %v14687_v4  ;;  %v14761_v4 = vld [vmem:[%s15561_s9 + $0x1a0] sm:$0xff]  }
 0x1d7   : > { %13646 = vmatpush3.bf16.msra.mxu0 %v14688_v5  ;;  %13079 = vmatprep.subr.bf16.mxu1 %v14690_v6  ;;  %v14763_v5 = vld [vmem:[%s15561_s9 + $0x4a0] sm:$0xff]  }
 0x1d8   : > { %13655 = vmatprep.subr.bf16.mxu0 %v14692_v7 }
 0x1d9   : > { %13072 = vmatmul.mubr.bf16.vlgmr.msra.gmra.mrb[0].mxu1 %v14693_v8  ;;  %v14751_v8 = vld [vmem:[%s16931_s1 + $0x368] sm:$0xff]  }
 0x1da   : > { %13080 = vmatpush3.bf16.msra.mxu1 %v14690_v6  ;;  %13648 = vmatmul.mubr.bf16.vlgmr.msra.gmra.mrb[0].mxu0 %v14694_v9  ;;  %v14749_v6 = vld [vmem:[%s16931_s1 + $0x360] sm:$0xff]   ;;  %v14752_v9 = vld [vmem:[%s16931_s1 + $0x968] sm:$0xff]  }
 0x1db   : > { %13656 = vmatpush3.bf16.msra.mxu0 %v14692_v7  ;;  %13081 = vmatprep.subr.bf16.mxu1 %v14695_v10  ;;  %v14750_v7 = vld [vmem:[%s16931_s1 + $0x960] sm:$0xff]  }
 0x1dc   : > { %13657 = vmatprep.subr.bf16.mxu0 %v14696_v11  ;;  %13075 = vmatprep.mubr.bf16.mxu1 %v14705_v12  ;;  %v14759_v12 = vld [vmem:[%s16931_s1 + $0x378] sm:$0xff]  }
 0x1dd   : > { %13651 = vmatprep.mubr.bf16.mxu0 %v14707_v13  ;;  %v14760_v13 = vld [vmem:[%s16931_s1 + $0x978] sm:$0xff]  }
 0x1de   : > { %13082 = vmatpush3.bf16.msra.mxu1 %v14695_v10  ;;  %v14754_v10 = vld [vmem:[%s16931_s1 + $0x370] sm:$0xff]  }
 0x1df   : > { %13658 = vmatpush3.bf16.msra.mxu0 %v14696_v11  ;;  %13083 = vmatprep.subr.bf16.mxu1 %v14697_v14  ;;  %v14756_v11 = vld [vmem:[%s16931_s1 + $0x970] sm:$0xff]  }
 0x1e0   : > { %13659 = vmatprep.subr.bf16.mxu0 %v14698_v15 }
 0x1e1   : > { %13076 = vmatmul.mubr.bf16.gmra.mrb[4].mxu1 %v14709_v17  ;;  %v14766_v17 = vld [vmem:[%s15561_s9 + $0x4a8] sm:$0xff]  }
 0x1e2   : > { %13084 = vmatpush3.bf16.msra.mxu1 %v14697_v14  ;;  %13652 = vmatmul.mubr.bf16.gmra.mrb[4].mxu0 %v14710_v19  ;;  %v14762_v14 = vld [vmem:[%s16931_s1 + $0x380] sm:$0xff]   ;;  %v14768_v19 = vld [vmem:[%s16931_s1 + $0x988] sm:$0xff]  }
 0x1e3   : > { %13660 = vmatpush3.bf16.msra.mxu0 %v14698_v15  ;;  %13085 = vmatprep.subr.bf16.mxu1 %v14699_v16  ;;  %v14764_v15 = vld [vmem:[%s16931_s1 + $0x980] sm:$0xff]  }
 0x1e4   : > { %13661 = vmatprep.subr.bf16.mxu0 %v14700_v18  ;;  %13095 = vmatprep.mubr.bf16.mxu1 %v14713_v20  ;;  %v14777_v20 = vld [vmem:[%s15561_s9 + $0x1b0] sm:$0xff]  }
 0x1e5   : > { %13671 = vmatprep.mubr.bf16.mxu0 %v14715_v21  ;;  %v14769_v21 = vld [vmem:[%s16931_s1 + $0x390] sm:$0xff]  }
 0x1e6   : > { %13086 = vmatpush3.bf16.msra.mxu1 %v14699_v16  ;;  %v14765_v16 = vld [vmem:[%s15561_s9 + $0x1a8] sm:$0xff]  }
 0x1e7   : > { %13662 = vmatpush3.bf16.msra.mxu0 %v14700_v18  ;;  %13087 = vmatprep.subr.bf16.mxu1 %v14701_v22  ;;  %v14767_v18 = vld [vmem:[%s16931_s1 + $0x388] sm:$0xff]  }
 0x1e8   : > { %13663 = vmatprep.subr.bf16.mxu0 %v14702_v23 }
 0x1ea   : > { %13088 = vmatpush3.bf16.msra.mxu1 %v14701_v22  ;;  %v14779_v22 = vld [vmem:[%s15561_s9 + $0x4b0] sm:$0xff]  }
 0x1eb   : > { %13664 = vmatpush3.bf16.msra.mxu0 %v14702_v23  ;;  %13089 = vmatprep.subr.bf16.mxu1 %v14703_v24  ;;  %v14770_v23 = vld [vmem:[%s16931_s1 + $0x990] sm:$0xff]  }
 0x1ec   : > { %13665 = vmatprep.subr.bf16.mxu0 %v14704_v25 }
 0x1ee   : > { %13090 = vmatpush3.bf16.msra.mxu1 %v14703_v24  ;;  %v14781_v24 = vld [vmem:[%s15561_s9 + $0x1b8] sm:$0xff]  }
 0x1ef   : > { %13666 = vmatpush3.bf16.msra.mxu0 %v14704_v25  ;;  %13091 = vmatprep.subr.bf16.mxu1 %v14706_v26  ;;  %v14782_v25 = vld [vmem:[%s15561_s9 + $0x4b8] sm:$0xff]  }
 0x1f0   : > { %13667 = vmatprep.subr.bf16.mxu0 %v14708_v27 }
 0x1f2   : > { %13092 = vmatpush3.bf16.msra.mxu1 %v14706_v26  ;;  %v14771_v26 = vld [vmem:[%s16931_s1 + $0x398] sm:$0xff]  }
 0x1f3   : > { %13668 = vmatpush3.bf16.msra.mxu0 %v14708_v27  ;;  %13093 = vmatprep.subr.bf16.mxu1 %v14711_v28  ;;  %v14772_v27 = vld [vmem:[%s16931_s1 + $0x998] sm:$0xff]  }
 0x1f4   : > { %13669 = vmatprep.subr.bf16.mxu0 %v14712_v29 }
 0x1f6   : > { %13094 = vmatpush3.bf16.msra.mxu1 %v14711_v28  ;;  %v14785_v28 = vld [vmem:[%s15561_s9 + $0x1c0] sm:$0xff]  }
 0x1f7   : > { %13670 = vmatpush3.bf16.msra.mxu0 %v14712_v29  ;;  %13103 = vmatprep.subr.bf16.mxu1 %v14714_v30  ;;  %v14787_v29 = vld [vmem:[%s15561_s9 + $0x4c0] sm:$0xff]  }
 0x1f8   : > { %13679 = vmatprep.subr.bf16.mxu0 %v14716_v31 }
 0x1f9   : > { %13096 = vmatmul.mubr.bf16.vlgmr.msra.gmra.mrb[0].mxu1 %v14717_v32  ;;  %v14775_v32 = vld [vmem:[%s16931_s1 + $0x3a8] sm:$0xff]  }
 0x1fa   : > { %13104 = vmatpush3.bf16.msra.mxu1 %v14714_v30  ;;  %13672 = vmatmul.mubr.bf16.vlgmr.msra.gmra.mrb[0].mxu0 %v14718_v33  ;;  %v14773_v30 = vld [vmem:[%s16931_s1 + $0x3a0] sm:$0xff]   ;;  %v14776_v33 = vld [vmem:[%s16931_s1 + $0x9a8] sm:$0xff]  }
 0x1fb   : > { %13680 = vmatpush3.bf16.msra.mxu0 %v14716_v31  ;;  %13105 = vmatprep.subr.bf16.mxu1 %v14719_v34  ;;  %v14774_v31 = vld [vmem:[%s16931_s1 + $0x9a0] sm:$0xff]  }
 0x1fc   : > { %13681 = vmatprep.subr.bf16.mxu0 %v14720_v35  ;;  %13099 = vmatprep.mubr.bf16.mxu1 %v14729_v36  ;;  %v14783_v36 = vld [vmem:[%s16931_s1 + $0x3b8] sm:$0xff]  }
 0x1fd   : > { %13675 = vmatprep.mubr.bf16.mxu0 %v14731_v38  ;;  %v14786_v38 = vld [vmem:[%s16931_s1 + $0x3c0] sm:$0xff]  }
 0x1fe   : > { %13106 = vmatpush3.bf16.msra.mxu1 %v14719_v34  ;;  %v14778_v34 = vld [vmem:[%s16931_s1 + $0x3b0] sm:$0xff]  }
 0x1ff   : > { %13682 = vmatpush3.bf16.msra.mxu0 %v14720_v35  ;;  %13107 = vmatprep.subr.bf16.mxu1 %v14721_v37  ;;  %v14780_v35 = vld [vmem:[%s16931_s1 + $0x9b0] sm:$0xff]  }
 0x200   : > { %13683 = vmatprep.subr.bf16.mxu0 %v14722_v39 }
 0x201   : > { %13100 = vmatmul.mubr.bf16.gmra.mrb[4].mxu1 %v14733_v40  ;;  %v14789_v40 = vld [vmem:[%s15561_s9 + $0x1c8] sm:$0xff]  }
 0x202   : > { %13108 = vmatpush3.bf16.msra.mxu1 %v14721_v37  ;;  %13676 = vmatmul.mubr.bf16.gmra.mrb[4].mxu0 %v14734_v41  ;;  %v14784_v37 = vld [vmem:[%s16931_s1 + $0x9b8] sm:$0xff]   ;;  %v14790_v41 = vld [vmem:[%s15561_s9 + $0x4c8] sm:$0xff]  }
 0x203   : > { %13684 = vmatpush3.bf16.msra.mxu0 %v14722_v39  ;;  %13109 = vmatprep.subr.bf16.mxu1 %v14723_v42  ;;  %v14788_v39 = vld [vmem:[%s16931_s1 + $0x9c0] sm:$0xff]  }
 0x204   : > { %13685 = vmatprep.subr.bf16.mxu0 %v14724_v43  ;;  %13119 = vmatprep.mubr.bf16.mxu1 %v14737_v44  ;;  %v14801_v44 = vld [vmem:[%s15561_s9 + $0x1d0] sm:$0xff]  }
 0x205   : > { %13695 = vmatprep.mubr.bf16.mxu0 %v14739_v45  ;;  %v14793_v45 = vld [vmem:[%s16931_s1 + $0x3d0] sm:$0xff]  }
 0x206   : > { %13110 = vmatpush3.bf16.msra.mxu1 %v14723_v42  ;;  %v14791_v42 = vld [vmem:[%s16931_s1 + $0x3c8] sm:$0xff]  }
 0x207   : > { %13686 = vmatpush3.bf16.msra.mxu0 %v14724_v43  ;;  %13111 = vmatprep.subr.bf16.mxu1 %v14725_v46  ;;  %v14792_v43 = vld [vmem:[%s16931_s1 + $0x9c8] sm:$0xff]  }
 0x208   : > { %13687 = vmatprep.subr.bf16.mxu0 %v14726_v47 }
 0x20a   : > { %13112 = vmatpush3.bf16.msra.mxu1 %v14725_v46  ;;  %v14803_v46 = vld [vmem:[%s15561_s9 + $0x4d0] sm:$0xff]  }
 0x20b   : > { %13688 = vmatpush3.bf16.msra.mxu0 %v14726_v47  ;;  %13113 = vmatprep.subr.bf16.mxu1 %v14727_v48  ;;  %v14794_v47 = vld [vmem:[%s16931_s1 + $0x9d0] sm:$0xff]  }
 0x20c   : > { %13689 = vmatprep.subr.bf16.mxu0 %v14728_v49 }
 0x20e   : > { %13114 = vmatpush3.bf16.msra.mxu1 %v14727_v48  ;;  %v14805_v48 = vld [vmem:[%s15561_s9 + $0x1d8] sm:$0xff]  }
 0x20f   : > { %13690 = vmatpush3.bf16.msra.mxu0 %v14728_v49  ;;  %13115 = vmatprep.subr.bf16.mxu1 %v14730_v50  ;;  %v14806_v49 = vld [vmem:[%s15561_s9 + $0x4d8] sm:$0xff]  }
 0x210   : > { %13691 = vmatprep.subr.bf16.mxu0 %v14732_v51 }
 0x212   : > { %13116 = vmatpush3.bf16.msra.mxu1 %v14730_v50  ;;  %v14795_v50 = vld [vmem:[%s16931_s1 + $0x3d8] sm:$0xff]  }
 0x213   : > { %13692 = vmatpush3.bf16.msra.mxu0 %v14732_v51  ;;  %13117 = vmatprep.subr.bf16.mxu1 %v14735_v52  ;;  %v14796_v51 = vld [vmem:[%s16931_s1 + $0x9d8] sm:$0xff]  }
 0x214   : > { %13693 = vmatprep.subr.bf16.mxu0 %v14736_v53 }
 0x216   : > { %13118 = vmatpush3.bf16.msra.mxu1 %v14735_v52  ;;  %v14809_v52 = vld [vmem:[%s15561_s9 + $0x1e0] sm:$0xff]  }
 0x217   : > { %13694 = vmatpush3.bf16.msra.mxu0 %v14736_v53  ;;  %13127 = vmatprep.subr.bf16.mxu1 %v14738_v54  ;;  %v14811_v53 = vld [vmem:[%s15561_s9 + $0x4e0] sm:$0xff]  }
 0x218   : > { %13703 = vmatprep.subr.bf16.mxu0 %v14740_v55 }
 0x219   : > { %13120 = vmatmul.mubr.bf16.vlgmr.msra.gmra.mrb[0].mxu1 %v14741_v56  ;;  %v14799_v56 = vld [vmem:[%s16931_s1 + $0x3e8] sm:$0xff]  }
 0x21a   : > { %13128 = vmatpush3.bf16.msra.mxu1 %v14738_v54  ;;  %13696 = vmatmul.mubr.bf16.vlgmr.msra.gmra.mrb[0].mxu0 %v14742_v57  ;;  %v14797_v54 = vld [vmem:[%s16931_s1 + $0x3e0] sm:$0xff]   ;;  %v14800_v57 = vld [vmem:[%s16931_s1 + $0x9e8] sm:$0xff]  }
 0x21b   : > { %13704 = vmatpush3.bf16.msra.mxu0 %v14740_v55  ;;  %13129 = vmatprep.subr.bf16.mxu1 %v14743_v58  ;;  %v14798_v55 = vld [vmem:[%s16931_s1 + $0x9e0] sm:$0xff]  }
 0x21c   : > { %13705 = vmatprep.subr.bf16.mxu0 %v14744_v59  ;;  %13123 = vmatprep.mubr.bf16.mxu1 %v14753_v60  ;;  %v14807_v60 = vld [vmem:[%s16931_s1 + $0x3f8] sm:$0xff]  }
 0x21d   : > { %13699 = vmatprep.mubr.bf16.mxu0 %v14755_v62  ;;  %v14810_v62 = vld [vmem:[%s16931_s1 + $0x400] sm:$0xff]  }
 0x21e   : > { %13130 = vmatpush3.bf16.msra.mxu1 %v14743_v58  ;;  %v14802_v58 = vld [vmem:[%s16931_s1 + $0x3f0] sm:$0xff]  }
 0x21f   : > { %13706 = vmatpush3.bf16.msra.mxu0 %v14744_v59  ;;  %13131 = vmatprep.subr.bf16.mxu1 %v14745_v61  ;;  %v14804_v59 = vld [vmem:[%s16931_s1 + $0x9f0] sm:$0xff]  }
 0x220   : > { %13707 = vmatprep.subr.bf16.mxu0 %v14746_v63 }
 0x221   : > { %13124 = vmatmul.mubr.bf16.gmra.mrb[4].mxu1 %v14757_v0  ;;  %v14813_v0 = vld [vmem:[%s15561_s9 + $0x1e8] sm:$0xff]  }
 0x222   : > { %13132 = vmatpush3.bf16.msra.mxu1 %v14745_v61  ;;  %13700 = vmatmul.mubr.bf16.gmra.mrb[4].mxu0 %v14758_v1  ;;  %v14808_v61 = vld [vmem:[%s16931_s1 + $0x9f8] sm:$0xff]   ;;  %v14814_v1 = vld [vmem:[%s15561_s9 + $0x4e8] sm:$0xff]  }
 0x223   : > { %13708 = vmatpush3.bf16.msra.mxu0 %v14746_v63  ;;  %13133 = vmatprep.subr.bf16.mxu1 %v14747_v2  ;;  %v14812_v63 = vld [vmem:[%s16931_s1 + $0xa00] sm:$0xff]  }
 0x224   : > { %13709 = vmatprep.subr.bf16.mxu0 %v14748_v3  ;;  %13143 = vmatprep.mubr.bf16.mxu1 %v14761_v4  ;;  %v14825_v4 = vld [vmem:[%s15561_s9 + $0x1f0] sm:$0xff]  }
 0x225   : > { %13719 = vmatprep.mubr.bf16.mxu0 %v14763_v5  ;;  %v14817_v5 = vld [vmem:[%s16931_s1 + $0x410] sm:$0xff]  }
 0x226   : > { %13134 = vmatpush3.bf16.msra.mxu1 %v14747_v2  ;;  %v14815_v2 = vld [vmem:[%s16931_s1 + $0x408] sm:$0xff]  }
 0x227   : > { %13710 = vmatpush3.bf16.msra.mxu0 %v14748_v3  ;;  %13135 = vmatprep.subr.bf16.mxu1 %v14749_v6  ;;  %v14816_v3 = vld [vmem:[%s16931_s1 + $0xa08] sm:$0xff]  }
 0x228   : > { %13711 = vmatprep.subr.bf16.mxu0 %v14750_v7 }
 0x22a   : > { %13136 = vmatpush3.bf16.msra.mxu1 %v14749_v6  ;;  %v14827_v6 = vld [vmem:[%s15561_s9 + $0x4f0] sm:$0xff]  }
 0x22b   : > { %13712 = vmatpush3.bf16.msra.mxu0 %v14750_v7  ;;  %13137 = vmatprep.subr.bf16.mxu1 %v14751_v8  ;;  %v14818_v7 = vld [vmem:[%s16931_s1 + $0xa10] sm:$0xff]  }
 0x22c   : > { %13713 = vmatprep.subr.bf16.mxu0 %v14752_v9 }
 0x22e   : > { %13138 = vmatpush3.bf16.msra.mxu1 %v14751_v8  ;;  %v14829_v8 = vld [vmem:[%s15561_s9 + $0x1f8] sm:$0xff]  }
 0x22f   : > { %13714 = vmatpush3.bf16.msra.mxu0 %v14752_v9  ;;  %13139 = vmatprep.subr.bf16.mxu1 %v14754_v10  ;;  %v14830_v9 = vld [vmem:[%s15561_s9 + $0x4f8] sm:$0xff]  }
 0x230   : > { %13715 = vmatprep.subr.bf16.mxu0 %v14756_v11 }
 0x232   : > { %13140 = vmatpush3.bf16.msra.mxu1 %v14754_v10  ;;  %v14819_v10 = vld [vmem:[%s16931_s1 + $0x418] sm:$0xff]  }
 0x233   : > { %13716 = vmatpush3.bf16.msra.mxu0 %v14756_v11  ;;  %13141 = vmatprep.subr.bf16.mxu1 %v14759_v12  ;;  %v14820_v11 = vld [vmem:[%s16931_s1 + $0xa18] sm:$0xff]  }
 0x234   : > { %13717 = vmatprep.subr.bf16.mxu0 %v14760_v13 }
 0x236   : > { %13142 = vmatpush3.bf16.msra.mxu1 %v14759_v12  ;;  %v14833_v12 = vld [vmem:[%s15561_s9 + $0x200] sm:$0xff]  }
 0x237   : > { %13718 = vmatpush3.bf16.msra.mxu0 %v14760_v13  ;;  %13151 = vmatprep.subr.bf16.mxu1 %v14762_v14  ;;  %v14835_v13 = vld [vmem:[%s15561_s9 + $0x500] sm:$0xff]  }
 0x238   : > { %13727 = vmatprep.subr.bf16.mxu0 %v14764_v15 }
 0x239   : > { %13144 = vmatmul.mubr.bf16.vlgmr.msra.gmra.mrb[0].mxu1 %v14765_v16  ;;  %v14823_v16 = vld [vmem:[%s16931_s1 + $0x428] sm:$0xff]  }
 0x23a   : > { %13152 = vmatpush3.bf16.msra.mxu1 %v14762_v14  ;;  %13720 = vmatmul.mubr.bf16.vlgmr.msra.gmra.mrb[0].mxu0 %v14766_v17  ;;  %v14821_v14 = vld [vmem:[%s16931_s1 + $0x420] sm:$0xff]   ;;  %v14824_v17 = vld [vmem:[%s16931_s1 + $0xa28] sm:$0xff]  }
 0x23b   : > { %13728 = vmatpush3.bf16.msra.mxu0 %v14764_v15  ;;  %13153 = vmatprep.subr.bf16.mxu1 %v14767_v18  ;;  %v14822_v15 = vld [vmem:[%s16931_s1 + $0xa20] sm:$0xff]  }
 0x23c   : > { %13729 = vmatprep.subr.bf16.mxu0 %v14768_v19  ;;  %13147 = vmatprep.mubr.bf16.mxu1 %v14777_v20  ;;  %v14831_v20 = vld [vmem:[%s16931_s1 + $0x438] sm:$0xff]  }
 0x23d   : > { %13723 = vmatprep.mubr.bf16.mxu0 %v14779_v22  ;;  %v14834_v22 = vld [vmem:[%s16931_s1 + $0x440] sm:$0xff]  }
 0x23e   : > { %13154 = vmatpush3.bf16.msra.mxu1 %v14767_v18  ;;  %v14826_v18 = vld [vmem:[%s16931_s1 + $0x430] sm:$0xff]  }
 0x23f   : > { %13730 = vmatpush3.bf16.msra.mxu0 %v14768_v19  ;;  %13155 = vmatprep.subr.bf16.mxu1 %v14769_v21  ;;  %v14828_v19 = vld [vmem:[%s16931_s1 + $0xa30] sm:$0xff]  }
 0x240   : > { %13731 = vmatprep.subr.bf16.mxu0 %v14770_v23 }
 0x241   : > { %13148 = vmatmul.mubr.bf16.gmra.mrb[4].mxu1 %v14781_v24  ;;  %v14837_v24 = vld [vmem:[%s15561_s9 + $0x208] sm:$0xff]  }
 0x242   : > { %13156 = vmatpush3.bf16.msra.mxu1 %v14769_v21  ;;  %13724 = vmatmul.mubr.bf16.gmra.mrb[4].mxu0 %v14782_v25  ;;  %v14832_v21 = vld [vmem:[%s16931_s1 + $0xa38] sm:$0xff]   ;;  %v14838_v25 = vld [vmem:[%s15561_s9 + $0x508] sm:$0xff]  }
 0x243   : > { %13732 = vmatpush3.bf16.msra.mxu0 %v14770_v23  ;;  %13157 = vmatprep.subr.bf16.mxu1 %v14771_v26  ;;  %v14836_v23 = vld [vmem:[%s16931_s1 + $0xa40] sm:$0xff]  }
 0x244   : > { %13733 = vmatprep.subr.bf16.mxu0 %v14772_v27  ;;  %13167 = vmatprep.mubr.bf16.mxu1 %v14785_v28  ;;  %v14849_v28 = vld [vmem:[%s15561_s9 + $0x210] sm:$0xff]  }
 0x245   : > { %13743 = vmatprep.mubr.bf16.mxu0 %v14787_v29  ;;  %v14841_v29 = vld [vmem:[%s16931_s1 + $0x450] sm:$0xff]  }
 0x246   : > { %13158 = vmatpush3.bf16.msra.mxu1 %v14771_v26  ;;  %v14839_v26 = vld [vmem:[%s16931_s1 + $0x448] sm:$0xff]  }
 0x247   : > { %13734 = vmatpush3.bf16.msra.mxu0 %v14772_v27  ;;  %13159 = vmatprep.subr.bf16.mxu1 %v14773_v30  ;;  %v14840_v27 = vld [vmem:[%s16931_s1 + $0xa48] sm:$0xff]  }
 0x248   : > { %13735 = vmatprep.subr.bf16.mxu0 %v14774_v31 }
 0x24a   : > { %13160 = vmatpush3.bf16.msra.mxu1 %v14773_v30  ;;  %v14851_v30 = vld [vmem:[%s15561_s9 + $0x510] sm:$0xff]  }
 0x24b   : > { %13736 = vmatpush3.bf16.msra.mxu0 %v14774_v31  ;;  %13161 = vmatprep.subr.bf16.mxu1 %v14775_v32  ;;  %v14842_v31 = vld [vmem:[%s16931_s1 + $0xa50] sm:$0xff]  }
 0x24c   : > { %13737 = vmatprep.subr.bf16.mxu0 %v14776_v33 }
 0x24e   : > { %13162 = vmatpush3.bf16.msra.mxu1 %v14775_v32  ;;  %v14853_v32 = vld [vmem:[%s15561_s9 + $0x218] sm:$0xff]  }
 0x24f   : > { %13738 = vmatpush3.bf16.msra.mxu0 %v14776_v33  ;;  %13163 = vmatprep.subr.bf16.mxu1 %v14778_v34  ;;  %v14854_v33 = vld [vmem:[%s15561_s9 + $0x518] sm:$0xff]  }
 0x250   : > { %13739 = vmatprep.subr.bf16.mxu0 %v14780_v35 }
 0x252   : > { %13164 = vmatpush3.bf16.msra.mxu1 %v14778_v34  ;;  %v14843_v34 = vld [vmem:[%s16931_s1 + $0x458] sm:$0xff]  }
 0x253   : > { %13740 = vmatpush3.bf16.msra.mxu0 %v14780_v35  ;;  %13165 = vmatprep.subr.bf16.mxu1 %v14783_v36  ;;  %v14844_v35 = vld [vmem:[%s16931_s1 + $0xa58] sm:$0xff]  }
 0x254   : > { %13741 = vmatprep.subr.bf16.mxu0 %v14784_v37 }
 0x256   : > { %13166 = vmatpush3.bf16.msra.mxu1 %v14783_v36  ;;  %v14857_v36 = vld [vmem:[%s15561_s9 + $0x220] sm:$0xff]  }
 0x257   : > { %13742 = vmatpush3.bf16.msra.mxu0 %v14784_v37  ;;  %13175 = vmatprep.subr.bf16.mxu1 %v14786_v38  ;;  %v14859_v37 = vld [vmem:[%s15561_s9 + $0x520] sm:$0xff]  }
 0x258   : > { %13751 = vmatprep.subr.bf16.mxu0 %v14788_v39 }
 0x259   : > { %13168 = vmatmul.mubr.bf16.vlgmr.msra.gmra.mrb[0].mxu1 %v14789_v40  ;;  %v14847_v40 = vld [vmem:[%s16931_s1 + $0x468] sm:$0xff]  }
 0x25a   : > { %13176 = vmatpush3.bf16.msra.mxu1 %v14786_v38  ;;  %13744 = vmatmul.mubr.bf16.vlgmr.msra.gmra.mrb[0].mxu0 %v14790_v41  ;;  %v14845_v38 = vld [vmem:[%s16931_s1 + $0x460] sm:$0xff]   ;;  %v14848_v41 = vld [vmem:[%s16931_s1 + $0xa68] sm:$0xff]  }
 0x25b   : > { %13752 = vmatpush3.bf16.msra.mxu0 %v14788_v39  ;;  %13177 = vmatprep.subr.bf16.mxu1 %v14791_v42  ;;  %v14846_v39 = vld [vmem:[%s16931_s1 + $0xa60] sm:$0xff]  }
 0x25c   : > { %13753 = vmatprep.subr.bf16.mxu0 %v14792_v43  ;;  %13171 = vmatprep.mubr.bf16.mxu1 %v14801_v44  ;;  %v14855_v44 = vld [vmem:[%s16931_s1 + $0x478] sm:$0xff]  }
 0x25d   : > { %13747 = vmatprep.mubr.bf16.mxu0 %v14803_v46  ;;  %v14858_v46 = vld [vmem:[%s16931_s1 + $0x480] sm:$0xff]  }
 0x25e   : > { %13178 = vmatpush3.bf16.msra.mxu1 %v14791_v42  ;;  %v14850_v42 = vld [vmem:[%s16931_s1 + $0x470] sm:$0xff]  }
 0x25f   : > { %13754 = vmatpush3.bf16.msra.mxu0 %v14792_v43  ;;  %13179 = vmatprep.subr.bf16.mxu1 %v14793_v45  ;;  %v14852_v43 = vld [vmem:[%s16931_s1 + $0xa70] sm:$0xff]  }
 0x260   : > { %13755 = vmatprep.subr.bf16.mxu0 %v14794_v47 }
 0x261   : > { %13172 = vmatmul.mubr.bf16.gmra.mrb[4].mxu1 %v14805_v48  ;;  %v14861_v48 = vld [vmem:[%s15561_s9 + $0x228] sm:$0xff]  }
 0x262   : > { %13180 = vmatpush3.bf16.msra.mxu1 %v14793_v45  ;;  %13748 = vmatmul.mubr.bf16.gmra.mrb[4].mxu0 %v14806_v49  ;;  %v14856_v45 = vld [vmem:[%s16931_s1 + $0xa78] sm:$0xff]   ;;  %v14862_v49 = vld [vmem:[%s15561_s9 + $0x528] sm:$0xff]  }
 0x263   : > { %13756 = vmatpush3.bf16.msra.mxu0 %v14794_v47  ;;  %13181 = vmatprep.subr.bf16.mxu1 %v14795_v50  ;;  %v14860_v47 = vld [vmem:[%s16931_s1 + $0xa80] sm:$0xff]  }
 0x264   : > { %13757 = vmatprep.subr.bf16.mxu0 %v14796_v51  ;;  %13191 = vmatprep.mubr.bf16.mxu1 %v14809_v52  ;;  %v14873_v52 = vld [vmem:[%s15561_s9 + $0x230] sm:$0xff]  }
 0x265   : > { %13767 = vmatprep.mubr.bf16.mxu0 %v14811_v53  ;;  %v14875_v53 = vld [vmem:[%s15561_s9 + $0x530] sm:$0xff]  }
 0x266   : > { %13182 = vmatpush3.bf16.msra.mxu1 %v14795_v50  ;;  %v14863_v50 = vld [vmem:[%s16931_s1 + $0x488] sm:$0xff]  }
 0x267   : > { %13758 = vmatpush3.bf16.msra.mxu0 %v14796_v51  ;;  %13183 = vmatprep.subr.bf16.mxu1 %v14797_v54  ;;  %v14864_v51 = vld [vmem:[%s16931_s1 + $0xa88] sm:$0xff]  }
 0x268   : > { %13759 = vmatprep.subr.bf16.mxu0 %v14798_v55 }
 0x26a   : > { %13184 = vmatpush3.bf16.msra.mxu1 %v14797_v54  ;;  %v14865_v54 = vld [vmem:[%s16931_s1 + $0x490] sm:$0xff]  }
 0x26b   : > { %13760 = vmatpush3.bf16.msra.mxu0 %v14798_v55  ;;  %13185 = vmatprep.subr.bf16.mxu1 %v14799_v56  ;;  %v14866_v55 = vld [vmem:[%s16931_s1 + $0xa90] sm:$0xff]  }
 0x26c   : > { %13761 = vmatprep.subr.bf16.mxu0 %v14800_v57 }
 0x26e   : > { %13186 = vmatpush3.bf16.msra.mxu1 %v14799_v56  ;;  %v14877_v56 = vld [vmem:[%s15561_s9 + $0x238] sm:$0xff]  }
 0x26f   : > { %13762 = vmatpush3.bf16.msra.mxu0 %v14800_v57  ;;  %13187 = vmatprep.subr.bf16.mxu1 %v14802_v58  ;;  %v14878_v57 = vld [vmem:[%s15561_s9 + $0x538] sm:$0xff]  }
 0x270   : > { %13763 = vmatprep.subr.bf16.mxu0 %v14804_v59 }
 0x272   : > { %13188 = vmatpush3.bf16.msra.mxu1 %v14802_v58  ;;  %v14867_v58 = vld [vmem:[%s16931_s1 + $0x498] sm:$0xff]  }
 0x273   : > { %13764 = vmatpush3.bf16.msra.mxu0 %v14804_v59  ;;  %13189 = vmatprep.subr.bf16.mxu1 %v14807_v60  ;;  %v14868_v59 = vld [vmem:[%s16931_s1 + $0xa98] sm:$0xff]  }
 0x274   : > { %13765 = vmatprep.subr.bf16.mxu0 %v14808_v61 }
 0x276   : > { %13190 = vmatpush3.bf16.msra.mxu1 %v14807_v60  ;;  %v14881_v60 = vld [vmem:[%s15561_s9 + $0x240] sm:$0xff]  }
 0x277   : > { %13766 = vmatpush3.bf16.msra.mxu0 %v14808_v61  ;;  %13199 = vmatprep.subr.bf16.mxu1 %v14810_v62  ;;  %v14883_v61 = vld [vmem:[%s15561_s9 + $0x540] sm:$0xff]  }
 0x278   : > { %13775 = vmatprep.subr.bf16.mxu0 %v14812_v63 }
 0x279   : > { %13192 = vmatmul.mubr.bf16.vlgmr.msra.gmra.mrb[0].mxu1 %v14813_v0  ;;  %v14871_v0 = vld [vmem:[%s16931_s1 + $0x4a8] sm:$0xff]  }
 0x27a   : > { %13200 = vmatpush3.bf16.msra.mxu1 %v14810_v62  ;;  %13768 = vmatmul.mubr.bf16.vlgmr.msra.gmra.mrb[0].mxu0 %v14814_v1  ;;  %v14869_v62 = vld [vmem:[%s16931_s1 + $0x4a0] sm:$0xff]   ;;  %v14872_v1 = vld [vmem:[%s16931_s1 + $0xaa8] sm:$0xff]  }
 0x27b   : > { %13776 = vmatpush3.bf16.msra.mxu0 %v14812_v63  ;;  %13201 = vmatprep.subr.bf16.mxu1 %v14815_v2  ;;  %v14870_v63 = vld [vmem:[%s16931_s1 + $0xaa0] sm:$0xff]  }
 0x27c   : > { %13777 = vmatprep.subr.bf16.mxu0 %v14816_v3  ;;  %13195 = vmatprep.mubr.bf16.mxu1 %v14825_v4  ;;  %v14879_v4 = vld [vmem:[%s16931_s1 + $0x4b8] sm:$0xff]  }
 0x27d   : > { %13771 = vmatprep.mubr.bf16.mxu0 %v14827_v6  ;;  %v14882_v6 = vld [vmem:[%s16931_s1 + $0x4c0] sm:$0xff]  }
 0x27e   : > { %13202 = vmatpush3.bf16.msra.mxu1 %v14815_v2  ;;  %v14874_v2 = vld [vmem:[%s16931_s1 + $0x4b0] sm:$0xff]  }
 0x27f   : > { %13778 = vmatpush3.bf16.msra.mxu0 %v14816_v3  ;;  %13203 = vmatprep.subr.bf16.mxu1 %v14817_v5  ;;  %v14876_v3 = vld [vmem:[%s16931_s1 + $0xab0] sm:$0xff]  }
 0x280   : > { %13779 = vmatprep.subr.bf16.mxu0 %v14818_v7 }
 0x281   : > { %13196 = vmatmul.mubr.bf16.gmra.mrb[4].mxu1 %v14829_v8  ;;  %v14885_v8 = vld [vmem:[%s15561_s9 + $0x248] sm:$0xff]  }
 0x282   : > { %13204 = vmatpush3.bf16.msra.mxu1 %v14817_v5  ;;  %13772 = vmatmul.mubr.bf16.gmra.mrb[4].mxu0 %v14830_v9  ;;  %v14880_v5 = vld [vmem:[%s16931_s1 + $0xab8] sm:$0xff]   ;;  %v14886_v9 = vld [vmem:[%s15561_s9 + $0x548] sm:$0xff]  }
 0x283   : > { %13780 = vmatpush3.bf16.msra.mxu0 %v14818_v7  ;;  %13205 = vmatprep.subr.bf16.mxu1 %v14819_v10  ;;  %v14884_v7 = vld [vmem:[%s16931_s1 + $0xac0] sm:$0xff]  }
 0x284   : > { %13781 = vmatprep.subr.bf16.mxu0 %v14820_v11  ;;  %13215 = vmatprep.mubr.bf16.mxu1 %v14833_v12  ;;  %v14897_v12 = vld [vmem:[%s15561_s9 + $0x250] sm:$0xff]  }
 0x285   : > { %13791 = vmatprep.mubr.bf16.mxu0 %v14835_v13  ;;  %v14899_v13 = vld [vmem:[%s15561_s9 + $0x550] sm:$0xff]  }
 0x286   : > { %13206 = vmatpush3.bf16.msra.mxu1 %v14819_v10  ;;  %v14887_v10 = vld [vmem:[%s16931_s1 + $0x4c8] sm:$0xff]  }
 0x287   : > { %13782 = vmatpush3.bf16.msra.mxu0 %v14820_v11  ;;  %13207 = vmatprep.subr.bf16.mxu1 %v14821_v14  ;;  %v14888_v11 = vld [vmem:[%s16931_s1 + $0xac8] sm:$0xff]  }
 0x288   : > { %13783 = vmatprep.subr.bf16.mxu0 %v14822_v15 }
 0x28a   : > { %13208 = vmatpush3.bf16.msra.mxu1 %v14821_v14  ;;  %v14889_v14 = vld [vmem:[%s16931_s1 + $0x4d0] sm:$0xff]  }
 0x28b   : > { %13784 = vmatpush3.bf16.msra.mxu0 %v14822_v15  ;;  %13209 = vmatprep.subr.bf16.mxu1 %v14823_v16  ;;  %v14890_v15 = vld [vmem:[%s16931_s1 + $0xad0] sm:$0xff]  }
 0x28c   : > { %13785 = vmatprep.subr.bf16.mxu0 %v14824_v17 }
 0x28e   : > { %13210 = vmatpush3.bf16.msra.mxu1 %v14823_v16  ;;  %v14901_v16 = vld [vmem:[%s15561_s9 + $0x258] sm:$0xff]  }
 0x28f   : > { %13786 = vmatpush3.bf16.msra.mxu0 %v14824_v17  ;;  %13211 = vmatprep.subr.bf16.mxu1 %v14826_v18  ;;  %v14902_v17 = vld [vmem:[%s15561_s9 + $0x558] sm:$0xff]  }
 0x290   : > { %13787 = vmatprep.subr.bf16.mxu0 %v14828_v19 }
 0x292   : > { %13212 = vmatpush3.bf16.msra.mxu1 %v14826_v18  ;;  %v14891_v18 = vld [vmem:[%s16931_s1 + $0x4d8] sm:$0xff]  }
 0x293   : > { %13788 = vmatpush3.bf16.msra.mxu0 %v14828_v19  ;;  %13213 = vmatprep.subr.bf16.mxu1 %v14831_v20  ;;  %v14892_v19 = vld [vmem:[%s16931_s1 + $0xad8] sm:$0xff]  }
 0x294   : > { %13789 = vmatprep.subr.bf16.mxu0 %v14832_v21 }
 0x296   : > { %13214 = vmatpush3.bf16.msra.mxu1 %v14831_v20  ;;  %v14905_v20 = vld [vmem:[%s15561_s9 + $0x260] sm:$0xff]  }
 0x297   : > { %13790 = vmatpush3.bf16.msra.mxu0 %v14832_v21  ;;  %13223 = vmatprep.subr.bf16.mxu1 %v14834_v22  ;;  %v14907_v21 = vld [vmem:[%s15561_s9 + $0x560] sm:$0xff]  }
 0x298   : > { %13799 = vmatprep.subr.bf16.mxu0 %v14836_v23 }
 0x299   : > { %13216 = vmatmul.mubr.bf16.vlgmr.msra.gmra.mrb[0].mxu1 %v14837_v24  ;;  %v14895_v24 = vld [vmem:[%s16931_s1 + $0x4e8] sm:$0xff]  }
 0x29a   : > { %13224 = vmatpush3.bf16.msra.mxu1 %v14834_v22  ;;  %13792 = vmatmul.mubr.bf16.vlgmr.msra.gmra.mrb[0].mxu0 %v14838_v25  ;;  %v14893_v22 = vld [vmem:[%s16931_s1 + $0x4e0] sm:$0xff]   ;;  %v14896_v25 = vld [vmem:[%s16931_s1 + $0xae8] sm:$0xff]  }
 0x29b   : > { %13800 = vmatpush3.bf16.msra.mxu0 %v14836_v23  ;;  %13225 = vmatprep.subr.bf16.mxu1 %v14839_v26  ;;  %v14894_v23 = vld [vmem:[%s16931_s1 + $0xae0] sm:$0xff]  }
 0x29c   : > { %13801 = vmatprep.subr.bf16.mxu0 %v14840_v27  ;;  %13219 = vmatprep.mubr.bf16.mxu1 %v14849_v28  ;;  %v14903_v28 = vld [vmem:[%s16931_s1 + $0x4f8] sm:$0xff]  }
 0x29d   : > { %13795 = vmatprep.mubr.bf16.mxu0 %v14851_v30  ;;  %v14906_v30 = vld [vmem:[%s16931_s1 + $0x500] sm:$0xff]  }
 0x29e   : > { %13226 = vmatpush3.bf16.msra.mxu1 %v14839_v26  ;;  %v14898_v26 = vld [vmem:[%s16931_s1 + $0x4f0] sm:$0xff]  }
 0x29f   : > { %13802 = vmatpush3.bf16.msra.mxu0 %v14840_v27  ;;  %13227 = vmatprep.subr.bf16.mxu1 %v14841_v29  ;;  %v14900_v27 = vld [vmem:[%s16931_s1 + $0xaf0] sm:$0xff]  }
 0x2a0   : > { %13803 = vmatprep.subr.bf16.mxu0 %v14842_v31 }
 0x2a1   : > { %13220 = vmatmul.mubr.bf16.gmra.mrb[4].mxu1 %v14853_v32  ;;  %v14909_v32 = vld [vmem:[%s15561_s9 + $0x268] sm:$0xff]  }
 0x2a2   : > { %13228 = vmatpush3.bf16.msra.mxu1 %v14841_v29  ;;  %13796 = vmatmul.mubr.bf16.gmra.mrb[4].mxu0 %v14854_v33  ;;  %v14904_v29 = vld [vmem:[%s16931_s1 + $0xaf8] sm:$0xff]   ;;  %v14910_v33 = vld [vmem:[%s15561_s9 + $0x568] sm:$0xff]  }
 0x2a3   : > { %13804 = vmatpush3.bf16.msra.mxu0 %v14842_v31  ;;  %13229 = vmatprep.subr.bf16.mxu1 %v14843_v34  ;;  %v14908_v31 = vld [vmem:[%s16931_s1 + $0xb00] sm:$0xff]  }
 0x2a4   : > { %13805 = vmatprep.subr.bf16.mxu0 %v14844_v35  ;;  %13239 = vmatprep.mubr.bf16.mxu1 %v14857_v36  ;;  %v14921_v36 = vld [vmem:[%s15561_s9 + $0x270] sm:$0xff]  }
 0x2a5   : > { %13815 = vmatprep.mubr.bf16.mxu0 %v14859_v37  ;;  %v14923_v37 = vld [vmem:[%s15561_s9 + $0x570] sm:$0xff]  }
 0x2a6   : > { %13230 = vmatpush3.bf16.msra.mxu1 %v14843_v34  ;;  %v14911_v34 = vld [vmem:[%s16931_s1 + $0x508] sm:$0xff]  }
 0x2a7   : > { %13806 = vmatpush3.bf16.msra.mxu0 %v14844_v35  ;;  %13231 = vmatprep.subr.bf16.mxu1 %v14845_v38  ;;  %v14912_v35 = vld [vmem:[%s16931_s1 + $0xb08] sm:$0xff]  }
 0x2a8   : > { %13807 = vmatprep.subr.bf16.mxu0 %v14846_v39 }
 0x2aa   : > { %13232 = vmatpush3.bf16.msra.mxu1 %v14845_v38  ;;  %v14913_v38 = vld [vmem:[%s16931_s1 + $0x510] sm:$0xff]  }
 0x2ab   : > { %13808 = vmatpush3.bf16.msra.mxu0 %v14846_v39  ;;  %13233 = vmatprep.subr.bf16.mxu1 %v14847_v40  ;;  %v14914_v39 = vld [vmem:[%s16931_s1 + $0xb10] sm:$0xff]  }
 0x2ac   : > { %13809 = vmatprep.subr.bf16.mxu0 %v14848_v41 }
 0x2ae   : > { %13234 = vmatpush3.bf16.msra.mxu1 %v14847_v40  ;;  %v14925_v40 = vld [vmem:[%s15561_s9 + $0x278] sm:$0xff]  }
 0x2af   : > { %13810 = vmatpush3.bf16.msra.mxu0 %v14848_v41  ;;  %13235 = vmatprep.subr.bf16.mxu1 %v14850_v42  ;;  %v14926_v41 = vld [vmem:[%s15561_s9 + $0x578] sm:$0xff]  }
 0x2b0   : > { %13811 = vmatprep.subr.bf16.mxu0 %v14852_v43 }
 0x2b2   : > { %13236 = vmatpush3.bf16.msra.mxu1 %v14850_v42  ;;  %v14915_v42 = vld [vmem:[%s16931_s1 + $0x518] sm:$0xff]  }
 0x2b3   : > { %13812 = vmatpush3.bf16.msra.mxu0 %v14852_v43  ;;  %13237 = vmatprep.subr.bf16.mxu1 %v14855_v44  ;;  %v14916_v43 = vld [vmem:[%s16931_s1 + $0xb18] sm:$0xff]  }
 0x2b4   : > { %13813 = vmatprep.subr.bf16.mxu0 %v14856_v45 }
 0x2b6   : > { %13238 = vmatpush3.bf16.msra.mxu1 %v14855_v44  ;;  %v14929_v44 = vld [vmem:[%s15561_s9 + $0x280] sm:$0xff]  }
 0x2b7   : > { %13814 = vmatpush3.bf16.msra.mxu0 %v14856_v45  ;;  %13247 = vmatprep.subr.bf16.mxu1 %v14858_v46  ;;  %v14931_v45 = vld [vmem:[%s15561_s9 + $0x580] sm:$0xff]  }
 0x2b8   : > { %13823 = vmatprep.subr.bf16.mxu0 %v14860_v47 }
 0x2b9   : > { %13240 = vmatmul.mubr.bf16.vlgmr.msra.gmra.mrb[0].mxu1 %v14861_v48  ;;  %v14919_v48 = vld [vmem:[%s16931_s1 + $0x528] sm:$0xff]  }
 0x2ba   : > { %13248 = vmatpush3.bf16.msra.mxu1 %v14858_v46  ;;  %13816 = vmatmul.mubr.bf16.vlgmr.msra.gmra.mrb[0].mxu0 %v14862_v49  ;;  %v14917_v46 = vld [vmem:[%s16931_s1 + $0x520] sm:$0xff]   ;;  %v14920_v49 = vld [vmem:[%s16931_s1 + $0xb28] sm:$0xff]  }
 0x2bb   : > { %13824 = vmatpush3.bf16.msra.mxu0 %v14860_v47  ;;  %13249 = vmatprep.subr.bf16.mxu1 %v14863_v50  ;;  %v14918_v47 = vld [vmem:[%s16931_s1 + $0xb20] sm:$0xff]  }
 0x2bc   : > { %13825 = vmatprep.subr.bf16.mxu0 %v14864_v51  ;;  %13243 = vmatprep.mubr.bf16.mxu1 %v14873_v52  ;;  %v14927_v52 = vld [vmem:[%s16931_s1 + $0x538] sm:$0xff]  }
 0x2bd   : > { %13819 = vmatprep.mubr.bf16.mxu0 %v14875_v53  ;;  %v14928_v53 = vld [vmem:[%s16931_s1 + $0xb38] sm:$0xff]  }
 0x2be   : > { %13250 = vmatpush3.bf16.msra.mxu1 %v14863_v50  ;;  %v14922_v50 = vld [vmem:[%s16931_s1 + $0x530] sm:$0xff]  }
 0x2bf   : > { %13826 = vmatpush3.bf16.msra.mxu0 %v14864_v51  ;;  %13251 = vmatprep.subr.bf16.mxu1 %v14865_v54  ;;  %v14924_v51 = vld [vmem:[%s16931_s1 + $0xb30] sm:$0xff]  }
 0x2c0   : > { %13827 = vmatprep.subr.bf16.mxu0 %v14866_v55 }
 0x2c1   : > { %13244 = vmatmul.mubr.bf16.gmra.mrb[4].mxu1 %v14877_v56  ;;  %v14933_v56 = vld [vmem:[%s15561_s9 + $0x288] sm:$0xff]  }
 0x2c2   : > { %13252 = vmatpush3.bf16.msra.mxu1 %v14865_v54  ;;  %13820 = vmatmul.mubr.bf16.gmra.mrb[4].mxu0 %v14878_v57  ;;  %v14930_v54 = vld [vmem:[%s16931_s1 + $0x540] sm:$0xff]   ;;  %v14934_v57 = vld [vmem:[%s15561_s9 + $0x588] sm:$0xff]  }
 0x2c3   : > { %13828 = vmatpush3.bf16.msra.mxu0 %v14866_v55  ;;  %13253 = vmatprep.subr.bf16.mxu1 %v14867_v58  ;;  %v14932_v55 = vld [vmem:[%s16931_s1 + $0xb40] sm:$0xff]  }
 0x2c4   : > { %13829 = vmatprep.subr.bf16.mxu0 %v14868_v59  ;;  %13263 = vmatprep.mubr.bf16.mxu1 %v14881_v60  ;;  %v14945_v60 = vld [vmem:[%s15561_s9 + $0x290] sm:$0xff]  }
 0x2c5   : > { %13839 = vmatprep.mubr.bf16.mxu0 %v14883_v61  ;;  %v14947_v61 = vld [vmem:[%s15561_s9 + $0x590] sm:$0xff]  }
 0x2c6   : > { %13254 = vmatpush3.bf16.msra.mxu1 %v14867_v58  ;;  %v14935_v58 = vld [vmem:[%s16931_s1 + $0x548] sm:$0xff]  }
 0x2c7   : > { %13830 = vmatpush3.bf16.msra.mxu0 %v14868_v59  ;;  %13255 = vmatprep.subr.bf16.mxu1 %v14869_v62  ;;  %v14936_v59 = vld [vmem:[%s16931_s1 + $0xb48] sm:$0xff]  }
 0x2c8   : > { %13831 = vmatprep.subr.bf16.mxu0 %v14870_v63 }
 0x2ca   : > { %13256 = vmatpush3.bf16.msra.mxu1 %v14869_v62  ;;  %v14937_v62 = vld [vmem:[%s16931_s1 + $0x550] sm:$0xff]  }
 0x2cb   : > { %13832 = vmatpush3.bf16.msra.mxu0 %v14870_v63  ;;  %13257 = vmatprep.subr.bf16.mxu1 %v14871_v0  ;;  %v14938_v63 = vld [vmem:[%s16931_s1 + $0xb50] sm:$0xff]  }
 0x2cc   : > { %13833 = vmatprep.subr.bf16.mxu0 %v14872_v1 }
 0x2ce   : > { %13258 = vmatpush3.bf16.msra.mxu1 %v14871_v0  ;;  %v14949_v0 = vld [vmem:[%s15561_s9 + $0x298] sm:$0xff]  }
 0x2cf   : > { %13834 = vmatpush3.bf16.msra.mxu0 %v14872_v1  ;;  %13259 = vmatprep.subr.bf16.mxu1 %v14874_v2  ;;  %v14950_v1 = vld [vmem:[%s15561_s9 + $0x598] sm:$0xff]  }
 0x2d0   : > { %13835 = vmatprep.subr.bf16.mxu0 %v14876_v3 }
 0x2d2   : > { %13260 = vmatpush3.bf16.msra.mxu1 %v14874_v2  ;;  %v14939_v2 = vld [vmem:[%s16931_s1 + $0x558] sm:$0xff]  }
 0x2d3   : > { %13836 = vmatpush3.bf16.msra.mxu0 %v14876_v3  ;;  %13261 = vmatprep.subr.bf16.mxu1 %v14879_v4  ;;  %v14940_v3 = vld [vmem:[%s16931_s1 + $0xb58] sm:$0xff]  }
 0x2d4   : > { %13837 = vmatprep.subr.bf16.mxu0 %v14880_v5 }
 0x2d6   : > { %13262 = vmatpush3.bf16.msra.mxu1 %v14879_v4  ;;  %v14953_v4 = vld [vmem:[%s15561_s9 + $0x2a0] sm:$0xff]  }
 0x2d7   : > { %13838 = vmatpush3.bf16.msra.mxu0 %v14880_v5  ;;  %13271 = vmatprep.subr.bf16.mxu1 %v14882_v6  ;;  %v14955_v5 = vld [vmem:[%s15561_s9 + $0x5a0] sm:$0xff]  }
 0x2d8   : > { %13847 = vmatprep.subr.bf16.mxu0 %v14884_v7 }
 0x2d9   : > { %13264 = vmatmul.mubr.bf16.vlgmr.msra.gmra.mrb[0].mxu1 %v14885_v8  ;;  %v14943_v8 = vld [vmem:[%s16931_s1 + $0x568] sm:$0xff]  }
 0x2da   : > { %13272 = vmatpush3.bf16.msra.mxu1 %v14882_v6  ;;  %13840 = vmatmul.mubr.bf16.vlgmr.msra.gmra.mrb[0].mxu0 %v14886_v9  ;;  %v14941_v6 = vld [vmem:[%s16931_s1 + $0x560] sm:$0xff]   ;;  %v14944_v9 = vld [vmem:[%s16931_s1 + $0xb68] sm:$0xff]  }
 0x2db   : > { %13848 = vmatpush3.bf16.msra.mxu0 %v14884_v7  ;;  %13273 = vmatprep.subr.bf16.mxu1 %v14887_v10  ;;  %v14942_v7 = vld [vmem:[%s16931_s1 + $0xb60] sm:$0xff]  }
 0x2dc   : > { %13849 = vmatprep.subr.bf16.mxu0 %v14888_v11  ;;  %13267 = vmatprep.mubr.bf16.mxu1 %v14897_v12  ;;  %v14951_v12 = vld [vmem:[%s16931_s1 + $0x578] sm:$0xff]  }
 0x2dd   : > { %13843 = vmatprep.mubr.bf16.mxu0 %v14899_v13  ;;  %v14952_v13 = vld [vmem:[%s16931_s1 + $0xb78] sm:$0xff]  }
 0x2de   : > { %13274 = vmatpush3.bf16.msra.mxu1 %v14887_v10  ;;  %v14946_v10 = vld [vmem:[%s16931_s1 + $0x570] sm:$0xff]  }
 0x2df   : > { %13850 = vmatpush3.bf16.msra.mxu0 %v14888_v11  ;;  %13275 = vmatprep.subr.bf16.mxu1 %v14889_v14  ;;  %v14948_v11 = vld [vmem:[%s16931_s1 + $0xb70] sm:$0xff]  }
 0x2e0   : > { %13851 = vmatprep.subr.bf16.mxu0 %v14890_v15 }
 0x2e1   : > { %13268 = vmatmul.mubr.bf16.gmra.mrb[4].mxu1 %v14901_v16  ;;  %v14957_v16 = vld [vmem:[%s15561_s9 + $0x2a8] sm:$0xff]  }
 0x2e2   : > { %13276 = vmatpush3.bf16.msra.mxu1 %v14889_v14  ;;  %13844 = vmatmul.mubr.bf16.gmra.mrb[4].mxu0 %v14902_v17  ;;  %v14954_v14 = vld [vmem:[%s16931_s1 + $0x580] sm:$0xff]   ;;  %v14958_v17 = vld [vmem:[%s15561_s9 + $0x5a8] sm:$0xff]  }
 0x2e3   : > { %13852 = vmatpush3.bf16.msra.mxu0 %v14890_v15  ;;  %13277 = vmatprep.subr.bf16.mxu1 %v14891_v18  ;;  %v14956_v15 = vld [vmem:[%s16931_s1 + $0xb80] sm:$0xff]  }
 0x2e4   : > { %13853 = vmatprep.subr.bf16.mxu0 %v14892_v19  ;;  %13287 = vmatprep.mubr.bf16.mxu1 %v14905_v20  ;;  %v14969_v20 = vld [vmem:[%s15561_s9 + $0x2b0] sm:$0xff]  }
 0x2e5   : > { %13863 = vmatprep.mubr.bf16.mxu0 %v14907_v21  ;;  %v14971_v21 = vld [vmem:[%s15561_s9 + $0x5b0] sm:$0xff]  }
 0x2e6   : > { %13278 = vmatpush3.bf16.msra.mxu1 %v14891_v18  ;;  %v14959_v18 = vld [vmem:[%s16931_s1 + $0x588] sm:$0xff]  }
 0x2e7   : > { %13854 = vmatpush3.bf16.msra.mxu0 %v14892_v19  ;;  %13279 = vmatprep.subr.bf16.mxu1 %v14893_v22  ;;  %v14960_v19 = vld [vmem:[%s16931_s1 + $0xb88] sm:$0xff]  }
 0x2e8   : > { %13855 = vmatprep.subr.bf16.mxu0 %v14894_v23 }
 0x2ea   : > { %13280 = vmatpush3.bf16.msra.mxu1 %v14893_v22  ;;  %v14961_v22 = vld [vmem:[%s16931_s1 + $0x590] sm:$0xff]  }
 0x2eb   : > { %13856 = vmatpush3.bf16.msra.mxu0 %v14894_v23  ;;  %13281 = vmatprep.subr.bf16.mxu1 %v14895_v24  ;;  %v14962_v23 = vld [vmem:[%s16931_s1 + $0xb90] sm:$0xff]  }
 0x2ec   : > { %13857 = vmatprep.subr.bf16.mxu0 %v14896_v25 }
 0x2ee   : > { %13282 = vmatpush3.bf16.msra.mxu1 %v14895_v24  ;;  %v14973_v24 = vld [vmem:[%s15561_s9 + $0x2b8] sm:$0xff]  }
 0x2ef   : > { %13858 = vmatpush3.bf16.msra.mxu0 %v14896_v25  ;;  %13283 = vmatprep.subr.bf16.mxu1 %v14898_v26  ;;  %v14974_v25 = vld [vmem:[%s15561_s9 + $0x5b8] sm:$0xff]  }
 0x2f0   : > { %13859 = vmatprep.subr.bf16.mxu0 %v14900_v27 }
 0x2f2   : > { %13284 = vmatpush3.bf16.msra.mxu1 %v14898_v26  ;;  %v14963_v26 = vld [vmem:[%s16931_s1 + $0x598] sm:$0xff]  }
 0x2f3   : > { %13860 = vmatpush3.bf16.msra.mxu0 %v14900_v27  ;;  %13285 = vmatprep.subr.bf16.mxu1 %v14903_v28  ;;  %v14964_v27 = vld [vmem:[%s16931_s1 + $0xb98] sm:$0xff]  }
 0x2f4   : > { %13861 = vmatprep.subr.bf16.mxu0 %v14904_v29 }
 0x2f6   : > { %13286 = vmatpush3.bf16.msra.mxu1 %v14903_v28  ;;  %v14977_v28 = vld [vmem:[%s15561_s9 + $0x2c0] sm:$0xff]  }
 0x2f7   : > { %13862 = vmatpush3.bf16.msra.mxu0 %v14904_v29  ;;  %13295 = vmatprep.subr.bf16.mxu1 %v14906_v30  ;;  %v14979_v29 = vld [vmem:[%s15561_s9 + $0x5c0] sm:$0xff]  }
 0x2f8   : > { %13871 = vmatprep.subr.bf16.mxu0 %v14908_v31 }
 0x2f9   : > { %13288 = vmatmul.mubr.bf16.vlgmr.msra.gmra.mrb[0].mxu1 %v14909_v32  ;;  %v14967_v32 = vld [vmem:[%s16931_s1 + $0x5a8] sm:$0xff]  }
 0x2fa   : > { %13296 = vmatpush3.bf16.msra.mxu1 %v14906_v30  ;;  %13864 = vmatmul.mubr.bf16.vlgmr.msra.gmra.mrb[0].mxu0 %v14910_v33  ;;  %v14965_v30 = vld [vmem:[%s16931_s1 + $0x5a0] sm:$0xff]   ;;  %v14968_v33 = vld [vmem:[%s16931_s1 + $0xba8] sm:$0xff]  }
 0x2fb   : > { %13872 = vmatpush3.bf16.msra.mxu0 %v14908_v31  ;;  %13297 = vmatprep.subr.bf16.mxu1 %v14911_v34  ;;  %v14966_v31 = vld [vmem:[%s16931_s1 + $0xba0] sm:$0xff]  }
 0x2fc   : > { %13873 = vmatprep.subr.bf16.mxu0 %v14912_v35  ;;  %13291 = vmatprep.mubr.bf16.mxu1 %v14921_v36  ;;  %v14975_v36 = vld [vmem:[%s16931_s1 + $0x5b8] sm:$0xff]  }
 0x2fd   : > { %13867 = vmatprep.mubr.bf16.mxu0 %v14923_v37  ;;  %v14976_v37 = vld [vmem:[%s16931_s1 + $0xbb8] sm:$0xff]  }
 0x2fe   : > { %13298 = vmatpush3.bf16.msra.mxu1 %v14911_v34  ;;  %v14970_v34 = vld [vmem:[%s16931_s1 + $0x5b0] sm:$0xff]  }
 0x2ff   : > { %13874 = vmatpush3.bf16.msra.mxu0 %v14912_v35  ;;  %13299 = vmatprep.subr.bf16.mxu1 %v14913_v38  ;;  %v14972_v35 = vld [vmem:[%s16931_s1 + $0xbb0] sm:$0xff]  }
 0x300   : > { %13875 = vmatprep.subr.bf16.mxu0 %v14914_v39 }
 0x301   : > { %13292 = vmatmul.mubr.bf16.gmra.mrb[4].mxu1 %v14925_v40  ;;  %v14981_v40 = vld [vmem:[%s15561_s9 + $0x2c8] sm:$0xff]  }
 0x302   : > { %13300 = vmatpush3.bf16.msra.mxu1 %v14913_v38  ;;  %13868 = vmatmul.mubr.bf16.gmra.mrb[4].mxu0 %v14926_v41  ;;  %v14978_v38 = vld [vmem:[%s16931_s1 + $0x5c0] sm:$0xff]   ;;  %v14982_v41 = vld [vmem:[%s15561_s9 + $0x5c8] sm:$0xff]  }
 0x303   : > { %13876 = vmatpush3.bf16.msra.mxu0 %v14914_v39  ;;  %13301 = vmatprep.subr.bf16.mxu1 %v14915_v42  ;;  %v14980_v39 = vld [vmem:[%s16931_s1 + $0xbc0] sm:$0xff]  }
 0x304   : > { %13877 = vmatprep.subr.bf16.mxu0 %v14916_v43  ;;  %13311 = vmatprep.mubr.bf16.mxu1 %v14929_v44  ;;  %v14993_v44 = vld [vmem:[%s15561_s9 + $0x2d0] sm:$0xff]  }
 0x305   : > { %13887 = vmatprep.mubr.bf16.mxu0 %v14931_v45  ;;  %v14994_v45 = vld [vmem:[%s15561_s9 + $0x5d0] sm:$0xff]  }
 0x306   : > { %13302 = vmatpush3.bf16.msra.mxu1 %v14915_v42  ;;  %v14983_v42 = vld [vmem:[%s16931_s1 + $0x5c8] sm:$0xff]  }
 0x307   : > { %13878 = vmatpush3.bf16.msra.mxu0 %v14916_v43  ;;  %13303 = vmatprep.subr.bf16.mxu1 %v14917_v46  ;;  %v14984_v43 = vld [vmem:[%s16931_s1 + $0xbc8] sm:$0xff]  }
 0x308   : > { %13879 = vmatprep.subr.bf16.mxu0 %v14918_v47 }
 0x30a   : > { %13304 = vmatpush3.bf16.msra.mxu1 %v14917_v46  ;;  %v14985_v46 = vld [vmem:[%s16931_s1 + $0x5d0] sm:$0xff]  }
 0x30b   : > { %13880 = vmatpush3.bf16.msra.mxu0 %v14918_v47  ;;  %13305 = vmatprep.subr.bf16.mxu1 %v14919_v48  ;;  %v14986_v47 = vld [vmem:[%s16931_s1 + $0xbd0] sm:$0xff]  }
 0x30c   : > { %13881 = vmatprep.subr.bf16.mxu0 %v14920_v49 }
 0x30e   : > { %13306 = vmatpush3.bf16.msra.mxu1 %v14919_v48  ;;  %v14995_v48 = vld [vmem:[%s15561_s9 + $0x2d8] sm:$0xff]  }
 0x30f   : > { %13882 = vmatpush3.bf16.msra.mxu0 %v14920_v49  ;;  %13307 = vmatprep.subr.bf16.mxu1 %v14922_v50  ;;  %v14997_v49 = vld [vmem:[%s15561_s9 + $0x5d8] sm:$0xff]  }
 0x310   : > { %13883 = vmatprep.subr.bf16.mxu0 %v14924_v51 }
 0x312   : > { %13308 = vmatpush3.bf16.msra.mxu1 %v14922_v50  ;;  %v14987_v50 = vld [vmem:[%s16931_s1 + $0x5d8] sm:$0xff]  }
 0x313   : > { %13884 = vmatpush3.bf16.msra.mxu0 %v14924_v51  ;;  %13309 = vmatprep.subr.bf16.mxu1 %v14927_v52  ;;  %v14988_v51 = vld [vmem:[%s16931_s1 + $0xbd8] sm:$0xff]  }
 0x314   : > { %13885 = vmatprep.subr.bf16.mxu0 %v14928_v53 }
 0x316   : > { %13310 = vmatpush3.bf16.msra.mxu1 %v14927_v52  ;;  %v15001_v52 = vld [vmem:[%s15561_s9 + $0x2e0] sm:$0xff]  }
 0x317   : > { %13886 = vmatpush3.bf16.msra.mxu0 %v14928_v53  ;;  %13319 = vmatprep.subr.bf16.mxu1 %v14930_v54  ;;  %v15002_v53 = vld [vmem:[%s15561_s9 + $0x5e0] sm:$0xff]  }
 0x318   : > { %13895 = vmatprep.subr.bf16.mxu0 %v14932_v55 }
 0x319   : > { %13312 = vmatmul.mubr.bf16.vlgmr.msra.gmra.mrb[0].mxu1 %v14933_v56  ;;  %v14991_v56 = vld [vmem:[%s16931_s1 + $0x5e8] sm:$0xff]  }
 0x31a   : > { %13320 = vmatpush3.bf16.msra.mxu1 %v14930_v54  ;;  %13888 = vmatmul.mubr.bf16.vlgmr.msra.gmra.mrb[0].mxu0 %v14934_v57  ;;  %v14989_v54 = vld [vmem:[%s16931_s1 + $0x5e0] sm:$0xff]   ;;  %v14992_v57 = vld [vmem:[%s16931_s1 + $0xbe8] sm:$0xff]  }
 0x31b   : > { %13896 = vmatpush3.bf16.msra.mxu0 %v14932_v55  ;;  %13321 = vmatprep.subr.bf16.mxu1 %v14935_v58  ;;  %v14990_v55 = vld [vmem:[%s16931_s1 + $0xbe0] sm:$0xff]  }
 0x31c   : > { %13897 = vmatprep.subr.bf16.mxu0 %v14936_v59  ;;  %13315 = vmatprep.mubr.bf16.mxu1 %v14945_v60  ;;  %v14999_v60 = vld [vmem:[%s16931_s1 + $0x5f8] sm:$0xff]  }
 0x31d   : > { %13891 = vmatprep.mubr.bf16.mxu0 %v14947_v61  ;;  %v15000_v61 = vld [vmem:[%s16931_s1 + $0xbf8] sm:$0xff]  }
 0x31e   : > { %13322 = vmatpush3.bf16.msra.mxu1 %v14935_v58  ;;  %v14996_v58 = vld [vmem:[%s16931_s1 + $0x5f0] sm:$0xff]  }
 0x31f   : > { %13898 = vmatpush3.bf16.msra.mxu0 %v14936_v59  ;;  %13323 = vmatprep.subr.bf16.mxu1 %v14937_v62  ;;  %v14998_v59 = vld [vmem:[%s16931_s1 + $0xbf0] sm:$0xff]  }
 0x320   : > { %13899 = vmatprep.subr.bf16.mxu0 %v14938_v63 }
 0x321   : > { %13316 = vmatmul.mubr.bf16.gmra.mrb[4].mxu1 %v14949_v0  ;;  %v15004_v0 = vld [vmem:[%s15561_s9 + $0x5e8] sm:$0xff]  }
 0x322   : > { %13324 = vmatpush3.bf16.msra.mxu1 %v14937_v62  ;;  %13892 = vmatmul.mubr.bf16.gmra.mrb[4].mxu0 %v14950_v1  ;;  %v15005_v62 = vld [vmem:[%s16931_s1 + $0xc00] sm:$0xff]   ;;  %v15006_v1 = vld [vmem:[%s16931_s1 + $0xc08] sm:$0xff]  }
 0x323   : > { %13900 = vmatpush3.bf16.msra.mxu0 %v14938_v63  ;;  %13325 = vmatprep.subr.bf16.mxu1 %v14939_v2  ;;  %v15003_v63 = vld [vmem:[%s15561_s9 + $0x2e8] sm:$0xff]  }
 0x324   : > { %13901 = vmatprep.subr.bf16.mxu0 %v14940_v3  ;;  %13335 = vmatprep.mubr.bf16.mxu1 %v14953_v4  ;;  %v15011_v4 = vld [vmem:[%s16931_s1 + $0xc10] sm:$0xff]  }
 0x325   : > { %13911 = vmatprep.mubr.bf16.mxu0 %v14955_v5  ;;  %v15009_v5 = vld [vmem:[%s15561_s9 + $0x2f8] sm:$0xff]  }
 0x326   : > { %13326 = vmatpush3.bf16.msra.mxu1 %v14939_v2  ;;  %v15007_v2 = vld [vmem:[%s15561_s9 + $0x2f0] sm:$0xff]  }
 0x327   : > { %13902 = vmatpush3.bf16.msra.mxu0 %v14940_v3  ;;  %13327 = vmatprep.subr.bf16.mxu1 %v14941_v6  ;;  %v15008_v3 = vld [vmem:[%s15561_s9 + $0x5f0] sm:$0xff]  }
 0x328   : > { %13903 = vmatprep.subr.bf16.mxu0 %v14942_v7 }
 0x32a   : > { %13328 = vmatpush3.bf16.msra.mxu1 %v14941_v6  ;;  %v15010_v6 = vld [vmem:[%s15561_s9 + $0x5f8] sm:$0xff]  }
 0x32b   : > { %13904 = vmatpush3.bf16.msra.mxu0 %v14942_v7  ;;  %13329 = vmatprep.subr.bf16.mxu1 %v14943_v8  ;;  %v15012_v7 = vld [vmem:[%s16931_s1 + $0xc18] sm:$0xff]  }
 0x32c   : > { %13905 = vmatprep.subr.bf16.mxu0 %v14944_v9 }
 0x32e   : > { %13330 = vmatpush3.bf16.msra.mxu1 %v14943_v8  ;;  %v15017_v8 = vld [vmem:[%s15561_s9 + $0x600] sm:$0xff]  }
 0x32f   : > { %13906 = vmatpush3.bf16.msra.mxu0 %v14944_v9  ;;  %13331 = vmatprep.subr.bf16.mxu1 %v14946_v10  ;;  %v15018_v9 = vld [vmem:[%s15561_s9 + $0x610] sm:$0xff]  }
 0x330   : > { %13907 = vmatprep.subr.bf16.mxu0 %v14948_v11 }
 0x332   : > { %13332 = vmatpush3.bf16.msra.mxu1 %v14946_v10  ;;  %v15013_v10 = vld [vmem:[%s16931_s1 + $0xc20] sm:$0xff]  }
 0x333   : > { %13908 = vmatpush3.bf16.msra.mxu0 %v14948_v11  ;;  %13333 = vmatprep.subr.bf16.mxu1 %v14951_v12  ;;  %v15014_v11 = vld [vmem:[%s16931_s1 + $0xc28] sm:$0xff]  }
 0x334   : > { %13909 = vmatprep.subr.bf16.mxu0 %v14952_v13 }
 0x336   : > { %13334 = vmatpush3.bf16.msra.mxu1 %v14951_v12  ;;  %v15015_v12 = vld [vmem:[%s16931_s1 + $0xc30] sm:$0xff]  }
 0x337   : > { %13910 = vmatpush3.bf16.msra.mxu0 %v14952_v13  ;;  %13343 = vmatprep.subr.bf16.mxu1 %v14954_v14  ;;  %v15016_v13 = vld [vmem:[%s16931_s1 + $0xc38] sm:$0xff]  }
 0x338   : > { %13919 = vmatprep.subr.bf16.mxu0 %v14956_v15 }
 0x339   : > { %13336 = vmatmul.mubr.bf16.vlgmr.msra.gmra.mrb[0].mxu1 %v14957_v16 }
 0x33a   : > { %13344 = vmatpush3.bf16.msra.mxu1 %v14954_v14  ;;  %13912 = vmatmul.mubr.bf16.vlgmr.msra.gmra.mrb[0].mxu0 %v14958_v17  ;;  %v15020_v14 = vld [vmem:[%s15561_s9 + $0x618] sm:$0xff]  }
 0x33b   : > { %13920 = vmatpush3.bf16.msra.mxu0 %v14956_v15  ;;  %13345 = vmatprep.subr.bf16.mxu1 %v14959_v18  ;;  %v15019_v15 = vld [vmem:[%s15561_s9 + $0x608] sm:$0xff]   ;;  %s10441_s9 = sshll.u32 %s15051_s17, 3 }
 0x33c   : > { %13921 = vmatprep.subr.bf16.mxu0 %v14960_v19  ;;  %13339 = vmatprep.mubr.bf16.mxu1 %v14969_v20  ;;  %p1863_p9 = scmp.lt.s32.totalorder %s10441_s9, 15 }
 0x33d   : > { %13915 = vmatprep.mubr.bf16.mxu0 %v14971_v21 }
 0x33e   : > { %13346 = vmatpush3.bf16.msra.mxu1 %v14959_v18  ;;  %s16942_s9 = smov (!%p1863_p9, %s10441_s9), 15 }
 0x33f   : > { %13922 = vmatpush3.bf16.msra.mxu0 %v14960_v19  ;;  %13347 = vmatprep.subr.bf16.mxu1 %v14961_v22  ;;  %s10442_s17 = sshll.u32 %s16942_s9, 2 }
 0x340   : > { %13923 = vmatprep.subr.bf16.mxu0 %v14962_v23  ;;  %s1869_s25 = scalar_lea.vmem %s16934_s4, %s10442_s17 }
 0x341   : > { %13340 = vmatmul.mubr.bf16.gmra.mrb[4].mxu1 %v14973_v24 }
 0x342   : > { %13348 = vmatpush3.bf16.msra.mxu1 %v14961_v22  ;;  %13916 = vmatmul.mubr.bf16.gmra.mrb[4].mxu0 %v14974_v25 }
 0x343   : > { %13924 = vmatpush3.bf16.msra.mxu0 %v14962_v23  ;;  %13349 = vmatprep.subr.bf16.mxu1 %v14963_v26 }
 0x344   : > { %13925 = vmatprep.subr.bf16.mxu0 %v14964_v27  ;;  %13359 = vmatprep.mubr.bf16.mxu1 %v14977_v28 }
 0x345   : > { %13935 = vmatprep.mubr.bf16.mxu0 %v14979_v29 }
 0x346   : > { %13350 = vmatpush3.bf16.msra.mxu1 %v14963_v26 }
 0x347   : > { %13926 = vmatpush3.bf16.msra.mxu0 %v14964_v27  ;;  %13351 = vmatprep.subr.bf16.mxu1 %v14965_v30 }
 0x348   : > { %13927 = vmatprep.subr.bf16.mxu0 %v14966_v31 }
 0x34a   : > { %13352 = vmatpush3.bf16.msra.mxu1 %v14965_v30 }
 0x34b   : > { %13928 = vmatpush3.bf16.msra.mxu0 %v14966_v31  ;;  %13353 = vmatprep.subr.bf16.mxu1 %v14967_v32 }
 0x34c   : > { %13929 = vmatprep.subr.bf16.mxu0 %v14968_v33 }
 0x34e   : > { %13354 = vmatpush3.bf16.msra.mxu1 %v14967_v32  ;;  %v12183_v32 = vld [vmem:[%s16932_s2] ss:$0 sm:$0xff] }
 0x34f   : > { %13930 = vmatpush3.bf16.msra.mxu0 %v14968_v33  ;;  %13355 = vmatprep.subr.bf16.mxu1 %v14970_v34 }
 0x350   : > { %13931 = vmatprep.subr.bf16.mxu0 %v14972_v35 }
 0x352   : > { %13356 = vmatpush3.bf16.msra.mxu1 %v14970_v34 }
 0x353   : > { %13932 = vmatpush3.bf16.msra.mxu0 %v14972_v35  ;;  %13357 = vmatprep.subr.bf16.mxu1 %v14975_v36 }
 0x354   : > { %13933 = vmatprep.subr.bf16.mxu0 %v14976_v37 }
 0x356   : > { %13358 = vmatpush3.bf16.msra.mxu1 %v14975_v36 }
 0x357   : > { %13934 = vmatpush3.bf16.msra.mxu0 %v14976_v37  ;;  %13367 = vmatprep.subr.bf16.mxu1 %v14978_v38 }
 0x358   : > { %13943 = vmatprep.subr.bf16.mxu0 %v14980_v39 }
 0x359   : > { %13360 = vmatmul.mubr.bf16.vlgmr.msra.gmra.mrb[0].mxu1 %v14981_v40 }
 0x35a   : > { %13368 = vmatpush3.bf16.msra.mxu1 %v14978_v38  ;;  %13936 = vmatmul.mubr.bf16.vlgmr.msra.gmra.mrb[0].mxu0 %v14982_v41  ;;  %v12184_v38 = vld [vmem:[%s16933_s3] ss:$0 sm:$0xff] }
 0x35b   : > { %13944 = vmatpush3.bf16.msra.mxu0 %v14980_v39  ;;  %13369 = vmatprep.subr.bf16.mxu1 %v14983_v42 }
 0x35c   : > { %13945 = vmatprep.subr.bf16.mxu0 %v14984_v43  ;;  %13363 = vmatprep.mubr.bf16.mxu1 %v14993_v44 }
 0x35d   : > { %13939 = vmatprep.mubr.bf16.mxu0 %v14994_v45 }
 0x35e   : > { %13370 = vmatpush3.bf16.msra.mxu1 %v14983_v42 }
 0x35f   : > { %13946 = vmatpush3.bf16.msra.mxu0 %v14984_v43  ;;  %13371 = vmatprep.subr.bf16.mxu1 %v14985_v46 }
 0x360   : > { %13947 = vmatprep.subr.bf16.mxu0 %v14986_v47 }
 0x361   : > { %13364 = vmatmul.mubr.bf16.gmra.mrb[4].mxu1 %v14995_v48 }
 0x362   : > { %13372 = vmatpush3.bf16.msra.mxu1 %v14985_v46  ;;  %13940 = vmatmul.mubr.bf16.gmra.mrb[4].mxu0 %v14997_v49 }
 0x363   : > { %13948 = vmatpush3.bf16.msra.mxu0 %v14986_v47  ;;  %13373 = vmatprep.subr.bf16.mxu1 %v14987_v50 }
 0x364   : > { %13949 = vmatprep.subr.bf16.mxu0 %v14988_v51  ;;  %13383 = vmatprep.mubr.bf16.mxu1 %v15001_v52 }
 0x365   : > { %13959 = vmatprep.mubr.bf16.mxu0 %v15002_v53 }
 0x366   : > { %13374 = vmatpush3.bf16.msra.mxu1 %v14987_v50 }
 0x367   : > { %13950 = vmatpush3.bf16.msra.mxu0 %v14988_v51  ;;  %13375 = vmatprep.subr.bf16.mxu1 %v14989_v54 }
 0x368   : > { %13951 = vmatprep.subr.bf16.mxu0 %v14990_v55 }
 0x36a   : > { %13376 = vmatpush3.bf16.msra.mxu1 %v14989_v54 }
 0x36b   : > { %13952 = vmatpush3.bf16.msra.mxu0 %v14990_v55  ;;  %13377 = vmatprep.subr.bf16.mxu1 %v14991_v56 }
 0x36c   : > { %13953 = vmatprep.subr.bf16.mxu0 %v14992_v57 }
 0x36e   : > { %13378 = vmatpush3.bf16.msra.mxu1 %v14991_v56 }
 0x36f   : > { %13954 = vmatpush3.bf16.msra.mxu0 %v14992_v57  ;;  %13379 = vmatprep.subr.bf16.mxu1 %v14996_v58 }
 0x370   : > { %13955 = vmatprep.subr.bf16.mxu0 %v14998_v59 }
 0x372   : > { %13380 = vmatpush3.bf16.msra.mxu1 %v14996_v58 }
 0x373   : > { %13956 = vmatpush3.bf16.msra.mxu0 %v14998_v59  ;;  %13381 = vmatprep.subr.bf16.mxu1 %v14999_v60 }
 0x374   : > { %13957 = vmatprep.subr.bf16.mxu0 %v15000_v61 }
 0x376   : > { %13382 = vmatpush3.bf16.msra.mxu1 %v14999_v60 }
 0x377   : > { %13958 = vmatpush3.bf16.msra.mxu0 %v15000_v61  ;;  %13991 = vmatprep.subr.bf16.mxu1 %v15005_v62 }
 0x378   : > { %13967 = vmatprep.subr.bf16.mxu0 %v15005_v62 }
 0x379   : > { %13384 = vmatmul.mubr.bf16.vlgmr.msra.gmra.mrb[0].mxu1 %v15003_v63 }
 0x37a   : > { %13960 = vmatmul.mubr.bf16.vlgmr.msra.gmra.mrb[0].mxu0 %v15004_v0  ;;  %13999 = vmatpush3.bf16.msra.mxu1 %v15005_v62 }
 0x37b   : > { %13968 = vmatpush3.bf16.msra.mxu0 %v15005_v62  ;;  %13992 = vmatprep.subr.bf16.mxu1 %v15006_v1 }
 0x37c   : > { %13969 = vmatprep.subr.bf16.mxu0 %v15006_v1  ;;  %13387 = vmatprep.mubr.bf16.mxu1 %v15007_v2 }
 0x37d   : > { %13963 = vmatprep.mubr.bf16.mxu0 %v15008_v3 }
 0x37e   : > { %14000 = vmatpush3.bf16.msra.mxu1 %v15006_v1 }
 0x37f   : > { %13970 = vmatpush3.bf16.msra.mxu0 %v15006_v1  ;;  %13993 = vmatprep.subr.bf16.mxu1 %v15011_v4 }
 0x380   : > { %13971 = vmatprep.subr.bf16.mxu0 %v15011_v4 }
 0x381   : > { %13388 = vmatmul.mubr.bf16.gmra.mrb[4].mxu1 %v15009_v5 }
 0x382   : > { %13964 = vmatmul.mubr.bf16.gmra.mrb[4].mxu0 %v15010_v6  ;;  %14001 = vmatpush3.bf16.msra.mxu1 %v15011_v4 }
 0x383   : > { %13972 = vmatpush3.bf16.msra.mxu0 %v15011_v4  ;;  %13994 = vmatprep.subr.bf16.mxu1 %v15012_v7 }
 0x384   : > { %13973 = vmatprep.subr.bf16.mxu0 %v15012_v7  ;;  %13983 = vmatprep.mubr.bf16.mxu0 %v15017_v8 }
 0x385   : > { %13987 = vmatprep.mubr.bf16.mxu1 %v15018_v9 }
 0x386   : > { %14002 = vmatpush3.bf16.msra.mxu1 %v15012_v7 }
 0x387   : > { %13974 = vmatpush3.bf16.msra.mxu0 %v15012_v7  ;;  %13995 = vmatprep.subr.bf16.mxu1 %v15013_v10 }
 0x388   : > { %13975 = vmatprep.subr.bf16.mxu0 %v15013_v10 }
 0x38a   : > { %14003 = vmatpush3.bf16.msra.mxu1 %v15013_v10 }
 0x38b   : > { %13976 = vmatpush3.bf16.msra.mxu0 %v15013_v10  ;;  %13996 = vmatprep.subr.bf16.mxu1 %v15014_v11 }
 0x38c   : > { %13977 = vmatprep.subr.bf16.mxu0 %v15014_v11 }
 0x38e   : > { %14004 = vmatpush3.bf16.msra.mxu1 %v15014_v11 }
 0x38f   : > { %13978 = vmatpush3.bf16.msra.mxu0 %v15014_v11  ;;  %13997 = vmatprep.subr.bf16.mxu1 %v15015_v12 }
 0x390   : > { %13979 = vmatprep.subr.bf16.mxu0 %v15015_v12 }
 0x392   : > { %14005 = vmatpush3.bf16.msra.mxu1 %v15015_v12 }
 0x393   : > { %13980 = vmatpush3.bf16.msra.mxu0 %v15015_v12  ;;  %13998 = vmatprep.subr.bf16.mxu1 %v15016_v13 }
 0x394   : > { %13981 = vmatprep.subr.bf16.mxu0 %v15016_v13 }
 0x396   : > { %14006 = vmatpush3.bf16.msra.mxu1 %v15016_v13 }
 0x397   : > { %13982 = vmatpush3.bf16.msra.mxu0 %v15016_v13 }
 0x399   : > { %13988 = vmatmul.mubr.bf16.vlgmr.msra.gmra.mrb[8].mxu1 %v15020_v14 }
 0x39a   : > { %13984 = vmatmul.mubr.bf16.vlgmr.msra.gmra.mrb[0].mxu0 %v15019_v15 }
 0x44c   : > { %v13385_v16 = vpop.f32.mrb[0].mxu1 }
 0x44d   : > { %v5919_v17 = vpop.f32.mrb[1].mxu1 }
 0x44e   : > { %v13386_v18 = vpop.f32.mrb[2].mxu1 }
 0x44f   : > { %v5922_v19 = vpop.f32.mrb[3].mxu1 }
 0x454   : > { %v13389_v20 = vpop.f32.mrb[4].mxu1 }
 0x455   : > { %v13965_v21 = vpop.f32.mrb[4].mxu0  ;;  %v5935_v22 = vpop.f32.mrb[5].mxu1 }
 0x456   : > { %v14011_v23 = vadd.f32 %v13965_v21, %v13389_v20  ;;  %v10039_v24 = vpop.f32.mrb[5].mxu0  ;;  %v13390_v25 = vpop.f32.mrb[6].mxu1 }
 0x457   : > { %v14013_v26 = vadd.f32 %v10039_v24, %v5935_v22  ;;  %v13966_v27 = vpop.f32.mrb[6].mxu0  ;;  %v5938_v28 = vpop.f32.mrb[7].mxu1 }
 0x458   : > { %v14015_v29 = vadd.f32 %v13966_v27, %v13390_v25  ;;  %v10042_v30 = vpop.f32.mrb[7].mxu0 }
 0x459   : > { %v14017_v31 = vadd.f32 %v10042_v30, %v5938_v28 }
 0x46c   : > { %v13989_v33 = vpop.f32.mrb[8].mxu1 }
 0x46d   : > { %v13985_v34 = vpop.f32.mrb[0].mxu0  ;;  %v14012_v35 = vadd.f32 %v14011_v23, %v13989_v33  ;;  %v10210_v36 = vpop.f32.mrb[9].mxu1 }
 0x46e   : > { %v14007_v37 = vadd.f32 %v13985_v34, %v13385_v16  ;;  %v10194_v39 = vpop.f32.mrb[1].mxu0  ;;  %v14014_v40 = vadd.f32 %v14013_v26, %v10210_v36  ;;  %v13990_v41 = vpop.f32.mrb[10].mxu1 }
 0x46f   : > { %v10246_v42 = vmul.f32 %v14012_v35, %v12183_v32  ;;  %v14008_v43 = vadd.f32 %v10194_v39, %v5919_v17  ;;  %v13986_v44 = vpop.f32.mrb[2].mxu0  ;;  %v14016_v45 = vadd.f32 %v14015_v29, %v13990_v41  ;;  %v10213_v46 = vpop.f32.mrb[11].mxu1 }
 0x470   : > { %v10242_v47 = vmul.f32 %v14007_v37, %v12183_v32  ;;  %v10244_v48 = vmul.f32 %v14014_v40, %v12183_v32  ;;  %v14009_v49 = vadd.f32 %v13986_v44, %v13386_v18  ;;  %v10197_v50 = vpop.f32.mrb[3].mxu0  ;;  %v14018_v51 = vadd.f32 %v14017_v31, %v10213_v46 }
 0x471   : > { %v10261_v52 = vadd.f32 %v12184_v38, %v10246_v42  ;;  %v10240_v53 = vmul.f32 %v14008_v43, %v12183_v32  ;;  %v10247_v54 = vmul.f32 %v14016_v45, %v12183_v32  ;;  %v14010_v55 = vadd.f32 %v10197_v50, %v5922_v19 }
 0x472   : > { %v10257_v56 = vadd.f32 %v12184_v38, %v10242_v47  ;;  %v10259_v57 = vadd.f32 %v12184_v38, %v10244_v48  ;;  %v10243_v58 = vmul.f32 %v14009_v49, %v12183_v32  ;;  %v10245_v59 = vmul.f32 %v14018_v51, %v12183_v32 }
 0x473   : > { %v10255_v60 = vadd.f32 %v12184_v38, %v10240_v53  ;;  %v10262_v61 = vadd.f32 %v12184_v38, %v10247_v54  ;;  %v10241_v62 = vmul.f32 %v14010_v55, %v12183_v32  ;;  %v10269_v1 = vmax.f32 %v10261_v52, 0.0 }
 0x474   : > { %v10258_v63 = vadd.f32 %v12184_v38, %v10243_v58  ;;  %v10260_v0 = vadd.f32 %v12184_v38, %v10245_v59  ;;  %v10265_v4 = vmax.f32 %v10257_v56, 0.0  ;;  %v10267_v5 = vmax.f32 %v10259_v57, 0.0 }
 0x475   : > { %v10270_v2 = vmax.f32 %v10262_v61, 0.0  ;;  %v10256_v3 = vadd.f32 %v12184_v38, %v10241_v62  ;;  %v10263_v8 = vmax.f32 %v10255_v60, 0.0 }
 0x476   : > { %v10266_v6 = vmax.f32 %v10258_v63, 0.0  ;;  %v10268_v7 = vmax.f32 %v10260_v0, 0.0 }
 0x477   : > { %v12222_v9 = vpack.c.bf16 %v10270_v2, %v10269_v1  ;;  %v10264_v10 = vmax.f32 %v10256_v3, 0.0 }
 0x478   : > { %v12212_v11 = vpack.c.bf16 %v10266_v6, %v10265_v4  ;;  %v12217_v12 = vpack.c.bf16 %v10268_v7, %v10267_v5 }
 0x479   : > { %12226 = vst [vmem:[%s1869_s25 + $0x18] sm:$0xff] %v12222_v9   ;;  %v12207_v13 = vpack.c.bf16 %v10264_v10, %v10263_v8 }
 0x47a   : > { %12224 = vst [vmem:[%s1869_s25 + $0x8] sm:$0xff] %v12212_v11   ;;  %12225 = vst [vmem:[%s1869_s25 + $0x10] sm:$0xff] %v12217_v12  }
 0x47b   : > { %12208 = vst [vmem:[%s1869_s25] sm:$0xff] %v12207_v13  }
 0x47c PF: > { %s14_s19 = sadd.s32 1, %s15059_s19   ;;  %s16935_s15 = smov %s15047_s16 }
 0x47d   : > { %p11_p10 = scmp.ge.s32.totalorder %s14_s19, 4   ;;  %s16936_s16 = smov %s15121_s23 }
 0x47e   : > { %s16937_s17 = smov %s15055_s18  ;;  %s16938_s18 = smov %s16940_s20 }
 0x47f   :  { %13 = sbr.rel (!%p11_p10) target bundleno = 3 (0x3), region = 217 }

</bundles_post_ra>
